<compile_context>
chip_gen: v7x
topology: tpu7x:2x2x1
jax: 0.10.0
libtpu: 0.0.40
codegen_flags: <defaults>
</compile_context>

<pallas_src>
import functools
import math

import jax
import jax.numpy as jnp
from jax.experimental import pallas as pl
from jax.experimental.pallas import tpu as pltpu


# --------------------------------------------------------------------------
# Fully fused forward kernel (one grid step per batch-block).
# --------------------------------------------------------------------------
def _fused_kernel(x_ref, w1_ref, b1_ref, w2_ref, b2_ref,
                  ln1w_ref, ln1b_ref,
                  wq_ref, wk_ref, wv_ref, bq_ref, bk_ref, bv_ref,
                  wo_ref, bo_ref,
                  ln2w_ref, ln2b_ref,
                  wm1_ref, bm1_ref, wm2_ref, bm2_ref,
                  w3_ref, b3_ref,
                  o_ref,
                  halo1_ref, halo2_ref, halo3_ref,
                  *, num_heads):
    Bb, H, W, _ = x_ref.shape
    HW = H * W
    M = Bb * HW
    eps = 1e-5

    def conv3x3(halo_ref, x_bhwc, w_ref_, b_ref_):
        # Shift-and-accumulate 3x3 conv (padding=1): write a zero-haloed copy
        # of the input into VMEM scratch once, then read the nine shifted
        # windows as static slices and fold each straight into the
        # accumulator with a small-K matmul.  No im2col slab, no concats.
        cin = x_bhwc.shape[-1]
        halo_ref[...] = jnp.zeros(halo_ref.shape, halo_ref.dtype)
        halo_ref[:, 1:H + 1, 1:W + 1, :] = x_bhwc
        acc = None
        for t in range(9):                      # t = kh*3 + kw, matches weight flatten
            dy, dx = t // 3, t % 3
            tap = halo_ref[:, dy:dy + H, dx:dx + W, :].reshape(M, cin)
            part = jnp.dot(tap, w_ref_[t], preferred_element_type=jnp.float32)
            acc = part if acc is None else acc + part
        return acc + b_ref_[...]

    def layernorm(v, g, b):
        mu = jnp.mean(v, axis=-1, keepdims=True)
        var = jnp.mean((v - mu) ** 2, axis=-1, keepdims=True)
        return (v - mu) * jax.lax.rsqrt(var + eps) * g + b

    dn_t = (((1,), (1,)), ((), ()))             # contract last dims (A @ B^T)

    # ---- conv1 + ReLU, conv2 + ReLU ----
    a1 = jnp.maximum(conv3x3(halo1_ref, x_ref[...], w1_ref, b1_ref), 0.0)
    c1 = w1_ref.shape[-1]
    a2 = jnp.maximum(conv3x3(halo2_ref, a1.reshape(Bb, H, W, c1),
                             w2_ref, b2_ref), 0.0)          # (M, D) token rows

    # ---- TransformerFusion: x += MHA(LN1(x)); x += MLP(LN2(x)) ----
    D = w2_ref.shape[-1]
    dh = D // num_heads
    scale = 1.0 / math.sqrt(dh)

    xt = a2
    xn = layernorm(xt, ln1w_ref[...], ln1b_ref[...])
    batch_out = []
    for b in range(Bb):
        xnb = xn[b * HW:(b + 1) * HW, :]                    # sublane slice (mult of 8)
        acc_b = jnp.zeros((HW, D), jnp.float32)
        for h in range(num_heads):
            # per-head aligned matmuls; weights pre-split in the wrapper
            qh = jnp.dot(xnb, wq_ref[h],
                         preferred_element_type=jnp.float32) + bq_ref[h]
            kh = jnp.dot(xnb, wk_ref[h],
                         preferred_element_type=jnp.float32) + bk_ref[h]
            vh = jnp.dot(xnb, wv_ref[h],
                         preferred_element_type=jnp.float32) + bv_ref[h]
            s = jax.lax.dot_general(qh, kh, dn_t,
                                    preferred_element_type=jnp.float32) * scale
            s = s - jnp.max(s, axis=-1, keepdims=True)
            p = jnp.exp(s)
            p = p / jnp.sum(p, axis=-1, keepdims=True)
            oh = jnp.dot(p, vh, preferred_element_type=jnp.float32)
            # output projection fused per head (no head concat)
            acc_b = acc_b + jnp.dot(oh, wo_ref[h],
                                    preferred_element_type=jnp.float32)
        batch_out.append(acc_b)
    attn = batch_out[0] if Bb == 1 else jnp.concatenate(batch_out, axis=0)
    xt = xt + attn + bo_ref[...]

    xn2 = layernorm(xt, ln2w_ref[...], ln2b_ref[...])
    h1 = jnp.maximum(jnp.dot(xn2, wm1_ref[...],
                             preferred_element_type=jnp.float32) + bm1_ref[...], 0.0)
    xt = xt + jnp.dot(h1, wm2_ref[...],
                      preferred_element_type=jnp.float32) + bm2_ref[...]

    # ---- conv3 (no ReLU) ----
    a3 = conv3x3(halo3_ref, xt.reshape(Bb, H, W, D), w3_ref, b3_ref)  # (M, Cout)
    if len(o_ref.shape) == 2:
        # (Cout, Bb*HW): one tiny transpose, then a single lane-dense store.
        o_ref[...] = a3.T.astype(o_ref.dtype)
    else:
        # batch-grid path: per-batch (1, Cout, HW) blocks.
        cout = w3_ref.shape[-1]
        o_ref[...] = jnp.transpose(a3.reshape(Bb, HW, cout),
                                   (0, 2, 1)).astype(o_ref.dtype)


# --------------------------------------------------------------------------
# One-time (outside jit) weight re-layout into kernel-ready form.
# --------------------------------------------------------------------------
def prepare_params(params, num_heads=4):
    D = params["ln1_w"].shape[0]
    dh = D // num_heads

    def conv_taps(w):               # (3, 3, Cin, Cout) -> (9, Cin, Cout)
        return w.reshape(9, w.shape[2], w.shape[3])

    wqkv = params["in_proj_w_t"]    # (D, 3D), columns ordered Q | K | V
    wq, wk, wv = wqkv[:, :D], wqkv[:, D:2 * D], wqkv[:, 2 * D:]
    bqkv = params["in_proj_b"]
    bq, bk, bv = bqkv[:D], bqkv[D:2 * D], bqkv[2 * D:]

    def per_head_w(w):              # (D, D) -> (num_heads, D, dh)
        return w.reshape(D, num_heads, dh).transpose(1, 0, 2)

    def per_head_b(b):              # (D,) -> (num_heads, 1, dh)
        return b.reshape(num_heads, 1, dh)

    hidden = params["mlp_w1"].shape[-1]
    cout = params["conv3_w"].shape[-1]
    return {
        "w1": conv_taps(params["conv1_w"]), "b1": params["conv1_b"].reshape(1, -1),
        "w2": conv_taps(params["conv2_w"]), "b2": params["conv2_b"].reshape(1, -1),
        "ln1_w": params["ln1_w"].reshape(1, D), "ln1_b": params["ln1_b"].reshape(1, D),
        "wq": per_head_w(wq), "wk": per_head_w(wk), "wv": per_head_w(wv),
        "bq": per_head_b(bq), "bk": per_head_b(bk), "bv": per_head_b(bv),
        "wo": params["out_proj_w_t"].reshape(num_heads, dh, D),
        "bo": params["out_proj_b"].reshape(1, D),
        "ln2_w": params["ln2_w"].reshape(1, D), "ln2_b": params["ln2_b"].reshape(1, D),
        "wm1": params["mlp_w1"], "bm1": params["mlp_b1"].reshape(1, hidden),
        "wm2": params["mlp_w2"], "bm2": params["mlp_b2"].reshape(1, D),
        "w3": conv_taps(params["conv3_w"]), "b3": params["conv3_b"].reshape(1, cout),
    }


# --------------------------------------------------------------------------
# Wrapper: one pallas_call; NCHW rearrange of the tiny result in the wrapper.
# --------------------------------------------------------------------------
def context_aware_transformer(x_nchw, prep, *, num_heads=4, batch_grid=False):
    B, cin, H, W = x_nchw.shape
    HW = H * W
    c1 = prep["w1"].shape[-1]
    D = prep["w2"].shape[-1]
    cout = prep["w3"].shape[-1]

    x_nhwc = jnp.transpose(x_nchw, (0, 2, 3, 1))

    n_blocks = B if batch_grid else 1
    Bb = B // n_blocks

    weight_args = (prep["w1"], prep["b1"], prep["w2"], prep["b2"],
                   prep["ln1_w"], prep["ln1_b"],
                   prep["wq"], prep["wk"], prep["wv"],
                   prep["bq"], prep["bk"], prep["bv"],
                   prep["wo"], prep["bo"],
                   prep["ln2_w"], prep["ln2_b"],
                   prep["wm1"], prep["bm1"], prep["wm2"], prep["bm2"],
                   prep["w3"], prep["b3"])

    in_specs = [pl.BlockSpec((Bb, H, W, cin), lambda i: (i, 0, 0, 0))]
    for a in weight_args:  # weights replicated: same block every step (no re-DMA)
        in_specs.append(pl.BlockSpec(a.shape, lambda i, _nd=a.ndim: (0,) * _nd))

    if batch_grid:
        out_shape = jax.ShapeDtypeStruct((B, cout, HW), jnp.float32)
        out_specs = pl.BlockSpec((1, cout, HW), lambda i: (i, 0, 0))
    else:
        out_shape = jax.ShapeDtypeStruct((cout, B * HW), jnp.float32)
        out_specs = pl.BlockSpec((cout, B * HW), lambda i: (0, i))

    kern = functools.partial(_fused_kernel, num_heads=num_heads)
    out = pl.pallas_call(
        kern,
        grid=(n_blocks,),
        in_specs=in_specs,
        out_specs=out_specs,
        out_shape=out_shape,
        scratch_shapes=[
            pltpu.VMEM((Bb, H + 2, W + 2, cin), jnp.float32),
            pltpu.VMEM((Bb, H + 2, W + 2, c1), jnp.float32),
            pltpu.VMEM((Bb, H + 2, W + 2, D), jnp.float32),
        ],
        compiler_params=pltpu.CompilerParams(
            dimension_semantics=("parallel",)),
    )(x_nhwc, *weight_args)

    if batch_grid:
        return out.reshape(B, cout, H, W)
    return out.reshape(cout, B, HW).transpose(1, 0, 2).reshape(B, cout, H, W)


def _use_batch_grid_default():
    # v7x has 2 TensorCores per chip -> split batch across them.  On v5e/v6e
    # (1 TC) the extra grid step is pure overhead, so keep a single step.
    try:
        kind = jax.devices()[0].device_kind.lower()
        return "v7" in kind
    except Exception:
        return False


# --------------------------------------------------------------------------
# Parameter init (PyTorch-equivalent semantics; linear weights pre-transposed).
# --------------------------------------------------------------------------
def init_params(key, in_channels=3, dim=128, mlp_ratio=4.0):
    ks = jax.random.split(key, 12)
    hidden = int(dim * mlp_ratio)

    def w(k, shape, fan_in):
        return jax.random.normal(k, shape, jnp.float32) / math.sqrt(fan_in)

    return {
        # conv weights stored (kh, kw, Cin, Cout)
        "conv1_w": w(ks[0], (3, 3, in_channels, 64), 9 * in_channels),
        "conv1_b": jnp.zeros((64,), jnp.float32),
        "conv2_w": w(ks[1], (3, 3, 64, dim), 9 * 64),
        "conv2_b": jnp.zeros((dim,), jnp.float32),
        "conv3_w": w(ks[2], (3, 3, dim, in_channels), 9 * dim),
        "conv3_b": jnp.zeros((in_channels,), jnp.float32),
        # transformer (linear weights pre-transposed to (in, out))
        "ln1_w": jnp.ones((dim,), jnp.float32),
        "ln1_b": jnp.zeros((dim,), jnp.float32),
        "in_proj_w_t": w(ks[3], (dim, 3 * dim), dim),
        "in_proj_b": jnp.zeros((3 * dim,), jnp.float32),
        "out_proj_w_t": w(ks[4], (dim, dim), dim),
        "out_proj_b": jnp.zeros((dim,), jnp.float32),
        "ln2_w": jnp.ones((dim,), jnp.float32),
        "ln2_b": jnp.zeros((dim,), jnp.float32),
        "mlp_w1": w(ks[5], (dim, hidden), dim),
        "mlp_b1": jnp.zeros((hidden,), jnp.float32),
        "mlp_w2": w(ks[6], (hidden, dim), hidden),
        "mlp_b2": jnp.zeros((dim,), jnp.float32),
    }


# --------------------------------------------------------------------------
# Pure-JAX reference (for correctness validation only).
# --------------------------------------------------------------------------
def reference_forward(x_nchw, params, num_heads=4):
    def conv(x_nhwc, w, b):
        y = jax.lax.conv_general_dilated(
            x_nhwc, w, window_strides=(1, 1), padding="SAME",
            dimension_numbers=("NHWC", "HWIO", "NHWC"))
        return y + b

    def layernorm(v, g, b):
        mu = v.mean(-1, keepdims=True)
        var = ((v - mu) ** 2).mean(-1, keepdims=True)
        return (v - mu) / jnp.sqrt(var + 1e-5) * g + b

    x = jnp.transpose(x_nchw, (0, 2, 3, 1))
    x = jax.nn.relu(conv(x, params["conv1_w"], params["conv1_b"]))
    x = jax.nn.relu(conv(x, params["conv2_w"], params["conv2_b"]))
    B, H, W, D = x.shape
    S = H * W
    dh = D // num_heads
    t = x.reshape(B, S, D)

    xn = layernorm(t, params["ln1_w"], params["ln1_b"])
    qkv = xn @ params["in_proj_w_t"] + params["in_proj_b"]
    q, k, v = jnp.split(qkv, 3, axis=-1)

    def split_heads(a):
        return a.reshape(B, S, num_heads, dh).transpose(0, 2, 1, 3)

    q, k, v = map(split_heads, (q, k, v))
    s = jnp.einsum("bhqd,bhkd->bhqk", q, k) / math.sqrt(dh)
    p = jax.nn.softmax(s, axis=-1)
    o = jnp.einsum("bhqk,bhkd->bhqd", p, v)
    o = o.transpose(0, 2, 1, 3).reshape(B, S, D)
    t = t + (o @ params["out_proj_w_t"] + params["out_proj_b"])

    xn2 = layernorm(t, params["ln2_w"], params["ln2_b"])
    h1 = jax.nn.relu(xn2 @ params["mlp_w1"] + params["mlp_b1"])
    t = t + (h1 @ params["mlp_w2"] + params["mlp_b2"])

    x = t.reshape(B, H, W, D)
    x = conv(x, params["conv3_w"], params["conv3_b"])
    return jnp.transpose(x, (0, 3, 1, 2))


if __name__ == "__main__":
    key = jax.random.PRNGKey(0)
    kx, kp = jax.random.split(key)

    # shapes consistent with the module: B=2, C=3, H=W=8 -> seq=64, dim=128
    x = jax.random.normal(kx, (2, 3, 8, 8), jnp.float32)
    params = init_params(kp, in_channels=3, dim=128)
    prep = prepare_params(params, num_heads=4)          # once, outside jit

    fwd = jax.jit(functools.partial(context_aware_transformer, num_heads=4,
                                    batch_grid=_use_batch_grid_default()))
    out = fwd(x, prep)
    jax.block_until_ready(out)
    assert out.shape == (2, 3, 8, 8) and out.dtype == jnp.float32

    # also exercise the per-batch grid path (v7x megacore layout)
    fwd_grid = jax.jit(functools.partial(context_aware_transformer, num_heads=4,
                                         batch_grid=True))
    out_grid = fwd_grid(x, prep)
    jax.block_until_ready(out_grid)
    assert out_grid.shape == (2, 3, 8, 8)

    ref = reference_forward(x, params, num_heads=4)
    assert jnp.allclose(out, ref, rtol=2e-3, atol=2e-3)
    assert jnp.allclose(out_grid, ref, rtol=2e-3, atol=2e-3)

    print("KERNEL_OK")
</pallas_src>

<mosaic_0001>
module attributes {stable_mosaic.version = 11 : i64} {
  func.func @_fused_kernel(%arg0: i32, %arg1: memref<2x8x8x3xf32, #tpu.memory_space<vmem>>, %arg2: memref<9x3x64xf32, #tpu.memory_space<vmem>>, %arg3: memref<1x64xf32, #tpu.memory_space<vmem>>, %arg4: memref<9x64x128xf32, #tpu.memory_space<vmem>>, %arg5: memref<1x128xf32, #tpu.memory_space<vmem>>, %arg6: memref<1x128xf32, #tpu.memory_space<vmem>>, %arg7: memref<1x128xf32, #tpu.memory_space<vmem>>, %arg8: memref<4x128x32xf32, #tpu.memory_space<vmem>>, %arg9: memref<4x128x32xf32, #tpu.memory_space<vmem>>, %arg10: memref<4x128x32xf32, #tpu.memory_space<vmem>>, %arg11: memref<4x1x32xf32, #tpu.memory_space<vmem>>, %arg12: memref<4x1x32xf32, #tpu.memory_space<vmem>>, %arg13: memref<4x1x32xf32, #tpu.memory_space<vmem>>, %arg14: memref<4x32x128xf32, #tpu.memory_space<vmem>>, %arg15: memref<1x128xf32, #tpu.memory_space<vmem>>, %arg16: memref<1x128xf32, #tpu.memory_space<vmem>>, %arg17: memref<1x128xf32, #tpu.memory_space<vmem>>, %arg18: memref<128x512xf32, #tpu.memory_space<vmem>>, %arg19: memref<1x512xf32, #tpu.memory_space<vmem>>, %arg20: memref<512x128xf32, #tpu.memory_space<vmem>>, %arg21: memref<1x128xf32, #tpu.memory_space<vmem>>, %arg22: memref<9x128x3xf32, #tpu.memory_space<vmem>>, %arg23: memref<1x3xf32, #tpu.memory_space<vmem>>, %arg24: memref<3x128xf32, #tpu.memory_space<vmem>>, %arg25: memref<2x10x10x3xf32, #tpu.memory_space<vmem>>, %arg26: memref<2x10x10x64xf32, #tpu.memory_space<vmem>>, %arg27: memref<2x10x10x128xf32, #tpu.memory_space<vmem>>) attributes {dimension_semantics = [#tpu.dimension_semantics<parallel>], iteration_bounds = array<i64: 1>, scalar_prefetch = 0 : i64, scratch_operands = 3 : i64, tpu.core_type = #tpu.core_type<tc>, window_params = [{transform_indices = @transform_0, window_bounds = array<i64: 2, 8, 8, 3>}, {pipeline_mode = #tpu.pipeline_mode<synchronous>, transform_indices = @transform_1, window_bounds = array<i64: 9, 3, 64>}, {pipeline_mode = #tpu.pipeline_mode<synchronous>, transform_indices = @transform_2, window_bounds = array<i64: 1, 64>}, {pipeline_mode = #tpu.pipeline_mode<synchronous>, transform_indices = @transform_3, window_bounds = array<i64: 9, 64, 128>}, {pipeline_mode = #tpu.pipeline_mode<synchronous>, transform_indices = @transform_4, window_bounds = array<i64: 1, 128>}, {pipeline_mode = #tpu.pipeline_mode<synchronous>, transform_indices = @transform_5, window_bounds = array<i64: 1, 128>}, {pipeline_mode = #tpu.pipeline_mode<synchronous>, transform_indices = @transform_6, window_bounds = array<i64: 1, 128>}, {pipeline_mode = #tpu.pipeline_mode<synchronous>, transform_indices = @transform_7, window_bounds = array<i64: 4, 128, 32>}, {pipeline_mode = #tpu.pipeline_mode<synchronous>, transform_indices = @transform_8, window_bounds = array<i64: 4, 128, 32>}, {pipeline_mode = #tpu.pipeline_mode<synchronous>, transform_indices = @transform_9, window_bounds = array<i64: 4, 128, 32>}, {pipeline_mode = #tpu.pipeline_mode<synchronous>, transform_indices = @transform_10, window_bounds = array<i64: 4, 1, 32>}, {pipeline_mode = #tpu.pipeline_mode<synchronous>, transform_indices = @transform_11, window_bounds = array<i64: 4, 1, 32>}, {pipeline_mode = #tpu.pipeline_mode<synchronous>, transform_indices = @transform_12, window_bounds = array<i64: 4, 1, 32>}, {pipeline_mode = #tpu.pipeline_mode<synchronous>, transform_indices = @transform_13, window_bounds = array<i64: 4, 32, 128>}, {pipeline_mode = #tpu.pipeline_mode<synchronous>, transform_indices = @transform_14, window_bounds = array<i64: 1, 128>}, {pipeline_mode = #tpu.pipeline_mode<synchronous>, transform_indices = @transform_15, window_bounds = array<i64: 1, 128>}, {pipeline_mode = #tpu.pipeline_mode<synchronous>, transform_indices = @transform_16, window_bounds = array<i64: 1, 128>}, {pipeline_mode = #tpu.pipeline_mode<synchronous>, transform_indices = @transform_17, window_bounds = array<i64: 128, 512>}, {pipeline_mode = #tpu.pipeline_mode<synchronous>, transform_indices = @transform_18, window_bounds = array<i64: 1, 512>}, {pipeline_mode = #tpu.pipeline_mode<synchronous>, transform_indices = @transform_19, window_bounds = array<i64: 512, 128>}, {pipeline_mode = #tpu.pipeline_mode<synchronous>, transform_indices = @transform_20, window_bounds = array<i64: 1, 128>}, {pipeline_mode = #tpu.pipeline_mode<synchronous>, transform_indices = @transform_21, window_bounds = array<i64: 9, 128, 3>}, {pipeline_mode = #tpu.pipeline_mode<synchronous>, transform_indices = @transform_22, window_bounds = array<i64: 1, 3>}, {transform_indices = @transform_23, window_bounds = array<i64: 3, 128>}]} {
    %c0 = arith.constant 0 : index
    %c0_0 = arith.constant 0 : index
    %c0_1 = arith.constant 0 : index
    %c0_2 = arith.constant 0 : index
    %0 = vector.load %arg1[%c0, %c0_0, %c0_1, %c0_2] : memref<2x8x8x3xf32, #tpu.memory_space<vmem>>, vector<2x8x8x3xf32>
    %cst = arith.constant 0.000000e+00 : f32
    %1 = vector.broadcast %cst : f32 to vector<2x10x10x3xf32>
    %c0_3 = arith.constant 0 : index
    %c0_4 = arith.constant 0 : index
    %c0_5 = arith.constant 0 : index
    %c0_6 = arith.constant 0 : index
    %2 = vector.load %arg25[%c0_3, %c0_4, %c0_5, %c0_6] : memref<2x10x10x3xf32, #tpu.memory_space<vmem>>, vector<2x10x10x3xf32>
    tpu.vector_store %arg25[%c0_3, %c0_4, %c0_5, %c0_6], %1 {strides = array<i32>} : memref<2x10x10x3xf32, #tpu.memory_space<vmem>>, vector<2x10x10x3xf32>,
    %c0_7 = arith.constant 0 : index
    %c1 = arith.constant 1 : index
    %c1_8 = arith.constant 1 : index
    %c0_9 = arith.constant 0 : index
    %3 = vector.load %arg25[%c0_7, %c1, %c1_8, %c0_9] : memref<2x10x10x3xf32, #tpu.memory_space<vmem>>, vector<2x8x8x3xf32>
    tpu.vector_store %arg25[%c0_7, %c1, %c1_8, %c0_9], %0 {strides = array<i32>} : memref<2x10x10x3xf32, #tpu.memory_space<vmem>>, vector<2x8x8x3xf32>,
    %c0_10 = arith.constant 0 : index
    %c0_11 = arith.constant 0 : index
    %c0_12 = arith.constant 0 : index
    %c0_13 = arith.constant 0 : index
    %4 = vector.load %arg25[%c0_10, %c0_11, %c0_12, %c0_13] : memref<2x10x10x3xf32, #tpu.memory_space<vmem>>, vector<2x8x8x3xf32>
    %5 = vector.shape_cast %4 : vector<2x8x8x3xf32> to vector<128x3xf32>
    %c0_14 = arith.constant 0 : index
    %c0_15 = arith.constant 0 : index
    %c0_16 = arith.constant 0 : index
    %6 = vector.load %arg2[%c0_14, %c0_15, %c0_16] : memref<9x3x64xf32, #tpu.memory_space<vmem>>, vector<1x3x64xf32>
    %7 = vector.shape_cast %6 : vector<1x3x64xf32> to vector<3x64xf32>
    %cst_17 = arith.constant dense<0.000000e+00> : vector<128x64xf32>
    %8 = tpu.matmul %5, %7, %cst_17 {dimension_numbers = #tpu.dot_dimension_numbers<[1], [0], [0], [1], [0, 0, 1, 1], [], []>} : vector<128x3xf32>, vector<3x64xf32>, vector<128x64xf32> -> vector<128x64xf32>
    %c0_18 = arith.constant 0 : index
    %c0_19 = arith.constant 0 : index
    %c1_20 = arith.constant 1 : index
    %c0_21 = arith.constant 0 : index
    %9 = vector.load %arg25[%c0_18, %c0_19, %c1_20, %c0_21] : memref<2x10x10x3xf32, #tpu.memory_space<vmem>>, vector<2x8x8x3xf32>
    %10 = vector.shape_cast %9 : vector<2x8x8x3xf32> to vector<128x3xf32>
    %c1_22 = arith.constant 1 : index
    %c0_23 = arith.constant 0 : index
    %c0_24 = arith.constant 0 : index
    %11 = vector.load %arg2[%c1_22, %c0_23, %c0_24] : memref<9x3x64xf32, #tpu.memory_space<vmem>>, vector<1x3x64xf32>
    %12 = vector.shape_cast %11 : vector<1x3x64xf32> to vector<3x64xf32>
    %cst_25 = arith.constant dense<0.000000e+00> : vector<128x64xf32>
    %13 = tpu.matmul %10, %12, %cst_25 {dimension_numbers = #tpu.dot_dimension_numbers<[1], [0], [0], [1], [0, 0, 1, 1], [], []>} : vector<128x3xf32>, vector<3x64xf32>, vector<128x64xf32> -> vector<128x64xf32>
    %14 = arith.addf %8, %13 : vector<128x64xf32>
    %c0_26 = arith.constant 0 : index
    %c0_27 = arith.constant 0 : index
    %c2 = arith.constant 2 : index
    %c0_28 = arith.constant 0 : index
    %15 = vector.load %arg25[%c0_26, %c0_27, %c2, %c0_28] : memref<2x10x10x3xf32, #tpu.memory_space<vmem>>, vector<2x8x8x3xf32>
    %16 = vector.shape_cast %15 : vector<2x8x8x3xf32> to vector<128x3xf32>
    %c2_29 = arith.constant 2 : index
    %c0_30 = arith.constant 0 : index
    %c0_31 = arith.constant 0 : index
    %17 = vector.load %arg2[%c2_29, %c0_30, %c0_31] : memref<9x3x64xf32, #tpu.memory_space<vmem>>, vector<1x3x64xf32>
    %18 = vector.shape_cast %17 : vector<1x3x64xf32> to vector<3x64xf32>
    %cst_32 = arith.constant dense<0.000000e+00> : vector<128x64xf32>
    %19 = tpu.matmul %16, %18, %cst_32 {dimension_numbers = #tpu.dot_dimension_numbers<[1], [0], [0], [1], [0, 0, 1, 1], [], []>} : vector<128x3xf32>, vector<3x64xf32>, vector<128x64xf32> -> vector<128x64xf32>
    %20 = arith.addf %14, %19 : vector<128x64xf32>
    %c0_33 = arith.constant 0 : index
    %c1_34 = arith.constant 1 : index
    %c0_35 = arith.constant 0 : index
    %c0_36 = arith.constant 0 : index
    %21 = vector.load %arg25[%c0_33, %c1_34, %c0_35, %c0_36] : memref<2x10x10x3xf32, #tpu.memory_space<vmem>>, vector<2x8x8x3xf32>
    %22 = vector.shape_cast %21 : vector<2x8x8x3xf32> to vector<128x3xf32>
    %c3 = arith.constant 3 : index
    %c0_37 = arith.constant 0 : index
    %c0_38 = arith.constant 0 : index
    %23 = vector.load %arg2[%c3, %c0_37, %c0_38] : memref<9x3x64xf32, #tpu.memory_space<vmem>>, vector<1x3x64xf32>
    %24 = vector.shape_cast %23 : vector<1x3x64xf32> to vector<3x64xf32>
    %cst_39 = arith.constant dense<0.000000e+00> : vector<128x64xf32>
    %25 = tpu.matmul %22, %24, %cst_39 {dimension_numbers = #tpu.dot_dimension_numbers<[1], [0], [0], [1], [0, 0, 1, 1], [], []>} : vector<128x3xf32>, vector<3x64xf32>, vector<128x64xf32> -> vector<128x64xf32>
    %26 = arith.addf %20, %25 : vector<128x64xf32>
    %c0_40 = arith.constant 0 : index
    %c1_41 = arith.constant 1 : index
    %c1_42 = arith.constant 1 : index
    %c0_43 = arith.constant 0 : index
    %27 = vector.load %arg25[%c0_40, %c1_41, %c1_42, %c0_43] : memref<2x10x10x3xf32, #tpu.memory_space<vmem>>, vector<2x8x8x3xf32>
    %28 = vector.shape_cast %27 : vector<2x8x8x3xf32> to vector<128x3xf32>
    %c4 = arith.constant 4 : index
    %c0_44 = arith.constant 0 : index
    %c0_45 = arith.constant 0 : index
    %29 = vector.load %arg2[%c4, %c0_44, %c0_45] : memref<9x3x64xf32, #tpu.memory_space<vmem>>, vector<1x3x64xf32>
    %30 = vector.shape_cast %29 : vector<1x3x64xf32> to vector<3x64xf32>
    %cst_46 = arith.constant dense<0.000000e+00> : vector<128x64xf32>
    %31 = tpu.matmul %28, %30, %cst_46 {dimension_numbers = #tpu.dot_dimension_numbers<[1], [0], [0], [1], [0, 0, 1, 1], [], []>} : vector<128x3xf32>, vector<3x64xf32>, vector<128x64xf32> -> vector<128x64xf32>
    %32 = arith.addf %26, %31 : vector<128x64xf32>
    %c0_47 = arith.constant 0 : index
    %c1_48 = arith.constant 1 : index
    %c2_49 = arith.constant 2 : index
    %c0_50 = arith.constant 0 : index
    %33 = vector.load %arg25[%c0_47, %c1_48, %c2_49, %c0_50] : memref<2x10x10x3xf32, #tpu.memory_space<vmem>>, vector<2x8x8x3xf32>
    %34 = vector.shape_cast %33 : vector<2x8x8x3xf32> to vector<128x3xf32>
    %c5 = arith.constant 5 : index
    %c0_51 = arith.constant 0 : index
    %c0_52 = arith.constant 0 : index
    %35 = vector.load %arg2[%c5, %c0_51, %c0_52] : memref<9x3x64xf32, #tpu.memory_space<vmem>>, vector<1x3x64xf32>
    %36 = vector.shape_cast %35 : vector<1x3x64xf32> to vector<3x64xf32>
    %cst_53 = arith.constant dense<0.000000e+00> : vector<128x64xf32>
    %37 = tpu.matmul %34, %36, %cst_53 {dimension_numbers = #tpu.dot_dimension_numbers<[1], [0], [0], [1], [0, 0, 1, 1], [], []>} : vector<128x3xf32>, vector<3x64xf32>, vector<128x64xf32> -> vector<128x64xf32>
    %38 = arith.addf %32, %37 : vector<128x64xf32>
    %c0_54 = arith.constant 0 : index
    %c2_55 = arith.constant 2 : index
    %c0_56 = arith.constant 0 : index
    %c0_57 = arith.constant 0 : index
    %39 = vector.load %arg25[%c0_54, %c2_55, %c0_56, %c0_57] : memref<2x10x10x3xf32, #tpu.memory_space<vmem>>, vector<2x8x8x3xf32>
    %40 = vector.shape_cast %39 : vector<2x8x8x3xf32> to vector<128x3xf32>
    %c6 = arith.constant 6 : index
    %c0_58 = arith.constant 0 : index
    %c0_59 = arith.constant 0 : index
    %41 = vector.load %arg2[%c6, %c0_58, %c0_59] : memref<9x3x64xf32, #tpu.memory_space<vmem>>, vector<1x3x64xf32>
    %42 = vector.shape_cast %41 : vector<1x3x64xf32> to vector<3x64xf32>
    %cst_60 = arith.constant dense<0.000000e+00> : vector<128x64xf32>
    %43 = tpu.matmul %40, %42, %cst_60 {dimension_numbers = #tpu.dot_dimension_numbers<[1], [0], [0], [1], [0, 0, 1, 1], [], []>} : vector<128x3xf32>, vector<3x64xf32>, vector<128x64xf32> -> vector<128x64xf32>
    %44 = arith.addf %38, %43 : vector<128x64xf32>
    %c0_61 = arith.constant 0 : index
    %c2_62 = arith.constant 2 : index
    %c1_63 = arith.constant 1 : index
    %c0_64 = arith.constant 0 : index
    %45 = vector.load %arg25[%c0_61, %c2_62, %c1_63, %c0_64] : memref<2x10x10x3xf32, #tpu.memory_space<vmem>>, vector<2x8x8x3xf32>
    %46 = vector.shape_cast %45 : vector<2x8x8x3xf32> to vector<128x3xf32>
    %c7 = arith.constant 7 : index
    %c0_65 = arith.constant 0 : index
    %c0_66 = arith.constant 0 : index
    %47 = vector.load %arg2[%c7, %c0_65, %c0_66] : memref<9x3x64xf32, #tpu.memory_space<vmem>>, vector<1x3x64xf32>
    %48 = vector.shape_cast %47 : vector<1x3x64xf32> to vector<3x64xf32>
    %cst_67 = arith.constant dense<0.000000e+00> : vector<128x64xf32>
    %49 = tpu.matmul %46, %48, %cst_67 {dimension_numbers = #tpu.dot_dimension_numbers<[1], [0], [0], [1], [0, 0, 1, 1], [], []>} : vector<128x3xf32>, vector<3x64xf32>, vector<128x64xf32> -> vector<128x64xf32>
    %50 = arith.addf %44, %49 : vector<128x64xf32>
    %c0_68 = arith.constant 0 : index
    %c2_69 = arith.constant 2 : index
    %c2_70 = arith.constant 2 : index
    %c0_71 = arith.constant 0 : index
    %51 = vector.load %arg25[%c0_68, %c2_69, %c2_70, %c0_71] : memref<2x10x10x3xf32, #tpu.memory_space<vmem>>, vector<2x8x8x3xf32>
    %52 = vector.shape_cast %51 : vector<2x8x8x3xf32> to vector<128x3xf32>
    %c8 = arith.constant 8 : index
    %c0_72 = arith.constant 0 : index
    %c0_73 = arith.constant 0 : index
    %53 = vector.load %arg2[%c8, %c0_72, %c0_73] : memref<9x3x64xf32, #tpu.memory_space<vmem>>, vector<1x3x64xf32>
    %54 = vector.shape_cast %53 : vector<1x3x64xf32> to vector<3x64xf32>
    %cst_74 = arith.constant dense<0.000000e+00> : vector<128x64xf32>
    %55 = tpu.matmul %52, %54, %cst_74 {dimension_numbers = #tpu.dot_dimension_numbers<[1], [0], [0], [1], [0, 0, 1, 1], [], []>} : vector<128x3xf32>, vector<3x64xf32>, vector<128x64xf32> -> vector<128x64xf32>
    %56 = arith.addf %50, %55 : vector<128x64xf32>
    %c0_75 = arith.constant 0 : index
    %c0_76 = arith.constant 0 : index
    %57 = vector.load %arg3[%c0_75, %c0_76] : memref<1x64xf32, #tpu.memory_space<vmem>>, vector<1x64xf32>
    %58 = vector.broadcast %57 : vector<1x64xf32> to vector<128x64xf32>
    %59 = arith.addf %56, %58 : vector<128x64xf32>
    %cst_77 = arith.constant 0.000000e+00 : f32
    %60 = vector.broadcast %cst_77 : f32 to vector<128x64xf32>
    %61 = arith.maximumf %59, %60 : vector<128x64xf32>
    %62 = vector.shape_cast %61 : vector<128x64xf32> to vector<2x8x8x64xf32>
    %cst_78 = arith.constant 0.000000e+00 : f32
    %63 = vector.broadcast %cst_78 : f32 to vector<2x10x10x64xf32>
    %c0_79 = arith.constant 0 : index
    %c0_80 = arith.constant 0 : index
    %c0_81 = arith.constant 0 : index
    %c0_82 = arith.constant 0 : index
    %64 = vector.load %arg26[%c0_79, %c0_80, %c0_81, %c0_82] : memref<2x10x10x64xf32, #tpu.memory_space<vmem>>, vector<2x10x10x64xf32>
    tpu.vector_store %arg26[%c0_79, %c0_80, %c0_81, %c0_82], %63 {strides = array<i32>} : memref<2x10x10x64xf32, #tpu.memory_space<vmem>>, vector<2x10x10x64xf32>,
    %c0_83 = arith.constant 0 : index
    %c1_84 = arith.constant 1 : index
    %c1_85 = arith.constant 1 : index
    %c0_86 = arith.constant 0 : index
    %65 = vector.load %arg26[%c0_83, %c1_84, %c1_85, %c0_86] : memref<2x10x10x64xf32, #tpu.memory_space<vmem>>, vector<2x8x8x64xf32>
    tpu.vector_store %arg26[%c0_83, %c1_84, %c1_85, %c0_86], %62 {strides = array<i32>} : memref<2x10x10x64xf32, #tpu.memory_space<vmem>>, vector<2x8x8x64xf32>,
    %c0_87 = arith.constant 0 : index
    %c0_88 = arith.constant 0 : index
    %c0_89 = arith.constant 0 : index
    %c0_90 = arith.constant 0 : index
    %66 = vector.load %arg26[%c0_87, %c0_88, %c0_89, %c0_90] : memref<2x10x10x64xf32, #tpu.memory_space<vmem>>, vector<2x8x8x64xf32>
    %67 = vector.shape_cast %66 : vector<2x8x8x64xf32> to vector<128x64xf32>
    %c0_91 = arith.constant 0 : index
    %c0_92 = arith.constant 0 : index
    %c0_93 = arith.constant 0 : index
    %68 = vector.load %arg4[%c0_91, %c0_92, %c0_93] : memref<9x64x128xf32, #tpu.memory_space<vmem>>, vector<1x64x128xf32>
    %69 = vector.shape_cast %68 : vector<1x64x128xf32> to vector<64x128xf32>
    %cst_94 = arith.constant dense<0.000000e+00> : vector<128x128xf32>
    %70 = tpu.matmul %67, %69, %cst_94 {dimension_numbers = #tpu.dot_dimension_numbers<[1], [0], [0], [1], [0, 0, 1, 1], [], []>} : vector<128x64xf32>, vector<64x128xf32>, vector<128x128xf32> -> vector<128x128xf32>
    %c0_95 = arith.constant 0 : index
    %c0_96 = arith.constant 0 : index
    %c1_97 = arith.constant 1 : index
    %c0_98 = arith.constant 0 : index
    %71 = vector.load %arg26[%c0_95, %c0_96, %c1_97, %c0_98] : memref<2x10x10x64xf32, #tpu.memory_space<vmem>>, vector<2x8x8x64xf32>
    %72 = vector.shape_cast %71 : vector<2x8x8x64xf32> to vector<128x64xf32>
    %c1_99 = arith.constant 1 : index
    %c0_100 = arith.constant 0 : index
    %c0_101 = arith.constant 0 : index
    %73 = vector.load %arg4[%c1_99, %c0_100, %c0_101] : memref<9x64x128xf32, #tpu.memory_space<vmem>>, vector<1x64x128xf32>
    %74 = vector.shape_cast %73 : vector<1x64x128xf32> to vector<64x128xf32>
    %cst_102 = arith.constant dense<0.000000e+00> : vector<128x128xf32>
    %75 = tpu.matmul %72, %74, %cst_102 {dimension_numbers = #tpu.dot_dimension_numbers<[1], [0], [0], [1], [0, 0, 1, 1], [], []>} : vector<128x64xf32>, vector<64x128xf32>, vector<128x128xf32> -> vector<128x128xf32>
    %76 = arith.addf %70, %75 : vector<128x128xf32>
    %c0_103 = arith.constant 0 : index
    %c0_104 = arith.constant 0 : index
    %c2_105 = arith.constant 2 : index
    %c0_106 = arith.constant 0 : index
    %77 = vector.load %arg26[%c0_103, %c0_104, %c2_105, %c0_106] : memref<2x10x10x64xf32, #tpu.memory_space<vmem>>, vector<2x8x8x64xf32>
    %78 = vector.shape_cast %77 : vector<2x8x8x64xf32> to vector<128x64xf32>
    %c2_107 = arith.constant 2 : index
    %c0_108 = arith.constant 0 : index
    %c0_109 = arith.constant 0 : index
    %79 = vector.load %arg4[%c2_107, %c0_108, %c0_109] : memref<9x64x128xf32, #tpu.memory_space<vmem>>, vector<1x64x128xf32>
    %80 = vector.shape_cast %79 : vector<1x64x128xf32> to vector<64x128xf32>
    %cst_110 = arith.constant dense<0.000000e+00> : vector<128x128xf32>
    %81 = tpu.matmul %78, %80, %cst_110 {dimension_numbers = #tpu.dot_dimension_numbers<[1], [0], [0], [1], [0, 0, 1, 1], [], []>} : vector<128x64xf32>, vector<64x128xf32>, vector<128x128xf32> -> vector<128x128xf32>
    %82 = arith.addf %76, %81 : vector<128x128xf32>
    %c0_111 = arith.constant 0 : index
    %c1_112 = arith.constant 1 : index
    %c0_113 = arith.constant 0 : index
    %c0_114 = arith.constant 0 : index
    %83 = vector.load %arg26[%c0_111, %c1_112, %c0_113, %c0_114] : memref<2x10x10x64xf32, #tpu.memory_space<vmem>>, vector<2x8x8x64xf32>
    %84 = vector.shape_cast %83 : vector<2x8x8x64xf32> to vector<128x64xf32>
    %c3_115 = arith.constant 3 : index
    %c0_116 = arith.constant 0 : index
    %c0_117 = arith.constant 0 : index
    %85 = vector.load %arg4[%c3_115, %c0_116, %c0_117] : memref<9x64x128xf32, #tpu.memory_space<vmem>>, vector<1x64x128xf32>
    %86 = vector.shape_cast %85 : vector<1x64x128xf32> to vector<64x128xf32>
    %cst_118 = arith.constant dense<0.000000e+00> : vector<128x128xf32>
    %87 = tpu.matmul %84, %86, %cst_118 {dimension_numbers = #tpu.dot_dimension_numbers<[1], [0], [0], [1], [0, 0, 1, 1], [], []>} : vector<128x64xf32>, vector<64x128xf32>, vector<128x128xf32> -> vector<128x128xf32>
    %88 = arith.addf %82, %87 : vector<128x128xf32>
    %c0_119 = arith.constant 0 : index
    %c1_120 = arith.constant 1 : index
    %c1_121 = arith.constant 1 : index
    %c0_122 = arith.constant 0 : index
    %89 = vector.load %arg26[%c0_119, %c1_120, %c1_121, %c0_122] : memref<2x10x10x64xf32, #tpu.memory_space<vmem>>, vector<2x8x8x64xf32>
    %90 = vector.shape_cast %89 : vector<2x8x8x64xf32> to vector<128x64xf32>
    %c4_123 = arith.constant 4 : index
    %c0_124 = arith.constant 0 : index
    %c0_125 = arith.constant 0 : index
    %91 = vector.load %arg4[%c4_123, %c0_124, %c0_125] : memref<9x64x128xf32, #tpu.memory_space<vmem>>, vector<1x64x128xf32>
    %92 = vector.shape_cast %91 : vector<1x64x128xf32> to vector<64x128xf32>
    %cst_126 = arith.constant dense<0.000000e+00> : vector<128x128xf32>
    %93 = tpu.matmul %90, %92, %cst_126 {dimension_numbers = #tpu.dot_dimension_numbers<[1], [0], [0], [1], [0, 0, 1, 1], [], []>} : vector<128x64xf32>, vector<64x128xf32>, vector<128x128xf32> -> vector<128x128xf32>
    %94 = arith.addf %88, %93 : vector<128x128xf32>
    %c0_127 = arith.constant 0 : index
    %c1_128 = arith.constant 1 : index
    %c2_129 = arith.constant 2 : index
    %c0_130 = arith.constant 0 : index
    %95 = vector.load %arg26[%c0_127, %c1_128, %c2_129, %c0_130] : memref<2x10x10x64xf32, #tpu.memory_space<vmem>>, vector<2x8x8x64xf32>
    %96 = vector.shape_cast %95 : vector<2x8x8x64xf32> to vector<128x64xf32>
    %c5_131 = arith.constant 5 : index
    %c0_132 = arith.constant 0 : index
    %c0_133 = arith.constant 0 : index
    %97 = vector.load %arg4[%c5_131, %c0_132, %c0_133] : memref<9x64x128xf32, #tpu.memory_space<vmem>>, vector<1x64x128xf32>
    %98 = vector.shape_cast %97 : vector<1x64x128xf32> to vector<64x128xf32>
    %cst_134 = arith.constant dense<0.000000e+00> : vector<128x128xf32>
    %99 = tpu.matmul %96, %98, %cst_134 {dimension_numbers = #tpu.dot_dimension_numbers<[1], [0], [0], [1], [0, 0, 1, 1], [], []>} : vector<128x64xf32>, vector<64x128xf32>, vector<128x128xf32> -> vector<128x128xf32>
    %100 = arith.addf %94, %99 : vector<128x128xf32>
    %c0_135 = arith.constant 0 : index
    %c2_136 = arith.constant 2 : index
    %c0_137 = arith.constant 0 : index
    %c0_138 = arith.constant 0 : index
    %101 = vector.load %arg26[%c0_135, %c2_136, %c0_137, %c0_138] : memref<2x10x10x64xf32, #tpu.memory_space<vmem>>, vector<2x8x8x64xf32>
    %102 = vector.shape_cast %101 : vector<2x8x8x64xf32> to vector<128x64xf32>
    %c6_139 = arith.constant 6 : index
    %c0_140 = arith.constant 0 : index
    %c0_141 = arith.constant 0 : index
    %103 = vector.load %arg4[%c6_139, %c0_140, %c0_141] : memref<9x64x128xf32, #tpu.memory_space<vmem>>, vector<1x64x128xf32>
    %104 = vector.shape_cast %103 : vector<1x64x128xf32> to vector<64x128xf32>
    %cst_142 = arith.constant dense<0.000000e+00> : vector<128x128xf32>
    %105 = tpu.matmul %102, %104, %cst_142 {dimension_numbers = #tpu.dot_dimension_numbers<[1], [0], [0], [1], [0, 0, 1, 1], [], []>} : vector<128x64xf32>, vector<64x128xf32>, vector<128x128xf32> -> vector<128x128xf32>
    %106 = arith.addf %100, %105 : vector<128x128xf32>
    %c0_143 = arith.constant 0 : index
    %c2_144 = arith.constant 2 : index
    %c1_145 = arith.constant 1 : index
    %c0_146 = arith.constant 0 : index
    %107 = vector.load %arg26[%c0_143, %c2_144, %c1_145, %c0_146] : memref<2x10x10x64xf32, #tpu.memory_space<vmem>>, vector<2x8x8x64xf32>
    %108 = vector.shape_cast %107 : vector<2x8x8x64xf32> to vector<128x64xf32>
    %c7_147 = arith.constant 7 : index
    %c0_148 = arith.constant 0 : index
    %c0_149 = arith.constant 0 : index
    %109 = vector.load %arg4[%c7_147, %c0_148, %c0_149] : memref<9x64x128xf32, #tpu.memory_space<vmem>>, vector<1x64x128xf32>
    %110 = vector.shape_cast %109 : vector<1x64x128xf32> to vector<64x128xf32>
    %cst_150 = arith.constant dense<0.000000e+00> : vector<128x128xf32>
    %111 = tpu.matmul %108, %110, %cst_150 {dimension_numbers = #tpu.dot_dimension_numbers<[1], [0], [0], [1], [0, 0, 1, 1], [], []>} : vector<128x64xf32>, vector<64x128xf32>, vector<128x128xf32> -> vector<128x128xf32>
    %112 = arith.addf %106, %111 : vector<128x128xf32>
    %c0_151 = arith.constant 0 : index
    %c2_152 = arith.constant 2 : index
    %c2_153 = arith.constant 2 : index
    %c0_154 = arith.constant 0 : index
    %113 = vector.load %arg26[%c0_151, %c2_152, %c2_153, %c0_154] : memref<2x10x10x64xf32, #tpu.memory_space<vmem>>, vector<2x8x8x64xf32>
    %114 = vector.shape_cast %113 : vector<2x8x8x64xf32> to vector<128x64xf32>
    %c8_155 = arith.constant 8 : index
    %c0_156 = arith.constant 0 : index
    %c0_157 = arith.constant 0 : index
    %115 = vector.load %arg4[%c8_155, %c0_156, %c0_157] : memref<9x64x128xf32, #tpu.memory_space<vmem>>, vector<1x64x128xf32>
    %116 = vector.shape_cast %115 : vector<1x64x128xf32> to vector<64x128xf32>
    %cst_158 = arith.constant dense<0.000000e+00> : vector<128x128xf32>
    %117 = tpu.matmul %114, %116, %cst_158 {dimension_numbers = #tpu.dot_dimension_numbers<[1], [0], [0], [1], [0, 0, 1, 1], [], []>} : vector<128x64xf32>, vector<64x128xf32>, vector<128x128xf32> -> vector<128x128xf32>
    %118 = arith.addf %112, %117 : vector<128x128xf32>
    %c0_159 = arith.constant 0 : index
    %c0_160 = arith.constant 0 : index
    %119 = vector.load %arg5[%c0_159, %c0_160] : memref<1x128xf32, #tpu.memory_space<vmem>>, vector<1x128xf32>
    %120 = vector.broadcast %119 : vector<1x128xf32> to vector<128x128xf32>
    %121 = arith.addf %118, %120 : vector<128x128xf32>
    %cst_161 = arith.constant 0.000000e+00 : f32
    %122 = vector.broadcast %cst_161 : f32 to vector<128x128xf32>
    %123 = arith.maximumf %121, %122 : vector<128x128xf32>
    %c0_162 = arith.constant 0 : index
    %c0_163 = arith.constant 0 : index
    %124 = vector.load %arg6[%c0_162, %c0_163] : memref<1x128xf32, #tpu.memory_space<vmem>>, vector<1x128xf32>
    %c0_164 = arith.constant 0 : index
    %c0_165 = arith.constant 0 : index
    %125 = vector.load %arg7[%c0_164, %c0_165] : memref<1x128xf32, #tpu.memory_space<vmem>>, vector<1x128xf32>
    %cst_166 = arith.constant dense<0.000000e+00> : vector<128xf32>
    %126 = vector.multi_reduction <add>, %123, %cst_166 [1] : vector<128x128xf32> to vector<128xf32>
    %127 = vector.shape_cast %126 : vector<128xf32> to vector<128x1xf32>
    %cst_167 = arith.constant 1.280000e+02 : f32
    %128 = vector.broadcast %cst_167 : f32 to vector<128x1xf32>
    %129 = arith.divf %127, %128 : vector<128x1xf32>
    %130 = vector.broadcast %129 : vector<128x1xf32> to vector<128x128xf32>
    %131 = arith.subf %123, %130 : vector<128x128xf32>
    %132 = arith.mulf %131, %131 : vector<128x128xf32>
    %cst_168 = arith.constant dense<0.000000e+00> : vector<128xf32>
    %133 = vector.multi_reduction <add>, %132, %cst_168 [1] : vector<128x128xf32> to vector<128xf32>
    %134 = vector.shape_cast %133 : vector<128xf32> to vector<128x1xf32>
    %cst_169 = arith.constant 1.280000e+02 : f32
    %135 = vector.broadcast %cst_169 : f32 to vector<128x1xf32>
    %136 = arith.divf %134, %135 : vector<128x1xf32>
    %137 = vector.broadcast %129 : vector<128x1xf32> to vector<128x128xf32>
    %138 = arith.subf %123, %137 : vector<128x128xf32>
    %cst_170 = arith.constant 9.99999974E-6 : f32
    %139 = vector.broadcast %cst_170 : f32 to vector<128x1xf32>
    %140 = arith.addf %136, %139 : vector<128x1xf32>
    %141 = math.rsqrt %140 : vector<128x1xf32>
    %142 = vector.broadcast %141 : vector<128x1xf32> to vector<128x128xf32>
    %143 = arith.mulf %138, %142 : vector<128x128xf32>
    %144 = vector.broadcast %124 : vector<1x128xf32> to vector<128x128xf32>
    %145 = arith.mulf %143, %144 : vector<128x128xf32>
    %146 = vector.broadcast %125 : vector<1x128xf32> to vector<128x128xf32>
    %147 = arith.addf %145, %146 : vector<128x128xf32>
    %148 = vector.extract_strided_slice %147 {offsets = [0, 0], sizes = [64, 128], strides = [1, 1]} : vector<128x128xf32> to vector<64x128xf32>
    %cst_171 = arith.constant 0.000000e+00 : f32
    %149 = vector.broadcast %cst_171 : f32 to vector<64x128xf32>
    %c0_172 = arith.constant 0 : index
    %c0_173 = arith.constant 0 : index
    %c0_174 = arith.constant 0 : index
    %150 = vector.load %arg8[%c0_172, %c0_173, %c0_174] : memref<4x128x32xf32, #tpu.memory_space<vmem>>, vector<1x128x32xf32>
    %151 = vector.shape_cast %150 : vector<1x128x32xf32> to vector<128x32xf32>
    %cst_175 = arith.constant dense<0.000000e+00> : vector<64x32xf32>
    %152 = tpu.matmul %148, %151, %cst_175 {dimension_numbers = #tpu.dot_dimension_numbers<[1], [0], [0], [1], [0, 0, 1, 1], [], []>} : vector<64x128xf32>, vector<128x32xf32>, vector<64x32xf32> -> vector<64x32xf32>
    %c0_176 = arith.constant 0 : index
    %c0_177 = arith.constant 0 : index
    %c0_178 = arith.constant 0 : index
    %153 = vector.load %arg11[%c0_176, %c0_177, %c0_178] : memref<4x1x32xf32, #tpu.memory_space<vmem>>, vector<1x1x32xf32>
    %154 = vector.shape_cast %153 : vector<1x1x32xf32> to vector<1x32xf32>
    %155 = vector.broadcast %154 : vector<1x32xf32> to vector<64x32xf32>
    %156 = arith.addf %152, %155 : vector<64x32xf32>
    %c0_179 = arith.constant 0 : index
    %c0_180 = arith.constant 0 : index
    %c0_181 = arith.constant 0 : index
    %157 = vector.load %arg9[%c0_179, %c0_180, %c0_181] : memref<4x128x32xf32, #tpu.memory_space<vmem>>, vector<1x128x32xf32>
    %158 = vector.shape_cast %157 : vector<1x128x32xf32> to vector<128x32xf32>
    %cst_182 = arith.constant dense<0.000000e+00> : vector<64x32xf32>
    %159 = tpu.matmul %148, %158, %cst_182 {dimension_numbers = #tpu.dot_dimension_numbers<[1], [0], [0], [1], [0, 0, 1, 1], [], []>} : vector<64x128xf32>, vector<128x32xf32>, vector<64x32xf32> -> vector<64x32xf32>
    %c0_183 = arith.constant 0 : index
    %c0_184 = arith.constant 0 : index
    %c0_185 = arith.constant 0 : index
    %160 = vector.load %arg12[%c0_183, %c0_184, %c0_185] : memref<4x1x32xf32, #tpu.memory_space<vmem>>, vector<1x1x32xf32>
    %161 = vector.shape_cast %160 : vector<1x1x32xf32> to vector<1x32xf32>
    %162 = vector.broadcast %161 : vector<1x32xf32> to vector<64x32xf32>
    %163 = arith.addf %159, %162 : vector<64x32xf32>
    %c0_186 = arith.constant 0 : index
    %c0_187 = arith.constant 0 : index
    %c0_188 = arith.constant 0 : index
    %164 = vector.load %arg10[%c0_186, %c0_187, %c0_188] : memref<4x128x32xf32, #tpu.memory_space<vmem>>, vector<1x128x32xf32>
    %165 = vector.shape_cast %164 : vector<1x128x32xf32> to vector<128x32xf32>
    %cst_189 = arith.constant dense<0.000000e+00> : vector<64x32xf32>
    %166 = tpu.matmul %148, %165, %cst_189 {dimension_numbers = #tpu.dot_dimension_numbers<[1], [0], [0], [1], [0, 0, 1, 1], [], []>} : vector<64x128xf32>, vector<128x32xf32>, vector<64x32xf32> -> vector<64x32xf32>
    %c0_190 = arith.constant 0 : index
    %c0_191 = arith.constant 0 : index
    %c0_192 = arith.constant 0 : index
    %167 = vector.load %arg13[%c0_190, %c0_191, %c0_192] : memref<4x1x32xf32, #tpu.memory_space<vmem>>, vector<1x1x32xf32>
    %168 = vector.shape_cast %167 : vector<1x1x32xf32> to vector<1x32xf32>
    %169 = vector.broadcast %168 : vector<1x32xf32> to vector<64x32xf32>
    %170 = arith.addf %166, %169 : vector<64x32xf32>
    %cst_193 = arith.constant dense<0.000000e+00> : vector<64x64xf32>
    %171 = tpu.matmul %156, %163, %cst_193 {dimension_numbers = #tpu.dot_dimension_numbers<[1], [1], [0], [0], [0, 0, 1, 0], [], []>} : vector<64x32xf32>, vector<64x32xf32>, vector<64x64xf32> -> vector<64x64xf32>
    %cst_194 = arith.constant 0.176776692 : f32
    %172 = vector.broadcast %cst_194 : f32 to vector<64x64xf32>
    %173 = arith.mulf %171, %172 : vector<64x64xf32>
    %cst_195 = arith.constant dense<0xFF800000> : vector<64xf32>
    %174 = vector.multi_reduction <maximumf>, %173, %cst_195 [1] : vector<64x64xf32> to vector<64xf32>
    %175 = vector.shape_cast %174 : vector<64xf32> to vector<64x1xf32>
    %176 = vector.broadcast %175 : vector<64x1xf32> to vector<64x64xf32>
    %177 = arith.subf %173, %176 : vector<64x64xf32>
    %178 = math.exp %177 : vector<64x64xf32>
    %cst_196 = arith.constant dense<0.000000e+00> : vector<64xf32>
    %179 = vector.multi_reduction <add>, %178, %cst_196 [1] : vector<64x64xf32> to vector<64xf32>
    %180 = vector.shape_cast %179 : vector<64xf32> to vector<64x1xf32>
    %181 = vector.broadcast %180 : vector<64x1xf32> to vector<64x64xf32>
    %182 = arith.divf %178, %181 : vector<64x64xf32>
    %cst_197 = arith.constant dense<0.000000e+00> : vector<64x32xf32>
    %183 = tpu.matmul %182, %170, %cst_197 {dimension_numbers = #tpu.dot_dimension_numbers<[1], [0], [0], [1], [0, 0, 1, 1], [], []>} : vector<64x64xf32>, vector<64x32xf32>, vector<64x32xf32> -> vector<64x32xf32>
    %c0_198 = arith.constant 0 : index
    %c0_199 = arith.constant 0 : index
    %c0_200 = arith.constant 0 : index
    %184 = vector.load %arg14[%c0_198, %c0_199, %c0_200] : memref<4x32x128xf32, #tpu.memory_space<vmem>>, vector<1x32x128xf32>
    %185 = vector.shape_cast %184 : vector<1x32x128xf32> to vector<32x128xf32>
    %cst_201 = arith.constant dense<0.000000e+00> : vector<64x128xf32>
    %186 = tpu.matmul %183, %185, %cst_201 {dimension_numbers = #tpu.dot_dimension_numbers<[1], [0], [0], [1], [0, 0, 1, 1], [], []>} : vector<64x32xf32>, vector<32x128xf32>, vector<64x128xf32> -> vector<64x128xf32>
    %187 = arith.addf %149, %186 : vector<64x128xf32>
    %c1_202 = arith.constant 1 : index
    %c0_203 = arith.constant 0 : index
    %c0_204 = arith.constant 0 : index
    %188 = vector.load %arg8[%c1_202, %c0_203, %c0_204] : memref<4x128x32xf32, #tpu.memory_space<vmem>>, vector<1x128x32xf32>
    %189 = vector.shape_cast %188 : vector<1x128x32xf32> to vector<128x32xf32>
    %cst_205 = arith.constant dense<0.000000e+00> : vector<64x32xf32>
    %190 = tpu.matmul %148, %189, %cst_205 {dimension_numbers = #tpu.dot_dimension_numbers<[1], [0], [0], [1], [0, 0, 1, 1], [], []>} : vector<64x128xf32>, vector<128x32xf32>, vector<64x32xf32> -> vector<64x32xf32>
    %c1_206 = arith.constant 1 : index
    %c0_207 = arith.constant 0 : index
    %c0_208 = arith.constant 0 : index
    %191 = vector.load %arg11[%c1_206, %c0_207, %c0_208] : memref<4x1x32xf32, #tpu.memory_space<vmem>>, vector<1x1x32xf32>
    %192 = vector.shape_cast %191 : vector<1x1x32xf32> to vector<1x32xf32>
    %193 = vector.broadcast %192 : vector<1x32xf32> to vector<64x32xf32>
    %194 = arith.addf %190, %193 : vector<64x32xf32>
    %c1_209 = arith.constant 1 : index
    %c0_210 = arith.constant 0 : index
    %c0_211 = arith.constant 0 : index
    %195 = vector.load %arg9[%c1_209, %c0_210, %c0_211] : memref<4x128x32xf32, #tpu.memory_space<vmem>>, vector<1x128x32xf32>
    %196 = vector.shape_cast %195 : vector<1x128x32xf32> to vector<128x32xf32>
    %cst_212 = arith.constant dense<0.000000e+00> : vector<64x32xf32>
    %197 = tpu.matmul %148, %196, %cst_212 {dimension_numbers = #tpu.dot_dimension_numbers<[1], [0], [0], [1], [0, 0, 1, 1], [], []>} : vector<64x128xf32>, vector<128x32xf32>, vector<64x32xf32> -> vector<64x32xf32>
    %c1_213 = arith.constant 1 : index
    %c0_214 = arith.constant 0 : index
    %c0_215 = arith.constant 0 : index
    %198 = vector.load %arg12[%c1_213, %c0_214, %c0_215] : memref<4x1x32xf32, #tpu.memory_space<vmem>>, vector<1x1x32xf32>
    %199 = vector.shape_cast %198 : vector<1x1x32xf32> to vector<1x32xf32>
    %200 = vector.broadcast %199 : vector<1x32xf32> to vector<64x32xf32>
    %201 = arith.addf %197, %200 : vector<64x32xf32>
    %c1_216 = arith.constant 1 : index
    %c0_217 = arith.constant 0 : index
    %c0_218 = arith.constant 0 : index
    %202 = vector.load %arg10[%c1_216, %c0_217, %c0_218] : memref<4x128x32xf32, #tpu.memory_space<vmem>>, vector<1x128x32xf32>
    %203 = vector.shape_cast %202 : vector<1x128x32xf32> to vector<128x32xf32>
    %cst_219 = arith.constant dense<0.000000e+00> : vector<64x32xf32>
    %204 = tpu.matmul %148, %203, %cst_219 {dimension_numbers = #tpu.dot_dimension_numbers<[1], [0], [0], [1], [0, 0, 1, 1], [], []>} : vector<64x128xf32>, vector<128x32xf32>, vector<64x32xf32> -> vector<64x32xf32>
    %c1_220 = arith.constant 1 : index
    %c0_221 = arith.constant 0 : index
    %c0_222 = arith.constant 0 : index
    %205 = vector.load %arg13[%c1_220, %c0_221, %c0_222] : memref<4x1x32xf32, #tpu.memory_space<vmem>>, vector<1x1x32xf32>
    %206 = vector.shape_cast %205 : vector<1x1x32xf32> to vector<1x32xf32>
    %207 = vector.broadcast %206 : vector<1x32xf32> to vector<64x32xf32>
    %208 = arith.addf %204, %207 : vector<64x32xf32>
    %cst_223 = arith.constant dense<0.000000e+00> : vector<64x64xf32>
    %209 = tpu.matmul %194, %201, %cst_223 {dimension_numbers = #tpu.dot_dimension_numbers<[1], [1], [0], [0], [0, 0, 1, 0], [], []>} : vector<64x32xf32>, vector<64x32xf32>, vector<64x64xf32> -> vector<64x64xf32>
    %cst_224 = arith.constant 0.176776692 : f32
    %210 = vector.broadcast %cst_224 : f32 to vector<64x64xf32>
    %211 = arith.mulf %209, %210 : vector<64x64xf32>
    %cst_225 = arith.constant dense<0xFF800000> : vector<64xf32>
    %212 = vector.multi_reduction <maximumf>, %211, %cst_225 [1] : vector<64x64xf32> to vector<64xf32>
    %213 = vector.shape_cast %212 : vector<64xf32> to vector<64x1xf32>
    %214 = vector.broadcast %213 : vector<64x1xf32> to vector<64x64xf32>
    %215 = arith.subf %211, %214 : vector<64x64xf32>
    %216 = math.exp %215 : vector<64x64xf32>
    %cst_226 = arith.constant dense<0.000000e+00> : vector<64xf32>
    %217 = vector.multi_reduction <add>, %216, %cst_226 [1] : vector<64x64xf32> to vector<64xf32>
    %218 = vector.shape_cast %217 : vector<64xf32> to vector<64x1xf32>
    %219 = vector.broadcast %218 : vector<64x1xf32> to vector<64x64xf32>
    %220 = arith.divf %216, %219 : vector<64x64xf32>
    %cst_227 = arith.constant dense<0.000000e+00> : vector<64x32xf32>
    %221 = tpu.matmul %220, %208, %cst_227 {dimension_numbers = #tpu.dot_dimension_numbers<[1], [0], [0], [1], [0, 0, 1, 1], [], []>} : vector<64x64xf32>, vector<64x32xf32>, vector<64x32xf32> -> vector<64x32xf32>
    %c1_228 = arith.constant 1 : index
    %c0_229 = arith.constant 0 : index
    %c0_230 = arith.constant 0 : index
    %222 = vector.load %arg14[%c1_228, %c0_229, %c0_230] : memref<4x32x128xf32, #tpu.memory_space<vmem>>, vector<1x32x128xf32>
    %223 = vector.shape_cast %222 : vector<1x32x128xf32> to vector<32x128xf32>
    %cst_231 = arith.constant dense<0.000000e+00> : vector<64x128xf32>
    %224 = tpu.matmul %221, %223, %cst_231 {dimension_numbers = #tpu.dot_dimension_numbers<[1], [0], [0], [1], [0, 0, 1, 1], [], []>} : vector<64x32xf32>, vector<32x128xf32>, vector<64x128xf32> -> vector<64x128xf32>
    %225 = arith.addf %187, %224 : vector<64x128xf32>
    %c2_232 = arith.constant 2 : index
    %c0_233 = arith.constant 0 : index
    %c0_234 = arith.constant 0 : index
    %226 = vector.load %arg8[%c2_232, %c0_233, %c0_234] : memref<4x128x32xf32, #tpu.memory_space<vmem>>, vector<1x128x32xf32>
    %227 = vector.shape_cast %226 : vector<1x128x32xf32> to vector<128x32xf32>
    %cst_235 = arith.constant dense<0.000000e+00> : vector<64x32xf32>
    %228 = tpu.matmul %148, %227, %cst_235 {dimension_numbers = #tpu.dot_dimension_numbers<[1], [0], [0], [1], [0, 0, 1, 1], [], []>} : vector<64x128xf32>, vector<128x32xf32>, vector<64x32xf32> -> vector<64x32xf32>
    %c2_236 = arith.constant 2 : index
    %c0_237 = arith.constant 0 : index
    %c0_238 = arith.constant 0 : index
    %229 = vector.load %arg11[%c2_236, %c0_237, %c0_238] : memref<4x1x32xf32, #tpu.memory_space<vmem>>, vector<1x1x32xf32>
    %230 = vector.shape_cast %229 : vector<1x1x32xf32> to vector<1x32xf32>
    %231 = vector.broadcast %230 : vector<1x32xf32> to vector<64x32xf32>
    %232 = arith.addf %228, %231 : vector<64x32xf32>
    %c2_239 = arith.constant 2 : index
    %c0_240 = arith.constant 0 : index
    %c0_241 = arith.constant 0 : index
    %233 = vector.load %arg9[%c2_239, %c0_240, %c0_241] : memref<4x128x32xf32, #tpu.memory_space<vmem>>, vector<1x128x32xf32>
    %234 = vector.shape_cast %233 : vector<1x128x32xf32> to vector<128x32xf32>
    %cst_242 = arith.constant dense<0.000000e+00> : vector<64x32xf32>
    %235 = tpu.matmul %148, %234, %cst_242 {dimension_numbers = #tpu.dot_dimension_numbers<[1], [0], [0], [1], [0, 0, 1, 1], [], []>} : vector<64x128xf32>, vector<128x32xf32>, vector<64x32xf32> -> vector<64x32xf32>
    %c2_243 = arith.constant 2 : index
    %c0_244 = arith.constant 0 : index
    %c0_245 = arith.constant 0 : index
    %236 = vector.load %arg12[%c2_243, %c0_244, %c0_245] : memref<4x1x32xf32, #tpu.memory_space<vmem>>, vector<1x1x32xf32>
    %237 = vector.shape_cast %236 : vector<1x1x32xf32> to vector<1x32xf32>
    %238 = vector.broadcast %237 : vector<1x32xf32> to vector<64x32xf32>
    %239 = arith.addf %235, %238 : vector<64x32xf32>
    %c2_246 = arith.constant 2 : index
    %c0_247 = arith.constant 0 : index
    %c0_248 = arith.constant 0 : index
    %240 = vector.load %arg10[%c2_246, %c0_247, %c0_248] : memref<4x128x32xf32, #tpu.memory_space<vmem>>, vector<1x128x32xf32>
    %241 = vector.shape_cast %240 : vector<1x128x32xf32> to vector<128x32xf32>
    %cst_249 = arith.constant dense<0.000000e+00> : vector<64x32xf32>
    %242 = tpu.matmul %148, %241, %cst_249 {dimension_numbers = #tpu.dot_dimension_numbers<[1], [0], [0], [1], [0, 0, 1, 1], [], []>} : vector<64x128xf32>, vector<128x32xf32>, vector<64x32xf32> -> vector<64x32xf32>
    %c2_250 = arith.constant 2 : index
    %c0_251 = arith.constant 0 : index
    %c0_252 = arith.constant 0 : index
    %243 = vector.load %arg13[%c2_250, %c0_251, %c0_252] : memref<4x1x32xf32, #tpu.memory_space<vmem>>, vector<1x1x32xf32>
    %244 = vector.shape_cast %243 : vector<1x1x32xf32> to vector<1x32xf32>
    %245 = vector.broadcast %244 : vector<1x32xf32> to vector<64x32xf32>
    %246 = arith.addf %242, %245 : vector<64x32xf32>
    %cst_253 = arith.constant dense<0.000000e+00> : vector<64x64xf32>
    %247 = tpu.matmul %232, %239, %cst_253 {dimension_numbers = #tpu.dot_dimension_numbers<[1], [1], [0], [0], [0, 0, 1, 0], [], []>} : vector<64x32xf32>, vector<64x32xf32>, vector<64x64xf32> -> vector<64x64xf32>
    %cst_254 = arith.constant 0.176776692 : f32
    %248 = vector.broadcast %cst_254 : f32 to vector<64x64xf32>
    %249 = arith.mulf %247, %248 : vector<64x64xf32>
    %cst_255 = arith.constant dense<0xFF800000> : vector<64xf32>
    %250 = vector.multi_reduction <maximumf>, %249, %cst_255 [1] : vector<64x64xf32> to vector<64xf32>
    %251 = vector.shape_cast %250 : vector<64xf32> to vector<64x1xf32>
    %252 = vector.broadcast %251 : vector<64x1xf32> to vector<64x64xf32>
    %253 = arith.subf %249, %252 : vector<64x64xf32>
    %254 = math.exp %253 : vector<64x64xf32>
    %cst_256 = arith.constant dense<0.000000e+00> : vector<64xf32>
    %255 = vector.multi_reduction <add>, %254, %cst_256 [1] : vector<64x64xf32> to vector<64xf32>
    %256 = vector.shape_cast %255 : vector<64xf32> to vector<64x1xf32>
    %257 = vector.broadcast %256 : vector<64x1xf32> to vector<64x64xf32>
    %258 = arith.divf %254, %257 : vector<64x64xf32>
    %cst_257 = arith.constant dense<0.000000e+00> : vector<64x32xf32>
    %259 = tpu.matmul %258, %246, %cst_257 {dimension_numbers = #tpu.dot_dimension_numbers<[1], [0], [0], [1], [0, 0, 1, 1], [], []>} : vector<64x64xf32>, vector<64x32xf32>, vector<64x32xf32> -> vector<64x32xf32>
    %c2_258 = arith.constant 2 : index
    %c0_259 = arith.constant 0 : index
    %c0_260 = arith.constant 0 : index
    %260 = vector.load %arg14[%c2_258, %c0_259, %c0_260] : memref<4x32x128xf32, #tpu.memory_space<vmem>>, vector<1x32x128xf32>
    %261 = vector.shape_cast %260 : vector<1x32x128xf32> to vector<32x128xf32>
    %cst_261 = arith.constant dense<0.000000e+00> : vector<64x128xf32>
    %262 = tpu.matmul %259, %261, %cst_261 {dimension_numbers = #tpu.dot_dimension_numbers<[1], [0], [0], [1], [0, 0, 1, 1], [], []>} : vector<64x32xf32>, vector<32x128xf32>, vector<64x128xf32> -> vector<64x128xf32>
    %263 = arith.addf %225, %262 : vector<64x128xf32>
    %c3_262 = arith.constant 3 : index
    %c0_263 = arith.constant 0 : index
    %c0_264 = arith.constant 0 : index
    %264 = vector.load %arg8[%c3_262, %c0_263, %c0_264] : memref<4x128x32xf32, #tpu.memory_space<vmem>>, vector<1x128x32xf32>
    %265 = vector.shape_cast %264 : vector<1x128x32xf32> to vector<128x32xf32>
    %cst_265 = arith.constant dense<0.000000e+00> : vector<64x32xf32>
    %266 = tpu.matmul %148, %265, %cst_265 {dimension_numbers = #tpu.dot_dimension_numbers<[1], [0], [0], [1], [0, 0, 1, 1], [], []>} : vector<64x128xf32>, vector<128x32xf32>, vector<64x32xf32> -> vector<64x32xf32>
    %c3_266 = arith.constant 3 : index
    %c0_267 = arith.constant 0 : index
    %c0_268 = arith.constant 0 : index
    %267 = vector.load %arg11[%c3_266, %c0_267, %c0_268] : memref<4x1x32xf32, #tpu.memory_space<vmem>>, vector<1x1x32xf32>
    %268 = vector.shape_cast %267 : vector<1x1x32xf32> to vector<1x32xf32>
    %269 = vector.broadcast %268 : vector<1x32xf32> to vector<64x32xf32>
    %270 = arith.addf %266, %269 : vector<64x32xf32>
    %c3_269 = arith.constant 3 : index
    %c0_270 = arith.constant 0 : index
    %c0_271 = arith.constant 0 : index
    %271 = vector.load %arg9[%c3_269, %c0_270, %c0_271] : memref<4x128x32xf32, #tpu.memory_space<vmem>>, vector<1x128x32xf32>
    %272 = vector.shape_cast %271 : vector<1x128x32xf32> to vector<128x32xf32>
    %cst_272 = arith.constant dense<0.000000e+00> : vector<64x32xf32>
    %273 = tpu.matmul %148, %272, %cst_272 {dimension_numbers = #tpu.dot_dimension_numbers<[1], [0], [0], [1], [0, 0, 1, 1], [], []>} : vector<64x128xf32>, vector<128x32xf32>, vector<64x32xf32> -> vector<64x32xf32>
    %c3_273 = arith.constant 3 : index
    %c0_274 = arith.constant 0 : index
    %c0_275 = arith.constant 0 : index
    %274 = vector.load %arg12[%c3_273, %c0_274, %c0_275] : memref<4x1x32xf32, #tpu.memory_space<vmem>>, vector<1x1x32xf32>
    %275 = vector.shape_cast %274 : vector<1x1x32xf32> to vector<1x32xf32>
    %276 = vector.broadcast %275 : vector<1x32xf32> to vector<64x32xf32>
    %277 = arith.addf %273, %276 : vector<64x32xf32>
    %c3_276 = arith.constant 3 : index
    %c0_277 = arith.constant 0 : index
    %c0_278 = arith.constant 0 : index
    %278 = vector.load %arg10[%c3_276, %c0_277, %c0_278] : memref<4x128x32xf32, #tpu.memory_space<vmem>>, vector<1x128x32xf32>
    %279 = vector.shape_cast %278 : vector<1x128x32xf32> to vector<128x32xf32>
    %cst_279 = arith.constant dense<0.000000e+00> : vector<64x32xf32>
    %280 = tpu.matmul %148, %279, %cst_279 {dimension_numbers = #tpu.dot_dimension_numbers<[1], [0], [0], [1], [0, 0, 1, 1], [], []>} : vector<64x128xf32>, vector<128x32xf32>, vector<64x32xf32> -> vector<64x32xf32>
    %c3_280 = arith.constant 3 : index
    %c0_281 = arith.constant 0 : index
    %c0_282 = arith.constant 0 : index
    %281 = vector.load %arg13[%c3_280, %c0_281, %c0_282] : memref<4x1x32xf32, #tpu.memory_space<vmem>>, vector<1x1x32xf32>
    %282 = vector.shape_cast %281 : vector<1x1x32xf32> to vector<1x32xf32>
    %283 = vector.broadcast %282 : vector<1x32xf32> to vector<64x32xf32>
    %284 = arith.addf %280, %283 : vector<64x32xf32>
    %cst_283 = arith.constant dense<0.000000e+00> : vector<64x64xf32>
    %285 = tpu.matmul %270, %277, %cst_283 {dimension_numbers = #tpu.dot_dimension_numbers<[1], [1], [0], [0], [0, 0, 1, 0], [], []>} : vector<64x32xf32>, vector<64x32xf32>, vector<64x64xf32> -> vector<64x64xf32>
    %cst_284 = arith.constant 0.176776692 : f32
    %286 = vector.broadcast %cst_284 : f32 to vector<64x64xf32>
    %287 = arith.mulf %285, %286 : vector<64x64xf32>
    %cst_285 = arith.constant dense<0xFF800000> : vector<64xf32>
    %288 = vector.multi_reduction <maximumf>, %287, %cst_285 [1] : vector<64x64xf32> to vector<64xf32>
    %289 = vector.shape_cast %288 : vector<64xf32> to vector<64x1xf32>
    %290 = vector.broadcast %289 : vector<64x1xf32> to vector<64x64xf32>
    %291 = arith.subf %287, %290 : vector<64x64xf32>
    %292 = math.exp %291 : vector<64x64xf32>
    %cst_286 = arith.constant dense<0.000000e+00> : vector<64xf32>
    %293 = vector.multi_reduction <add>, %292, %cst_286 [1] : vector<64x64xf32> to vector<64xf32>
    %294 = vector.shape_cast %293 : vector<64xf32> to vector<64x1xf32>
    %295 = vector.broadcast %294 : vector<64x1xf32> to vector<64x64xf32>
    %296 = arith.divf %292, %295 : vector<64x64xf32>
    %cst_287 = arith.constant dense<0.000000e+00> : vector<64x32xf32>
    %297 = tpu.matmul %296, %284, %cst_287 {dimension_numbers = #tpu.dot_dimension_numbers<[1], [0], [0], [1], [0, 0, 1, 1], [], []>} : vector<64x64xf32>, vector<64x32xf32>, vector<64x32xf32> -> vector<64x32xf32>
    %c3_288 = arith.constant 3 : index
    %c0_289 = arith.constant 0 : index
    %c0_290 = arith.constant 0 : index
    %298 = vector.load %arg14[%c3_288, %c0_289, %c0_290] : memref<4x32x128xf32, #tpu.memory_space<vmem>>, vector<1x32x128xf32>
    %299 = vector.shape_cast %298 : vector<1x32x128xf32> to vector<32x128xf32>
    %cst_291 = arith.constant dense<0.000000e+00> : vector<64x128xf32>
    %300 = tpu.matmul %297, %299, %cst_291 {dimension_numbers = #tpu.dot_dimension_numbers<[1], [0], [0], [1], [0, 0, 1, 1], [], []>} : vector<64x32xf32>, vector<32x128xf32>, vector<64x128xf32> -> vector<64x128xf32>
    %301 = arith.addf %263, %300 : vector<64x128xf32>
    %302 = vector.extract_strided_slice %147 {offsets = [64, 0], sizes = [64, 128], strides = [1, 1]} : vector<128x128xf32> to vector<64x128xf32>
    %cst_292 = arith.constant 0.000000e+00 : f32
    %303 = vector.broadcast %cst_292 : f32 to vector<64x128xf32>
    %c0_293 = arith.constant 0 : index
    %c0_294 = arith.constant 0 : index
    %c0_295 = arith.constant 0 : index
    %304 = vector.load %arg8[%c0_293, %c0_294, %c0_295] : memref<4x128x32xf32, #tpu.memory_space<vmem>>, vector<1x128x32xf32>
    %305 = vector.shape_cast %304 : vector<1x128x32xf32> to vector<128x32xf32>
    %cst_296 = arith.constant dense<0.000000e+00> : vector<64x32xf32>
    %306 = tpu.matmul %302, %305, %cst_296 {dimension_numbers = #tpu.dot_dimension_numbers<[1], [0], [0], [1], [0, 0, 1, 1], [], []>} : vector<64x128xf32>, vector<128x32xf32>, vector<64x32xf32> -> vector<64x32xf32>
    %c0_297 = arith.constant 0 : index
    %c0_298 = arith.constant 0 : index
    %c0_299 = arith.constant 0 : index
    %307 = vector.load %arg11[%c0_297, %c0_298, %c0_299] : memref<4x1x32xf32, #tpu.memory_space<vmem>>, vector<1x1x32xf32>
    %308 = vector.shape_cast %307 : vector<1x1x32xf32> to vector<1x32xf32>
    %309 = vector.broadcast %308 : vector<1x32xf32> to vector<64x32xf32>
    %310 = arith.addf %306, %309 : vector<64x32xf32>
    %c0_300 = arith.constant 0 : index
    %c0_301 = arith.constant 0 : index
    %c0_302 = arith.constant 0 : index
    %311 = vector.load %arg9[%c0_300, %c0_301, %c0_302] : memref<4x128x32xf32, #tpu.memory_space<vmem>>, vector<1x128x32xf32>
    %312 = vector.shape_cast %311 : vector<1x128x32xf32> to vector<128x32xf32>
    %cst_303 = arith.constant dense<0.000000e+00> : vector<64x32xf32>
    %313 = tpu.matmul %302, %312, %cst_303 {dimension_numbers = #tpu.dot_dimension_numbers<[1], [0], [0], [1], [0, 0, 1, 1], [], []>} : vector<64x128xf32>, vector<128x32xf32>, vector<64x32xf32> -> vector<64x32xf32>
    %c0_304 = arith.constant 0 : index
    %c0_305 = arith.constant 0 : index
    %c0_306 = arith.constant 0 : index
    %314 = vector.load %arg12[%c0_304, %c0_305, %c0_306] : memref<4x1x32xf32, #tpu.memory_space<vmem>>, vector<1x1x32xf32>
    %315 = vector.shape_cast %314 : vector<1x1x32xf32> to vector<1x32xf32>
    %316 = vector.broadcast %315 : vector<1x32xf32> to vector<64x32xf32>
    %317 = arith.addf %313, %316 : vector<64x32xf32>
    %c0_307 = arith.constant 0 : index
    %c0_308 = arith.constant 0 : index
    %c0_309 = arith.constant 0 : index
    %318 = vector.load %arg10[%c0_307, %c0_308, %c0_309] : memref<4x128x32xf32, #tpu.memory_space<vmem>>, vector<1x128x32xf32>
    %319 = vector.shape_cast %318 : vector<1x128x32xf32> to vector<128x32xf32>
    %cst_310 = arith.constant dense<0.000000e+00> : vector<64x32xf32>
    %320 = tpu.matmul %302, %319, %cst_310 {dimension_numbers = #tpu.dot_dimension_numbers<[1], [0], [0], [1], [0, 0, 1, 1], [], []>} : vector<64x128xf32>, vector<128x32xf32>, vector<64x32xf32> -> vector<64x32xf32>
    %c0_311 = arith.constant 0 : index
    %c0_312 = arith.constant 0 : index
    %c0_313 = arith.constant 0 : index
    %321 = vector.load %arg13[%c0_311, %c0_312, %c0_313] : memref<4x1x32xf32, #tpu.memory_space<vmem>>, vector<1x1x32xf32>
    %322 = vector.shape_cast %321 : vector<1x1x32xf32> to vector<1x32xf32>
    %323 = vector.broadcast %322 : vector<1x32xf32> to vector<64x32xf32>
    %324 = arith.addf %320, %323 : vector<64x32xf32>
    %cst_314 = arith.constant dense<0.000000e+00> : vector<64x64xf32>
    %325 = tpu.matmul %310, %317, %cst_314 {dimension_numbers = #tpu.dot_dimension_numbers<[1], [1], [0], [0], [0, 0, 1, 0], [], []>} : vector<64x32xf32>, vector<64x32xf32>, vector<64x64xf32> -> vector<64x64xf32>
    %cst_315 = arith.constant 0.176776692 : f32
    %326 = vector.broadcast %cst_315 : f32 to vector<64x64xf32>
    %327 = arith.mulf %325, %326 : vector<64x64xf32>
    %cst_316 = arith.constant dense<0xFF800000> : vector<64xf32>
    %328 = vector.multi_reduction <maximumf>, %327, %cst_316 [1] : vector<64x64xf32> to vector<64xf32>
    %329 = vector.shape_cast %328 : vector<64xf32> to vector<64x1xf32>
    %330 = vector.broadcast %329 : vector<64x1xf32> to vector<64x64xf32>
    %331 = arith.subf %327, %330 : vector<64x64xf32>
    %332 = math.exp %331 : vector<64x64xf32>
    %cst_317 = arith.constant dense<0.000000e+00> : vector<64xf32>
    %333 = vector.multi_reduction <add>, %332, %cst_317 [1] : vector<64x64xf32> to vector<64xf32>
    %334 = vector.shape_cast %333 : vector<64xf32> to vector<64x1xf32>
    %335 = vector.broadcast %334 : vector<64x1xf32> to vector<64x64xf32>
    %336 = arith.divf %332, %335 : vector<64x64xf32>
    %cst_318 = arith.constant dense<0.000000e+00> : vector<64x32xf32>
    %337 = tpu.matmul %336, %324, %cst_318 {dimension_numbers = #tpu.dot_dimension_numbers<[1], [0], [0], [1], [0, 0, 1, 1], [], []>} : vector<64x64xf32>, vector<64x32xf32>, vector<64x32xf32> -> vector<64x32xf32>
    %c0_319 = arith.constant 0 : index
    %c0_320 = arith.constant 0 : index
    %c0_321 = arith.constant 0 : index
    %338 = vector.load %arg14[%c0_319, %c0_320, %c0_321] : memref<4x32x128xf32, #tpu.memory_space<vmem>>, vector<1x32x128xf32>
    %339 = vector.shape_cast %338 : vector<1x32x128xf32> to vector<32x128xf32>
    %cst_322 = arith.constant dense<0.000000e+00> : vector<64x128xf32>
    %340 = tpu.matmul %337, %339, %cst_322 {dimension_numbers = #tpu.dot_dimension_numbers<[1], [0], [0], [1], [0, 0, 1, 1], [], []>} : vector<64x32xf32>, vector<32x128xf32>, vector<64x128xf32> -> vector<64x128xf32>
    %341 = arith.addf %303, %340 : vector<64x128xf32>
    %c1_323 = arith.constant 1 : index
    %c0_324 = arith.constant 0 : index
    %c0_325 = arith.constant 0 : index
    %342 = vector.load %arg8[%c1_323, %c0_324, %c0_325] : memref<4x128x32xf32, #tpu.memory_space<vmem>>, vector<1x128x32xf32>
    %343 = vector.shape_cast %342 : vector<1x128x32xf32> to vector<128x32xf32>
    %cst_326 = arith.constant dense<0.000000e+00> : vector<64x32xf32>
    %344 = tpu.matmul %302, %343, %cst_326 {dimension_numbers = #tpu.dot_dimension_numbers<[1], [0], [0], [1], [0, 0, 1, 1], [], []>} : vector<64x128xf32>, vector<128x32xf32>, vector<64x32xf32> -> vector<64x32xf32>
    %c1_327 = arith.constant 1 : index
    %c0_328 = arith.constant 0 : index
    %c0_329 = arith.constant 0 : index
    %345 = vector.load %arg11[%c1_327, %c0_328, %c0_329] : memref<4x1x32xf32, #tpu.memory_space<vmem>>, vector<1x1x32xf32>
    %346 = vector.shape_cast %345 : vector<1x1x32xf32> to vector<1x32xf32>
    %347 = vector.broadcast %346 : vector<1x32xf32> to vector<64x32xf32>
    %348 = arith.addf %344, %347 : vector<64x32xf32>
    %c1_330 = arith.constant 1 : index
    %c0_331 = arith.constant 0 : index
    %c0_332 = arith.constant 0 : index
    %349 = vector.load %arg9[%c1_330, %c0_331, %c0_332] : memref<4x128x32xf32, #tpu.memory_space<vmem>>, vector<1x128x32xf32>
    %350 = vector.shape_cast %349 : vector<1x128x32xf32> to vector<128x32xf32>
    %cst_333 = arith.constant dense<0.000000e+00> : vector<64x32xf32>
    %351 = tpu.matmul %302, %350, %cst_333 {dimension_numbers = #tpu.dot_dimension_numbers<[1], [0], [0], [1], [0, 0, 1, 1], [], []>} : vector<64x128xf32>, vector<128x32xf32>, vector<64x32xf32> -> vector<64x32xf32>
    %c1_334 = arith.constant 1 : index
    %c0_335 = arith.constant 0 : index
    %c0_336 = arith.constant 0 : index
    %352 = vector.load %arg12[%c1_334, %c0_335, %c0_336] : memref<4x1x32xf32, #tpu.memory_space<vmem>>, vector<1x1x32xf32>
    %353 = vector.shape_cast %352 : vector<1x1x32xf32> to vector<1x32xf32>
    %354 = vector.broadcast %353 : vector<1x32xf32> to vector<64x32xf32>
    %355 = arith.addf %351, %354 : vector<64x32xf32>
    %c1_337 = arith.constant 1 : index
    %c0_338 = arith.constant 0 : index
    %c0_339 = arith.constant 0 : index
    %356 = vector.load %arg10[%c1_337, %c0_338, %c0_339] : memref<4x128x32xf32, #tpu.memory_space<vmem>>, vector<1x128x32xf32>
    %357 = vector.shape_cast %356 : vector<1x128x32xf32> to vector<128x32xf32>
    %cst_340 = arith.constant dense<0.000000e+00> : vector<64x32xf32>
    %358 = tpu.matmul %302, %357, %cst_340 {dimension_numbers = #tpu.dot_dimension_numbers<[1], [0], [0], [1], [0, 0, 1, 1], [], []>} : vector<64x128xf32>, vector<128x32xf32>, vector<64x32xf32> -> vector<64x32xf32>
    %c1_341 = arith.constant 1 : index
    %c0_342 = arith.constant 0 : index
    %c0_343 = arith.constant 0 : index
    %359 = vector.load %arg13[%c1_341, %c0_342, %c0_343] : memref<4x1x32xf32, #tpu.memory_space<vmem>>, vector<1x1x32xf32>
    %360 = vector.shape_cast %359 : vector<1x1x32xf32> to vector<1x32xf32>
    %361 = vector.broadcast %360 : vector<1x32xf32> to vector<64x32xf32>
    %362 = arith.addf %358, %361 : vector<64x32xf32>
    %cst_344 = arith.constant dense<0.000000e+00> : vector<64x64xf32>
    %363 = tpu.matmul %348, %355, %cst_344 {dimension_numbers = #tpu.dot_dimension_numbers<[1], [1], [0], [0], [0, 0, 1, 0], [], []>} : vector<64x32xf32>, vector<64x32xf32>, vector<64x64xf32> -> vector<64x64xf32>
    %cst_345 = arith.constant 0.176776692 : f32
    %364 = vector.broadcast %cst_345 : f32 to vector<64x64xf32>
    %365 = arith.mulf %363, %364 : vector<64x64xf32>
    %cst_346 = arith.constant dense<0xFF800000> : vector<64xf32>
    %366 = vector.multi_reduction <maximumf>, %365, %cst_346 [1] : vector<64x64xf32> to vector<64xf32>
    %367 = vector.shape_cast %366 : vector<64xf32> to vector<64x1xf32>
    %368 = vector.broadcast %367 : vector<64x1xf32> to vector<64x64xf32>
    %369 = arith.subf %365, %368 : vector<64x64xf32>
    %370 = math.exp %369 : vector<64x64xf32>
    %cst_347 = arith.constant dense<0.000000e+00> : vector<64xf32>
    %371 = vector.multi_reduction <add>, %370, %cst_347 [1] : vector<64x64xf32> to vector<64xf32>
    %372 = vector.shape_cast %371 : vector<64xf32> to vector<64x1xf32>
    %373 = vector.broadcast %372 : vector<64x1xf32> to vector<64x64xf32>
    %374 = arith.divf %370, %373 : vector<64x64xf32>
    %cst_348 = arith.constant dense<0.000000e+00> : vector<64x32xf32>
    %375 = tpu.matmul %374, %362, %cst_348 {dimension_numbers = #tpu.dot_dimension_numbers<[1], [0], [0], [1], [0, 0, 1, 1], [], []>} : vector<64x64xf32>, vector<64x32xf32>, vector<64x32xf32> -> vector<64x32xf32>
    %c1_349 = arith.constant 1 : index
    %c0_350 = arith.constant 0 : index
    %c0_351 = arith.constant 0 : index
    %376 = vector.load %arg14[%c1_349, %c0_350, %c0_351] : memref<4x32x128xf32, #tpu.memory_space<vmem>>, vector<1x32x128xf32>
    %377 = vector.shape_cast %376 : vector<1x32x128xf32> to vector<32x128xf32>
    %cst_352 = arith.constant dense<0.000000e+00> : vector<64x128xf32>
    %378 = tpu.matmul %375, %377, %cst_352 {dimension_numbers = #tpu.dot_dimension_numbers<[1], [0], [0], [1], [0, 0, 1, 1], [], []>} : vector<64x32xf32>, vector<32x128xf32>, vector<64x128xf32> -> vector<64x128xf32>
    %379 = arith.addf %341, %378 : vector<64x128xf32>
    %c2_353 = arith.constant 2 : index
    %c0_354 = arith.constant 0 : index
    %c0_355 = arith.constant 0 : index
    %380 = vector.load %arg8[%c2_353, %c0_354, %c0_355] : memref<4x128x32xf32, #tpu.memory_space<vmem>>, vector<1x128x32xf32>
    %381 = vector.shape_cast %380 : vector<1x128x32xf32> to vector<128x32xf32>
    %cst_356 = arith.constant dense<0.000000e+00> : vector<64x32xf32>
    %382 = tpu.matmul %302, %381, %cst_356 {dimension_numbers = #tpu.dot_dimension_numbers<[1], [0], [0], [1], [0, 0, 1, 1], [], []>} : vector<64x128xf32>, vector<128x32xf32>, vector<64x32xf32> -> vector<64x32xf32>
    %c2_357 = arith.constant 2 : index
    %c0_358 = arith.constant 0 : index
    %c0_359 = arith.constant 0 : index
    %383 = vector.load %arg11[%c2_357, %c0_358, %c0_359] : memref<4x1x32xf32, #tpu.memory_space<vmem>>, vector<1x1x32xf32>
    %384 = vector.shape_cast %383 : vector<1x1x32xf32> to vector<1x32xf32>
    %385 = vector.broadcast %384 : vector<1x32xf32> to vector<64x32xf32>
    %386 = arith.addf %382, %385 : vector<64x32xf32>
    %c2_360 = arith.constant 2 : index
    %c0_361 = arith.constant 0 : index
    %c0_362 = arith.constant 0 : index
    %387 = vector.load %arg9[%c2_360, %c0_361, %c0_362] : memref<4x128x32xf32, #tpu.memory_space<vmem>>, vector<1x128x32xf32>
    %388 = vector.shape_cast %387 : vector<1x128x32xf32> to vector<128x32xf32>
    %cst_363 = arith.constant dense<0.000000e+00> : vector<64x32xf32>
    %389 = tpu.matmul %302, %388, %cst_363 {dimension_numbers = #tpu.dot_dimension_numbers<[1], [0], [0], [1], [0, 0, 1, 1], [], []>} : vector<64x128xf32>, vector<128x32xf32>, vector<64x32xf32> -> vector<64x32xf32>
    %c2_364 = arith.constant 2 : index
    %c0_365 = arith.constant 0 : index
    %c0_366 = arith.constant 0 : index
    %390 = vector.load %arg12[%c2_364, %c0_365, %c0_366] : memref<4x1x32xf32, #tpu.memory_space<vmem>>, vector<1x1x32xf32>
    %391 = vector.shape_cast %390 : vector<1x1x32xf32> to vector<1x32xf32>
    %392 = vector.broadcast %391 : vector<1x32xf32> to vector<64x32xf32>
    %393 = arith.addf %389, %392 : vector<64x32xf32>
    %c2_367 = arith.constant 2 : index
    %c0_368 = arith.constant 0 : index
    %c0_369 = arith.constant 0 : index
    %394 = vector.load %arg10[%c2_367, %c0_368, %c0_369] : memref<4x128x32xf32, #tpu.memory_space<vmem>>, vector<1x128x32xf32>
    %395 = vector.shape_cast %394 : vector<1x128x32xf32> to vector<128x32xf32>
    %cst_370 = arith.constant dense<0.000000e+00> : vector<64x32xf32>
    %396 = tpu.matmul %302, %395, %cst_370 {dimension_numbers = #tpu.dot_dimension_numbers<[1], [0], [0], [1], [0, 0, 1, 1], [], []>} : vector<64x128xf32>, vector<128x32xf32>, vector<64x32xf32> -> vector<64x32xf32>
    %c2_371 = arith.constant 2 : index
    %c0_372 = arith.constant 0 : index
    %c0_373 = arith.constant 0 : index
    %397 = vector.load %arg13[%c2_371, %c0_372, %c0_373] : memref<4x1x32xf32, #tpu.memory_space<vmem>>, vector<1x1x32xf32>
    %398 = vector.shape_cast %397 : vector<1x1x32xf32> to vector<1x32xf32>
    %399 = vector.broadcast %398 : vector<1x32xf32> to vector<64x32xf32>
    %400 = arith.addf %396, %399 : vector<64x32xf32>
    %cst_374 = arith.constant dense<0.000000e+00> : vector<64x64xf32>
    %401 = tpu.matmul %386, %393, %cst_374 {dimension_numbers = #tpu.dot_dimension_numbers<[1], [1], [0], [0], [0, 0, 1, 0], [], []>} : vector<64x32xf32>, vector<64x32xf32>, vector<64x64xf32> -> vector<64x64xf32>
    %cst_375 = arith.constant 0.176776692 : f32
    %402 = vector.broadcast %cst_375 : f32 to vector<64x64xf32>
    %403 = arith.mulf %401, %402 : vector<64x64xf32>
    %cst_376 = arith.constant dense<0xFF800000> : vector<64xf32>
    %404 = vector.multi_reduction <maximumf>, %403, %cst_376 [1] : vector<64x64xf32> to vector<64xf32>
    %405 = vector.shape_cast %404 : vector<64xf32> to vector<64x1xf32>
    %406 = vector.broadcast %405 : vector<64x1xf32> to vector<64x64xf32>
    %407 = arith.subf %403, %406 : vector<64x64xf32>
    %408 = math.exp %407 : vector<64x64xf32>
    %cst_377 = arith.constant dense<0.000000e+00> : vector<64xf32>
    %409 = vector.multi_reduction <add>, %408, %cst_377 [1] : vector<64x64xf32> to vector<64xf32>
    %410 = vector.shape_cast %409 : vector<64xf32> to vector<64x1xf32>
    %411 = vector.broadcast %410 : vector<64x1xf32> to vector<64x64xf32>
    %412 = arith.divf %408, %411 : vector<64x64xf32>
    %cst_378 = arith.constant dense<0.000000e+00> : vector<64x32xf32>
    %413 = tpu.matmul %412, %400, %cst_378 {dimension_numbers = #tpu.dot_dimension_numbers<[1], [0], [0], [1], [0, 0, 1, 1], [], []>} : vector<64x64xf32>, vector<64x32xf32>, vector<64x32xf32> -> vector<64x32xf32>
    %c2_379 = arith.constant 2 : index
    %c0_380 = arith.constant 0 : index
    %c0_381 = arith.constant 0 : index
    %414 = vector.load %arg14[%c2_379, %c0_380, %c0_381] : memref<4x32x128xf32, #tpu.memory_space<vmem>>, vector<1x32x128xf32>
    %415 = vector.shape_cast %414 : vector<1x32x128xf32> to vector<32x128xf32>
    %cst_382 = arith.constant dense<0.000000e+00> : vector<64x128xf32>
    %416 = tpu.matmul %413, %415, %cst_382 {dimension_numbers = #tpu.dot_dimension_numbers<[1], [0], [0], [1], [0, 0, 1, 1], [], []>} : vector<64x32xf32>, vector<32x128xf32>, vector<64x128xf32> -> vector<64x128xf32>
    %417 = arith.addf %379, %416 : vector<64x128xf32>
    %c3_383 = arith.constant 3 : index
    %c0_384 = arith.constant 0 : index
    %c0_385 = arith.constant 0 : index
    %418 = vector.load %arg8[%c3_383, %c0_384, %c0_385] : memref<4x128x32xf32, #tpu.memory_space<vmem>>, vector<1x128x32xf32>
    %419 = vector.shape_cast %418 : vector<1x128x32xf32> to vector<128x32xf32>
    %cst_386 = arith.constant dense<0.000000e+00> : vector<64x32xf32>
    %420 = tpu.matmul %302, %419, %cst_386 {dimension_numbers = #tpu.dot_dimension_numbers<[1], [0], [0], [1], [0, 0, 1, 1], [], []>} : vector<64x128xf32>, vector<128x32xf32>, vector<64x32xf32> -> vector<64x32xf32>
    %c3_387 = arith.constant 3 : index
    %c0_388 = arith.constant 0 : index
    %c0_389 = arith.constant 0 : index
    %421 = vector.load %arg11[%c3_387, %c0_388, %c0_389] : memref<4x1x32xf32, #tpu.memory_space<vmem>>, vector<1x1x32xf32>
    %422 = vector.shape_cast %421 : vector<1x1x32xf32> to vector<1x32xf32>
    %423 = vector.broadcast %422 : vector<1x32xf32> to vector<64x32xf32>
    %424 = arith.addf %420, %423 : vector<64x32xf32>
    %c3_390 = arith.constant 3 : index
    %c0_391 = arith.constant 0 : index
    %c0_392 = arith.constant 0 : index
    %425 = vector.load %arg9[%c3_390, %c0_391, %c0_392] : memref<4x128x32xf32, #tpu.memory_space<vmem>>, vector<1x128x32xf32>
    %426 = vector.shape_cast %425 : vector<1x128x32xf32> to vector<128x32xf32>
    %cst_393 = arith.constant dense<0.000000e+00> : vector<64x32xf32>
    %427 = tpu.matmul %302, %426, %cst_393 {dimension_numbers = #tpu.dot_dimension_numbers<[1], [0], [0], [1], [0, 0, 1, 1], [], []>} : vector<64x128xf32>, vector<128x32xf32>, vector<64x32xf32> -> vector<64x32xf32>
    %c3_394 = arith.constant 3 : index
    %c0_395 = arith.constant 0 : index
    %c0_396 = arith.constant 0 : index
    %428 = vector.load %arg12[%c3_394, %c0_395, %c0_396] : memref<4x1x32xf32, #tpu.memory_space<vmem>>, vector<1x1x32xf32>
    %429 = vector.shape_cast %428 : vector<1x1x32xf32> to vector<1x32xf32>
    %430 = vector.broadcast %429 : vector<1x32xf32> to vector<64x32xf32>
    %431 = arith.addf %427, %430 : vector<64x32xf32>
    %c3_397 = arith.constant 3 : index
    %c0_398 = arith.constant 0 : index
    %c0_399 = arith.constant 0 : index
    %432 = vector.load %arg10[%c3_397, %c0_398, %c0_399] : memref<4x128x32xf32, #tpu.memory_space<vmem>>, vector<1x128x32xf32>
    %433 = vector.shape_cast %432 : vector<1x128x32xf32> to vector<128x32xf32>
    %cst_400 = arith.constant dense<0.000000e+00> : vector<64x32xf32>
    %434 = tpu.matmul %302, %433, %cst_400 {dimension_numbers = #tpu.dot_dimension_numbers<[1], [0], [0], [1], [0, 0, 1, 1], [], []>} : vector<64x128xf32>, vector<128x32xf32>, vector<64x32xf32> -> vector<64x32xf32>
    %c3_401 = arith.constant 3 : index
    %c0_402 = arith.constant 0 : index
    %c0_403 = arith.constant 0 : index
    %435 = vector.load %arg13[%c3_401, %c0_402, %c0_403] : memref<4x1x32xf32, #tpu.memory_space<vmem>>, vector<1x1x32xf32>
    %436 = vector.shape_cast %435 : vector<1x1x32xf32> to vector<1x32xf32>
    %437 = vector.broadcast %436 : vector<1x32xf32> to vector<64x32xf32>
    %438 = arith.addf %434, %437 : vector<64x32xf32>
    %cst_404 = arith.constant dense<0.000000e+00> : vector<64x64xf32>
    %439 = tpu.matmul %424, %431, %cst_404 {dimension_numbers = #tpu.dot_dimension_numbers<[1], [1], [0], [0], [0, 0, 1, 0], [], []>} : vector<64x32xf32>, vector<64x32xf32>, vector<64x64xf32> -> vector<64x64xf32>
    %cst_405 = arith.constant 0.176776692 : f32
    %440 = vector.broadcast %cst_405 : f32 to vector<64x64xf32>
    %441 = arith.mulf %439, %440 : vector<64x64xf32>
    %cst_406 = arith.constant dense<0xFF800000> : vector<64xf32>
    %442 = vector.multi_reduction <maximumf>, %441, %cst_406 [1] : vector<64x64xf32> to vector<64xf32>
    %443 = vector.shape_cast %442 : vector<64xf32> to vector<64x1xf32>
    %444 = vector.broadcast %443 : vector<64x1xf32> to vector<64x64xf32>
    %445 = arith.subf %441, %444 : vector<64x64xf32>
    %446 = math.exp %445 : vector<64x64xf32>
    %cst_407 = arith.constant dense<0.000000e+00> : vector<64xf32>
    %447 = vector.multi_reduction <add>, %446, %cst_407 [1] : vector<64x64xf32> to vector<64xf32>
    %448 = vector.shape_cast %447 : vector<64xf32> to vector<64x1xf32>
    %449 = vector.broadcast %448 : vector<64x1xf32> to vector<64x64xf32>
    %450 = arith.divf %446, %449 : vector<64x64xf32>
    %cst_408 = arith.constant dense<0.000000e+00> : vector<64x32xf32>
    %451 = tpu.matmul %450, %438, %cst_408 {dimension_numbers = #tpu.dot_dimension_numbers<[1], [0], [0], [1], [0, 0, 1, 1], [], []>} : vector<64x64xf32>, vector<64x32xf32>, vector<64x32xf32> -> vector<64x32xf32>
    %c3_409 = arith.constant 3 : index
    %c0_410 = arith.constant 0 : index
    %c0_411 = arith.constant 0 : index
    %452 = vector.load %arg14[%c3_409, %c0_410, %c0_411] : memref<4x32x128xf32, #tpu.memory_space<vmem>>, vector<1x32x128xf32>
    %453 = vector.shape_cast %452 : vector<1x32x128xf32> to vector<32x128xf32>
    %cst_412 = arith.constant dense<0.000000e+00> : vector<64x128xf32>
    %454 = tpu.matmul %451, %453, %cst_412 {dimension_numbers = #tpu.dot_dimension_numbers<[1], [0], [0], [1], [0, 0, 1, 1], [], []>} : vector<64x32xf32>, vector<32x128xf32>, vector<64x128xf32> -> vector<64x128xf32>
    %455 = arith.addf %417, %454 : vector<64x128xf32>
    %456 = tpu.concatenate %301, %455 in 0 : vector<64x128xf32>, vector<64x128xf32> -> vector<128x128xf32>
    %457 = arith.addf %123, %456 : vector<128x128xf32>
    %c0_413 = arith.constant 0 : index
    %c0_414 = arith.constant 0 : index
    %458 = vector.load %arg15[%c0_413, %c0_414] : memref<1x128xf32, #tpu.memory_space<vmem>>, vector<1x128xf32>
    %459 = vector.broadcast %458 : vector<1x128xf32> to vector<128x128xf32>
    %460 = arith.addf %457, %459 : vector<128x128xf32>
    %c0_415 = arith.constant 0 : index
    %c0_416 = arith.constant 0 : index
    %461 = vector.load %arg16[%c0_415, %c0_416] : memref<1x128xf32, #tpu.memory_space<vmem>>, vector<1x128xf32>
    %c0_417 = arith.constant 0 : index
    %c0_418 = arith.constant 0 : index
    %462 = vector.load %arg17[%c0_417, %c0_418] : memref<1x128xf32, #tpu.memory_space<vmem>>, vector<1x128xf32>
    %cst_419 = arith.constant dense<0.000000e+00> : vector<128xf32>
    %463 = vector.multi_reduction <add>, %460, %cst_419 [1] : vector<128x128xf32> to vector<128xf32>
    %464 = vector.shape_cast %463 : vector<128xf32> to vector<128x1xf32>
    %cst_420 = arith.constant 1.280000e+02 : f32
    %465 = vector.broadcast %cst_420 : f32 to vector<128x1xf32>
    %466 = arith.divf %464, %465 : vector<128x1xf32>
    %467 = vector.broadcast %466 : vector<128x1xf32> to vector<128x128xf32>
    %468 = arith.subf %460, %467 : vector<128x128xf32>
    %469 = arith.mulf %468, %468 : vector<128x128xf32>
    %cst_421 = arith.constant dense<0.000000e+00> : vector<128xf32>
    %470 = vector.multi_reduction <add>, %469, %cst_421 [1] : vector<128x128xf32> to vector<128xf32>
    %471 = vector.shape_cast %470 : vector<128xf32> to vector<128x1xf32>
    %cst_422 = arith.constant 1.280000e+02 : f32
    %472 = vector.broadcast %cst_422 : f32 to vector<128x1xf32>
    %473 = arith.divf %471, %472 : vector<128x1xf32>
    %474 = vector.broadcast %466 : vector<128x1xf32> to vector<128x128xf32>
    %475 = arith.subf %460, %474 : vector<128x128xf32>
    %cst_423 = arith.constant 9.99999974E-6 : f32
    %476 = vector.broadcast %cst_423 : f32 to vector<128x1xf32>
    %477 = arith.addf %473, %476 : vector<128x1xf32>
    %478 = math.rsqrt %477 : vector<128x1xf32>
    %479 = vector.broadcast %478 : vector<128x1xf32> to vector<128x128xf32>
    %480 = arith.mulf %475, %479 : vector<128x128xf32>
    %481 = vector.broadcast %461 : vector<1x128xf32> to vector<128x128xf32>
    %482 = arith.mulf %480, %481 : vector<128x128xf32>
    %483 = vector.broadcast %462 : vector<1x128xf32> to vector<128x128xf32>
    %484 = arith.addf %482, %483 : vector<128x128xf32>
    %c0_424 = arith.constant 0 : index
    %c0_425 = arith.constant 0 : index
    %485 = vector.load %arg18[%c0_424, %c0_425] : memref<128x512xf32, #tpu.memory_space<vmem>>, vector<128x512xf32>
    %cst_426 = arith.constant dense<0.000000e+00> : vector<128x512xf32>
    %486 = tpu.matmul %484, %485, %cst_426 {dimension_numbers = #tpu.dot_dimension_numbers<[1], [0], [0], [1], [0, 0, 1, 1], [], []>} : vector<128x128xf32>, vector<128x512xf32>, vector<128x512xf32> -> vector<128x512xf32>
    %c0_427 = arith.constant 0 : index
    %c0_428 = arith.constant 0 : index
    %487 = vector.load %arg19[%c0_427, %c0_428] : memref<1x512xf32, #tpu.memory_space<vmem>>, vector<1x512xf32>
    %488 = vector.broadcast %487 : vector<1x512xf32> to vector<128x512xf32>
    %489 = arith.addf %486, %488 : vector<128x512xf32>
    %cst_429 = arith.constant 0.000000e+00 : f32
    %490 = vector.broadcast %cst_429 : f32 to vector<128x512xf32>
    %491 = arith.maximumf %489, %490 : vector<128x512xf32>
    %c0_430 = arith.constant 0 : index
    %c0_431 = arith.constant 0 : index
    %492 = vector.load %arg20[%c0_430, %c0_431] : memref<512x128xf32, #tpu.memory_space<vmem>>, vector<512x128xf32>
    %cst_432 = arith.constant dense<0.000000e+00> : vector<128x128xf32>
    %493 = tpu.matmul %491, %492, %cst_432 {dimension_numbers = #tpu.dot_dimension_numbers<[1], [0], [0], [1], [0, 0, 1, 1], [], []>} : vector<128x512xf32>, vector<512x128xf32>, vector<128x128xf32> -> vector<128x128xf32>
    %494 = arith.addf %460, %493 : vector<128x128xf32>
    %c0_433 = arith.constant 0 : index
    %c0_434 = arith.constant 0 : index
    %495 = vector.load %arg21[%c0_433, %c0_434] : memref<1x128xf32, #tpu.memory_space<vmem>>, vector<1x128xf32>
    %496 = vector.broadcast %495 : vector<1x128xf32> to vector<128x128xf32>
    %497 = arith.addf %494, %496 : vector<128x128xf32>
    %498 = vector.shape_cast %497 : vector<128x128xf32> to vector<2x8x8x128xf32>
    %cst_435 = arith.constant 0.000000e+00 : f32
    %499 = vector.broadcast %cst_435 : f32 to vector<2x10x10x128xf32>
    %c0_436 = arith.constant 0 : index
    %c0_437 = arith.constant 0 : index
    %c0_438 = arith.constant 0 : index
    %c0_439 = arith.constant 0 : index
    %500 = vector.load %arg27[%c0_436, %c0_437, %c0_438, %c0_439] : memref<2x10x10x128xf32, #tpu.memory_space<vmem>>, vector<2x10x10x128xf32>
    tpu.vector_store %arg27[%c0_436, %c0_437, %c0_438, %c0_439], %499 {strides = array<i32>} : memref<2x10x10x128xf32, #tpu.memory_space<vmem>>, vector<2x10x10x128xf32>,
    %c0_440 = arith.constant 0 : index
    %c1_441 = arith.constant 1 : index
    %c1_442 = arith.constant 1 : index
    %c0_443 = arith.constant 0 : index
    %501 = vector.load %arg27[%c0_440, %c1_441, %c1_442, %c0_443] : memref<2x10x10x128xf32, #tpu.memory_space<vmem>>, vector<2x8x8x128xf32>
    tpu.vector_store %arg27[%c0_440, %c1_441, %c1_442, %c0_443], %498 {strides = array<i32>} : memref<2x10x10x128xf32, #tpu.memory_space<vmem>>, vector<2x8x8x128xf32>,
    %c0_444 = arith.constant 0 : index
    %c0_445 = arith.constant 0 : index
    %c0_446 = arith.constant 0 : index
    %c0_447 = arith.constant 0 : index
    %502 = vector.load %arg27[%c0_444, %c0_445, %c0_446, %c0_447] : memref<2x10x10x128xf32, #tpu.memory_space<vmem>>, vector<2x8x8x128xf32>
    %503 = vector.shape_cast %502 : vector<2x8x8x128xf32> to vector<128x128xf32>
    %c0_448 = arith.constant 0 : index
    %c0_449 = arith.constant 0 : index
    %c0_450 = arith.constant 0 : index
    %504 = vector.load %arg22[%c0_448, %c0_449, %c0_450] : memref<9x128x3xf32, #tpu.memory_space<vmem>>, vector<1x128x3xf32>
    %505 = vector.shape_cast %504 : vector<1x128x3xf32> to vector<128x3xf32>
    %cst_451 = arith.constant dense<0.000000e+00> : vector<128x3xf32>
    %506 = tpu.matmul %503, %505, %cst_451 {dimension_numbers = #tpu.dot_dimension_numbers<[1], [0], [0], [1], [0, 0, 1, 1], [], []>} : vector<128x128xf32>, vector<128x3xf32>, vector<128x3xf32> -> vector<128x3xf32>
    %c0_452 = arith.constant 0 : index
    %c0_453 = arith.constant 0 : index
    %c1_454 = arith.constant 1 : index
    %c0_455 = arith.constant 0 : index
    %507 = vector.load %arg27[%c0_452, %c0_453, %c1_454, %c0_455] : memref<2x10x10x128xf32, #tpu.memory_space<vmem>>, vector<2x8x8x128xf32>
    %508 = vector.shape_cast %507 : vector<2x8x8x128xf32> to vector<128x128xf32>
    %c1_456 = arith.constant 1 : index
    %c0_457 = arith.constant 0 : index
    %c0_458 = arith.constant 0 : index
    %509 = vector.load %arg22[%c1_456, %c0_457, %c0_458] : memref<9x128x3xf32, #tpu.memory_space<vmem>>, vector<1x128x3xf32>
    %510 = vector.shape_cast %509 : vector<1x128x3xf32> to vector<128x3xf32>
    %cst_459 = arith.constant dense<0.000000e+00> : vector<128x3xf32>
    %511 = tpu.matmul %508, %510, %cst_459 {dimension_numbers = #tpu.dot_dimension_numbers<[1], [0], [0], [1], [0, 0, 1, 1], [], []>} : vector<128x128xf32>, vector<128x3xf32>, vector<128x3xf32> -> vector<128x3xf32>
    %512 = arith.addf %506, %511 : vector<128x3xf32>
    %c0_460 = arith.constant 0 : index
    %c0_461 = arith.constant 0 : index
    %c2_462 = arith.constant 2 : index
    %c0_463 = arith.constant 0 : index
    %513 = vector.load %arg27[%c0_460, %c0_461, %c2_462, %c0_463] : memref<2x10x10x128xf32, #tpu.memory_space<vmem>>, vector<2x8x8x128xf32>
    %514 = vector.shape_cast %513 : vector<2x8x8x128xf32> to vector<128x128xf32>
    %c2_464 = arith.constant 2 : index
    %c0_465 = arith.constant 0 : index
    %c0_466 = arith.constant 0 : index
    %515 = vector.load %arg22[%c2_464, %c0_465, %c0_466] : memref<9x128x3xf32, #tpu.memory_space<vmem>>, vector<1x128x3xf32>
    %516 = vector.shape_cast %515 : vector<1x128x3xf32> to vector<128x3xf32>
    %cst_467 = arith.constant dense<0.000000e+00> : vector<128x3xf32>
    %517 = tpu.matmul %514, %516, %cst_467 {dimension_numbers = #tpu.dot_dimension_numbers<[1], [0], [0], [1], [0, 0, 1, 1], [], []>} : vector<128x128xf32>, vector<128x3xf32>, vector<128x3xf32> -> vector<128x3xf32>
    %518 = arith.addf %512, %517 : vector<128x3xf32>
    %c0_468 = arith.constant 0 : index
    %c1_469 = arith.constant 1 : index
    %c0_470 = arith.constant 0 : index
    %c0_471 = arith.constant 0 : index
    %519 = vector.load %arg27[%c0_468, %c1_469, %c0_470, %c0_471] : memref<2x10x10x128xf32, #tpu.memory_space<vmem>>, vector<2x8x8x128xf32>
    %520 = vector.shape_cast %519 : vector<2x8x8x128xf32> to vector<128x128xf32>
    %c3_472 = arith.constant 3 : index
    %c0_473 = arith.constant 0 : index
    %c0_474 = arith.constant 0 : index
    %521 = vector.load %arg22[%c3_472, %c0_473, %c0_474] : memref<9x128x3xf32, #tpu.memory_space<vmem>>, vector<1x128x3xf32>
    %522 = vector.shape_cast %521 : vector<1x128x3xf32> to vector<128x3xf32>
    %cst_475 = arith.constant dense<0.000000e+00> : vector<128x3xf32>
    %523 = tpu.matmul %520, %522, %cst_475 {dimension_numbers = #tpu.dot_dimension_numbers<[1], [0], [0], [1], [0, 0, 1, 1], [], []>} : vector<128x128xf32>, vector<128x3xf32>, vector<128x3xf32> -> vector<128x3xf32>
    %524 = arith.addf %518, %523 : vector<128x3xf32>
    %c0_476 = arith.constant 0 : index
    %c1_477 = arith.constant 1 : index
    %c1_478 = arith.constant 1 : index
    %c0_479 = arith.constant 0 : index
    %525 = vector.load %arg27[%c0_476, %c1_477, %c1_478, %c0_479] : memref<2x10x10x128xf32, #tpu.memory_space<vmem>>, vector<2x8x8x128xf32>
    %526 = vector.shape_cast %525 : vector<2x8x8x128xf32> to vector<128x128xf32>
    %c4_480 = arith.constant 4 : index
    %c0_481 = arith.constant 0 : index
    %c0_482 = arith.constant 0 : index
    %527 = vector.load %arg22[%c4_480, %c0_481, %c0_482] : memref<9x128x3xf32, #tpu.memory_space<vmem>>, vector<1x128x3xf32>
    %528 = vector.shape_cast %527 : vector<1x128x3xf32> to vector<128x3xf32>
    %cst_483 = arith.constant dense<0.000000e+00> : vector<128x3xf32>
    %529 = tpu.matmul %526, %528, %cst_483 {dimension_numbers = #tpu.dot_dimension_numbers<[1], [0], [0], [1], [0, 0, 1, 1], [], []>} : vector<128x128xf32>, vector<128x3xf32>, vector<128x3xf32> -> vector<128x3xf32>
    %530 = arith.addf %524, %529 : vector<128x3xf32>
    %c0_484 = arith.constant 0 : index
    %c1_485 = arith.constant 1 : index
    %c2_486 = arith.constant 2 : index
    %c0_487 = arith.constant 0 : index
    %531 = vector.load %arg27[%c0_484, %c1_485, %c2_486, %c0_487] : memref<2x10x10x128xf32, #tpu.memory_space<vmem>>, vector<2x8x8x128xf32>
    %532 = vector.shape_cast %531 : vector<2x8x8x128xf32> to vector<128x128xf32>
    %c5_488 = arith.constant 5 : index
    %c0_489 = arith.constant 0 : index
    %c0_490 = arith.constant 0 : index
    %533 = vector.load %arg22[%c5_488, %c0_489, %c0_490] : memref<9x128x3xf32, #tpu.memory_space<vmem>>, vector<1x128x3xf32>
    %534 = vector.shape_cast %533 : vector<1x128x3xf32> to vector<128x3xf32>
    %cst_491 = arith.constant dense<0.000000e+00> : vector<128x3xf32>
    %535 = tpu.matmul %532, %534, %cst_491 {dimension_numbers = #tpu.dot_dimension_numbers<[1], [0], [0], [1], [0, 0, 1, 1], [], []>} : vector<128x128xf32>, vector<128x3xf32>, vector<128x3xf32> -> vector<128x3xf32>
    %536 = arith.addf %530, %535 : vector<128x3xf32>
    %c0_492 = arith.constant 0 : index
    %c2_493 = arith.constant 2 : index
    %c0_494 = arith.constant 0 : index
    %c0_495 = arith.constant 0 : index
    %537 = vector.load %arg27[%c0_492, %c2_493, %c0_494, %c0_495] : memref<2x10x10x128xf32, #tpu.memory_space<vmem>>, vector<2x8x8x128xf32>
    %538 = vector.shape_cast %537 : vector<2x8x8x128xf32> to vector<128x128xf32>
    %c6_496 = arith.constant 6 : index
    %c0_497 = arith.constant 0 : index
    %c0_498 = arith.constant 0 : index
    %539 = vector.load %arg22[%c6_496, %c0_497, %c0_498] : memref<9x128x3xf32, #tpu.memory_space<vmem>>, vector<1x128x3xf32>
    %540 = vector.shape_cast %539 : vector<1x128x3xf32> to vector<128x3xf32>
    %cst_499 = arith.constant dense<0.000000e+00> : vector<128x3xf32>
    %541 = tpu.matmul %538, %540, %cst_499 {dimension_numbers = #tpu.dot_dimension_numbers<[1], [0], [0], [1], [0, 0, 1, 1], [], []>} : vector<128x128xf32>, vector<128x3xf32>, vector<128x3xf32> -> vector<128x3xf32>
    %542 = arith.addf %536, %541 : vector<128x3xf32>
    %c0_500 = arith.constant 0 : index
    %c2_501 = arith.constant 2 : index
    %c1_502 = arith.constant 1 : index
    %c0_503 = arith.constant 0 : index
    %543 = vector.load %arg27[%c0_500, %c2_501, %c1_502, %c0_503] : memref<2x10x10x128xf32, #tpu.memory_space<vmem>>, vector<2x8x8x128xf32>
    %544 = vector.shape_cast %543 : vector<2x8x8x128xf32> to vector<128x128xf32>
    %c7_504 = arith.constant 7 : index
    %c0_505 = arith.constant 0 : index
    %c0_506 = arith.constant 0 : index
    %545 = vector.load %arg22[%c7_504, %c0_505, %c0_506] : memref<9x128x3xf32, #tpu.memory_space<vmem>>, vector<1x128x3xf32>
    %546 = vector.shape_cast %545 : vector<1x128x3xf32> to vector<128x3xf32>
    %cst_507 = arith.constant dense<0.000000e+00> : vector<128x3xf32>
    %547 = tpu.matmul %544, %546, %cst_507 {dimension_numbers = #tpu.dot_dimension_numbers<[1], [0], [0], [1], [0, 0, 1, 1], [], []>} : vector<128x128xf32>, vector<128x3xf32>, vector<128x3xf32> -> vector<128x3xf32>
    %548 = arith.addf %542, %547 : vector<128x3xf32>
    %c0_508 = arith.constant 0 : index
    %c2_509 = arith.constant 2 : index
    %c2_510 = arith.constant 2 : index
    %c0_511 = arith.constant 0 : index
    %549 = vector.load %arg27[%c0_508, %c2_509, %c2_510, %c0_511] : memref<2x10x10x128xf32, #tpu.memory_space<vmem>>, vector<2x8x8x128xf32>
    %550 = vector.shape_cast %549 : vector<2x8x8x128xf32> to vector<128x128xf32>
    %c8_512 = arith.constant 8 : index
    %c0_513 = arith.constant 0 : index
    %c0_514 = arith.constant 0 : index
    %551 = vector.load %arg22[%c8_512, %c0_513, %c0_514] : memref<9x128x3xf32, #tpu.memory_space<vmem>>, vector<1x128x3xf32>
    %552 = vector.shape_cast %551 : vector<1x128x3xf32> to vector<128x3xf32>
    %cst_515 = arith.constant dense<0.000000e+00> : vector<128x3xf32>
    %553 = tpu.matmul %550, %552, %cst_515 {dimension_numbers = #tpu.dot_dimension_numbers<[1], [0], [0], [1], [0, 0, 1, 1], [], []>} : vector<128x128xf32>, vector<128x3xf32>, vector<128x3xf32> -> vector<128x3xf32>
    %554 = arith.addf %548, %553 : vector<128x3xf32>
    %c0_516 = arith.constant 0 : index
    %c0_517 = arith.constant 0 : index
    %555 = vector.load %arg23[%c0_516, %c0_517] : memref<1x3xf32, #tpu.memory_space<vmem>>, vector<1x3xf32>
    %556 = vector.broadcast %555 : vector<1x3xf32> to vector<128x3xf32>
    %557 = arith.addf %554, %556 : vector<128x3xf32>
    %558 = tpu.transpose %557, [1, 0] : vector<128x3xf32> -> vector<3x128xf32>
    %c0_518 = arith.constant 0 : index
    %c0_519 = arith.constant 0 : index
    %559 = vector.load %arg24[%c0_518, %c0_519] : memref<3x128xf32, #tpu.memory_space<vmem>>, vector<3x128xf32>
    tpu.vector_store %arg24[%c0_518, %c0_519], %558 {strides = array<i32>} : memref<3x128xf32, #tpu.memory_space<vmem>>, vector<3x128xf32>,
    return
  }
  func.func @transform_0(%arg0: i32) -> (i32, i32, i32, i32) {
    %c0_i32 = arith.constant 0 : i32
    %c0_i32_0 = arith.constant 0 : i32
    %c0_i32_1 = arith.constant 0 : i32
    %c0_i32_2 = arith.constant 0 : i32
    return %arg0, %c0_i32, %c0_i32_0, %c0_i32_1 : i32, i32, i32, i32
  }
  func.func @transform_1(%arg0: i32) -> (i32, i32, i32) {
    %c0_i32 = arith.constant 0 : i32
    %c0_i32_0 = arith.constant 0 : i32
    %c0_i32_1 = arith.constant 0 : i32
    %c0_i32_2 = arith.constant 0 : i32
    return %c0_i32, %c0_i32_0, %c0_i32_1 : i32, i32, i32
  }
  func.func @transform_2(%arg0: i32) -> (i32, i32) {
    %c0_i32 = arith.constant 0 : i32
    %c0_i32_0 = arith.constant 0 : i32
    %c0_i32_1 = arith.constant 0 : i32
    return %c0_i32, %c0_i32_0 : i32, i32
  }
  func.func @transform_3(%arg0: i32) -> (i32, i32, i32) {
    %c0_i32 = arith.constant 0 : i32
    %c0_i32_0 = arith.constant 0 : i32
    %c0_i32_1 = arith.constant 0 : i32
    %c0_i32_2 = arith.constant 0 : i32
    return %c0_i32, %c0_i32_0, %c0_i32_1 : i32, i32, i32
  }
  func.func @transform_4(%arg0: i32) -> (i32, i32) {
    %c0_i32 = arith.constant 0 : i32
    %c0_i32_0 = arith.constant 0 : i32
    %c0_i32_1 = arith.constant 0 : i32
    return %c0_i32, %c0_i32_0 : i32, i32
  }
  func.func @transform_5(%arg0: i32) -> (i32, i32) {
    %c0_i32 = arith.constant 0 : i32
    %c0_i32_0 = arith.constant 0 : i32
    %c0_i32_1 = arith.constant 0 : i32
    return %c0_i32, %c0_i32_0 : i32, i32
  }
  func.func @transform_6(%arg0: i32) -> (i32, i32) {
    %c0_i32 = arith.constant 0 : i32
    %c0_i32_0 = arith.constant 0 : i32
    %c0_i32_1 = arith.constant 0 : i32
    return %c0_i32, %c0_i32_0 : i32, i32
  }
  func.func @transform_7(%arg0: i32) -> (i32, i32, i32) {
    %c0_i32 = arith.constant 0 : i32
    %c0_i32_0 = arith.constant 0 : i32
    %c0_i32_1 = arith.constant 0 : i32
    %c0_i32_2 = arith.constant 0 : i32
    return %c0_i32, %c0_i32_0, %c0_i32_1 : i32, i32, i32
  }
  func.func @transform_8(%arg0: i32) -> (i32, i32, i32) {
    %c0_i32 = arith.constant 0 : i32
    %c0_i32_0 = arith.constant 0 : i32
    %c0_i32_1 = arith.constant 0 : i32
    %c0_i32_2 = arith.constant 0 : i32
    return %c0_i32, %c0_i32_0, %c0_i32_1 : i32, i32, i32
  }
  func.func @transform_9(%arg0: i32) -> (i32, i32, i32) {
    %c0_i32 = arith.constant 0 : i32
    %c0_i32_0 = arith.constant 0 : i32
    %c0_i32_1 = arith.constant 0 : i32
    %c0_i32_2 = arith.constant 0 : i32
    return %c0_i32, %c0_i32_0, %c0_i32_1 : i32, i32, i32
  }
  func.func @transform_10(%arg0: i32) -> (i32, i32, i32) {
    %c0_i32 = arith.constant 0 : i32
    %c0_i32_0 = arith.constant 0 : i32
    %c0_i32_1 = arith.constant 0 : i32
    %c0_i32_2 = arith.constant 0 : i32
    return %c0_i32, %c0_i32_0, %c0_i32_1 : i32, i32, i32
  }
  func.func @transform_11(%arg0: i32) -> (i32, i32, i32) {
    %c0_i32 = arith.constant 0 : i32
    %c0_i32_0 = arith.constant 0 : i32
    %c0_i32_1 = arith.constant 0 : i32
    %c0_i32_2 = arith.constant 0 : i32
    return %c0_i32, %c0_i32_0, %c0_i32_1 : i32, i32, i32
  }
  func.func @transform_12(%arg0: i32) -> (i32, i32, i32) {
    %c0_i32 = arith.constant 0 : i32
    %c0_i32_0 = arith.constant 0 : i32
    %c0_i32_1 = arith.constant 0 : i32
    %c0_i32_2 = arith.constant 0 : i32
    return %c0_i32, %c0_i32_0, %c0_i32_1 : i32, i32, i32
  }
  func.func @transform_13(%arg0: i32) -> (i32, i32, i32) {
    %c0_i32 = arith.constant 0 : i32
    %c0_i32_0 = arith.constant 0 : i32
    %c0_i32_1 = arith.constant 0 : i32
    %c0_i32_2 = arith.constant 0 : i32
    return %c0_i32, %c0_i32_0, %c0_i32_1 : i32, i32, i32
  }
  func.func @transform_14(%arg0: i32) -> (i32, i32) {
    %c0_i32 = arith.constant 0 : i32
    %c0_i32_0 = arith.constant 0 : i32
    %c0_i32_1 = arith.constant 0 : i32
    return %c0_i32, %c0_i32_0 : i32, i32
  }
  func.func @transform_15(%arg0: i32) -> (i32, i32) {
    %c0_i32 = arith.constant 0 : i32
    %c0_i32_0 = arith.constant 0 : i32
    %c0_i32_1 = arith.constant 0 : i32
    return %c0_i32, %c0_i32_0 : i32, i32
  }
  func.func @transform_16(%arg0: i32) -> (i32, i32) {
    %c0_i32 = arith.constant 0 : i32
    %c0_i32_0 = arith.constant 0 : i32
    %c0_i32_1 = arith.constant 0 : i32
    return %c0_i32, %c0_i32_0 : i32, i32
  }
  func.func @transform_17(%arg0: i32) -> (i32, i32) {
    %c0_i32 = arith.constant 0 : i32
    %c0_i32_0 = arith.constant 0 : i32
    %c0_i32_1 = arith.constant 0 : i32
    return %c0_i32, %c0_i32_0 : i32, i32
  }
  func.func @transform_18(%arg0: i32) -> (i32, i32) {
    %c0_i32 = arith.constant 0 : i32
    %c0_i32_0 = arith.constant 0 : i32
    %c0_i32_1 = arith.constant 0 : i32
    return %c0_i32, %c0_i32_0 : i32, i32
  }
  func.func @transform_19(%arg0: i32) -> (i32, i32) {
    %c0_i32 = arith.constant 0 : i32
    %c0_i32_0 = arith.constant 0 : i32
    %c0_i32_1 = arith.constant 0 : i32
    return %c0_i32, %c0_i32_0 : i32, i32
  }
  func.func @transform_20(%arg0: i32) -> (i32, i32) {
    %c0_i32 = arith.constant 0 : i32
    %c0_i32_0 = arith.constant 0 : i32
    %c0_i32_1 = arith.constant 0 : i32
    return %c0_i32, %c0_i32_0 : i32, i32
  }
  func.func @transform_21(%arg0: i32) -> (i32, i32, i32) {
    %c0_i32 = arith.constant 0 : i32
    %c0_i32_0 = arith.constant 0 : i32
    %c0_i32_1 = arith.constant 0 : i32
    %c0_i32_2 = arith.constant 0 : i32
    return %c0_i32, %c0_i32_0, %c0_i32_1 : i32, i32, i32
  }
  func.func @transform_22(%arg0: i32) -> (i32, i32) {
    %c0_i32 = arith.constant 0 : i32
    %c0_i32_0 = arith.constant 0 : i32
    %c0_i32_1 = arith.constant 0 : i32
    return %c0_i32, %c0_i32_0 : i32, i32
  }
  func.func @transform_23(%arg0: i32) -> (i32, i32) {
    %c0_i32 = arith.constant 0 : i32
    %c0_i32_0 = arith.constant 0 : i32
    return %c0_i32, %arg0 : i32, i32
  }
}

</mosaic_0001>

<bundles_post_ra>
// kernel: context_aware_transformer.1
= control target key start
LH: loop header
LB: loop body
LE: loop exit
PB: predicated region body
PF: predicated region fallthrough
CT: control target
= control target key end

     0   :  { %vm232_vm0 = vcmask 1042432   ;;  %vm90_vm1 = vcmask 23552   ;;  %vm92_vm2 = vcmask 17408   ;;  %v22445_v1 = vmov 0.0   ;;  %s28101_s1 = inlined_call_operand.vmem [shape: f32[9,3,64], index: 1, kind: input, shape index: {}]   ;;  %s28102_s0 = inlined_call_operand.vmem [shape: f32[2,8,8,3], index: 0, kind: input, shape index: {}]   ;;  %s28103_s3 = inlined_call_operand.vmem [shape: f32[9,64,128], index: 3, kind: input, shape index: {}]   ;;  %s28104_s2 = inlined_call_operand.vmem [shape: f32[1,64], index: 2, kind: input, shape index: {}]   ;;  %s28105_s4 = inlined_call_operand.vmem [shape: f32[1,128], index: 4, kind: input, shape index: {}]   ;;  %s28106_s7 = inlined_call_operand.vmem [shape: f32[4,128,32], index: 7, kind: input, shape index: {}]   ;;  %s28107_s8 = inlined_call_operand.vmem [shape: f32[4,128,32], index: 8, kind: input, shape index: {}]   ;;  %s28108_s9 = inlined_call_operand.vmem [shape: f32[4,128,32], index: 9, kind: input, shape index: {}]   ;;  %s28109_s5 = inlined_call_operand.vmem [shape: f32[1,128], index: 5, kind: input, shape index: {}]   ;;  %s28110_s6 = inlined_call_operand.vmem [shape: f32[1,128], index: 6, kind: input, shape index: {}]   ;;  %s28111_s11 = inlined_call_operand.vmem [shape: f32[4,1,32], index: 11, kind: input, shape index: {}]   ;;  %s28112_s10 = inlined_call_operand.vmem [shape: f32[4,1,32], index: 10, kind: input, shape index: {}]   ;;  %s28113_s12 = inlined_call_operand.vmem [shape: f32[4,1,32], index: 12, kind: input, shape index: {}]   ;;  %s28114_s13 = inlined_call_operand.vmem [shape: f32[4,32,128], index: 13, kind: input, shape index: {}]   ;;  %s28115_s14 = inlined_call_operand.vmem [shape: f32[1,128], index: 14, kind: input, shape index: {}]   ;;  %s28116_s17 = inlined_call_operand.vmem [shape: f32[128,512], index: 17, kind: input, shape index: {}]   ;;  %s28117_s15 = inlined_call_operand.vmem [shape: f32[1,128], index: 15, kind: input, shape index: {}]   ;;  %s28118_s16 = inlined_call_operand.vmem [shape: f32[1,128], index: 16, kind: input, shape index: {}]   ;;  %s28119_s19 = inlined_call_operand.vmem [shape: f32[512,128], index: 19, kind: input, shape index: {}]   ;;  %s28120_s18 = inlined_call_operand.vmem [shape: f32[1,512], index: 18, kind: input, shape index: {}]   ;;  %s28121_s21 = inlined_call_operand.vmem [shape: f32[9,128,3], index: 21, kind: input, shape index: {}]   ;;  %s28122_s20 = inlined_call_operand.vmem [shape: f32[1,128], index: 20, kind: input, shape index: {}]   ;;  %s28123_s22 = inlined_call_operand.vmem [shape: f32[1,3], index: 22, kind: input, shape index: {}]   ;;  %s28124_s23 = inlined_call_operand.vmem [shape: f32[3,128], index: 23, kind: output, shape index: {}]  }
   0x1   :  { %28295 = sst [smem:[#allocation95_spill]] %s28101_s1  ;;  %91 = vst.msk [vmem:[#allocation2] sm:$0xff] %vm90_vm1, %v22445_v1  ;;  %94 = vst.msk [vmem:[#allocation2 + $0x10] sm:$0xff] %vm90_vm1, %v22445_v1  ;;  %vm2227_vm3 = vcmask 523264   ;;  %vm2229_vm4 = vcmask 517120   ;;  %vm5006_vm5 = vcmask 261120  }
   0x2   :  { %28296 = sst [smem:[#allocation96_spill]] %s28102_s0  ;;  %s28303_s24 = sld [smem:[#allocation95_spill]]  ;;  %93 = vst.msk [vmem:[#allocation2 + $0x8] sm:$0x3] %vm92_vm2, %v22445_v1  ;;  %95 = vst.msk [vmem:[#allocation2 + $0x18] sm:$0x3] %vm92_vm2, %v22445_v1 }
   0x3   :  { %28297 = sst [smem:[#allocation97_spill]] %s28103_s3  ;;  %96 = vst.msk [vmem:[#allocation2 + $0x20] sm:$0xff] %vm90_vm1, %v22445_v1  ;;  %98 = vst.msk [vmem:[#allocation2 + $0x30] sm:$0xff] %vm90_vm1, %v22445_v1  ;;  %s28304_s3 = sld [smem:[#allocation96_spill]] }
   0x4   :  { %28298 = sst [smem:[#allocation98_spill]] %s28104_s2  ;;  %97 = vst.msk [vmem:[#allocation2 + $0x28] sm:$0x3] %vm92_vm2, %v22445_v1  ;;  %99 = vst.msk [vmem:[#allocation2 + $0x38] sm:$0x3] %vm92_vm2, %v22445_v1 }
   0x5   :  { %28299 = sst [smem:[#allocation99_spill]] %s28105_s4  ;;  %100 = vst.msk [vmem:[#allocation2 + $0x40] sm:$0xff] %vm90_vm1, %v22445_v1  ;;  %102 = vst.msk [vmem:[#allocation2 + $0x50] sm:$0xff] %vm90_vm1, %v22445_v1  ;;  %s28306_s0 = sld [smem:[#allocation98_spill]] }
   0x6   :  { %28300 = sst [smem:[#allocation100_spill]] %s28106_s7  ;;  %101 = vst.msk [vmem:[#allocation2 + $0x48] sm:$0x3] %vm92_vm2, %v22445_v1  ;;  %103 = vst.msk [vmem:[#allocation2 + $0x58] sm:$0x3] %vm92_vm2, %v22445_v1 }
   0x7   :  { %28301 = sst [smem:[#allocation101_spill]] %s28107_s8  ;;  %104 = vst.msk [vmem:[#allocation2 + $0x60] sm:$0xff] %vm90_vm1, %v22445_v1  ;;  %106 = vst.msk [vmem:[#allocation2 + $0x70] sm:$0xff] %vm90_vm1, %v22445_v1  ;;  %s28316_s27 = sld [smem:[#allocation100_spill]] }
   0x8   :  { %28302 = sst [smem:[#allocation102_spill]] %s28108_s9  ;;  %v22569_v0 = vld [vmem:[%s28303_s24 + $0x4] sm:$0x7]  ;;  %105 = vst.msk [vmem:[#allocation2 + $0x68] sm:$0x3] %vm92_vm2, %v22445_v1  ;;  %12670 = vst [vmem:[#allocation4] sm:$0xff] %v22445_v1 }
   0x9   :  { %107 = vst.msk [vmem:[#allocation2 + $0x78] sm:$0x3] %vm92_vm2, %v22445_v1  ;;  %109 = vst.msk [vmem:[#allocation2 + $0x88] sm:$0x3] %vm92_vm2, %v22445_v1  ;;  %v165_v2 = vld [vmem:[%s28303_s24] sm:$0x7]  ;;  %17185 = vmatprep.subr.msk.mxu0 %vm232_vm0, %v22569_v0 }
   0xa   :  { %108 = vst.msk [vmem:[#allocation2 + $0x80] sm:$0xff] %vm90_vm1, %v22445_v1  ;;  %110 = vst.msk [vmem:[#allocation2 + $0x90] sm:$0xff] %vm90_vm1, %v22445_v1  ;;  %v74_v3 = vld [vmem:[%s28304_s3] sm:$0xff]  ;;  %v75_v4 = vld [vmem:[%s28304_s3 + $0x8] sm:$0xff]  ;;  %17186 = vmatpush3.msk.msra.mxu0 %vm232_vm0, %v22569_v0  ;;  %s28305_s9 = sld [smem:[#allocation97_spill]]  ;;  %s28317_s1 = sld [smem:[#allocation101_spill]] }
   0xb   :  { %111 = vst.msk [vmem:[#allocation2 + $0x98] sm:$0x3] %vm92_vm2, %v22445_v1  ;;  %113 = vst.msk [vmem:[#allocation2 + $0xa8] sm:$0x3] %vm92_vm2, %v22445_v1  ;;  %v76_v5 = vld [vmem:[%s28304_s3 + $0x10] sm:$0xff]  ;;  %v77_v6 = vld [vmem:[%s28304_s3 + $0x18] sm:$0xff]  ;;  %17211 = vmatprep.subr.msk.mxu0 %vm232_vm0, %v165_v2 }
   0xc   :  { %112 = vst.msk [vmem:[#allocation2 + $0xa0] sm:$0xff] %vm90_vm1, %v22445_v1  ;;  %114 = vst.msk [vmem:[#allocation2 + $0xb0] sm:$0xff] %vm90_vm1, %v22445_v1  ;;  %v78_v7 = vld [vmem:[%s28304_s3 + $0x20] sm:$0xff]  ;;  %v79_v8 = vld [vmem:[%s28304_s3 + $0x28] sm:$0xff]  ;;  %s28325_s8 = sld [smem:[#allocation102_spill]] }
   0xd   :  { %115 = vst.msk [vmem:[#allocation2 + $0xb8] sm:$0x3] %vm92_vm2, %v22445_v1  ;;  %117 = vst.msk [vmem:[#allocation2 + $0xc8] sm:$0x3] %vm92_vm2, %v22445_v1  ;;  %v80_v9 = vld [vmem:[%s28304_s3 + $0x30] sm:$0xff]  ;;  %v82_v10 = vld [vmem:[%s28304_s3 + $0x40] sm:$0xff] }
   0xe   :  { %116 = vst.msk [vmem:[#allocation2 + $0xc0] sm:$0xff] %vm90_vm1, %v22445_v1  ;;  %118 = vst.msk [vmem:[#allocation2 + $0xd0] sm:$0xff] %vm90_vm1, %v22445_v1  ;;  %v83_v11 = vld [vmem:[%s28304_s3 + $0x48] sm:$0xff]  ;;  %v84_v12 = vld [vmem:[%s28304_s3 + $0x50] sm:$0xff] }
   0xf   :  { %119 = vst.msk [vmem:[#allocation2 + $0xd8] sm:$0x3] %vm92_vm2, %v22445_v1  ;;  %121 = vst.msk [vmem:[#allocation2 + $0xe8] sm:$0x3] %vm92_vm2, %v22445_v1  ;;  %v85_v13 = vld [vmem:[%s28304_s3 + $0x58] sm:$0xff]  ;;  %v86_v14 = vld [vmem:[%s28304_s3 + $0x60] sm:$0xff] }
  0x10   :  { %120 = vst.msk [vmem:[#allocation2 + $0xe0] sm:$0xff] %vm90_vm1, %v22445_v1  ;;  %122 = vst.msk [vmem:[#allocation2 + $0xf0] sm:$0xff] %vm90_vm1, %v22445_v1  ;;  %v87_v15 = vld [vmem:[%s28304_s3 + $0x68] sm:$0xff]  ;;  %v88_v16 = vld [vmem:[%s28304_s3 + $0x70] sm:$0xff] }
  0x11   :  { %123 = vst.msk [vmem:[#allocation2 + $0xf8] sm:$0x3] %vm92_vm2, %v22445_v1  ;;  %125 = vst.msk [vmem:[#allocation2 + $0x108] sm:$0x3] %vm92_vm2, %v22445_v1  ;;  %v81_v17 = vld [vmem:[%s28304_s3 + $0x38] sm:$0xff]  ;;  %v166_v19 = vld [vmem:[#allocation2 + $0x1] sm:$0xff] }
  0x12   :  { %124 = vst.msk [vmem:[#allocation2 + $0x100] sm:$0xff] %vm90_vm1, %v22445_v1  ;;  %126 = vst.msk [vmem:[#allocation2 + $0x110] sm:$0xff] %vm90_vm1, %v22445_v1  ;;  %v89_v18 = vld [vmem:[%s28304_s3 + $0x78] sm:$0xff]  ;;  %17187 = vmatprep.mubr.msk.f32.mxu0 %vm90_vm1, %v166_v19  ;;  %v14536_v21 = vld [vmem:[%s28303_s24 + $0x8] sm:$0x7] }
  0x13   :  { %127 = vst.msk [vmem:[#allocation2 + $0x118] sm:$0x3] %vm92_vm2, %v22445_v1  ;;  %129 = vst.msk [vmem:[#allocation2 + $0x128] sm:$0x3] %vm92_vm2, %v22445_v1  ;;  %v174_v28 = vld [vmem:[#allocation2 + $0xa1] sm:$0xff] }
  0x14   :  { %128 = vst.msk [vmem:[#allocation2 + $0x120] sm:$0xff] %vm90_vm1, %v22445_v1  ;;  %130 = vst.msk [vmem:[#allocation2 + $0x130] sm:$0xff] %vm90_vm1, %v22445_v1  ;;  %v149_v36 = vld [vmem:[#allocation2] sm:$0xff]  ;;  %v14554_v39 = vld [vmem:[%s28303_s24 + $0xc] sm:$0x7] }
  0x15   :  { %131 = vst.msk [vmem:[#allocation2 + $0x138] sm:$0x3] %vm92_vm2, %v22445_v1  ;;  %12671 = vst [vmem:[#allocation4 + $0x8] sm:$0x3] %v22445_v1  ;;  %v157_v45 = vld [vmem:[#allocation2 + $0xa0] sm:$0xff] }
  0x16   :  { %12672 = vst [vmem:[#allocation4 + $0x10] sm:$0xff] %v22445_v1  ;;  %12673 = vst [vmem:[#allocation4 + $0x18] sm:$0x3] %v22445_v1  ;;  %v577_v53 = vld [vmem:[#allocation2 + $0x2] sm:$0xff]  ;;  %v14572_v56 = vld [vmem:[%s28303_s24 + $0x10] sm:$0x7] }
  0x17   :  { %12674 = vst [vmem:[#allocation4 + $0x20] sm:$0xff] %v22445_v1  ;;  %12675 = vst [vmem:[#allocation4 + $0x28] sm:$0x3] %v22445_v1  ;;  %v585_v62 = vld [vmem:[#allocation2 + $0xa2] sm:$0xff] }
  0x18   :  { %12676 = vst [vmem:[#allocation4 + $0x30] sm:$0xff] %v22445_v1  ;;  %12677 = vst [vmem:[#allocation4 + $0x38] sm:$0x3] %v22445_v1  ;;  %v14644_v19 = vld [vmem:[%s28303_s24 + $0x20] sm:$0x7] }
  0x19   :  { %12678 = vst [vmem:[#allocation4 + $0x40] sm:$0xff] %v22445_v1  ;;  %12679 = vst [vmem:[#allocation4 + $0x48] sm:$0x3] %v22445_v1 }
  0x1a   :  { %12680 = vst [vmem:[#allocation4 + $0x50] sm:$0xff] %v22445_v1  ;;  %12681 = vst [vmem:[#allocation4 + $0x58] sm:$0x3] %v22445_v1 }
  0x1b   :  { %12682 = vst [vmem:[#allocation4 + $0x60] sm:$0xff] %v22445_v1  ;;  %12683 = vst [vmem:[#allocation4 + $0x68] sm:$0x3] %v22445_v1 }
  0x1c   :  { %12684 = vst [vmem:[#allocation4 + $0x70] sm:$0xff] %v22445_v1  ;;  %12685 = vst [vmem:[#allocation4 + $0x78] sm:$0x3] %v22445_v1 }
  0x1d   :  { %12686 = vst [vmem:[#allocation4 + $0x80] sm:$0xff] %v22445_v1  ;;  %12687 = vst [vmem:[#allocation4 + $0x88] sm:$0x3] %v22445_v1 }
  0x1e   :  { %12688 = vst [vmem:[#allocation4 + $0x90] sm:$0xff] %v22445_v1  ;;  %12689 = vst [vmem:[#allocation4 + $0x98] sm:$0x3] %v22445_v1 }
  0x1f   :  { %12690 = vst [vmem:[#allocation4 + $0xa0] sm:$0xff] %v22445_v1  ;;  %12691 = vst [vmem:[#allocation4 + $0xa8] sm:$0x3] %v22445_v1 }
  0x20   :  { %12692 = vst [vmem:[#allocation4 + $0xb0] sm:$0xff] %v22445_v1  ;;  %12693 = vst [vmem:[#allocation4 + $0xb8] sm:$0x3] %v22445_v1 }
  0x21   :  { %12694 = vst [vmem:[#allocation4 + $0xc0] sm:$0xff] %v22445_v1  ;;  %12695 = vst [vmem:[#allocation4 + $0xc8] sm:$0x3] %v22445_v1 }
  0x22   :  { %12696 = vst [vmem:[#allocation4 + $0xd0] sm:$0xff] %v22445_v1  ;;  %12697 = vst [vmem:[#allocation4 + $0xd8] sm:$0x3] %v22445_v1 }
  0x23   :  { %12698 = vst [vmem:[#allocation4 + $0xe0] sm:$0xff] %v22445_v1  ;;  %12699 = vst [vmem:[#allocation4 + $0xe8] sm:$0x3] %v22445_v1 }
  0x24   :  { %12700 = vst [vmem:[#allocation4 + $0xf0] sm:$0xff] %v22445_v1  ;;  %12701 = vst [vmem:[#allocation4 + $0xf8] sm:$0x3] %v22445_v1 }
  0x25   :  { %12702 = vst [vmem:[#allocation4 + $0x100] sm:$0xff] %v22445_v1  ;;  %12703 = vst [vmem:[#allocation4 + $0x108] sm:$0x3] %v22445_v1 }
  0x26   :  { %12704 = vst [vmem:[#allocation4 + $0x110] sm:$0xff] %v22445_v1  ;;  %12705 = vst [vmem:[#allocation4 + $0x118] sm:$0x3] %v22445_v1 }
  0x27   :  { %12706 = vst [vmem:[#allocation4 + $0x120] sm:$0xff] %v22445_v1  ;;  %12707 = vst [vmem:[#allocation4 + $0x128] sm:$0x3] %v22445_v1 }
  0x28   :  { %12708 = vst [vmem:[#allocation4 + $0x130] sm:$0xff] %v22445_v1  ;;  %12709 = vst [vmem:[#allocation4 + $0x138] sm:$0x3] %v22445_v1 }
  0x29   :  { %133 = vst.msk [vmem:[#allocation2 + $0x11] sm:$0xff] %vm90_vm1, %v74_v3  ;;  %134 = vst.msk [vmem:[#allocation2 + $0x21] sm:$0xff] %vm90_vm1, %v75_v4 }
  0x2a   :  { %135 = vst.msk [vmem:[#allocation2 + $0x31] sm:$0xff] %vm90_vm1, %v76_v5  ;;  %136 = vst.msk [vmem:[#allocation2 + $0x41] sm:$0xff] %vm90_vm1, %v77_v6 }
  0x2b   :  { %137 = vst.msk [vmem:[#allocation2 + $0x51] sm:$0xff] %vm90_vm1, %v78_v7  ;;  %138 = vst.msk [vmem:[#allocation2 + $0x61] sm:$0xff] %vm90_vm1, %v79_v8  ;;  %v14590_v7 = vld [vmem:[%s28303_s24 + $0x14] sm:$0x7] }
  0x2c   :  { %139 = vst.msk [vmem:[#allocation2 + $0x71] sm:$0xff] %vm90_vm1, %v80_v9  ;;  %141 = vst.msk [vmem:[#allocation2 + $0xb1] sm:$0xff] %vm90_vm1, %v82_v10  ;;  %v14608_v10 = vld [vmem:[%s28303_s24 + $0x18] sm:$0x7] }
  0x2d   :  { %142 = vst.msk [vmem:[#allocation2 + $0xc1] sm:$0xff] %vm90_vm1, %v83_v11  ;;  %143 = vst.msk [vmem:[#allocation2 + $0xd1] sm:$0xff] %vm90_vm1, %v84_v12 }
  0x2e   :  { %144 = vst.msk [vmem:[#allocation2 + $0xe1] sm:$0xff] %vm90_vm1, %v85_v13  ;;  %145 = vst.msk [vmem:[#allocation2 + $0xf1] sm:$0xff] %vm90_vm1, %v86_v14  ;;  %v14663_v13 = vld [vmem:[%s28305_s9 + $0x40] sm:$0xff]  ;;  %v14664_v14 = vld [vmem:[%s28305_s9 + $0x48] sm:$0xff] }
  0x2f   :  { %146 = vst.msk [vmem:[#allocation2 + $0x101] sm:$0xff] %vm90_vm1, %v87_v15  ;;  %147 = vst.msk [vmem:[#allocation2 + $0x111] sm:$0xff] %vm90_vm1, %v88_v16  ;;  %v19947_v15 = vpack.c.bf16 %v14664_v14, %v14663_v13  ;;  %v14626_v16 = vld [vmem:[%s28303_s24 + $0x1c] sm:$0x7] }
  0x30   :  { %140 = vst.msk [vmem:[#allocation2 + $0x81] sm:$0xff] %vm90_vm1, %v81_v17  ;;  %148 = vst.msk [vmem:[#allocation2 + $0x121] sm:$0xff] %vm90_vm1, %v89_v18  ;;  %v22764_v20 = vld [vmem:[#allocation2 + $0x11] sm:$0xff]  ;;  %v22771_v22 = vld [vmem:[#allocation2 + $0x21] sm:$0xff] }
  0x31   :  { %17188 = vmatmul.mubr.msk.f32.vlgmr.msra.gmra.mrb[0].mxu0 %vm90_vm1, %v22764_v20  ;;  %v22776_v23 = vld [vmem:[#allocation2 + $0x31] sm:$0xff]  ;;  %v22778_v24 = vld [vmem:[#allocation2 + $0x41] sm:$0xff]  ;;  %19948 = vmatprep.subr.bf16.mxu1 %v19947_v15  ;;  %2233 = vst.msk [vmem:[#allocation3 + $0x20] sm:$0xff] %vm2227_vm3, %v22445_v1  ;;  %2228 = vst.msk [vmem:[#allocation3] sm:$0xff] %vm2227_vm3, %v22445_v1 }
  0x32   :  { %17212 = vmatpush3.msk.msra.mxu0 %vm232_vm0, %v165_v2  ;;  %17190 = vmatprep.mubr.msk.f32.mxu0 %vm90_vm1, %v22771_v22  ;;  %v22785_v25 = vld [vmem:[#allocation2 + $0x51] sm:$0xff]  ;;  %v22787_v26 = vld [vmem:[#allocation2 + $0x61] sm:$0xff]  ;;  %2234 = vst.msk [vmem:[#allocation3 + $0x28] sm:$0x3] %vm2229_vm4, %v22445_v1  ;;  %2230 = vst.msk [vmem:[#allocation3 + $0x8] sm:$0x3] %vm2229_vm4, %v22445_v1 }
  0x33   :  { %17237 = vmatprep.subr.msk.mxu0 %vm232_vm0, %v14536_v21  ;;  %v22793_v27 = vld [vmem:[#allocation2 + $0x71] sm:$0xff]  ;;  %v22829_v38 = vld [vmem:[#allocation2 + $0x20] sm:$0xff]  ;;  %19950 = vmatpush3.bf16.msra.mxu1 %v19947_v15  ;;  %2231 = vst.msk [vmem:[#allocation3 + $0x10] sm:$0xff] %vm2227_vm3, %v22445_v1  ;;  %2235 = vst.msk [vmem:[#allocation3 + $0x30] sm:$0xff] %vm2227_vm3, %v22445_v1 }
  0x34   :  { %v22798_v29 = vld [vmem:[#allocation2 + $0xb1] sm:$0xff]  ;;  %v22800_v30 = vld [vmem:[#allocation2 + $0xc1] sm:$0xff]  ;;  %2232 = vst.msk [vmem:[#allocation3 + $0x18] sm:$0x3] %vm2229_vm4, %v22445_v1  ;;  %2236 = vst.msk [vmem:[#allocation3 + $0x38] sm:$0x3] %vm2229_vm4, %v22445_v1 }
  0x35   :  { %17191 = vmatmul.mubr.msk.f32.gmra.mrb[2].mxu0 %vm90_vm1, %v22776_v23  ;;  %v22806_v31 = vld [vmem:[#allocation2 + $0xd1] sm:$0xff]  ;;  %v22808_v32 = vld [vmem:[#allocation2 + $0xe1] sm:$0xff]  ;;  %2237 = vst.msk [vmem:[#allocation3 + $0x40] sm:$0xff] %vm2227_vm3, %v22445_v1  ;;  %2239 = vst.msk [vmem:[#allocation3 + $0x50] sm:$0xff] %vm2227_vm3, %v22445_v1 }
  0x36   :  { %17193 = vmatprep.mubr.msk.f32.mxu0 %vm90_vm1, %v22778_v24  ;;  %v22814_v33 = vld [vmem:[#allocation2 + $0xf1] sm:$0xff]  ;;  %v22816_v34 = vld [vmem:[#allocation2 + $0x101] sm:$0xff]  ;;  %2238 = vst.msk [vmem:[#allocation3 + $0x48] sm:$0x3] %vm2229_vm4, %v22445_v1  ;;  %2240 = vst.msk [vmem:[#allocation3 + $0x58] sm:$0x3] %vm2229_vm4, %v22445_v1 }
  0x37   :  { %v22822_v35 = vld [vmem:[#allocation2 + $0x111] sm:$0xff]  ;;  %v22841_v41 = vld [vmem:[#allocation2 + $0x40] sm:$0xff]  ;;  %2241 = vst.msk [vmem:[#allocation3 + $0x60] sm:$0xff] %vm2227_vm3, %v22445_v1  ;;  %2243 = vst.msk [vmem:[#allocation3 + $0x70] sm:$0xff] %vm2227_vm3, %v22445_v1 }
  0x38   :  { %v22827_v37 = vld [vmem:[#allocation2 + $0x10] sm:$0xff]  ;;  %v22850_v43 = vld [vmem:[#allocation2 + $0x60] sm:$0xff]  ;;  %2242 = vst.msk [vmem:[#allocation3 + $0x68] sm:$0x3] %vm2229_vm4, %v22445_v1  ;;  %2244 = vst.msk [vmem:[#allocation3 + $0x78] sm:$0x3] %vm2229_vm4, %v22445_v1 }
  0x39   :  { %17194 = vmatmul.mubr.msk.f32.gmra.mrb[4].mxu0 %vm90_vm1, %v22785_v25  ;;  %v22839_v40 = vld [vmem:[#allocation2 + $0x30] sm:$0xff]  ;;  %v22861_v47 = vld [vmem:[#allocation2 + $0xc0] sm:$0xff]  ;;  %2245 = vst.msk [vmem:[#allocation3 + $0x80] sm:$0xff] %vm2227_vm3, %v22445_v1  ;;  %2247 = vst.msk [vmem:[#allocation3 + $0x90] sm:$0xff] %vm2227_vm3, %v22445_v1 }
  0x3a   :  { %17196 = vmatprep.mubr.msk.f32.mxu0 %vm90_vm1, %v22787_v26  ;;  %v22848_v42 = vld [vmem:[#allocation2 + $0x50] sm:$0xff]  ;;  %v22868_v49 = vld [vmem:[#allocation2 + $0xe0] sm:$0xff]  ;;  %2246 = vst.msk [vmem:[#allocation3 + $0x88] sm:$0x3] %vm2229_vm4, %v22445_v1  ;;  %2248 = vst.msk [vmem:[#allocation3 + $0x98] sm:$0x3] %vm2229_vm4, %v22445_v1 }
  0x3b   :  { %v22856_v44 = vld [vmem:[#allocation2 + $0x70] sm:$0xff]  ;;  %v22876_v51 = vld [vmem:[#allocation2 + $0x100] sm:$0xff]  ;;  %2249 = vst.msk [vmem:[#allocation3 + $0xa0] sm:$0xff] %vm2227_vm3, %v22445_v1  ;;  %2251 = vst.msk [vmem:[#allocation3 + $0xb0] sm:$0xff] %vm2227_vm3, %v22445_v1 }
  0x3c   :  { %v158_v46 = vld [vmem:[#allocation2 + $0xb0] sm:$0xff]  ;;  %v22889_v55 = vld [vmem:[#allocation2 + $0x22] sm:$0xff]  ;;  %2250 = vst.msk [vmem:[#allocation3 + $0xa8] sm:$0x3] %vm2229_vm4, %v22445_v1  ;;  %2252 = vst.msk [vmem:[#allocation3 + $0xb8] sm:$0x3] %vm2229_vm4, %v22445_v1 }
  0x3d   :  { %17197 = vmatmul.mubr.msk.f32.gmra.mrb[6].mxu0 %vm90_vm1, %v22793_v27  ;;  %v22866_v48 = vld [vmem:[#allocation2 + $0xd0] sm:$0xff]  ;;  %v22901_v58 = vld [vmem:[#allocation2 + $0x42] sm:$0xff]  ;;  %2253 = vst.msk [vmem:[#allocation3 + $0xc0] sm:$0xff] %vm2227_vm3, %v22445_v1  ;;  %2255 = vst.msk [vmem:[#allocation3 + $0xd0] sm:$0xff] %vm2227_vm3, %v22445_v1 }
  0x3e   :  { %17199 = vmatprep.mubr.msk.f32.mxu0 %vm90_vm1, %v174_v28  ;;  %v22874_v50 = vld [vmem:[#allocation2 + $0xf0] sm:$0xff]  ;;  %v22910_v60 = vld [vmem:[#allocation2 + $0x62] sm:$0xff]  ;;  %2254 = vst.msk [vmem:[#allocation3 + $0xc8] sm:$0x3] %vm2229_vm4, %v22445_v1  ;;  %2256 = vst.msk [vmem:[#allocation3 + $0xd8] sm:$0x3] %vm2229_vm4, %v22445_v1 }
  0x3f   :  { %v22882_v52 = vld [vmem:[#allocation2 + $0x110] sm:$0xff]  ;;  %v22923_v0 = vld [vmem:[#allocation2 + $0xc2] sm:$0xff]  ;;  %2257 = vst.msk [vmem:[#allocation3 + $0xe0] sm:$0xff] %vm2227_vm3, %v22445_v1  ;;  %2259 = vst.msk [vmem:[#allocation3 + $0xf0] sm:$0xff] %vm2227_vm3, %v22445_v1 }
  0x40   :  { %v22887_v54 = vld [vmem:[#allocation2 + $0x12] sm:$0xff]  ;;  %v22931_v3 = vld [vmem:[#allocation2 + $0xe2] sm:$0xff]  ;;  %2258 = vst.msk [vmem:[#allocation3 + $0xe8] sm:$0x3] %vm2229_vm4, %v22445_v1  ;;  %2260 = vst.msk [vmem:[#allocation3 + $0xf8] sm:$0x3] %vm2229_vm4, %v22445_v1 }
  0x41   :  { %17200 = vmatmul.mubr.msk.f32.gmra.mrb[8].mxu0 %vm90_vm1, %v22798_v29  ;;  %v22899_v57 = vld [vmem:[#allocation2 + $0x32] sm:$0xff]  ;;  %v22939_v5 = vld [vmem:[#allocation2 + $0x102] sm:$0xff]  ;;  %2261 = vst.msk [vmem:[#allocation3 + $0x100] sm:$0xff] %vm2227_vm3, %v22445_v1  ;;  %2263 = vst.msk [vmem:[#allocation3 + $0x110] sm:$0xff] %vm2227_vm3, %v22445_v1 }
  0x42   :  { %17202 = vmatprep.mubr.msk.f32.mxu0 %vm90_vm1, %v22800_v30  ;;  %v22908_v59 = vld [vmem:[#allocation2 + $0x52] sm:$0xff]  ;;  %v22968_v8 = vld [vmem:[#allocation2 + $0x80] sm:$0xff]  ;;  %2262 = vst.msk [vmem:[#allocation3 + $0x108] sm:$0x3] %vm2229_vm4, %v22445_v1  ;;  %2264 = vst.msk [vmem:[#allocation3 + $0x118] sm:$0x3] %vm2229_vm4, %v22445_v1 }
  0x43   :  { %v22916_v61 = vld [vmem:[#allocation2 + $0x72] sm:$0xff]  ;;  %v22985_v9 = vld [vmem:[#allocation2 + $0x120] sm:$0xff]  ;;  %2265 = vst.msk [vmem:[#allocation3 + $0x120] sm:$0xff] %vm2227_vm3, %v22445_v1  ;;  %2267 = vst.msk [vmem:[#allocation3 + $0x130] sm:$0xff] %vm2227_vm3, %v22445_v1 }
  0x44   :  { %v22921_v63 = vld [vmem:[#allocation2 + $0xb2] sm:$0xff]  ;;  %v23008_v11 = vld [vmem:[#allocation2 + $0x81] sm:$0xff]  ;;  %2266 = vst.msk [vmem:[#allocation3 + $0x128] sm:$0x3] %vm2229_vm4, %v22445_v1  ;;  %2268 = vst.msk [vmem:[#allocation3 + $0x138] sm:$0x3] %vm2229_vm4, %v22445_v1 }
  0x45   :  { %17203 = vmatmul.mubr.msk.f32.gmra.mrb[10].mxu0 %vm90_vm1, %v22806_v31  ;;  %v22929_v2 = vld [vmem:[#allocation2 + $0xd2] sm:$0xff]  ;;  %v23026_v12 = vld [vmem:[#allocation2 + $0x121] sm:$0xff]  ;;  %vm24272_vm6 = vmpackc.low %vm5006_vm5, %vm5006_vm5 }
  0x46   :  { %17205 = vmatprep.mubr.msk.f32.mxu0 %vm90_vm1, %v22808_v32  ;;  %v22937_v4 = vld [vmem:[#allocation2 + $0xf2] sm:$0xff]  ;;  %v1274_v17 = vld [vmem:[#allocation2 + $0x82] sm:$0xff] }
  0x47   :  { %v22945_v6 = vld [vmem:[#allocation2 + $0x112] sm:$0xff]  ;;  %v1282_v18 = vld [vmem:[#allocation2 + $0x122] sm:$0xff] }
  0x48   :  { %v2302_v1 = vld [vmem:[%s28305_s9] sm:$0xff]  ;;  %v2309_v13 = vld [vmem:[%s28305_s9 + $0x38] sm:$0xff] }
  0x49   :  { %17206 = vmatmul.mubr.msk.f32.gmra.mrb[12].mxu0 %vm90_vm1, %v22814_v33 }
  0x4a   :  { %17208 = vmatprep.mubr.msk.f32.mxu0 %vm90_vm1, %v22816_v34 }
  0x4d   :  { %17209 = vmatmul.mubr.msk.f32.gmra.mrb[14].mxu0 %vm90_vm1, %v22822_v35 }
  0x4e   :  { %17213 = vmatprep.mubr.msk.f32.mxu0 %vm90_vm1, %v149_v36  ;;  %v2303_v36 = vld [vmem:[%s28305_s9 + $0x8] sm:$0xff] }
  0x51   :  { %17214 = vmatmul.mubr.msk.f32.vlgmr.msra.gmra.mrb[0].mxu0 %vm90_vm1, %v22827_v37 }
  0x52   :  { %17238 = vmatpush3.msk.msra.mxu0 %vm232_vm0, %v14536_v21  ;;  %17216 = vmatprep.mubr.msk.f32.mxu0 %vm90_vm1, %v22829_v38  ;;  %v1513_v21 = vld [vmem:[#allocation2 + $0x130] sm:$0xff] }
  0x53   :  { %17263 = vmatprep.subr.msk.mxu0 %vm232_vm0, %v14554_v39 }
  0x55   :  { %17217 = vmatmul.mubr.msk.f32.gmra.mrb[2].mxu0 %vm90_vm1, %v22839_v40 }
  0x56   :  { %17219 = vmatprep.mubr.msk.f32.mxu0 %vm90_vm1, %v22841_v41 }
  0x59   :  { %17220 = vmatmul.mubr.msk.f32.gmra.mrb[4].mxu0 %vm90_vm1, %v22848_v42 }
  0x5a   :  { %17222 = vmatprep.mubr.msk.f32.mxu0 %vm90_vm1, %v22850_v43 }
  0x5d   :  { %17223 = vmatmul.mubr.msk.f32.gmra.mrb[6].mxu0 %vm90_vm1, %v22856_v44 }
  0x5e   :  { %17225 = vmatprep.mubr.msk.f32.mxu0 %vm90_vm1, %v157_v45 }
  0x61   :  { %17226 = vmatmul.mubr.msk.f32.gmra.mrb[8].mxu0 %vm90_vm1, %v158_v46 }
  0x62   :  { %17228 = vmatprep.mubr.msk.f32.mxu0 %vm90_vm1, %v22861_v47 }
  0x65   :  { %17229 = vmatmul.mubr.msk.f32.gmra.mrb[10].mxu0 %vm90_vm1, %v22866_v48 }
  0x66   :  { %17231 = vmatprep.mubr.msk.f32.mxu0 %vm90_vm1, %v22868_v49 }
  0x69   :  { %17232 = vmatmul.mubr.msk.f32.gmra.mrb[12].mxu0 %vm90_vm1, %v22874_v50 }
  0x6a   :  { %17234 = vmatprep.mubr.msk.f32.mxu0 %vm90_vm1, %v22876_v51 }
  0x6d   :  { %17235 = vmatmul.mubr.msk.f32.gmra.mrb[14].mxu0 %vm90_vm1, %v22882_v52 }
  0x6e   :  { %17239 = vmatprep.mubr.msk.f32.mxu0 %vm90_vm1, %v577_v53 }
  0x71   :  { %17240 = vmatmul.mubr.msk.f32.vlgmr.msra.gmra.mrb[0].mxu0 %vm90_vm1, %v22887_v54 }
  0x72   :  { %17264 = vmatpush3.msk.msra.mxu0 %vm232_vm0, %v14554_v39  ;;  %17242 = vmatprep.mubr.msk.f32.mxu0 %vm90_vm1, %v22889_v55 }
  0x73   :  { %17289 = vmatprep.subr.msk.mxu0 %vm232_vm0, %v14572_v56 }
  0x75   :  { %17243 = vmatmul.mubr.msk.f32.gmra.mrb[2].mxu0 %vm90_vm1, %v22899_v57 }
  0x76   :  { %17245 = vmatprep.mubr.msk.f32.mxu0 %vm90_vm1, %v22901_v58 }
  0x79   :  { %17246 = vmatmul.mubr.msk.f32.gmra.mrb[4].mxu0 %vm90_vm1, %v22908_v59 }
  0x7a   :  { %17248 = vmatprep.mubr.msk.f32.mxu0 %vm90_vm1, %v22910_v60 }
  0x7d   :  { %17249 = vmatmul.mubr.msk.f32.gmra.mrb[6].mxu0 %vm90_vm1, %v22916_v61 }
  0x7e   :  { %17251 = vmatprep.mubr.msk.f32.mxu0 %vm90_vm1, %v585_v62 }
  0x81   :  { %17252 = vmatmul.mubr.msk.f32.gmra.mrb[8].mxu0 %vm90_vm1, %v22921_v63 }
  0x82   :  { %17254 = vmatprep.mubr.msk.f32.mxu0 %vm90_vm1, %v22923_v0 }
  0x85   :  { %17255 = vmatmul.mubr.msk.f32.gmra.mrb[10].mxu0 %vm90_vm1, %v22929_v2 }
  0x86   :  { %17257 = vmatprep.mubr.msk.f32.mxu0 %vm90_vm1, %v22931_v3 }
  0x89   :  { %17258 = vmatmul.mubr.msk.f32.gmra.mrb[12].mxu0 %vm90_vm1, %v22937_v4 }
  0x8a   :  { %17260 = vmatprep.mubr.msk.f32.mxu0 %vm90_vm1, %v22939_v5 }
  0x8d   :  { %17261 = vmatmul.mubr.msk.f32.gmra.mrb[14].mxu0 %vm90_vm1, %v22945_v6 }
  0x8e   :  { %17265 = vmatprep.mubr.msk.f32.mxu0 %vm90_vm1, %v22827_v37  ;;  %v19963_v37 = vpack.c.bf16 %v2303_v36, %v2302_v1 }
  0x91   :  { %17266 = vmatmul.mubr.msk.f32.vlgmr.msra.gmra.mrb[0].mxu0 %vm90_vm1, %v22829_v38 }
  0x92   :  { %17290 = vmatpush3.msk.msra.mxu0 %vm232_vm0, %v14572_v56  ;;  %17268 = vmatprep.mubr.msk.f32.mxu0 %vm90_vm1, %v22839_v40 }
  0x93   :  { %17315 = vmatprep.subr.msk.mxu0 %vm232_vm0, %v14590_v7 }
  0x95   :  { %17269 = vmatmul.mubr.msk.f32.gmra.mrb[2].mxu0 %vm90_vm1, %v22841_v41 }
  0x96   :  { %17271 = vmatprep.mubr.msk.f32.mxu0 %vm90_vm1, %v22848_v42 }
  0x99   :  { %17272 = vmatmul.mubr.msk.f32.gmra.mrb[4].mxu0 %vm90_vm1, %v22850_v43 }
  0x9a   :  { %17274 = vmatprep.mubr.msk.f32.mxu0 %vm90_vm1, %v22856_v44 }
  0x9d   :  { %17275 = vmatmul.mubr.msk.f32.gmra.mrb[6].mxu0 %vm90_vm1, %v22968_v8 }
  0x9e   :  { %17277 = vmatprep.mubr.msk.f32.mxu0 %vm90_vm1, %v158_v46 }
  0xa1   :  { %17278 = vmatmul.mubr.msk.f32.gmra.mrb[8].mxu0 %vm90_vm1, %v22861_v47 }
  0xa2   :  { %17280 = vmatprep.mubr.msk.f32.mxu0 %vm90_vm1, %v22866_v48 }
  0xa5   :  { %17281 = vmatmul.mubr.msk.f32.gmra.mrb[10].mxu0 %vm90_vm1, %v22868_v49 }
  0xa6   :  { %17283 = vmatprep.mubr.msk.f32.mxu0 %vm90_vm1, %v22874_v50 }
  0xa9   :  { %17284 = vmatmul.mubr.msk.f32.gmra.mrb[12].mxu0 %vm90_vm1, %v22876_v51 }
  0xaa   :  { %17286 = vmatprep.mubr.msk.f32.mxu0 %vm90_vm1, %v22882_v52 }
  0xad   :  { %17287 = vmatmul.mubr.msk.f32.gmra.mrb[14].mxu0 %vm90_vm1, %v22985_v9 }
  0xae   :  { %17291 = vmatprep.mubr.msk.f32.mxu0 %vm90_vm1, %v22764_v20  ;;  %v1505_v20 = vld [vmem:[#allocation2 + $0x90] sm:$0xff] }
  0xb1   :  { %17292 = vmatmul.mubr.msk.f32.vlgmr.msra.gmra.mrb[0].mxu0 %vm90_vm1, %v22771_v22 }
  0xb2   :  { %17316 = vmatpush3.msk.msra.mxu0 %vm232_vm0, %v14590_v7  ;;  %17294 = vmatprep.mubr.msk.f32.mxu0 %vm90_vm1, %v22776_v23 }
  0xb3   :  { %17341 = vmatprep.subr.msk.mxu0 %vm232_vm0, %v14608_v10 }
  0xb5   :  { %17295 = vmatmul.mubr.msk.f32.gmra.mrb[2].mxu0 %vm90_vm1, %v22778_v24 }
  0xb6   :  { %17297 = vmatprep.mubr.msk.f32.mxu0 %vm90_vm1, %v22785_v25 }
  0xb9   :  { %17298 = vmatmul.mubr.msk.f32.gmra.mrb[4].mxu0 %vm90_vm1, %v22787_v26 }
  0xba   :  { %17300 = vmatprep.mubr.msk.f32.mxu0 %vm90_vm1, %v22793_v27 }
  0xbd   :  { %17301 = vmatmul.mubr.msk.f32.gmra.mrb[6].mxu0 %vm90_vm1, %v23008_v11 }
  0xbe   :  { %17303 = vmatprep.mubr.msk.f32.mxu0 %vm90_vm1, %v22798_v29  ;;  %v14667_v29 = vld [vmem:[%s28305_s9 + $0x60] sm:$0xff] }
  0xc1   :  { %17304 = vmatmul.mubr.msk.f32.gmra.mrb[8].mxu0 %vm90_vm1, %v22800_v30 }
  0xc2   :  { %17306 = vmatprep.mubr.msk.f32.mxu0 %vm90_vm1, %v22806_v31 }
  0xc5   :  { %17307 = vmatmul.mubr.msk.f32.gmra.mrb[10].mxu0 %vm90_vm1, %v22808_v32 }
  0xc6   :  { %17309 = vmatprep.mubr.msk.f32.mxu0 %vm90_vm1, %v22814_v33 }
  0xc9   :  { %17310 = vmatmul.mubr.msk.f32.gmra.mrb[12].mxu0 %vm90_vm1, %v22816_v34 }
  0xca   :  { %17312 = vmatprep.mubr.msk.f32.mxu0 %vm90_vm1, %v22822_v35 }
  0xcd   :  { %17313 = vmatmul.mubr.msk.f32.gmra.mrb[14].mxu0 %vm90_vm1, %v23026_v12 }
  0xce   :  { %17317 = vmatprep.mubr.msk.f32.mxu0 %vm90_vm1, %v22887_v54  ;;  %v2304_v54 = vld [vmem:[%s28305_s9 + $0x10] sm:$0xff] }
  0xd1   :  { %17318 = vmatmul.mubr.msk.f32.vlgmr.msra.gmra.mrb[0].mxu0 %vm90_vm1, %v22889_v55 }
  0xd2   :  { %17342 = vmatpush3.msk.msra.mxu0 %vm232_vm0, %v14608_v10  ;;  %17320 = vmatprep.mubr.msk.f32.mxu0 %vm90_vm1, %v22899_v57 }
  0xd3   :  { %17367 = vmatprep.subr.msk.mxu0 %vm232_vm0, %v14626_v16 }
  0xd5   :  { %17321 = vmatmul.mubr.msk.f32.gmra.mrb[2].mxu0 %vm90_vm1, %v22901_v58 }
  0xd6   :  { %17323 = vmatprep.mubr.msk.f32.mxu0 %vm90_vm1, %v22908_v59 }
  0xd9   :  { %17324 = vmatmul.mubr.msk.f32.gmra.mrb[4].mxu0 %vm90_vm1, %v22910_v60 }
  0xda   :  { %17326 = vmatprep.mubr.msk.f32.mxu0 %vm90_vm1, %v22916_v61 }
  0xdd   :  { %17327 = vmatmul.mubr.msk.f32.gmra.mrb[6].mxu0 %vm90_vm1, %v1274_v17 }
  0xde   :  { %17329 = vmatprep.mubr.msk.f32.mxu0 %vm90_vm1, %v22921_v63 }
  0xe1   :  { %17330 = vmatmul.mubr.msk.f32.gmra.mrb[8].mxu0 %vm90_vm1, %v22923_v0 }
  0xe2   :  { %17332 = vmatprep.mubr.msk.f32.mxu0 %vm90_vm1, %v22929_v2 }
  0xe5   :  { %17333 = vmatmul.mubr.msk.f32.gmra.mrb[10].mxu0 %vm90_vm1, %v22931_v3 }
  0xe6   :  { %17335 = vmatprep.mubr.msk.f32.mxu0 %vm90_vm1, %v22937_v4 }
  0xe9   :  { %17336 = vmatmul.mubr.msk.f32.gmra.mrb[12].mxu0 %vm90_vm1, %v22939_v5 }
  0xea   :  { %17338 = vmatprep.mubr.msk.f32.mxu0 %vm90_vm1, %v22945_v6 }
  0xed   :  { %17339 = vmatmul.mubr.msk.f32.gmra.mrb[14].mxu0 %vm90_vm1, %v1282_v18 }
  0xee   :  { %17343 = vmatprep.mubr.msk.f32.mxu0 %vm90_vm1, %v22829_v38  ;;  %v23273_v38 = vld [vmem:[%s28306_s0] ss:$0 sm:$0xff]  ;;  %s28307_s0 = sld [smem:[#allocation99_spill]] }
  0xf1   :  { %17344 = vmatmul.mubr.msk.f32.vlgmr.msra.gmra.mrb[0].mxu0 %vm90_vm1, %v22839_v40 }
  0xf2   :  { %17368 = vmatpush3.msk.msra.mxu0 %vm232_vm0, %v14626_v16  ;;  %17346 = vmatprep.mubr.msk.f32.mxu0 %vm90_vm1, %v22841_v41 }
  0xf3   :  { %17393 = vmatprep.subr.msk.mxu0 %vm232_vm0, %v14644_v19 }
  0xf5   :  { %17347 = vmatmul.mubr.msk.f32.gmra.mrb[2].mxu0 %vm90_vm1, %v22848_v42 }
  0xf6   :  { %17349 = vmatprep.mubr.msk.f32.mxu0 %vm90_vm1, %v22850_v43 }
  0xf9   :  { %17350 = vmatmul.mubr.msk.f32.gmra.mrb[4].mxu0 %vm90_vm1, %v22856_v44 }
  0xfa   :  { %17352 = vmatprep.mubr.msk.f32.mxu0 %vm90_vm1, %v22968_v8 }
  0xfd   :  { %17353 = vmatmul.mubr.msk.f32.gmra.mrb[6].mxu0 %vm90_vm1, %v1505_v20 }
  0xfe   :  { %17355 = vmatprep.mubr.msk.f32.mxu0 %vm90_vm1, %v22861_v47 }
 0x101   :  { %17356 = vmatmul.mubr.msk.f32.gmra.mrb[8].mxu0 %vm90_vm1, %v22866_v48 }
 0x102   :  { %17358 = vmatprep.mubr.msk.f32.mxu0 %vm90_vm1, %v22868_v49 }
 0x105   :  { %17359 = vmatmul.mubr.msk.f32.gmra.mrb[10].mxu0 %vm90_vm1, %v22874_v50 }
 0x106   :  { %17361 = vmatprep.mubr.msk.f32.mxu0 %vm90_vm1, %v22876_v51 }
 0x109   :  { %17362 = vmatmul.mubr.msk.f32.gmra.mrb[12].mxu0 %vm90_vm1, %v22882_v52 }
 0x10a   :  { %17364 = vmatprep.mubr.msk.f32.mxu0 %vm90_vm1, %v22985_v9 }
 0x10d   :  { %17365 = vmatmul.mubr.msk.f32.gmra.mrb[14].mxu0 %vm90_vm1, %v1513_v21 }
 0x10e   :  { %17369 = vmatprep.mubr.msk.f32.mxu0 %vm90_vm1, %v22771_v22  ;;  %v1735_v22 = vld [vmem:[#allocation2 + $0x91] sm:$0xff] }
 0x111   :  { %17370 = vmatmul.mubr.msk.f32.vlgmr.msra.gmra.mrb[0].mxu0 %vm90_vm1, %v22776_v23  ;;  %v1743_v23 = vld [vmem:[#allocation2 + $0x131] sm:$0xff] }
 0x112   :  { %17394 = vmatpush3.msk.msra.mxu0 %vm232_vm0, %v14644_v19  ;;  %17372 = vmatprep.mubr.msk.f32.mxu0 %vm90_vm1, %v22778_v24  ;;  %v1965_v24 = vld [vmem:[#allocation2 + $0x92] sm:$0xff] }
 0x115   :  { %17373 = vmatmul.mubr.msk.f32.gmra.mrb[2].mxu0 %vm90_vm1, %v22785_v25  ;;  %v1973_v25 = vld [vmem:[#allocation2 + $0x132] sm:$0xff] }
 0x116   :  { %17375 = vmatprep.mubr.msk.f32.mxu0 %vm90_vm1, %v22787_v26  ;;  %v14665_v26 = vld [vmem:[%s28305_s9 + $0x50] sm:$0xff] }
 0x119   :  { %17376 = vmatmul.mubr.msk.f32.gmra.mrb[4].mxu0 %vm90_vm1, %v22793_v27  ;;  %v14666_v27 = vld [vmem:[%s28305_s9 + $0x58] sm:$0xff] }
 0x11a   :  { %17378 = vmatprep.mubr.msk.f32.mxu0 %vm90_vm1, %v23008_v11  ;;  %v19951_v28 = vpack.c.bf16 %v14666_v27, %v14665_v26 }
 0x11c   :  { %19952 = vmatprep.subr.bf16.mxu1 %v19951_v28 }
 0x11d   :  { %17379 = vmatmul.mubr.msk.f32.gmra.mrb[6].mxu0 %vm90_vm1, %v1735_v22  ;;  %19954 = vmatpush3.bf16.msra.mxu1 %v19951_v28 }
 0x11e   :  { %17381 = vmatprep.mubr.msk.f32.mxu0 %vm90_vm1, %v22800_v30  ;;  %v14668_v30 = vld [vmem:[%s28305_s9 + $0x68] sm:$0xff] }
 0x121   :  { %17382 = vmatmul.mubr.msk.f32.gmra.mrb[8].mxu0 %vm90_vm1, %v22806_v31  ;;  %v19955_v31 = vpack.c.bf16 %v14668_v30, %v14667_v29  ;;  %v2318_v30 = vld [vmem:[#allocation3 + $0xa1] sm:$0xff] }
 0x122   :  { %17384 = vmatprep.mubr.msk.f32.mxu0 %vm90_vm1, %v22808_v32  ;;  %v14669_v32 = vld [vmem:[%s28305_s9 + $0x70] sm:$0xff] }
 0x123   :  { %19956 = vmatprep.subr.bf16.mxu1 %v19955_v31 }
 0x124   :  { %19958 = vmatpush3.bf16.msra.mxu1 %v19955_v31 }
 0x125   :  { %17385 = vmatmul.mubr.msk.f32.gmra.mrb[10].mxu0 %vm90_vm1, %v22814_v33  ;;  %v14670_v33 = vld [vmem:[%s28305_s9 + $0x78] sm:$0xff] }
 0x126   :  { %17387 = vmatprep.mubr.msk.f32.mxu0 %vm90_vm1, %v22816_v34  ;;  %v19959_v34 = vpack.c.bf16 %v14670_v33, %v14669_v32 }
 0x128   :  { %19960 = vmatprep.subr.bf16.mxu1 %v19959_v34 }
 0x129   :  { %17388 = vmatmul.mubr.msk.f32.gmra.mrb[12].mxu0 %vm90_vm1, %v22822_v35  ;;  %19962 = vmatpush3.bf16.msra.mxu1 %v19959_v34  ;;  %v2310_v35 = vld [vmem:[#allocation3 + $0x1] sm:$0xff] }
 0x12a   :  { %17390 = vmatprep.mubr.msk.f32.mxu0 %vm90_vm1, %v23026_v12  ;;  %17435 = vmatprep.mubr.msk.f32.mxu1 %vm2227_vm3, %v2310_v35  ;;  %v2308_v12 = vld [vmem:[%s28305_s9 + $0x30] sm:$0xff] }
 0x12b   :  { %19964 = vmatprep.subr.bf16.mxu1 %v19963_v37  ;;  %v19975_v19 = vpack.c.bf16 %v2309_v13, %v2308_v12 }
 0x12d   :  { %17391 = vmatmul.mubr.msk.f32.gmra.mrb[14].mxu0 %vm90_vm1, %v1743_v23  ;;  %v14703_v23 = vld [vmem:[%s28305_s9 + $0x80] sm:$0xff] }
 0x12e   :  { %17395 = vmatprep.mubr.msk.f32.mxu0 %vm90_vm1, %v22889_v55  ;;  %v2305_v55 = vld [vmem:[%s28305_s9 + $0x18] sm:$0xff] }
 0x131   :  { %17396 = vmatmul.mubr.msk.f32.vlgmr.msra.gmra.mrb[0].mxu0 %vm90_vm1, %v22899_v57 }
 0x132   :  { %17398 = vmatprep.mubr.msk.f32.mxu0 %vm90_vm1, %v22901_v58 }
 0x135   :  { %17399 = vmatmul.mubr.msk.f32.gmra.mrb[2].mxu0 %vm90_vm1, %v22908_v59 }
 0x136   :  { %17401 = vmatprep.mubr.msk.f32.mxu0 %vm90_vm1, %v22910_v60  ;;  %v19967_v60 = vpack.c.bf16 %v2305_v55, %v2304_v54  ;;  %v14707_v55 = vld [vmem:[%s28305_s9 + $0xa0] sm:$0xff] }
 0x139   :  { %17402 = vmatmul.mubr.msk.f32.gmra.mrb[4].mxu0 %vm90_vm1, %v22916_v61 }
 0x13a   :  { %17404 = vmatprep.mubr.msk.f32.mxu0 %vm90_vm1, %v1274_v17 }
 0x13d   :  { %17405 = vmatmul.mubr.msk.f32.gmra.mrb[6].mxu0 %vm90_vm1, %v1965_v24  ;;  %v14704_v24 = vld [vmem:[%s28305_s9 + $0x88] sm:$0xff] }
 0x13e   :  { %17407 = vmatprep.mubr.msk.f32.mxu0 %vm90_vm1, %v22923_v0  ;;  %v2306_v0 = vld [vmem:[%s28305_s9 + $0x20] sm:$0xff]  ;;  %v19979_v31 = vpack.c.bf16 %v14704_v24, %v14703_v23 }
 0x141   :  { %17408 = vmatmul.mubr.msk.f32.gmra.mrb[8].mxu0 %vm90_vm1, %v22929_v2  ;;  %v2307_v2 = vld [vmem:[%s28305_s9 + $0x28] sm:$0xff] }
 0x142   :  { %17410 = vmatprep.mubr.msk.f32.mxu0 %vm90_vm1, %v22931_v3  ;;  %v19971_v8 = vpack.c.bf16 %v2307_v2, %v2306_v0 }
 0x145   :  { %17411 = vmatmul.mubr.msk.f32.gmra.mrb[10].mxu0 %vm90_vm1, %v22937_v4 }
 0x146   :  { %17413 = vmatprep.mubr.msk.f32.mxu0 %vm90_vm1, %v22939_v5 }
 0x149   :  { %17414 = vmatmul.mubr.msk.f32.gmra.mrb[12].mxu0 %vm90_vm1, %v22945_v6 }
 0x14a   :  { %17416 = vmatprep.mubr.msk.f32.mxu0 %vm90_vm1, %v1282_v18 }
 0x14d   :  { %17417 = vmatmul.mubr.msk.f32.gmra.mrb[14].mxu0 %vm90_vm1, %v1973_v25 }
 0x204   :  { %v17397_v39 = vpop.f32.mrb[0].mxu0 }
 0x205   :  { %v2196_v40 = vadd.f32 %v17397_v39, %v23273_v38  ;;  %v2093_v41 = vpop.f32.mrb[1].mxu0 }
 0x206   :  { %v2195_v42 = vadd.f32 %v23273_v38, %v2093_v41 }
 0x207   :  { %v2212_v43 = vmax.f32 %v2196_v40, 0.0 }
 0x208   :  { %v2211_v44 = vmax.f32 %v2195_v42, 0.0  ;;  %v17400_v45 = vpop.f32.mrb[2].mxu0 }
 0x209   :  { %2271 = vst.msk [vmem:[#allocation3 + $0x21] sm:$0xff] %vm2227_vm3, %v2212_v43  ;;  %v2198_v46 = vadd.f32 %v17400_v45, %v23273_v38  ;;  %v2103_v47 = vpop.f32.mrb[3].mxu0 }
 0x20a   :  { %2270 = vst.msk [vmem:[#allocation3 + $0x11] sm:$0xff] %vm2227_vm3, %v2211_v44  ;;  %v2197_v48 = vadd.f32 %v23273_v38, %v2103_v47 }
 0x20b   :  { %v2214_v49 = vmax.f32 %v2198_v46, 0.0 }
 0x20c   :  { %v2213_v50 = vmax.f32 %v2197_v48, 0.0  ;;  %v17403_v51 = vpop.f32.mrb[4].mxu0 }
 0x20d   :  { %2273 = vst.msk [vmem:[#allocation3 + $0x41] sm:$0xff] %vm2227_vm3, %v2214_v49  ;;  %v2200_v52 = vadd.f32 %v17403_v51, %v23273_v38  ;;  %v2113_v53 = vpop.f32.mrb[5].mxu0  ;;  %v2286_v49 = vld [vmem:[#allocation3] sm:$0xff]  ;;  %v14705_v51 = vld [vmem:[%s28305_s9 + $0x90] sm:$0xff] }
 0x20e   :  { %2272 = vst.msk [vmem:[#allocation3 + $0x31] sm:$0xff] %vm2227_vm3, %v2213_v50  ;;  %v2199_v56 = vadd.f32 %v23273_v38, %v2113_v53 }
 0x20f   :  { %v2216_v57 = vmax.f32 %v2200_v52, 0.0  ;;  %v14706_v52 = vld [vmem:[%s28305_s9 + $0x98] sm:$0xff] }
 0x210   :  { %v2215_v58 = vmax.f32 %v2199_v56, 0.0  ;;  %v17406_v59 = vpop.f32.mrb[6].mxu0  ;;  %v23305_v4 = vld [vmem:[#allocation3 + $0x21] sm:$0xff]  ;;  %v19983_v53 = vpack.c.bf16 %v14706_v52, %v14705_v51 }
 0x211   :  { %2275 = vst.msk [vmem:[#allocation3 + $0x61] sm:$0xff] %vm2227_vm3, %v2216_v57  ;;  %v2202_v61 = vadd.f32 %v17406_v59, %v23273_v38  ;;  %v2123_v62 = vpop.f32.mrb[7].mxu0  ;;  %v23293_v63 = vld [vmem:[#allocation3 + $0x11] sm:$0xff]  ;;  %v14708_v56 = vld [vmem:[%s28305_s9 + $0xa8] sm:$0xff]  ;;  %v23405_v57 = vld [vmem:[#allocation3 + $0x20] sm:$0xff] }
 0x212   :  { %2274 = vst.msk [vmem:[#allocation3 + $0x51] sm:$0xff] %vm2227_vm3, %v2215_v58  ;;  %v2201_v3 = vadd.f32 %v23273_v38, %v2123_v62  ;;  %17436 = vmatmul.mubr.msk.f32.vlgmr.msra.gmra.mrb[0].mxu1 %vm2227_vm3, %v23293_v63  ;;  %v23395_v54 = vld [vmem:[#allocation3 + $0x10] sm:$0xff]  ;;  %v19987_v58 = vpack.c.bf16 %v14708_v56, %v14707_v55 }
 0x213   :  { %v2218_v5 = vmax.f32 %v2202_v61, 0.0  ;;  %19966 = vmatpush3.bf16.msra.mxu1 %v19963_v37  ;;  %17438 = vmatprep.mubr.msk.f32.mxu1 %vm2227_vm3, %v23305_v4  ;;  %v14710_v61 = vld [vmem:[%s28305_s9 + $0xb8] sm:$0xff] }
 0x214   :  { %v2217_v6 = vmax.f32 %v2201_v3, 0.0  ;;  %v17409_v7 = vpop.f32.mrb[8].mxu0  ;;  %19968 = vmatprep.subr.bf16.mxu1 %v19967_v60  ;;  %v23323_v15 = vld [vmem:[#allocation3 + $0x41] sm:$0xff]  ;;  %v23477_v24 = vld [vmem:[#allocation3 + $0x12] sm:$0xff] }
 0x215   :  { %2277 = vst.msk [vmem:[#allocation3 + $0x81] sm:$0xff] %vm2227_vm3, %v2218_v5  ;;  %v2204_v9 = vadd.f32 %v17409_v7, %v23273_v38  ;;  %v2133_v10 = vpop.f32.mrb[9].mxu0  ;;  %v23311_v11 = vld [vmem:[#allocation3 + $0x31] sm:$0xff]  ;;  %v23419_v62 = vld [vmem:[#allocation3 + $0x40] sm:$0xff]  ;;  %v14728_v5 = vld [vmem:[%s28305_s9 + $0xc8] sm:$0xff] }
 0x216   :  { %2276 = vst.msk [vmem:[#allocation3 + $0x71] sm:$0xff] %vm2227_vm3, %v2217_v6  ;;  %v2203_v14 = vadd.f32 %v23273_v38, %v2133_v10  ;;  %17439 = vmatmul.mubr.msk.f32.gmra.mrb[2].mxu1 %vm2227_vm3, %v23311_v11  ;;  %v23409_v59 = vld [vmem:[#allocation3 + $0x30] sm:$0xff]  ;;  %v14727_v3 = vld [vmem:[%s28305_s9 + $0xc0] sm:$0xff] }
 0x217   :  { %v2220_v16 = vmax.f32 %v2204_v9, 0.0  ;;  %17441 = vmatprep.mubr.msk.f32.mxu1 %vm2227_vm3, %v23323_v15  ;;  %19970 = vmatpush3.bf16.msra.mxu1 %v19967_v60  ;;  %v14709_v60 = vld [vmem:[%s28305_s9 + $0xb0] sm:$0xff]  ;;  %v2294_v7 = vld [vmem:[#allocation3 + $0xa0] sm:$0xff] }
 0x218   :  { %v2219_v17 = vmax.f32 %v2203_v14, 0.0  ;;  %v17412_v18 = vpop.f32.mrb[10].mxu0  ;;  %19972 = vmatprep.subr.bf16.mxu1 %v19971_v8  ;;  %v23341_v26 = vld [vmem:[#allocation3 + $0x61] sm:$0xff]  ;;  %v19991_v0 = vpack.c.bf16 %v14710_v61, %v14709_v60  ;;  %v14754_v60 = vld [vmem:[%s28305_s9 + $0x118] sm:$0xff] }
 0x219   :  { %2279 = vst.msk [vmem:[#allocation3 + $0xc1] sm:$0xff] %vm2227_vm3, %v2220_v16  ;;  %v2206_v20 = vadd.f32 %v17412_v18, %v23273_v38  ;;  %v2143_v21 = vpop.f32.mrb[11].mxu0  ;;  %v23329_v22 = vld [vmem:[#allocation3 + $0x51] sm:$0xff]  ;;  %v23433_v6 = vld [vmem:[#allocation3 + $0x60] sm:$0xff] }
 0x21a   :  { %2278 = vst.msk [vmem:[#allocation3 + $0xb1] sm:$0xff] %vm2227_vm3, %v2219_v17  ;;  %v2205_v25 = vadd.f32 %v23273_v38, %v2143_v21  ;;  %17442 = vmatmul.mubr.msk.f32.gmra.mrb[4].mxu1 %vm2227_vm3, %v23329_v22  ;;  %v23423_v2 = vld [vmem:[#allocation3 + $0x50] sm:$0xff]  ;;  %v2721_v18 = vld [vmem:[#allocation3 + $0x2] sm:$0xff]  ;;  %v14730_v21 = vld [vmem:[%s28305_s9 + $0xd8] sm:$0xff] }
 0x21b   :  { %v2222_v27 = vmax.f32 %v2206_v20, 0.0  ;;  %17444 = vmatprep.mubr.msk.f32.mxu1 %vm2227_vm3, %v23341_v26  ;;  %19974 = vmatpush3.bf16.msra.mxu1 %v19971_v8  ;;  %v19995_v8 = vpack.c.bf16 %v14728_v5, %v14727_v3  ;;  %v14729_v20 = vld [vmem:[%s28305_s9 + $0xd0] sm:$0xff]  ;;  %v14756_v3 = vld [vmem:[%s28305_s9 + $0x128] sm:$0xff] }
 0x21c   :  { %v2221_v28 = vmax.f32 %v2205_v25, 0.0  ;;  %v17415_v29 = vpop.f32.mrb[12].mxu0  ;;  %19976 = vmatprep.subr.bf16.mxu1 %v19975_v19  ;;  %v19999_v23 = vpack.c.bf16 %v14730_v21, %v14729_v20  ;;  %v14731_v25 = vld [vmem:[%s28305_s9 + $0xe0] sm:$0xff]  ;;  %v14776_v20 = vld [vmem:[%s28305_s9 + $0x148] sm:$0xff] }
 0x21d   :  { %2281 = vst.msk [vmem:[#allocation3 + $0xe1] sm:$0xff] %vm2227_vm3, %v2222_v27  ;;  %v2208_v32 = vadd.f32 %v17415_v29, %v23273_v38  ;;  %v2153_v33 = vpop.f32.mrb[13].mxu0  ;;  %v23347_v34 = vld [vmem:[#allocation3 + $0x71] sm:$0xff]  ;;  %v14732_v27 = vld [vmem:[%s28305_s9 + $0xe8] sm:$0xff] }
 0x21e   :  { %2280 = vst.msk [vmem:[#allocation3 + $0xd1] sm:$0xff] %vm2227_vm3, %v2221_v28  ;;  %v2207_v35 = vadd.f32 %v23273_v38, %v2153_v33  ;;  %17445 = vmatmul.mubr.msk.f32.gmra.mrb[6].mxu1 %vm2227_vm3, %v23347_v34  ;;  %v23437_v9 = vld [vmem:[#allocation3 + $0x70] sm:$0xff]  ;;  %v23487_v28 = vld [vmem:[#allocation3 + $0x22] sm:$0xff]  ;;  %v20003_v29 = vpack.c.bf16 %v14732_v27, %v14731_v25  ;;  %v14778_v27 = vld [vmem:[%s28305_s9 + $0x158] sm:$0xff] }
 0x21f   :  { %v2224_v1 = vmax.f32 %v2208_v32, 0.0  ;;  %17447 = vmatprep.mubr.msk.f32.mxu1 %vm2227_vm3, %v2318_v30  ;;  %19978 = vmatpush3.bf16.msra.mxu1 %v19975_v19  ;;  %v23491_v30 = vld [vmem:[#allocation3 + $0x32] sm:$0xff]  ;;  %v23501_v33 = vld [vmem:[#allocation3 + $0x42] sm:$0xff] }
 0x220   :  { %v2223_v36 = vmax.f32 %v2207_v35, 0.0  ;;  %v17418_v37 = vpop.f32.mrb[14].mxu0  ;;  %19980 = vmatprep.subr.bf16.mxu1 %v19979_v31  ;;  %v23362_v43 = vld [vmem:[#allocation3 + $0xc1] sm:$0xff]  ;;  %v14734_v32 = vld [vmem:[%s28305_s9 + $0xf8] sm:$0xff]  ;;  %v14777_v25 = vld [vmem:[%s28305_s9 + $0x150] sm:$0xff] }
 0x221   :  { %2283 = vst.msk [vmem:[#allocation3 + $0x101] sm:$0xff] %vm2227_vm3, %v2224_v1  ;;  %v2210_v39 = vadd.f32 %v17418_v37, %v23273_v38  ;;  %v2163_v40 = vpop.f32.mrb[15].mxu0  ;;  %v23356_v41 = vld [vmem:[#allocation3 + $0xb1] sm:$0xff]  ;;  %v23446_v12 = vld [vmem:[#allocation3 + $0xc0] sm:$0xff]  ;;  %v14752_v37 = vld [vmem:[%s28305_s9 + $0x108] sm:$0xff] }
 0x222   :  { %2282 = vst.msk [vmem:[#allocation3 + $0xf1] sm:$0xff] %vm2227_vm3, %v2223_v36  ;;  %v2209_v42 = vadd.f32 %v23273_v38, %v2163_v40  ;;  %17448 = vmatmul.mubr.msk.f32.gmra.mrb[8].mxu1 %vm2227_vm3, %v23356_v41  ;;  %v23442_v10 = vld [vmem:[#allocation3 + $0xb0] sm:$0xff]  ;;  %v14751_v36 = vld [vmem:[%s28305_s9 + $0x100] sm:$0xff] }
 0x223   :  { %v2226_v44 = vmax.f32 %v2210_v39, 0.0  ;;  %17450 = vmatprep.mubr.msk.f32.mxu1 %vm2227_vm3, %v23362_v43  ;;  %v23505_v1 = vld [vmem:[#allocation3 + $0x52] sm:$0xff]  ;;  %v23515_v39 = vld [vmem:[#allocation3 + $0x62] sm:$0xff] }
 0x224   :  { %v2225_v45 = vmax.f32 %v2209_v42, 0.0  ;;  %v23372_v38 = vld [vmem:[#allocation3 + $0xe1] sm:$0xff]  ;;  %v20011_v42 = vpack.c.bf16 %v14752_v37, %v14751_v36  ;;  %v14782_v36 = vld [vmem:[%s28305_s9 + $0x178] sm:$0xff] }
 0x225   :  { %2285 = vst.msk [vmem:[#allocation3 + $0x121] sm:$0xff] %vm2227_vm3, %v2226_v44  ;;  %v23367_v46 = vld [vmem:[#allocation3 + $0xd1] sm:$0xff]  ;;  %v23454_v14 = vld [vmem:[#allocation3 + $0xe0] sm:$0xff] }
 0x226   :  { %2284 = vst.msk [vmem:[#allocation3 + $0x111] sm:$0xff] %vm2227_vm3, %v2225_v45  ;;  %17451 = vmatmul.mubr.msk.f32.gmra.mrb[10].mxu1 %vm2227_vm3, %v23367_v46  ;;  %v23450_v13 = vld [vmem:[#allocation3 + $0xd0] sm:$0xff]  ;;  %v2729_v40 = vld [vmem:[#allocation3 + $0xa2] sm:$0xff] }
 0x227   :  { %17453 = vmatprep.mubr.msk.f32.mxu1 %vm2227_vm3, %v23372_v38  ;;  %v23519_v44 = vld [vmem:[#allocation3 + $0x72] sm:$0xff]  ;;  %v23536_v52 = vld [vmem:[#allocation3 + $0xe2] sm:$0xff] }
 0x228   :  { %v23380_v48 = vld [vmem:[#allocation3 + $0x101] sm:$0xff]  ;;  %v23524_v45 = vld [vmem:[#allocation3 + $0xb2] sm:$0xff] }
 0x229   :  { %v23376_v47 = vld [vmem:[#allocation3 + $0xf1] sm:$0xff]  ;;  %v23462_v17 = vld [vmem:[#allocation3 + $0x100] sm:$0xff] }
 0x22a   :  { %17454 = vmatmul.mubr.msk.f32.gmra.mrb[12].mxu1 %vm2227_vm3, %v23376_v47  ;;  %v23458_v16 = vld [vmem:[#allocation3 + $0xf0] sm:$0xff]  ;;  %v23544_v55 = vld [vmem:[#allocation3 + $0x102] sm:$0xff] }
 0x22b   :  { %17456 = vmatprep.mubr.msk.f32.mxu1 %vm2227_vm3, %v23380_v48  ;;  %v23532_v51 = vld [vmem:[#allocation3 + $0xd2] sm:$0xff] }
 0x22d   :  { %v23384_v50 = vld [vmem:[#allocation3 + $0x111] sm:$0xff] }
 0x22e   :  { %17457 = vmatmul.mubr.msk.f32.gmra.mrb[14].mxu1 %vm2227_vm3, %v23384_v50  ;;  %v23466_v19 = vld [vmem:[#allocation3 + $0x110] sm:$0xff] }
 0x22f   :  { %17475 = vmatprep.mubr.msk.f32.mxu1 %vm2227_vm3, %v2286_v49  ;;  %v23528_v49 = vld [vmem:[#allocation3 + $0xc2] sm:$0xff]  ;;  %v23548_v56 = vld [vmem:[#allocation3 + $0x112] sm:$0xff] }
 0x232   :  { %17476 = vmatmul.mubr.msk.f32.vlgmr.msra.gmra.mrb[0].mxu1 %vm2227_vm3, %v23395_v54 }
 0x233   :  { %19982 = vmatpush3.bf16.msra.mxu1 %v19979_v31  ;;  %17478 = vmatprep.mubr.msk.f32.mxu1 %vm2227_vm3, %v23405_v57  ;;  %v14733_v31 = vld [vmem:[%s28305_s9 + $0xf0] sm:$0xff] }
 0x234   :  { %19984 = vmatprep.subr.bf16.mxu1 %v19983_v53  ;;  %v20007_v35 = vpack.c.bf16 %v14734_v32, %v14733_v31  ;;  %v14779_v31 = vld [vmem:[%s28305_s9 + $0x160] sm:$0xff]  ;;  %v14780_v32 = vld [vmem:[%s28305_s9 + $0x168] sm:$0xff] }
 0x236   :  { %17479 = vmatmul.mubr.msk.f32.gmra.mrb[2].mxu1 %vm2227_vm3, %v23409_v59 }
 0x237   :  { %17481 = vmatprep.mubr.msk.f32.mxu1 %vm2227_vm3, %v23419_v62  ;;  %19986 = vmatpush3.bf16.msra.mxu1 %v19983_v53  ;;  %v23540_v53 = vld [vmem:[#allocation3 + $0xf2] sm:$0xff] }
 0x238   :  { %19988 = vmatprep.subr.bf16.mxu1 %v19987_v58 }
 0x23a   :  { %17482 = vmatmul.mubr.msk.f32.gmra.mrb[4].mxu1 %vm2227_vm3, %v23423_v2 }
 0x23b   :  { %17484 = vmatprep.mubr.msk.f32.mxu1 %vm2227_vm3, %v23433_v6  ;;  %19990 = vmatpush3.bf16.msra.mxu1 %v19987_v58  ;;  %v14753_v58 = vld [vmem:[%s28305_s9 + $0x110] sm:$0xff] }
 0x23c   :  { %19992 = vmatprep.subr.bf16.mxu1 %v19991_v0  ;;  %v20015_v61 = vpack.c.bf16 %v14754_v60, %v14753_v58  ;;  %v23650_v60 = vld [vmem:[#allocation3 + $0x81] sm:$0xff] }
 0x23e   :  { %17485 = vmatmul.mubr.msk.f32.gmra.mrb[6].mxu1 %vm2227_vm3, %v23437_v9 }
 0x23f   :  { %17487 = vmatprep.mubr.msk.f32.mxu1 %vm2227_vm3, %v2294_v7  ;;  %19994 = vmatpush3.bf16.msra.mxu1 %v19991_v0  ;;  %v14755_v0 = vld [vmem:[%s28305_s9 + $0x120] sm:$0xff]  ;;  %v14758_v7 = vld [vmem:[%s28305_s9 + $0x138] sm:$0xff] }
 0x240   :  { %19996 = vmatprep.subr.bf16.mxu1 %v19995_v8  ;;  %v20019_v5 = vpack.c.bf16 %v14756_v3, %v14755_v0  ;;  %v14802_v0 = vld [vmem:[%s28305_s9 + $0x198] sm:$0xff] }
 0x242   :  { %17488 = vmatmul.mubr.msk.f32.gmra.mrb[8].mxu1 %vm2227_vm3, %v23442_v10 }
 0x243   :  { %17490 = vmatprep.mubr.msk.f32.mxu1 %vm2227_vm3, %v23446_v12 }
 0x246   :  { %17491 = vmatmul.mubr.msk.f32.gmra.mrb[10].mxu1 %vm2227_vm3, %v23450_v13 }
 0x247   :  { %17493 = vmatprep.mubr.msk.f32.mxu1 %vm2227_vm3, %v23454_v14 }
 0x24a   :  { %17494 = vmatmul.mubr.msk.f32.gmra.mrb[12].mxu1 %vm2227_vm3, %v23458_v16 }
 0x24b   :  { %17496 = vmatprep.mubr.msk.f32.mxu1 %vm2227_vm3, %v23462_v17 }
 0x24e   :  { %17497 = vmatmul.mubr.msk.f32.gmra.mrb[14].mxu1 %vm2227_vm3, %v23466_v19 }
 0x24f   :  { %17515 = vmatprep.mubr.msk.f32.mxu1 %vm2227_vm3, %v2721_v18  ;;  %v14775_v18 = vld [vmem:[%s28305_s9 + $0x140] sm:$0xff] }
 0x250   :  { %v20027_v21 = vpack.c.bf16 %v14776_v20, %v14775_v18  ;;  %v14823_v20 = vld [vmem:[%s28305_s9 + $0x1c0] sm:$0xff] }
 0x252   :  { %17516 = vmatmul.mubr.msk.f32.vlgmr.msra.gmra.mrb[0].mxu1 %vm2227_vm3, %v23477_v24 }
 0x253   :  { %19998 = vmatpush3.bf16.msra.mxu1 %v19995_v8  ;;  %17518 = vmatprep.mubr.msk.f32.mxu1 %vm2227_vm3, %v23487_v28 }
 0x254   :  { %20000 = vmatprep.subr.bf16.mxu1 %v19999_v23 }
 0x256   :  { %17519 = vmatmul.mubr.msk.f32.gmra.mrb[2].mxu1 %vm2227_vm3, %v23491_v30 }
 0x257   :  { %17521 = vmatprep.mubr.msk.f32.mxu1 %vm2227_vm3, %v23501_v33  ;;  %20002 = vmatpush3.bf16.msra.mxu1 %v19999_v23  ;;  %v23590_v23 = vld [vmem:[#allocation3 + $0x80] sm:$0xff] }
 0x258   :  { %20004 = vmatprep.subr.bf16.mxu1 %v20003_v29 }
 0x25a   :  { %17522 = vmatmul.mubr.msk.f32.gmra.mrb[4].mxu1 %vm2227_vm3, %v23505_v1 }
 0x25b   :  { %17524 = vmatprep.mubr.msk.f32.mxu1 %vm2227_vm3, %v23515_v39  ;;  %20006 = vmatpush3.bf16.msra.mxu1 %v20003_v29  ;;  %v20031_v29 = vpack.c.bf16 %v14778_v27, %v14777_v25  ;;  %v23710_v27 = vld [vmem:[#allocation3 + $0x82] sm:$0xff] }
 0x25c   :  { %20008 = vmatprep.subr.bf16.mxu1 %v20007_v35 }
 0x25e   :  { %17525 = vmatmul.mubr.msk.f32.gmra.mrb[6].mxu1 %vm2227_vm3, %v23519_v44 }
 0x25f   :  { %17527 = vmatprep.mubr.msk.f32.mxu1 %vm2227_vm3, %v2729_v40  ;;  %20010 = vmatpush3.bf16.msra.mxu1 %v20007_v35  ;;  %v20035_v35 = vpack.c.bf16 %v14780_v32, %v14779_v31  ;;  %v14799_v40 = vld [vmem:[%s28305_s9 + $0x180] sm:$0xff]  ;;  %v14826_v31 = vld [vmem:[%s28305_s9 + $0x1d8] sm:$0xff] }
 0x260   :  { %20012 = vmatprep.subr.bf16.mxu1 %v20011_v42 }
 0x262   :  { %17528 = vmatmul.mubr.msk.f32.gmra.mrb[8].mxu1 %vm2227_vm3, %v23524_v45 }
 0x263   :  { %17530 = vmatprep.mubr.msk.f32.mxu1 %vm2227_vm3, %v23528_v49 }
 0x266   :  { %17531 = vmatmul.mubr.msk.f32.gmra.mrb[10].mxu1 %vm2227_vm3, %v23532_v51 }
 0x267   :  { %17533 = vmatprep.mubr.msk.f32.mxu1 %vm2227_vm3, %v23536_v52 }
 0x26a   :  { %17534 = vmatmul.mubr.msk.f32.gmra.mrb[12].mxu1 %vm2227_vm3, %v23540_v53 }
 0x26b   :  { %17536 = vmatprep.mubr.msk.f32.mxu1 %vm2227_vm3, %v23544_v55 }
 0x26e   :  { %17537 = vmatmul.mubr.msk.f32.gmra.mrb[14].mxu1 %vm2227_vm3, %v23548_v56 }
 0x26f   :  { %17555 = vmatprep.mubr.msk.f32.mxu1 %vm2227_vm3, %v23395_v54  ;;  %v14757_v54 = vld [vmem:[%s28305_s9 + $0x130] sm:$0xff] }
 0x270   :  { %v20023_v8 = vpack.c.bf16 %v14758_v7, %v14757_v54  ;;  %v14804_v54 = vld [vmem:[%s28305_s9 + $0x1a8] sm:$0xff] }
 0x272   :  { %17556 = vmatmul.mubr.msk.f32.vlgmr.msra.gmra.mrb[0].mxu1 %vm2227_vm3, %v23405_v57 }
 0x273   :  { %20014 = vmatpush3.bf16.msra.mxu1 %v20011_v42  ;;  %17558 = vmatprep.mubr.msk.f32.mxu1 %vm2227_vm3, %v23409_v59  ;;  %v14800_v42 = vld [vmem:[%s28305_s9 + $0x188] sm:$0xff] }
 0x274   :  { %20016 = vmatprep.subr.bf16.mxu1 %v20015_v61  ;;  %v20043_v58 = vpack.c.bf16 %v14800_v42, %v14799_v40  ;;  %v14848_v40 = vld [vmem:[%s28305_s9 + $0x208] sm:$0xff] }
 0x276   :  { %17559 = vmatmul.mubr.msk.f32.gmra.mrb[2].mxu1 %vm2227_vm3, %v23419_v62 }
 0x277   :  { %17561 = vmatprep.mubr.msk.f32.mxu1 %vm2227_vm3, %v23423_v2  ;;  %20018 = vmatpush3.bf16.msra.mxu1 %v20015_v61  ;;  %v14801_v61 = vld [vmem:[%s28305_s9 + $0x190] sm:$0xff] }
 0x278   :  { %20020 = vmatprep.subr.bf16.mxu1 %v20019_v5  ;;  %v20047_v3 = vpack.c.bf16 %v14802_v0, %v14801_v61 }
 0x27a   :  { %17562 = vmatmul.mubr.msk.f32.gmra.mrb[4].mxu1 %vm2227_vm3, %v23433_v6 }
 0x27b   :  { %17564 = vmatprep.mubr.msk.f32.mxu1 %vm2227_vm3, %v23437_v9  ;;  %20022 = vmatpush3.bf16.msra.mxu1 %v20019_v5  ;;  %v14803_v5 = vld [vmem:[%s28305_s9 + $0x1a0] sm:$0xff] }
 0x27c   :  { %20024 = vmatprep.subr.bf16.mxu1 %v20023_v8  ;;  %v20051_v7 = vpack.c.bf16 %v14804_v54, %v14803_v5 }
 0x27e   :  { %17565 = vmatmul.mubr.msk.f32.gmra.mrb[6].mxu1 %vm2227_vm3, %v23590_v23 }
 0x27f   :  { %17567 = vmatprep.mubr.msk.f32.mxu1 %vm2227_vm3, %v23442_v10  ;;  %20026 = vmatpush3.bf16.msra.mxu1 %v20023_v8  ;;  %v23608_v10 = vld [vmem:[#allocation3 + $0x120] sm:$0xff]  ;;  %v14806_v8 = vld [vmem:[%s28305_s9 + $0x1b8] sm:$0xff] }
 0x280   :  { %20028 = vmatprep.subr.bf16.mxu1 %v20027_v21 }
 0x282   :  { %17568 = vmatmul.mubr.msk.f32.gmra.mrb[8].mxu1 %vm2227_vm3, %v23446_v12 }
 0x283   :  { %17570 = vmatprep.mubr.msk.f32.mxu1 %vm2227_vm3, %v23450_v13 }
 0x286   :  { %17571 = vmatmul.mubr.msk.f32.gmra.mrb[10].mxu1 %vm2227_vm3, %v23454_v14 }
 0x287   :  { %17573 = vmatprep.mubr.msk.f32.mxu1 %vm2227_vm3, %v23458_v16 }
 0x28a   :  { %17574 = vmatmul.mubr.msk.f32.gmra.mrb[12].mxu1 %vm2227_vm3, %v23462_v17 }
 0x28b   :  { %17576 = vmatprep.mubr.msk.f32.mxu1 %vm2227_vm3, %v23466_v19 }
 0x28e   :  { %17577 = vmatmul.mubr.msk.f32.gmra.mrb[14].mxu1 %vm2227_vm3, %v23608_v10 }
 0x28f   :  { %17595 = vmatprep.mubr.msk.f32.mxu1 %vm2227_vm3, %v23293_v63  ;;  %v14781_v63 = vld [vmem:[%s28305_s9 + $0x170] sm:$0xff] }
 0x290   :  { %v20039_v37 = vpack.c.bf16 %v14782_v36, %v14781_v63  ;;  %v14828_v63 = vld [vmem:[%s28305_s9 + $0x1e8] sm:$0xff] }
 0x292   :  { %17596 = vmatmul.mubr.msk.f32.vlgmr.msra.gmra.mrb[0].mxu1 %vm2227_vm3, %v23305_v4 }
 0x293   :  { %20030 = vmatpush3.bf16.msra.mxu1 %v20027_v21  ;;  %17598 = vmatprep.mubr.msk.f32.mxu1 %vm2227_vm3, %v23311_v11  ;;  %v14824_v21 = vld [vmem:[%s28305_s9 + $0x1c8] sm:$0xff] }
 0x294   :  { %20032 = vmatprep.subr.bf16.mxu1 %v20031_v29  ;;  %v20059_v25 = vpack.c.bf16 %v14824_v21, %v14823_v20 }
 0x296   :  { %17599 = vmatmul.mubr.msk.f32.gmra.mrb[2].mxu1 %vm2227_vm3, %v23323_v15 }
 0x297   :  { %17601 = vmatprep.mubr.msk.f32.mxu1 %vm2227_vm3, %v23329_v22  ;;  %20034 = vmatpush3.bf16.msra.mxu1 %v20031_v29  ;;  %v14825_v29 = vld [vmem:[%s28305_s9 + $0x1d0] sm:$0xff] }
 0x298   :  { %20036 = vmatprep.subr.bf16.mxu1 %v20035_v35  ;;  %v20063_v32 = vpack.c.bf16 %v14826_v31, %v14825_v29 }
 0x29a   :  { %17602 = vmatmul.mubr.msk.f32.gmra.mrb[4].mxu1 %vm2227_vm3, %v23341_v26 }
 0x29b   :  { %17604 = vmatprep.mubr.msk.f32.mxu1 %vm2227_vm3, %v23347_v34  ;;  %20038 = vmatpush3.bf16.msra.mxu1 %v20035_v35  ;;  %v14827_v35 = vld [vmem:[%s28305_s9 + $0x1e0] sm:$0xff] }
 0x29c   :  { %20040 = vmatprep.subr.bf16.mxu1 %v20039_v37  ;;  %v20067_v36 = vpack.c.bf16 %v14828_v63, %v14827_v35  ;;  %v4622_v63 = vld [vmem:[%s28316_s27] sm:$0xff] }
 0x29e   :  { %17605 = vmatmul.mubr.msk.f32.gmra.mrb[6].mxu1 %vm2227_vm3, %v23650_v60 }
 0x29f   :  { %17607 = vmatprep.mubr.msk.f32.mxu1 %vm2227_vm3, %v23356_v41  ;;  %20042 = vmatpush3.bf16.msra.mxu1 %v20039_v37  ;;  %v23668_v41 = vld [vmem:[#allocation3 + $0x121] sm:$0xff]  ;;  %v14830_v37 = vld [vmem:[%s28305_s9 + $0x1f8] sm:$0xff] }
 0x2a0   :  { %20044 = vmatprep.subr.bf16.mxu1 %v20043_v58 }
 0x2a2   :  { %17608 = vmatmul.mubr.msk.f32.gmra.mrb[8].mxu1 %vm2227_vm3, %v23362_v43 }
 0x2a3   :  { %17610 = vmatprep.mubr.msk.f32.mxu1 %vm2227_vm3, %v23367_v46 }
 0x2a6   :  { %17611 = vmatmul.mubr.msk.f32.gmra.mrb[10].mxu1 %vm2227_vm3, %v23372_v38 }
 0x2a7   :  { %17613 = vmatprep.mubr.msk.f32.mxu1 %vm2227_vm3, %v23376_v47 }
 0x2aa   :  { %17614 = vmatmul.mubr.msk.f32.gmra.mrb[12].mxu1 %vm2227_vm3, %v23380_v48 }
 0x2ab   :  { %17616 = vmatprep.mubr.msk.f32.mxu1 %vm2227_vm3, %v23384_v50 }
 0x2ae   :  { %17617 = vmatmul.mubr.msk.f32.gmra.mrb[14].mxu1 %vm2227_vm3, %v23668_v41 }
 0x2af   :  { %17635 = vmatprep.mubr.msk.f32.mxu1 %vm2227_vm3, %v23477_v24  ;;  %v14805_v24 = vld [vmem:[%s28305_s9 + $0x1b0] sm:$0xff] }
 0x2b0   :  { %v20055_v18 = vpack.c.bf16 %v14806_v8, %v14805_v24 }
 0x2b2   :  { %17636 = vmatmul.mubr.msk.f32.vlgmr.msra.gmra.mrb[0].mxu1 %vm2227_vm3, %v23487_v28 }
 0x2b3   :  { %20046 = vmatpush3.bf16.msra.mxu1 %v20043_v58  ;;  %17638 = vmatprep.mubr.msk.f32.mxu1 %vm2227_vm3, %v23491_v30 }
 0x2b4   :  { %20048 = vmatprep.subr.bf16.mxu1 %v20047_v3 }
 0x2b6   :  { %17639 = vmatmul.mubr.msk.f32.gmra.mrb[2].mxu1 %vm2227_vm3, %v23501_v33 }
 0x2b7   :  { %17641 = vmatprep.mubr.msk.f32.mxu1 %vm2227_vm3, %v23505_v1  ;;  %20050 = vmatpush3.bf16.msra.mxu1 %v20047_v3 }
 0x2b8   :  { %20052 = vmatprep.subr.bf16.mxu1 %v20051_v7 }
 0x2ba   :  { %17642 = vmatmul.mubr.msk.f32.gmra.mrb[4].mxu1 %vm2227_vm3, %v23515_v39 }
 0x2bb   :  { %17644 = vmatprep.mubr.msk.f32.mxu1 %vm2227_vm3, %v23519_v44  ;;  %20054 = vmatpush3.bf16.msra.mxu1 %v20051_v7 }
 0x2bc   :  { %20056 = vmatprep.subr.bf16.mxu1 %v20055_v18 }
 0x2be   :  { %17645 = vmatmul.mubr.msk.f32.gmra.mrb[6].mxu1 %vm2227_vm3, %v23710_v27 }
 0x2bf   :  { %17647 = vmatprep.mubr.msk.f32.mxu1 %vm2227_vm3, %v23524_v45  ;;  %20058 = vmatpush3.bf16.msra.mxu1 %v20055_v18  ;;  %v23728_v45 = vld [vmem:[#allocation3 + $0x122] sm:$0xff] }
 0x2c0   :  { %20060 = vmatprep.subr.bf16.mxu1 %v20059_v25 }
 0x2c2   :  { %17648 = vmatmul.mubr.msk.f32.gmra.mrb[8].mxu1 %vm2227_vm3, %v23528_v49 }
 0x2c3   :  { %17650 = vmatprep.mubr.msk.f32.mxu1 %vm2227_vm3, %v23532_v51 }
 0x2c6   :  { %17651 = vmatmul.mubr.msk.f32.gmra.mrb[10].mxu1 %vm2227_vm3, %v23536_v52 }
 0x2c7   :  { %17653 = vmatprep.mubr.msk.f32.mxu1 %vm2227_vm3, %v23540_v53 }
 0x2ca   :  { %17654 = vmatmul.mubr.msk.f32.gmra.mrb[12].mxu1 %vm2227_vm3, %v23544_v55 }
 0x2cb   :  { %17656 = vmatprep.mubr.msk.f32.mxu1 %vm2227_vm3, %v23548_v56 }
 0x2ce   :  { %17657 = vmatmul.mubr.msk.f32.gmra.mrb[14].mxu1 %vm2227_vm3, %v23728_v45 }
 0x2cf   :  { %17675 = vmatprep.mubr.msk.f32.mxu1 %vm2227_vm3, %v23405_v57  ;;  %v14829_v57 = vld [vmem:[%s28305_s9 + $0x1f0] sm:$0xff] }
 0x2d2   :  { %17676 = vmatmul.mubr.msk.f32.vlgmr.msra.gmra.mrb[0].mxu1 %vm2227_vm3, %v23409_v59  ;;  %v20071_v59 = vpack.c.bf16 %v14830_v37, %v14829_v57  ;;  %v4750_v57 = vld [vmem:[%s28317_s1] sm:$0xff] }
 0x2d3   :  { %20062 = vmatpush3.bf16.msra.mxu1 %v20059_v25  ;;  %17678 = vmatprep.mubr.msk.f32.mxu1 %vm2227_vm3, %v23419_v62  ;;  %v14847_v62 = vld [vmem:[%s28305_s9 + $0x200] sm:$0xff] }
 0x2d4   :  { %20064 = vmatprep.subr.bf16.mxu1 %v20063_v32 }
 0x2d6   :  { %17679 = vmatmul.mubr.msk.f32.gmra.mrb[2].mxu1 %vm2227_vm3, %v23423_v2  ;;  %v3665_v2 = vld [vmem:[#allocation3 + $0x90] sm:$0xff] }
 0x2d7   :  { %17681 = vmatprep.mubr.msk.f32.mxu1 %vm2227_vm3, %v23433_v6  ;;  %20066 = vmatpush3.bf16.msra.mxu1 %v20063_v32  ;;  %v20075_v6 = vpack.c.bf16 %v14848_v40, %v14847_v62  ;;  %v4624_v62 = vld [vmem:[%s28316_s27 + $0x10] sm:$0xff]  ;;  %v4625_v40 = vld [vmem:[%s28316_s27 + $0x18] sm:$0xff] }
 0x2d8   :  { %20068 = vmatprep.subr.bf16.mxu1 %v20067_v36 }
 0x2da   :  { %17682 = vmatmul.mubr.msk.f32.gmra.mrb[4].mxu1 %vm2227_vm3, %v23437_v9  ;;  %v3673_v9 = vld [vmem:[#allocation3 + $0x130] sm:$0xff] }
 0x2db   :  { %17684 = vmatprep.mubr.msk.f32.mxu1 %vm2227_vm3, %v23590_v23  ;;  %20070 = vmatpush3.bf16.msra.mxu1 %v20067_v36  ;;  %v14854_v23 = vld [vmem:[%s28305_s9 + $0x238] sm:$0xff]  ;;  %v4623_v36 = vld [vmem:[%s28316_s27 + $0x8] sm:$0xff] }
 0x2dc   :  { %20072 = vmatprep.subr.bf16.mxu1 %v20071_v59  ;;  %v23916_v37 = vpack.c.bf16 %v4623_v36, %v4622_v63 }
 0x2de   :  { %17685 = vmatmul.mubr.msk.f32.gmra.mrb[6].mxu1 %vm2227_vm3, %v3665_v2  ;;  %20092 = vmatprep.subr.bf16.mxu0 %v23916_v37 }
 0x2df   :  { %17687 = vmatprep.mubr.msk.f32.mxu1 %vm2227_vm3, %v23446_v12  ;;  %20074 = vmatpush3.bf16.msra.mxu1 %v20071_v59  ;;  %v14849_v12 = vld [vmem:[%s28305_s9 + $0x210] sm:$0xff]  ;;  %v4751_v59 = vld [vmem:[%s28317_s1 + $0x8] sm:$0xff] }
 0x2e0   :  { %20076 = vmatprep.subr.bf16.mxu1 %v20075_v6  ;;  %v23927_v2 = vpack.c.bf16 %v4751_v59, %v4750_v57  ;;  %20094 = vmatpush3.bf16.msra.mxu0 %v23916_v37  ;;  %v4628_v57 = vld [vmem:[%s28316_s27 + $0x30] sm:$0xff]  ;;  %v4629_v59 = vld [vmem:[%s28316_s27 + $0x38] sm:$0xff] }
 0x2e2   :  { %17688 = vmatmul.mubr.msk.f32.gmra.mrb[8].mxu1 %vm2227_vm3, %v23450_v13  ;;  %v14850_v13 = vld [vmem:[%s28305_s9 + $0x218] sm:$0xff] }
 0x2e3   :  { %17690 = vmatprep.mubr.msk.f32.mxu1 %vm2227_vm3, %v23454_v14  ;;  %v20079_v14 = vpack.c.bf16 %v14850_v13, %v14849_v12  ;;  %v4753_v12 = vld [vmem:[%s28317_s1 + $0x18] sm:$0xff] }
 0x2e6   :  { %17691 = vmatmul.mubr.msk.f32.gmra.mrb[10].mxu1 %vm2227_vm3, %v23458_v16  ;;  %v14851_v16 = vld [vmem:[%s28305_s9 + $0x220] sm:$0xff] }
 0x2e7   :  { %17693 = vmatprep.mubr.msk.f32.mxu1 %vm2227_vm3, %v23462_v17  ;;  %v14852_v17 = vld [vmem:[%s28305_s9 + $0x228] sm:$0xff] }
 0x2ea   :  { %17694 = vmatmul.mubr.msk.f32.gmra.mrb[12].mxu1 %vm2227_vm3, %v23466_v19  ;;  %v20083_v19 = vpack.c.bf16 %v14852_v17, %v14851_v16 }
 0x2eb   :  { %17696 = vmatprep.mubr.msk.f32.mxu1 %vm2227_vm3, %v23608_v10 }
 0x2ee   :  { %17697 = vmatmul.mubr.msk.f32.gmra.mrb[14].mxu1 %vm2227_vm3, %v3673_v9  ;;  %v4752_v9 = vld [vmem:[%s28317_s1 + $0x10] sm:$0xff] }
 0x2ef   :  { %17715 = vmatprep.mubr.msk.f32.mxu1 %vm2227_vm3, %v23305_v4  ;;  %v14853_v4 = vld [vmem:[%s28305_s9 + $0x230] sm:$0xff]  ;;  %v23938_v13 = vpack.c.bf16 %v4753_v12, %v4752_v9  ;;  %v4757_v9 = vld [vmem:[%s28317_s1 + $0x38] sm:$0xff] }
 0x2f1   :  { %28318 = vst [vmem:[#allocation13_spill] sm:$0xff] %v23938_v13 }
 0x2f2   :  { %17716 = vmatmul.mubr.msk.f32.vlgmr.msra.gmra.mrb[0].mxu1 %vm2227_vm3, %v23311_v11  ;;  %v20087_v11 = vpack.c.bf16 %v14854_v23, %v14853_v4 }
 0x2f3   :  { %20078 = vmatpush3.bf16.msra.mxu1 %v20075_v6  ;;  %17718 = vmatprep.mubr.msk.f32.mxu1 %vm2227_vm3, %v23323_v15  ;;  %v3899_v15 = vld [vmem:[#allocation3 + $0x91] sm:$0xff]  ;;  %v23929_v6 = vpack.c.bf16 %v4625_v40, %v4624_v62  ;;  %v24013_v62 = vpack.c.bf16 %v4629_v59, %v4628_v57 }
 0x2f4   :  { %20080 = vmatprep.subr.bf16.mxu1 %v20079_v14  ;;  %v4756_v40 = vld [vmem:[%s28317_s1 + $0x30] sm:$0xff] }
 0x2f5   :  { %20096 = vmatprep.subr.bf16.mxu0 %v23929_v6  ;;  %v24021_v12 = vpack.c.bf16 %v4757_v9, %v4756_v40 }
 0x2f6   :  { %17719 = vmatmul.mubr.msk.f32.gmra.mrb[2].mxu1 %vm2227_vm3, %v23329_v22  ;;  %v3907_v22 = vld [vmem:[#allocation3 + $0x131] sm:$0xff]  ;;  %20098 = vmatpush3.bf16.msra.mxu0 %v23929_v6 }
 0x2f7   :  { %17721 = vmatprep.mubr.msk.f32.mxu1 %vm2227_vm3, %v23341_v26  ;;  %20082 = vmatpush3.bf16.msra.mxu1 %v20079_v14  ;;  %v4133_v26 = vld [vmem:[#allocation3 + $0x92] sm:$0xff]  ;;  %28320 = vst [vmem:[#allocation15_spill] sm:$0xff] %v24021_v12 }
 0x2f8   :  { %20084 = vmatprep.subr.bf16.mxu1 %v20083_v19 }
 0x2fa   :  { %17722 = vmatmul.mubr.msk.f32.gmra.mrb[4].mxu1 %vm2227_vm3, %v23347_v34  ;;  %v4141_v34 = vld [vmem:[#allocation3 + $0x132] sm:$0xff] }
 0x2fb   :  { %17724 = vmatprep.mubr.msk.f32.mxu1 %vm2227_vm3, %v23650_v60  ;;  %20086 = vmatpush3.bf16.msra.mxu1 %v20083_v19 }
 0x2fc   :  { %20088 = vmatprep.subr.bf16.mxu1 %v20087_v11 }
 0x2fe   :  { %17725 = vmatmul.mubr.msk.f32.gmra.mrb[6].mxu1 %vm2227_vm3, %v3899_v15 }
 0x2ff   :  { %17727 = vmatprep.mubr.msk.f32.mxu1 %vm2227_vm3, %v23362_v43  ;;  %20090 = vmatpush3.bf16.msra.mxu1 %v20087_v11  ;;  %v14871_v43 = vld [vmem:[%s28307_s0] ss:$0 sm:$0xff] }
 0x300   :  { %20124 = vmatprep.subr.bf16.mxu1 %v23927_v2 }
 0x302   :  { %17728 = vmatmul.mubr.msk.f32.gmra.mrb[8].mxu1 %vm2227_vm3, %v23367_v46 }
 0x303   :  { %17730 = vmatprep.mubr.msk.f32.mxu1 %vm2227_vm3, %v23372_v38 }
 0x306   :  { %17731 = vmatmul.mubr.msk.f32.gmra.mrb[10].mxu1 %vm2227_vm3, %v23376_v47 }
 0x307   :  { %17733 = vmatprep.mubr.msk.f32.mxu1 %vm2227_vm3, %v23380_v48 }
 0x30a   :  { %17734 = vmatmul.mubr.msk.f32.gmra.mrb[12].mxu1 %vm2227_vm3, %v23384_v50 }
 0x30b   :  { %17736 = vmatprep.mubr.msk.f32.mxu1 %vm2227_vm3, %v23668_v41 }
 0x30e   :  { %17737 = vmatmul.mubr.msk.f32.gmra.mrb[14].mxu1 %vm2227_vm3, %v3907_v22 }
 0x30f   :  { %17755 = vmatprep.mubr.msk.f32.mxu1 %vm2227_vm3, %v23487_v28 }
 0x312   :  { %17756 = vmatmul.mubr.msk.f32.vlgmr.msra.gmra.mrb[0].mxu1 %vm2227_vm3, %v23491_v30 }
 0x313   :  { %17758 = vmatprep.mubr.msk.f32.mxu1 %vm2227_vm3, %v23501_v33  ;;  %20126 = vmatpush3.bf16.msra.mxu1 %v23927_v2 }
 0x314   :  { %20128 = vmatprep.subr.bf16.mxu1 %v23938_v13 }
 0x316   :  { %17759 = vmatmul.mubr.msk.f32.gmra.mrb[2].mxu1 %vm2227_vm3, %v23505_v1 }
 0x317   :  { %17761 = vmatprep.mubr.msk.f32.mxu1 %vm2227_vm3, %v23515_v39  ;;  %20130 = vmatpush3.bf16.msra.mxu1 %v23938_v13 }
 0x31a   :  { %17762 = vmatmul.mubr.msk.f32.gmra.mrb[4].mxu1 %vm2227_vm3, %v23519_v44 }
 0x31b   :  { %17764 = vmatprep.mubr.msk.f32.mxu1 %vm2227_vm3, %v23710_v27 }
 0x31e   :  { %17765 = vmatmul.mubr.msk.f32.gmra.mrb[6].mxu1 %vm2227_vm3, %v4133_v26 }
 0x31f   :  { %17767 = vmatprep.mubr.msk.f32.mxu1 %vm2227_vm3, %v23528_v49 }
 0x322   :  { %17768 = vmatmul.mubr.msk.f32.gmra.mrb[8].mxu1 %vm2227_vm3, %v23532_v51 }
 0x323   :  { %17770 = vmatprep.mubr.msk.f32.mxu1 %vm2227_vm3, %v23536_v52 }
 0x326   :  { %17771 = vmatmul.mubr.msk.f32.gmra.mrb[10].mxu1 %vm2227_vm3, %v23540_v53 }
 0x327   :  { %17773 = vmatprep.mubr.msk.f32.mxu1 %vm2227_vm3, %v23544_v55 }
 0x32a   :  { %17774 = vmatmul.mubr.msk.f32.gmra.mrb[12].mxu1 %vm2227_vm3, %v23548_v56 }
 0x32b   :  { %17776 = vmatprep.mubr.msk.f32.mxu1 %vm2227_vm3, %v23728_v45 }
 0x32e   :  { %17777 = vmatmul.mubr.msk.f32.gmra.mrb[14].mxu1 %vm2227_vm3, %v4141_v34 }
 0x3e5   :  { %v17757_v46 = vpop.f32.mrb[0].mxu1 }
 0x3e6   :  { %v4265_v38 = vpop.f32.mrb[1].mxu1  ;;  %v4368_v48 = vadd.f32 %v17757_v46, %v14871_v43 }
 0x3e7   :  { %v4367_v47 = vadd.f32 %v14871_v43, %v4265_v38 }
 0x3e8   :  { %v23870_v1 = vmax.f32 %v4368_v48, 0.0 }
 0x3e9   :  { %v23867_v50 = vmax.f32 %v4367_v47, 0.0  ;;  %v17760_v28 = vpop.f32.mrb[2].mxu1 }
 0x3ea   :  { %v4275_v30 = vpop.f32.mrb[3].mxu1  ;;  %28309 = vst [vmem:[#allocation6_spill] sm:$0xff] %v23870_v1  ;;  %v4370_v39 = vadd.f32 %v17760_v28, %v14871_v43 }
 0x3eb   :  { %28308 = vst [vmem:[#allocation5_spill] sm:$0xff] %v23867_v50  ;;  %v4369_v33 = vadd.f32 %v14871_v43, %v4275_v30  ;;  %4401 = vadd.xlane.f32.xlu0 %v23867_v50 }
 0x3ec   :  { %v23876_v53 = vmax.f32 %v4370_v39, 0.0 }
 0x3ed   :  { %v23872_v44 = vmax.f32 %v4369_v33, 0.0  ;;  %v17763_v49 = vpop.f32.mrb[4].mxu1 }
 0x3ee   :  { %v4285_v51 = vpop.f32.mrb[5].mxu1  ;;  %28311 = vst [vmem:[#allocation8_spill] sm:$0xff] %v23876_v53  ;;  %v4372_v55 = vadd.f32 %v17763_v49, %v14871_v43 }
 0x3ef   :  { %28310 = vst [vmem:[#allocation7_spill] sm:$0xff] %v23872_v44  ;;  %v4371_v52 = vadd.f32 %v14871_v43, %v4285_v51  ;;  %4403 = vadd.xlane.f32.xlu0 %v23870_v1  ;;  %4405 = vadd.xlane.f32.xlu1 %v23872_v44 }
 0x3f0   :  { %v23882_v60 = vmax.f32 %v4372_v55, 0.0 }
 0x3f1   :  { %v23878_v56 = vmax.f32 %v4371_v52, 0.0  ;;  %v17766_v10 = vpop.f32.mrb[6].mxu1 }
 0x3f2   :  { %v4295_v42 = vpop.f32.mrb[7].mxu1  ;;  %28313 = vst [vmem:[#allocation10_spill] sm:$0xff] %v23882_v60  ;;  %v4374_v41 = vadd.f32 %v17766_v10, %v14871_v43 }
 0x3f3   :  { %28312 = vst [vmem:[#allocation9_spill] sm:$0xff] %v23878_v56  ;;  %v4373_v58 = vadd.f32 %v14871_v43, %v4295_v42  ;;  %4407 = vadd.xlane.f32.xlu1 %v23876_v53  ;;  %4409 = vadd.xlane.f32.xlu0 %v23878_v56 }
 0x3f4   :  { %v23892_v7 = vmax.f32 %v4374_v41, 0.0 }
 0x3f5   :  { %v23884_v61 = vmax.f32 %v4373_v58, 0.0  ;;  %v17769_v0 = vpop.f32.mrb[8].mxu1 }
 0x3f6   :  { %v23886_v3 = vadd.f32 %v17769_v0, %v14871_v43  ;;  %v4305_v5 = vpop.f32.mrb[9].mxu1  ;;  %28315 = vst [vmem:[#allocation12_spill] sm:$0xff] %v23892_v7 }
 0x3f7   :  { %28314 = vst [vmem:[#allocation11_spill] sm:$0xff] %v23884_v61  ;;  %v23888_v54 = vadd.f32 %v14871_v43, %v4305_v5  ;;  %4411 = vadd.xlane.f32.xlu1 %v23882_v60  ;;  %4413 = vadd.xlane.f32.xlu0 %v23884_v61 }
 0x3f9   :  { %v17772_v24 = vpop.f32.mrb[10].mxu1 }
 0x3fa   :  { %v23894_v8 = vadd.f32 %v17772_v24, %v14871_v43  ;;  %v4315_v18 = vpop.f32.mrb[11].mxu1  ;;  %v4626_v24 = vld [vmem:[%s28316_s27 + $0x20] sm:$0xff] }
 0x3fb   :  { %v23896_v20 = vadd.f32 %v14871_v43, %v4315_v18  ;;  %4415 = vadd.xlane.f32.xlu1 %v23892_v7  ;;  %v4627_v18 = vld [vmem:[%s28316_s27 + $0x28] sm:$0xff] }
 0x3fd   :  { %v17775_v21 = vpop.f32.mrb[12].mxu1 }
 0x3fe   :  { %v23899_v25 = vadd.f32 %v17775_v21, %v14871_v43  ;;  %v4325_v27 = vpop.f32.mrb[13].mxu1 }
 0x3ff   :  { %v23901_v45 = vadd.f32 %v14871_v43, %v4325_v27  ;;  %v23991_v27 = vpack.c.bf16 %v4627_v18, %v4626_v24  ;;  %v4878_v18 = vld [vmem:[%s28325_s8] sm:$0xff] }
 0x401   :  { %v17778_v29 = vpop.f32.mrb[14].mxu1  ;;  %20100 = vmatprep.subr.bf16.mxu0 %v23991_v27 }
 0x402   :  { %v23903_v31 = vadd.f32 %v17778_v29, %v14871_v43  ;;  %v4335_v32 = vpop.f32.mrb[15].mxu1  ;;  %v4754_v29 = vld [vmem:[%s28317_s1 + $0x20] sm:$0xff]  ;;  %20102 = vmatpush3.bf16.msra.mxu0 %v23991_v27 }
 0x403   :  { %v23905_v35 = vadd.f32 %v14871_v43, %v4335_v32  ;;  %v4755_v32 = vld [vmem:[%s28317_s1 + $0x28] sm:$0xff]  ;;  %20104 = vmatprep.subr.bf16.mxu0 %v24013_v62 }
 0x404   :  { %v23999_v63 = vpack.c.bf16 %v4755_v32, %v4754_v29  ;;  %v4879_v29 = vld [vmem:[%s28325_s8 + $0x8] sm:$0xff] }
 0x405   :  { %v24113_v32 = vpack.c.bf16 %v4879_v29, %v4878_v18 }
 0x406   :  { %28319 = vst [vmem:[#allocation14_spill] sm:$0xff] %v23999_v63  ;;  %20132 = vmatprep.subr.bf16.mxu1 %v23999_v63  ;;  %20106 = vmatpush3.bf16.msra.mxu0 %v24013_v62 }
 0x407   :  { %20134 = vmatpush3.bf16.msra.mxu1 %v23999_v63 }
 0x408   :  { %20136 = vmatprep.subr.bf16.mxu1 %v24021_v12 }
 0x40b   :  { %20138 = vmatpush3.bf16.msra.mxu1 %v24021_v12 }
 0x478   :  { %v4402_v14 = vpop.xlane.xlu0 %4401 }
 0x479   :  { %v4434_v16 = vmul.f32 0.0078125, %v4402_v14  ;;  %v4630_v14 = vld [vmem:[%s28316_s27 + $0x40] sm:$0xff] }
 0x47b   :  { %v23948_v17 = vsub.f32 %v23867_v50, %v4434_v16  ;;  %v4631_v16 = vld [vmem:[%s28316_s27 + $0x48] sm:$0xff] }
 0x47c   :  { %v4404_v19 = vpop.xlane.xlu0 %4403  ;;  %v4406_v4 = vpop.xlane.xlu1 %4405 }
 0x47d   :  { %v4435_v23 = vmul.f32 0.0078125, %v4404_v19  ;;  %v4436_v11 = vmul.f32 0.0078125, %v4406_v4  ;;  %v4466_v15 = vmul.f32 %v23948_v17, %v23948_v17  ;;  %v24033_v19 = vpack.c.bf16 %v4631_v16, %v4630_v14  ;;  %v4758_v4 = vld [vmem:[%s28317_s1 + $0x40] sm:$0xff] }
 0x47f   :  { %4482 = vadd.xlane.f32.xlu0 %v4466_v15  ;;  %v23953_v22 = vsub.f32 %v23870_v1, %v4435_v23  ;;  %v23956_v26 = vsub.f32 %v23872_v44, %v4436_v11  ;;  %v4759_v23 = vld [vmem:[%s28317_s1 + $0x48] sm:$0xff]  ;;  %20108 = vmatprep.subr.bf16.mxu0 %v24033_v19  ;;  %v4632_v15 = vld [vmem:[%s28316_s27 + $0x50] sm:$0xff] }
 0x480   :  { %v4408_v34 = vpop.xlane.xlu1 %4407  ;;  %v4410_v43 = vpop.xlane.xlu0 %4409  ;;  %v24041_v11 = vpack.c.bf16 %v4759_v23, %v4758_v4  ;;  %20110 = vmatpush3.bf16.msra.mxu0 %v24033_v19 }
 0x481   :  { %v4437_v46 = vmul.f32 0.0078125, %v4408_v34  ;;  %v4438_v38 = vmul.f32 0.0078125, %v4410_v43  ;;  %v4467_v47 = vmul.f32 %v23953_v22, %v23953_v22  ;;  %v4468_v48 = vmul.f32 %v23956_v26, %v23956_v26  ;;  %v4633_v34 = vld [vmem:[%s28316_s27 + $0x58] sm:$0xff] }
 0x482   :  { %28321 = vst [vmem:[#allocation16_spill] sm:$0xff] %v24041_v11  ;;  %20140 = vmatprep.subr.bf16.mxu1 %v24041_v11  ;;  %v24053_v43 = vpack.c.bf16 %v4633_v34, %v4632_v15 }
 0x483   :  { %4484 = vadd.xlane.f32.xlu1 %v4467_v47  ;;  %4486 = vadd.xlane.f32.xlu0 %v4468_v48  ;;  %v23963_v28 = vsub.f32 %v23876_v53, %v4437_v46  ;;  %v23966_v30 = vsub.f32 %v23878_v56, %v4438_v38  ;;  %v4760_v46 = vld [vmem:[%s28317_s1 + $0x50] sm:$0xff]  ;;  %v4761_v38 = vld [vmem:[%s28317_s1 + $0x58] sm:$0xff]  ;;  %v4634_v48 = vld [vmem:[%s28316_s27 + $0x60] sm:$0xff] }
 0x484   :  { %v4412_v33 = vpop.xlane.xlu1 %4411  ;;  %v4414_v39 = vpop.xlane.xlu0 %4413  ;;  %20142 = vmatpush3.bf16.msra.mxu1 %v24041_v11  ;;  %v24061_v47 = vpack.c.bf16 %v4761_v38, %v4760_v46  ;;  %20112 = vmatprep.subr.bf16.mxu0 %v24053_v43 }
 0x485   :  { %v4439_v49 = vmul.f32 0.0078125, %v4412_v33  ;;  %v4440_v51 = vmul.f32 0.0078125, %v4414_v39  ;;  %v4469_v52 = vmul.f32 %v23963_v28, %v23963_v28  ;;  %v4470_v55 = vmul.f32 %v23966_v30, %v23966_v30  ;;  %20114 = vmatpush3.bf16.msra.mxu0 %v24053_v43  ;;  %v4635_v33 = vld [vmem:[%s28316_s27 + $0x68] sm:$0xff] }
 0x486   :  { %28322 = vst [vmem:[#allocation17_spill] sm:$0xff] %v24061_v47  ;;  %20144 = vmatprep.subr.bf16.mxu1 %v24061_v47  ;;  %v24073_v39 = vpack.c.bf16 %v4635_v33, %v4634_v48 }
 0x487   :  { %4488 = vadd.xlane.f32.xlu1 %v4469_v52  ;;  %4490 = vadd.xlane.f32.xlu0 %v4470_v55  ;;  %v23973_v10 = vsub.f32 %v23882_v60, %v4439_v49  ;;  %v23976_v42 = vsub.f32 %v23884_v61, %v4440_v51  ;;  %v4762_v49 = vld [vmem:[%s28317_s1 + $0x60] sm:$0xff]  ;;  %v4763_v51 = vld [vmem:[%s28317_s1 + $0x68] sm:$0xff]  ;;  %v4636_v55 = vld [vmem:[%s28316_s27 + $0x70] sm:$0xff] }
 0x488   :  { %v4416_v58 = vpop.xlane.xlu1 %4415  ;;  %20146 = vmatpush3.bf16.msra.mxu1 %v24061_v47  ;;  %v24081_v52 = vpack.c.bf16 %v4763_v51, %v4762_v49  ;;  %20116 = vmatprep.subr.bf16.mxu0 %v24073_v39 }
 0x489   :  { %v4441_v41 = vmul.f32 0.0078125, %v4416_v58  ;;  %v4471_v0 = vmul.f32 %v23973_v10, %v23973_v10  ;;  %v4472_v5 = vmul.f32 %v23976_v42, %v23976_v42  ;;  %20118 = vmatpush3.bf16.msra.mxu0 %v24073_v39  ;;  %v4637_v58 = vld [vmem:[%s28316_s27 + $0x78] sm:$0xff] }
 0x48a   :  { %28323 = vst [vmem:[#allocation18_spill] sm:$0xff] %v24081_v52  ;;  %20148 = vmatprep.subr.bf16.mxu1 %v24081_v52 }
 0x48b   :  { %4492 = vadd.xlane.f32.xlu1 %v4471_v0  ;;  %4494 = vadd.xlane.f32.xlu0 %v4472_v5  ;;  %v23989_v21 = vsub.f32 %v23892_v7, %v4441_v41  ;;  %v24093_v41 = vpack.c.bf16 %v4637_v58, %v4636_v55  ;;  %v4764_v0 = vld [vmem:[%s28317_s1 + $0x70] sm:$0xff]  ;;  %v4765_v5 = vld [vmem:[%s28317_s1 + $0x78] sm:$0xff] }
 0x48c   :  { %20150 = vmatpush3.bf16.msra.mxu1 %v24081_v52  ;;  %v24101_v24 = vpack.c.bf16 %v4765_v5, %v4764_v0  ;;  %v24119_v5 = vld [vmem:[%s28109_s5] ss:$0 sm:$0xff] }
 0x48d   :  { %v4473_v36 = vmul.f32 %v23989_v21, %v23989_v21  ;;  %20120 = vmatprep.subr.bf16.mxu0 %v24093_v41 }
 0x48e   :  { %28324 = vst [vmem:[#allocation19_spill] sm:$0xff] %v24101_v24  ;;  %20152 = vmatprep.subr.bf16.mxu1 %v24101_v24  ;;  %20122 = vmatpush3.bf16.msra.mxu0 %v24093_v41 }
 0x48f   :  { %4496 = vadd.xlane.f32.xlu1 %v4473_v36  ;;  %20156 = vmatprep.subr.bf16.mxu0 %v24113_v32 }
 0x490   :  { %20154 = vmatpush3.bf16.msra.mxu1 %v24101_v24 }
 0x50c   :  { %v4483_v36 = vpop.xlane.xlu0 %4482 }
 0x50d   :  { %v4514_v57 = vmul.f32 0.0078125, %v4483_v36 }
 0x50f   :  { %v4530_v59 = vadd.f32 1e-05, %v4514_v57 }
 0x510   :  { %v4485_v40 = vpop.xlane.xlu1 %4484  ;;  %v4487_v9 = vpop.xlane.xlu0 %4486 }
 0x511   :  { %22108 = vrsqrt.f32 %v4530_v59  ;;  %v4515_v14 = vmul.f32 0.0078125, %v4485_v40  ;;  %v4516_v16 = vmul.f32 0.0078125, %v4487_v9  ;;  %v24125_v59 = vld [vmem:[%s28110_s6] ss:$0 sm:$0xff] }
 0x513   :  { %v4531_v4 = vadd.f32 1e-05, %v4515_v14  ;;  %v4532_v23 = vadd.f32 1e-05, %v4516_v16 }
 0x514   :  { %v4489_v15 = vpop.xlane.xlu1 %4488  ;;  %v4491_v34 = vpop.xlane.xlu0 %4490 }
 0x515   :  { %22110 = vrsqrt.f32 %v4531_v4  ;;  %v4517_v46 = vmul.f32 0.0078125, %v4489_v15  ;;  %v4518_v38 = vmul.f32 0.0078125, %v4491_v34  ;;  %v4880_v34 = vld [vmem:[%s28325_s8 + $0x10] sm:$0xff] }
 0x516   :  { %22112 = vrsqrt.f32 %v4532_v23 }
 0x517   :  { %v4533_v48 = vadd.f32 1e-05, %v4517_v46  ;;  %v4534_v33 = vadd.f32 1e-05, %v4518_v38  ;;  %v4881_v46 = vld [vmem:[%s28325_s8 + $0x18] sm:$0xff] }
 0x518   :  { %v4493_v49 = vpop.xlane.xlu1 %4492  ;;  %v4495_v51 = vpop.xlane.xlu0 %4494 }
 0x519   :  { %22114 = vrsqrt.f32 %v4533_v48  ;;  %v4519_v55 = vmul.f32 0.0078125, %v4493_v49  ;;  %v4520_v58 = vmul.f32 0.0078125, %v4495_v51  ;;  %v24147_v51 = vpack.c.bf16 %v4881_v46, %v4880_v34 }
 0x51a   :  { %22116 = vrsqrt.f32 %v4534_v33 }
 0x51b   :  { %v22109_v0 = vpop.eup %22108  ;;  %v4535_v18 = vadd.f32 1e-05, %v4519_v55  ;;  %v4536_v29 = vadd.f32 1e-05, %v4520_v58 }
 0x51c   :  { %v4562_v36 = vmul.f32 %v22109_v0, %v23948_v17  ;;  %v4497_v57 = vpop.xlane.xlu1 %4496  ;;  %v4882_v0 = vld [vmem:[%s28325_s8 + $0x20] sm:$0xff] }
 0x51d   :  { %22118 = vrsqrt.f32 %v4535_v18  ;;  %v4521_v40 = vmul.f32 0.0078125, %v4497_v57  ;;  %v4883_v18 = vld [vmem:[%s28325_s8 + $0x28] sm:$0xff] }
 0x51e   :  { %v4584_v9 = vmul.f32 %v24119_v5, %v4562_v36  ;;  %22120 = vrsqrt.f32 %v4536_v29 }
 0x51f   :  { %v22111_v14 = vpop.eup %22110  ;;  %v4537_v16 = vadd.f32 1e-05, %v4521_v40 }
 0x520   :  { %v22113_v4 = vpop.eup %22112  ;;  %v24129_v23 = vadd.f32 %v24125_v59, %v4584_v9  ;;  %v4563_v15 = vmul.f32 %v22111_v14, %v23953_v22  ;;  %v24171_v9 = vpack.c.bf16 %v4883_v18, %v4882_v0  ;;  %v4889_v0 = vld [vmem:[%s28325_s8 + $0x58] sm:$0xff]  ;;  %v4890_v18 = vld [vmem:[%s28325_s8 + $0x60] sm:$0xff] }
 0x521   :  { %v4564_v17 = vmul.f32 %v22113_v4, %v23956_v26  ;;  %22122 = vrsqrt.f32 %v4537_v16  ;;  %v4884_v4 = vld [vmem:[%s28325_s8 + $0x30] sm:$0xff] }
 0x522   :  { %v4585_v38 = vmul.f32 %v24119_v5, %v4563_v15  ;;  %17811 = vmatprep.mubr.f32.mxu0 %v24129_v23  ;;  %17855 = vmatprep.mubr.f32.mxu1 %v24129_v23  ;;  %v4885_v15 = vld [vmem:[%s28325_s8 + $0x38] sm:$0xff] }
 0x523   :  { %v22115_v48 = vpop.eup %22114  ;;  %v4586_v22 = vmul.f32 %v24119_v5, %v4564_v17 }
 0x524   :  { %v22117_v33 = vpop.eup %22116  ;;  %v24144_v26 = vadd.f32 %v24125_v59, %v4585_v38  ;;  %v4565_v49 = vmul.f32 %v22115_v48, %v23963_v28  ;;  %v24195_v38 = vpack.c.bf16 %v4885_v15, %v4884_v4  ;;  %v24267_v4 = vld [vmem:[%s28112_s10] ss:$0 sm:$0xff] }
 0x525   :  { %v24150_v55 = vadd.f32 %v24125_v59, %v4586_v22  ;;  %v4566_v58 = vmul.f32 %v22117_v33, %v23966_v30  ;;  %v4886_v22 = vld [vmem:[%s28325_s8 + $0x40] sm:$0xff]  ;;  %v4887_v33 = vld [vmem:[%s28325_s8 + $0x48] sm:$0xff] }
 0x526   :  { %v4587_v29 = vmul.f32 %v24119_v5, %v4565_v49  ;;  %17812 = vmatmul.mubr.f32.vlgmr.msra.gmra.mrb[16].mxu0 %v24144_v26  ;;  %17856 = vmatmul.mubr.f32.vlgmr.msra.gmra.mrb[16].mxu1 %v24144_v26  ;;  %28326 = vst [vmem:[#allocation20_spill] sm:$0xff] %v24195_v38 }
 0x527   :  { %v22119_v28 = vpop.eup %22118  ;;  %v4588_v36 = vmul.f32 %v24119_v5, %v4566_v58  ;;  %20158 = vmatpush3.bf16.msra.mxu0 %v24113_v32  ;;  %17814 = vmatprep.mubr.f32.mxu0 %v24150_v55  ;;  %v24216_v58 = vpack.c.bf16 %v4887_v33, %v4886_v22 }
 0x528   :  { %v22121_v30 = vpop.eup %22120  ;;  %v24166_v57 = vadd.f32 %v24125_v59, %v4587_v29  ;;  %v4567_v40 = vmul.f32 %v22119_v28, %v23973_v10  ;;  %17858 = vmatprep.mubr.f32.mxu1 %v24150_v55  ;;  %20160 = vmatprep.subr.bf16.mxu0 %v24147_v51  ;;  %v4891_v29 = vld [vmem:[%s28325_s8 + $0x68] sm:$0xff] }
 0x529   :  { %v24174_v14 = vadd.f32 %v24125_v59, %v4588_v36  ;;  %v4568_v16 = vmul.f32 %v22121_v30, %v23976_v42  ;;  %28327 = vst [vmem:[#allocation21_spill] sm:$0xff] %v24216_v58  ;;  %v24239_v28 = vpack.c.bf16 %v4891_v29, %v4890_v18  ;;  %v4892_v36 = vld [vmem:[%s28325_s8 + $0x70] sm:$0xff]  ;;  %v4893_v30 = vld [vmem:[%s28325_s8 + $0x78] sm:$0xff] }
 0x52a   :  { %v4589_v10 = vmul.f32 %v24119_v5, %v4567_v40  ;;  %17815 = vmatmul.mubr.f32.gmra.mrb[18].mxu0 %v24166_v57  ;;  %17859 = vmatmul.mubr.f32.gmra.mrb[18].mxu1 %v24166_v57  ;;  %v24249_v40 = vpack.c.bf16 %v4893_v30, %v4892_v36 }
 0x52b   :  { %v22123_v17 = vpop.eup %22122  ;;  %v4590_v34 = vmul.f32 %v24119_v5, %v4568_v16  ;;  %20162 = vmatpush3.bf16.msra.mxu0 %v24147_v51  ;;  %17817 = vmatprep.mubr.f32.mxu0 %v24174_v14  ;;  %28329 = vst [vmem:[#allocation23_spill] sm:$0xff] %v24239_v28  ;;  %v14875_v16 = vld [vmem:[%s28111_s11] ss:$0 sm:$0xff] }
 0x52c   :  { %v24190_v42 = vadd.f32 %v24125_v59, %v4589_v10  ;;  %v4569_v46 = vmul.f32 %v22123_v17, %v23989_v21  ;;  %17861 = vmatprep.mubr.f32.mxu1 %v24174_v14  ;;  %20164 = vmatprep.subr.bf16.mxu0 %v24171_v9  ;;  %28330 = vst [vmem:[#allocation24_spill] sm:$0xff] %v24249_v40 }
 0x52d   :  { %v24198_v48 = vadd.f32 %v24125_v59, %v4590_v34 }
 0x52e   :  { %v4591_v49 = vmul.f32 %v24119_v5, %v4569_v46  ;;  %17818 = vmatmul.mubr.f32.gmra.mrb[20].mxu0 %v24190_v42  ;;  %17862 = vmatmul.mubr.f32.gmra.mrb[20].mxu1 %v24190_v42  ;;  %v4888_v5 = vld [vmem:[%s28325_s8 + $0x50] sm:$0xff] }
 0x52f   :  { %20166 = vmatpush3.bf16.msra.mxu0 %v24171_v9  ;;  %17820 = vmatprep.mubr.f32.mxu0 %v24198_v48 }
 0x530   :  { %v24212_v21 = vadd.f32 %v24125_v59, %v4591_v49  ;;  %17864 = vmatprep.mubr.f32.mxu1 %v24198_v48  ;;  %20168 = vmatprep.subr.bf16.mxu0 %v24195_v38  ;;  %v24229_v59 = vpack.c.bf16 %v4889_v0, %v4888_v5 }
 0x532   :  { %17821 = vmatmul.mubr.f32.gmra.mrb[22].mxu0 %v24212_v21  ;;  %17865 = vmatmul.mubr.f32.gmra.mrb[22].mxu1 %v24212_v21  ;;  %28328 = vst [vmem:[#allocation22_spill] sm:$0xff] %v24229_v59 }
 0x533   :  { %20170 = vmatpush3.bf16.msra.mxu0 %v24195_v38  ;;  %17899 = vmatprep.mubr.f32.mxu0 %v24129_v23 }
 0x534   :  { %20172 = vmatprep.subr.bf16.mxu0 %v24216_v58 }
 0x537   :  { %20174 = vmatpush3.bf16.msra.mxu0 %v24216_v58 }
 0x538   :  { %20176 = vmatprep.subr.bf16.mxu0 %v24229_v59 }
 0x53b   :  { %20178 = vmatpush3.bf16.msra.mxu0 %v24229_v59 }
 0x53c   :  { %20180 = vmatprep.subr.bf16.mxu0 %v24239_v28 }
 0x53f   :  { %20182 = vmatpush3.bf16.msra.mxu0 %v24239_v28 }
 0x540   :  { %20184 = vmatprep.subr.bf16.mxu0 %v24249_v40 }
 0x543   :  { %20186 = vmatpush3.bf16.msra.mxu0 %v24249_v40 }
 0x546   :  { %17900 = vmatmul.mubr.f32.vlgmr.msra.gmra.mrb[24].mxu0 %v24144_v26 }
 0x547   :  { %17902 = vmatprep.mubr.f32.mxu0 %v24150_v55 }
 0x54a   :  { %17903 = vmatmul.mubr.f32.gmra.mrb[26].mxu0 %v24166_v57 }
 0x54b   :  { %17905 = vmatprep.mubr.f32.mxu0 %v24174_v14 }
 0x54e   :  { %17906 = vmatmul.mubr.f32.gmra.mrb[28].mxu0 %v24190_v42 }
 0x54f   :  { %17908 = vmatprep.mubr.f32.mxu0 %v24198_v48 }
 0x552   :  { %17909 = vmatmul.mubr.f32.gmra.mrb[30].mxu0 %v24212_v21 }
 0x5f9   :  { %v17813_v15 = vpop.f32.mrb[16].mxu0  ;;  %v17857_v10 = vpop.f32.mrb[16].mxu1 }
 0x5fa   :  { %v4845_v17 = vadd.f32 %v17857_v10, %v14875_v16  ;;  %v4711_v34 = vpop.f32.mrb[17].mxu0  ;;  %v4839_v46 = vpop.f32.mrb[17].mxu1 }
 0x5fb   :  { %v4712_v22 = vadd.f32 %v24267_v4, %v4711_v34  ;;  %v4840_v33 = vadd.f32 %v14875_v16, %v4839_v46 }
 0x5fd   :  { %v20187_v5 = vpack.c.bf16 %v4845_v17, %v4840_v33  ;;  %v17816_v0 = vpop.f32.mrb[18].mxu0  ;;  %v17860_v18 = vpop.f32.mrb[18].mxu1  ;;  %17927 = vmatprep.mubr.msk.f32.mxu1 %vm5006_vm5, %v4712_v22 }
 0x5fe   :  { %v4855_v29 = vadd.f32 %v17860_v18, %v14875_v16  ;;  %v4721_v36 = vpop.f32.mrb[19].mxu0  ;;  %v4849_v30 = vpop.f32.mrb[19].mxu1 }
 0x5ff   :  { %v4850_v10 = vadd.f32 %v14875_v16, %v4849_v30  ;;  %20189 = vmatprep.subr.msk.bf16.mxu1 %vm24272_vm6, %v20187_v5 }
 0x600   :  { %20192 = vmatpush3.bf16.xpose.msk.msra.mxu1 %vm24272_vm6, %v20187_v5 }
 0x601   :  { %v20193_v34 = vpack.c.bf16 %v4855_v29, %v4850_v10  ;;  %v17819_v46 = vpop.f32.mrb[20].mxu0  ;;  %v17863_v61 = vpop.f32.mrb[20].mxu1 }
 0x602   :  { %v4865_v7 = vadd.f32 %v17863_v61, %v14875_v16  ;;  %v4731_v56 = vpop.f32.mrb[21].mxu0  ;;  %v4859_v17 = vpop.f32.mrb[21].mxu1  ;;  %v14901_v61 = vld [vmem:[%s28316_s27 + $0x80] sm:$0xff] }
 0x603   :  { %v4860_v33 = vadd.f32 %v14875_v16, %v4859_v17  ;;  %20195 = vmatprep.subr.msk.bf16.mxu1 %vm24272_vm6, %v20193_v34  ;;  %v14904_v17 = vld [vmem:[%s28316_s27 + $0x98] sm:$0xff] }
 0x605   :  { %v20199_v22 = vpack.c.bf16 %v4865_v7, %v4860_v33  ;;  %v24283_v18 = vpop.f32.mrb[22].mxu0  ;;  %v17866_v30 = vpop.f32.mrb[22].mxu1  ;;  %v4717_v33 = vadd.f32 %v17813_v15, %v24267_v4  ;;  %v14906_v15 = vld [vmem:[%s28316_s27 + $0xa8] sm:$0xff] }
 0x606   :  { %v4875_v60 = vadd.f32 %v17866_v30, %v14875_v16  ;;  %v4741_v44 = vpop.f32.mrb[23].mxu0  ;;  %v4869_v53 = vpop.f32.mrb[23].mxu1 }
 0x607   :  { %v4870_v50 = vadd.f32 %v14875_v16, %v4869_v53  ;;  %v14902_v53 = vld [vmem:[%s28316_s27 + $0x88] sm:$0xff] }
 0x608   :  { %20198 = vmatpush3.bf16.xpose.msk.msra.mxu1 %vm24272_vm6, %v20193_v34  ;;  %v24299_v7 = vpack.c.bf16 %v14902_v53, %v14901_v61  ;;  %v14903_v34 = vld [vmem:[%s28316_s27 + $0x90] sm:$0xff] }
 0x609   :  { %v20205_v5 = vpack.c.bf16 %v4875_v60, %v4870_v50  ;;  %20201 = vmatprep.subr.msk.bf16.mxu1 %vm24272_vm6, %v20199_v22  ;;  %v14876_v50 = vld [vmem:[%s28113_s12] ss:$0 sm:$0xff]  ;;  %v24315_v1 = vpack.c.bf16 %v14904_v17, %v14903_v34  ;;  %v4732_v34 = vadd.f32 %v24267_v4, %v4731_v56  ;;  %v4737_v56 = vadd.f32 %v17819_v46, %v24267_v4 }
 0x60a   :  { %28333 = vst [vmem:[#allocation25_spill] sm:$0xff] %v24299_v7  ;;  %v14909_v46 = vld [vmem:[%s28316_s27 + $0xc0] sm:$0xff] }
 0x60b   :  { %28334 = vst [vmem:[#allocation26_spill] sm:$0xff] %v24315_v1 }
 0x610   :  { %20204 = vmatpush3.bf16.xpose.msk.msra.mxu1 %vm24272_vm6, %v20199_v22 }
 0x611   :  { %20207 = vmatprep.subr.msk.bf16.mxu1 %vm24272_vm6, %v20205_v5 }
 0x618   :  { %20210 = vmatpush3.bf16.xpose.msk.msra.mxu1 %vm24272_vm6, %v20205_v5  ;;  %v4722_v5 = vadd.f32 %v24267_v4, %v4721_v36  ;;  %v4727_v36 = vadd.f32 %v17816_v0, %v24267_v4  ;;  %v14907_v0 = vld [vmem:[%s28316_s27 + $0xb0] sm:$0xff] }
 0x619   :  { %v17901_v60 = vpop.f32.mrb[24].mxu0  ;;  %20228 = vmatprep.subr.bf16.mxu1 %v24299_v7 }
 0x61a   :  { %v4973_v16 = vadd.f32 %v17901_v60, %v14876_v50  ;;  %v4967_v29 = vpop.f32.mrb[25].mxu0 }
 0x61b   :  { %v4968_v10 = vadd.f32 %v14876_v50, %v4967_v29  ;;  %v14905_v29 = vld [vmem:[%s28316_s27 + $0xa0] sm:$0xff] }
 0x61d   :  { %v17904_v22 = vpop.f32.mrb[26].mxu0  ;;  %v20211_v30 = vpack.c.bf16 %v4973_v16, %v4968_v10 }
 0x61e   :  { %v4983_v61 = vadd.f32 %v17904_v22, %v14876_v50  ;;  %v4977_v53 = vpop.f32.mrb[27].mxu0  ;;  %v24329_v22 = vpack.c.bf16 %v14906_v15, %v14905_v29 }
 0x61f   :  { %v4978_v60 = vadd.f32 %v14876_v50, %v4977_v53  ;;  %20212 = vmatprep.subr.bf16.mxu0 %v20211_v30  ;;  %17928 = vmatmul.mubr.msk.f32.vlgmr.msra.gmra.mrb[24].mxu1 %vm5006_vm5, %v4717_v33 }
 0x620   :  { %20214 = vmatpush3.bf16.msra.mxu0 %v20211_v30  ;;  %17930 = vmatprep.mubr.msk.f32.mxu1 %vm5006_vm5, %v4722_v5  ;;  %28335 = vst [vmem:[#allocation27_spill] sm:$0xff] %v24329_v22  ;;  %v14908_v30 = vld [vmem:[%s28316_s27 + $0xb8] sm:$0xff] }
 0x621   :  { %v17907_v16 = vpop.f32.mrb[28].mxu0  ;;  %20230 = vmatpush3.bf16.msra.mxu1 %v24299_v7  ;;  %v20215_v10 = vpack.c.bf16 %v4983_v61, %v4978_v60  ;;  %v4742_v60 = vadd.f32 %v24267_v4, %v4741_v44  ;;  %v4747_v44 = vadd.f32 %v24283_v18, %v24267_v4  ;;  %v14913_v18 = vld [vmem:[%s28316_s27 + $0xe0] sm:$0xff] }
 0x622   :  { %v4993_v17 = vadd.f32 %v17907_v16, %v14876_v50  ;;  %v4987_v33 = vpop.f32.mrb[29].mxu0  ;;  %20232 = vmatprep.subr.bf16.mxu1 %v24315_v1 }
 0x623   :  { %v4988_v53 = vadd.f32 %v14876_v50, %v4987_v33  ;;  %20216 = vmatprep.subr.bf16.mxu0 %v20215_v10  ;;  %17931 = vmatmul.mubr.msk.f32.gmra.mrb[26].mxu1 %vm5006_vm5, %v4727_v36  ;;  %v24343_v36 = vpack.c.bf16 %v14908_v30, %v14907_v0  ;;  %v14912_v33 = vld [vmem:[%s28316_s27 + $0xd8] sm:$0xff]  ;;  %v14915_v30 = vld [vmem:[%s28316_s27 + $0xf0] sm:$0xff] }
 0x624   :  { %20218 = vmatpush3.bf16.msra.mxu0 %v20215_v10  ;;  %17933 = vmatprep.mubr.msk.f32.mxu1 %vm5006_vm5, %v4732_v34  ;;  %v14910_v10 = vld [vmem:[%s28316_s27 + $0xc8] sm:$0xff] }
 0x625   :  { %v17910_v5 = vpop.f32.mrb[30].mxu0  ;;  %20234 = vmatpush3.bf16.msra.mxu1 %v24315_v1  ;;  %v20219_v61 = vpack.c.bf16 %v4993_v17, %v4988_v53  ;;  %28336 = vst [vmem:[#allocation28_spill] sm:$0xff] %v24343_v36  ;;  %v24357_v34 = vpack.c.bf16 %v14910_v10, %v14909_v46  ;;  %v14911_v17 = vld [vmem:[%s28316_s27 + $0xd0] sm:$0xff]  ;;  %v14914_v53 = vld [vmem:[%s28316_s27 + $0xe8] sm:$0xff]  ;;  %v14941_v10 = vld [vmem:[%s28325_s8 + $0xa0] sm:$0xff] }
 0x626   :  { %v5003_v29 = vadd.f32 %v17910_v5, %v14876_v50  ;;  %v4997_v15 = vpop.f32.mrb[31].mxu0  ;;  %20236 = vmatprep.subr.bf16.mxu1 %v24329_v22  ;;  %v24369_v4 = vpack.c.bf16 %v14912_v33, %v14911_v17  ;;  %v24379_v0 = vpack.c.bf16 %v14914_v53, %v14913_v18  ;;  %v14943_v17 = vld [vmem:[%s28325_s8 + $0xb0] sm:$0xff]  ;;  %v14944_v33 = vld [vmem:[%s28325_s8 + $0xb8] sm:$0xff]  ;;  %v14945_v53 = vld [vmem:[%s28325_s8 + $0xc0] sm:$0xff] }
 0x627   :  { %v4998_v16 = vadd.f32 %v14876_v50, %v4997_v15  ;;  %20220 = vmatprep.subr.bf16.mxu0 %v20219_v61  ;;  %17934 = vmatmul.mubr.msk.f32.gmra.mrb[28].mxu1 %vm5006_vm5, %v4737_v56  ;;  %28337 = vst [vmem:[#allocation29_spill] sm:$0xff] %v24357_v34  ;;  %v14916_v56 = vld [vmem:[%s28316_s27 + $0xf8] sm:$0xff]  ;;  %v14939_v15 = vld [vmem:[%s28325_s8 + $0x90] sm:$0xff]  ;;  %v24433_v18 = vpack.c.bf16 %v14944_v33, %v14943_v17 }
 0x628   :  { %20222 = vmatpush3.bf16.msra.mxu0 %v20219_v61  ;;  %17936 = vmatprep.mubr.msk.f32.mxu1 %vm5006_vm5, %v4742_v60  ;;  %28338 = vst [vmem:[#allocation30_spill] sm:$0xff] %v24369_v4  ;;  %28339 = vst [vmem:[#allocation31_spill] sm:$0xff] %v24379_v0  ;;  %v24389_v5 = vpack.c.bf16 %v14916_v56, %v14915_v30  ;;  %v14937_v61 = vld [vmem:[%s28325_s8 + $0x80] sm:$0xff]  ;;  %v14938_v60 = vld [vmem:[%s28325_s8 + $0x88] sm:$0xff] }
 0x629   :  { %20238 = vmatpush3.bf16.msra.mxu1 %v24329_v22  ;;  %v20223_v50 = vpack.c.bf16 %v5003_v29, %v4998_v16  ;;  %v24399_v29 = vpack.c.bf16 %v14938_v60, %v14937_v61  ;;  %v14940_v16 = vld [vmem:[%s28325_s8 + $0x98] sm:$0xff]  ;;  %28344 = vst [vmem:[#allocation36_spill] sm:$0xff] %v24433_v18  ;;  %v14946_v30 = vld [vmem:[%s28325_s8 + $0xc8] sm:$0xff]  ;;  %v14947_v61 = vld [vmem:[%s28325_s8 + $0xd0] sm:$0xff] }
 0x62a   :  { %20240 = vmatprep.subr.bf16.mxu1 %v24343_v36  ;;  %28340 = vst [vmem:[#allocation32_spill] sm:$0xff] %v24389_v5  ;;  %v24409_v46 = vpack.c.bf16 %v14940_v16, %v14939_v15  ;;  %v24445_v56 = vpack.c.bf16 %v14946_v30, %v14945_v53  ;;  %v14948_v60 = vld [vmem:[%s28325_s8 + $0xd8] sm:$0xff]  ;;  %v14949_v16 = vld [vmem:[%s28325_s8 + $0xe0] sm:$0xff]  ;;  %v14951_v17 = vld [vmem:[%s28325_s8 + $0xf0] sm:$0xff] }
 0x62b   :  { %20224 = vmatprep.subr.bf16.mxu0 %v20223_v50  ;;  %17937 = vmatmul.mubr.msk.f32.gmra.mrb[30].mxu1 %vm5006_vm5, %v4747_v44  ;;  %28341 = vst [vmem:[#allocation33_spill] sm:$0xff] %v24399_v29  ;;  %v14942_v44 = vld [vmem:[%s28325_s8 + $0xa8] sm:$0xff]  ;;  %v24457_v15 = vpack.c.bf16 %v14948_v60, %v14947_v61  ;;  %v14952_v33 = vld [vmem:[%s28325_s8 + $0xf8] sm:$0xff] }
 0x62c   :  { %20226 = vmatpush3.bf16.msra.mxu0 %v20223_v50  ;;  %17999 = vmatprep.mubr.f32.mxu1 %v24129_v23  ;;  %28342 = vst [vmem:[#allocation34_spill] sm:$0xff] %v24409_v46  ;;  %v24421_v50 = vpack.c.bf16 %v14942_v44, %v14941_v10  ;;  %28345 = vst [vmem:[#allocation37_spill] sm:$0xff] %v24445_v56  ;;  %v14950_v10 = vld [vmem:[%s28325_s8 + $0xe8] sm:$0xff]  ;;  %v24477_v53 = vpack.c.bf16 %v14952_v33, %v14951_v17 }
 0x62d   :  { %20242 = vmatpush3.bf16.msra.mxu1 %v24343_v36  ;;  %28346 = vst [vmem:[#allocation38_spill] sm:$0xff] %v24457_v15  ;;  %v24467_v44 = vpack.c.bf16 %v14950_v10, %v14949_v16 }
 0x62e   :  { %20244 = vmatprep.subr.bf16.mxu1 %v24357_v34  ;;  %28343 = vst [vmem:[#allocation35_spill] sm:$0xff] %v24421_v50  ;;  %28348 = vst [vmem:[#allocation40_spill] sm:$0xff] %v24477_v53 }
 0x62f   :  { %28347 = vst [vmem:[#allocation39_spill] sm:$0xff] %v24467_v44 }
 0x631   :  { %20246 = vmatpush3.bf16.msra.mxu1 %v24357_v34 }
 0x632   :  { %20248 = vmatprep.subr.bf16.mxu1 %v24369_v4 }
 0x635   :  { %20250 = vmatpush3.bf16.msra.mxu1 %v24369_v4 }
 0x636   :  { %20252 = vmatprep.subr.bf16.mxu1 %v24379_v0 }
 0x639   :  { %20254 = vmatpush3.bf16.msra.mxu1 %v24379_v0 }
 0x63a   :  { %20256 = vmatprep.subr.bf16.mxu1 %v24389_v5 }
 0x63d   :  { %20258 = vmatpush3.bf16.msra.mxu1 %v24389_v5 }
 0x63e   :  { %20292 = vmatprep.subr.bf16.mxu1 %v24399_v29 }
 0x640   :  { %18000 = vmatmul.mubr.f32.vlgmr.msra.gmra.mrb[32].mxu1 %v24144_v26 }
 0x641   :  { %18002 = vmatprep.mubr.f32.mxu1 %v24150_v55  ;;  %20294 = vmatpush3.bf16.msra.mxu1 %v24399_v29 }
 0x642   :  { %20296 = vmatprep.subr.bf16.mxu1 %v24409_v46 }
 0x644   :  { %18003 = vmatmul.mubr.f32.gmra.mrb[34].mxu1 %v24166_v57 }
 0x645   :  { %18005 = vmatprep.mubr.f32.mxu1 %v24174_v14  ;;  %20298 = vmatpush3.bf16.msra.mxu1 %v24409_v46 }
 0x646   :  { %20300 = vmatprep.subr.bf16.mxu1 %v24421_v50 }
 0x648   :  { %18006 = vmatmul.mubr.f32.gmra.mrb[36].mxu1 %v24190_v42 }
 0x649   :  { %18008 = vmatprep.mubr.f32.mxu1 %v24198_v48  ;;  %20302 = vmatpush3.bf16.msra.mxu1 %v24421_v50 }
 0x64a   :  { %20304 = vmatprep.subr.bf16.mxu1 %v24433_v18 }
 0x64c   :  { %18009 = vmatmul.mubr.f32.gmra.mrb[38].mxu1 %v24212_v21 }
 0x64d   :  { %20306 = vmatpush3.bf16.msra.mxu1 %v24433_v18  ;;  %18087 = vmatprep.mubr.f32.mxu1 %v24129_v23 }
 0x64e   :  { %20308 = vmatprep.subr.bf16.mxu1 %v24445_v56 }
 0x651   :  { %20310 = vmatpush3.bf16.msra.mxu1 %v24445_v56 }
 0x652   :  { %20312 = vmatprep.subr.bf16.mxu1 %v24457_v15 }
 0x655   :  { %20314 = vmatpush3.bf16.msra.mxu1 %v24457_v15 }
 0x656   :  { %20316 = vmatprep.subr.bf16.mxu1 %v24467_v44 }
 0x659   :  { %20318 = vmatpush3.bf16.msra.mxu1 %v24467_v44 }
 0x65a   :  { %20320 = vmatprep.subr.bf16.mxu1 %v24477_v53 }
 0x65d   :  { %20322 = vmatpush3.bf16.msra.mxu1 %v24477_v53 }
 0x660   :  { %18088 = vmatmul.mubr.f32.vlgmr.msra.gmra.mrb[40].mxu1 %v24144_v26 }
 0x661   :  { %18090 = vmatprep.mubr.f32.mxu1 %v24150_v55 }
 0x664   :  { %18091 = vmatmul.mubr.f32.gmra.mrb[42].mxu1 %v24166_v57 }
 0x665   :  { %18093 = vmatprep.mubr.f32.mxu1 %v24174_v14 }
 0x668   :  { %18094 = vmatmul.mubr.f32.gmra.mrb[44].mxu1 %v24190_v42 }
 0x669   :  { %18096 = vmatprep.mubr.f32.mxu1 %v24198_v48 }
 0x66c   :  { %18097 = vmatmul.mubr.f32.gmra.mrb[46].mxu1 %v24212_v21 }
 0x6f2   :  { %v17929_v30 = vpop.f32.mrb[24].mxu1 }
 0x6f3   :  { %v24489_v61 = vmul.f32 0.17677669, %v17929_v30  ;;  %v5121_v60 = vpop.f32.mrb[25].mxu1 }
 0x6f4   :  { %v24491_v16 = vmul.f32 0.17677669, %v5121_v60 }
 0x6f5   :  { %v5171_v10 = vsel %vm2227_vm3, %v24489_v61, -inf }
 0x6f6   :  { %5172 = vmax.xlane.f32.xlu1 %v5171_v10  ;;  %v17932_v17 = vpop.f32.mrb[26].mxu1  ;;  %v5168_v33 = vsel %vm2227_vm3, %v24491_v16, -inf }
 0x6f7   :  { %v24497_v53 = vmul.f32 0.17677669, %v17932_v17  ;;  %5169 = vmax.xlane.f32.xlu0 %v5168_v33  ;;  %v5131_v44 = vpop.f32.mrb[27].mxu1 }
 0x6f8   :  { %v24499_v15 = vmul.f32 0.17677669, %v5131_v44 }
 0x6f9   :  { %v5177_v30 = vsel %vm2227_vm3, %v24497_v53, -inf }
 0x6fa   :  { %5178 = vmax.xlane.f32.xlu1 %v5177_v30  ;;  %v17935_v60 = vpop.f32.mrb[28].mxu1  ;;  %v5174_v56 = vsel %vm2227_vm3, %v24499_v15, -inf }
 0x6fb   :  { %v24505_v18 = vmul.f32 0.17677669, %v17935_v60  ;;  %5175 = vmax.xlane.f32.xlu0 %v5174_v56  ;;  %v5141_v10 = vpop.f32.mrb[29].mxu1 }
 0x6fc   :  { %v24507_v50 = vmul.f32 0.17677669, %v5141_v10 }
 0x6fd   :  { %v5183_v17 = vsel %vm2227_vm3, %v24505_v18, -inf }
 0x6fe   :  { %5184 = vmax.xlane.f32.xlu1 %v5183_v17  ;;  %v17938_v44 = vpop.f32.mrb[30].mxu1  ;;  %v5180_v33 = vsel %vm2227_vm3, %v24507_v50, -inf }
 0x6ff   :  { %v24513_v46 = vmul.f32 0.17677669, %v17938_v44  ;;  %5181 = vmax.xlane.f32.xlu0 %v5180_v33  ;;  %v5151_v30 = vpop.f32.mrb[31].mxu1 }
 0x700   :  { %v24515_v29 = vmul.f32 0.17677669, %v5151_v30 }
 0x701   :  { %v5189_v56 = vsel %vm2227_vm3, %v24513_v46, -inf }
 0x702   :  { %5190 = vmax.xlane.f32.xlu1 %v5189_v56  ;;  %v5186_v60 = vsel %vm2227_vm3, %v24515_v29, -inf  ;;  %v14954_v56 = vld [vmem:[%s28113_s12 + $0x1] ss:$0 sm:$0xff] }
 0x703   :  { %5187 = vmax.xlane.f32.xlu0 %v5186_v60 }
 0x713   :  { %v24521_v10 = vpop.f32.mrb[32].mxu1 }
 0x714   :  { %v24523_v17 = vpop.f32.mrb[33].mxu1 }
 0x717   :  { %v24525_v5 = vpop.f32.mrb[34].mxu1 }
 0x718   :  { %v24527_v44 = vpop.f32.mrb[35].mxu1 }
 0x71b   :  { %v24529_v33 = vpop.f32.mrb[36].mxu1 }
 0x71c   :  { %v24531_v30 = vpop.f32.mrb[37].mxu1 }
 0x71f   :  { %v24533_v0 = vpop.f32.mrb[38].mxu1 }
 0x720   :  { %v24535_v4 = vpop.f32.mrb[39].mxu1 }
 0x733   :  { %v18089_v60 = vpop.f32.mrb[40].mxu1 }
 0x734   :  { %v5746_v34 = vadd.f32 %v18089_v60, %v14954_v56  ;;  %v5740_v36 = vpop.f32.mrb[41].mxu1 }
 0x735   :  { %v5741_v22 = vadd.f32 %v14954_v56, %v5740_v36 }
 0x737   :  { %v20347_v1 = vpack.c.bf16 %v5746_v34, %v5741_v22  ;;  %v18092_v7 = vpop.f32.mrb[42].mxu1 }
 0x738   :  { %v5756_v24 = vadd.f32 %v18092_v7, %v14954_v56  ;;  %v5750_v52 = vpop.f32.mrb[43].mxu1 }
 0x739   :  { %v5751_v47 = vadd.f32 %v14954_v56, %v5750_v52  ;;  %20348 = vmatprep.subr.bf16.mxu1 %v20347_v1 }
 0x73a   :  { %20350 = vmatpush3.bf16.msra.mxu1 %v20347_v1 }
 0x73b   :  { %v20351_v11 = vpack.c.bf16 %v5756_v24, %v5751_v47  ;;  %v18095_v12 = vpop.f32.mrb[44].mxu1 }
 0x73c   :  { %v5766_v63 = vadd.f32 %v18095_v12, %v14954_v56  ;;  %v5760_v13 = vpop.f32.mrb[45].mxu1 }
 0x73d   :  { %v5761_v40 = vadd.f32 %v14954_v56, %v5760_v13  ;;  %20352 = vmatprep.subr.bf16.mxu1 %v20351_v11 }
 0x73e   :  { %20354 = vmatpush3.bf16.msra.mxu1 %v20351_v11 }
 0x73f   :  { %v20355_v28 = vpack.c.bf16 %v5766_v63, %v5761_v40  ;;  %v18098_v59 = vpop.f32.mrb[46].mxu1 }
 0x740   :  { %v5776_v58 = vadd.f32 %v18098_v59, %v14954_v56  ;;  %v5770_v60 = vpop.f32.mrb[47].mxu1 }
 0x741   :  { %v5771_v38 = vadd.f32 %v14954_v56, %v5770_v60  ;;  %20356 = vmatprep.subr.bf16.mxu1 %v20355_v28 }
 0x742   :  { %20358 = vmatpush3.bf16.msra.mxu1 %v20355_v28 }
 0x743   :  { %v20359_v22 = vpack.c.bf16 %v5776_v58, %v5771_v38 }
 0x745   :  { %20360 = vmatprep.subr.bf16.mxu1 %v20359_v22 }
 0x746   :  { %20362 = vmatpush3.bf16.msra.mxu1 %v20359_v22 }
 0x783   :  { %v5173_v52 = vpop.xlane.xlu1 %5172 }
 0x784   :  { %v5193_v1 = vsub.f32 %v24489_v61, %v5173_v52  ;;  %v5170_v47 = vpop.xlane.xlu0 %5169 }
 0x785   :  { %v5192_v12 = vsub.f32 %v24491_v16, %v5170_v47 }
 0x786   :  { %v5202_v24 = vmul.f32 1.442695, %v5193_v1 }
 0x787   :  { %v5200_v13 = vmul.f32 1.442695, %v5192_v12  ;;  %v5179_v7 = vpop.xlane.xlu1 %5178 }
 0x788   :  { %22124 = vpow2.f32 %v5202_v24  ;;  %v5195_v63 = vsub.f32 %v24497_v53, %v5179_v7  ;;  %v5176_v11 = vpop.xlane.xlu0 %5175 }
 0x789   :  { %22126 = vpow2.f32 %v5200_v13  ;;  %v5194_v59 = vsub.f32 %v24499_v15, %v5176_v11 }
 0x78a   :  { %v5206_v28 = vmul.f32 1.442695, %v5195_v63 }
 0x78b   :  { %v5204_v38 = vmul.f32 1.442695, %v5194_v59  ;;  %v5185_v58 = vpop.xlane.xlu1 %5184 }
 0x78c   :  { %22128 = vpow2.f32 %v5206_v28  ;;  %v5197_v40 = vsub.f32 %v24505_v18, %v5185_v58  ;;  %v5182_v36 = vpop.xlane.xlu0 %5181 }
 0x78d   :  { %22130 = vpow2.f32 %v5204_v38  ;;  %v5196_v34 = vsub.f32 %v24507_v50, %v5182_v36  ;;  %v14920_v36 = vld [vmem:[%s28317_s1 + $0x88] sm:$0xff] }
 0x78e   :  { %v5210_v61 = vmul.f32 1.442695, %v5197_v40  ;;  %v14919_v40 = vld [vmem:[%s28317_s1 + $0x80] sm:$0xff] }
 0x78f   :  { %v5208_v16 = vmul.f32 1.442695, %v5196_v34  ;;  %v5191_v56 = vpop.xlane.xlu1 %5190  ;;  %v24565_v34 = vpack.c.bf16 %v14920_v36, %v14919_v40  ;;  %v14923_v40 = vld [vmem:[%s28317_s1 + $0xa0] sm:$0xff]  ;;  %v14924_v36 = vld [vmem:[%s28317_s1 + $0xa8] sm:$0xff] }
 0x790   :  { %22132 = vpow2.f32 %v5210_v61  ;;  %v5199_v53 = vsub.f32 %v24513_v46, %v5191_v56  ;;  %v5188_v60 = vpop.xlane.xlu0 %5187 }
 0x791   :  { %22134 = vpow2.f32 %v5208_v16  ;;  %v5198_v15 = vsub.f32 %v24515_v29, %v5188_v60  ;;  %20260 = vmatprep.subr.bf16.mxu0 %v24565_v34 }
 0x792   :  { %v22125_v22 = vpop.eup %22124  ;;  %v5214_v52 = vmul.f32 1.442695, %v5199_v53 }
 0x793   :  { %v22127_v1 = vpop.eup %22126  ;;  %v5212_v47 = vmul.f32 1.442695, %v5198_v15  ;;  %v5219_v18 = vsel %vm2227_vm3, %v22125_v22, 0.0 }
 0x794   :  { %22136 = vpow2.f32 %v5214_v52  ;;  %5220 = vadd.xlane.f32.xlu1 %v5219_v18  ;;  %v5216_v50 = vsel %vm2227_vm3, %v22127_v1, 0.0  ;;  %v14922_v18 = vld [vmem:[%s28317_s1 + $0x98] sm:$0xff] }
 0x795   :  { %22138 = vpow2.f32 %v5212_v47  ;;  %5217 = vadd.xlane.f32.xlu0 %v5216_v50  ;;  %v14921_v47 = vld [vmem:[%s28317_s1 + $0x90] sm:$0xff] }
 0x796   :  { %v22129_v12 = vpop.eup %22128 }
 0x797   :  { %v22131_v24 = vpop.eup %22130  ;;  %v5225_v46 = vsel %vm2227_vm3, %v22129_v12, 0.0 }
 0x798   :  { %5226 = vadd.xlane.f32.xlu1 %v5225_v46  ;;  %v5222_v13 = vsel %vm2227_vm3, %v22131_v24, 0.0 }
 0x799   :  { %5223 = vadd.xlane.f32.xlu0 %v5222_v13 }
 0x79a   :  { %v22133_v29 = vpop.eup %22132 }
 0x79b   :  { %v22135_v7 = vpop.eup %22134  ;;  %v5231_v63 = vsel %vm2227_vm3, %v22133_v29, 0.0 }
 0x79c   :  { %5232 = vadd.xlane.f32.xlu1 %v5231_v63  ;;  %v5228_v11 = vsel %vm2227_vm3, %v22135_v7, 0.0 }
 0x79d   :  { %5229 = vadd.xlane.f32.xlu0 %v5228_v11 }
 0x79e   :  { %v24554_v59 = vpop.eup %22136 }
 0x79f   :  { %v22139_v28 = vpop.eup %22138  ;;  %v5237_v38 = vsel %vm2227_vm3, %v24554_v59, 0.0 }
 0x7a0   :  { %5238 = vadd.xlane.f32.xlu1 %v5237_v38  ;;  %v5234_v58 = vsel %vm2227_vm3, %v22139_v28, 0.0  ;;  %v24574_v38 = vpack.c.bf16 %v14922_v18, %v14921_v47  ;;  %v14927_v18 = vld [vmem:[%s28317_s1 + $0xc0] sm:$0xff] }
 0x7a1   :  { %5235 = vadd.xlane.f32.xlu0 %v5234_v58 }
 0x821   :  { %v5221_v61 = vpop.xlane.xlu1 %5220 }
 0x822   :  { %22140 = vrcp.f32 %v5221_v61  ;;  %v5218_v16 = vpop.xlane.xlu0 %5217 }
 0x823   :  { %22142 = vrcp.f32 %v5218_v16  ;;  %v24586_v16 = vpack.c.bf16 %v14924_v36, %v14923_v40  ;;  %v14933_v36 = vld [vmem:[%s28317_s1 + $0xf0] sm:$0xff] }
 0x825   :  { %v5227_v56 = vpop.xlane.xlu1 %5226  ;;  %28349 = vst [vmem:[#allocation41_spill] sm:$0xff] %v24586_v16 }
 0x826   :  { %22144 = vrcp.f32 %v5227_v56  ;;  %v5224_v53 = vpop.xlane.xlu0 %5223 }
 0x827   :  { %22146 = vrcp.f32 %v5224_v53  ;;  %v14925_v53 = vld [vmem:[%s28317_s1 + $0xb0] sm:$0xff] }
 0x829   :  { %v5233_v60 = vpop.xlane.xlu1 %5232 }
 0x82a   :  { %22148 = vrcp.f32 %v5233_v60  ;;  %v5230_v15 = vpop.xlane.xlu0 %5229  ;;  %v14926_v60 = vld [vmem:[%s28317_s1 + $0xb8] sm:$0xff] }
 0x82b   :  { %22150 = vrcp.f32 %v5230_v15 }
 0x82c   :  { %v22141_v52 = vpop.eup %22140 }
 0x82d   :  { %v22143_v50 = vpop.eup %22142  ;;  %v5239_v46 = vpop.xlane.xlu1 %5238  ;;  %v5243_v11 = vmul.f32 %v22141_v52, %v22125_v22  ;;  %v24598_v52 = vpack.c.bf16 %v14926_v60, %v14925_v53 }
 0x82e   :  { %22152 = vrcp.f32 %v5239_v46  ;;  %v5236_v13 = vpop.xlane.xlu0 %5235  ;;  %v5241_v63 = vmul.f32 %v22143_v50, %v22127_v1  ;;  %v14928_v50 = vld [vmem:[%s28317_s1 + $0xc8] sm:$0xff] }
 0x82f   :  { %22154 = vrcp.f32 %v5236_v13  ;;  %28350 = vst [vmem:[#allocation42_spill] sm:$0xff] %v24598_v52  ;;  %v24611_v13 = vpack.c.bf16 %v14928_v50, %v14927_v18 }
 0x830   :  { %v22145_v58 = vpop.eup %22144  ;;  %17955 = vmatprep.mubr.msk.f32.mxu0 %vm2227_vm3, %v5241_v63  ;;  %v14929_v63 = vld [vmem:[%s28317_s1 + $0xd0] sm:$0xff] }
 0x831   :  { %v22147_v61 = vpop.eup %22146  ;;  %17956 = vmatmul.mubr.msk.f32.vlgmr.msra.gmra.mrb[32].mxu0 %vm2227_vm3, %v5243_v11  ;;  %v5247_v1 = vmul.f32 %v22145_v58, %v22129_v12  ;;  %28351 = vst [vmem:[#allocation43_spill] sm:$0xff] %v24611_v13  ;;  %v14930_v11 = vld [vmem:[%s28317_s1 + $0xd8] sm:$0xff]  ;;  %v14932_v58 = vld [vmem:[%s28317_s1 + $0xe8] sm:$0xff] }
 0x832   :  { %20262 = vmatpush3.bf16.msra.mxu0 %v24565_v34  ;;  %v5245_v22 = vmul.f32 %v22147_v61, %v22131_v24  ;;  %v14934_v61 = vld [vmem:[%s28317_s1 + $0xf8] sm:$0xff] }
 0x833   :  { %20264 = vmatprep.subr.bf16.mxu0 %v24574_v38 }
 0x834   :  { %v22149_v56 = vpop.eup %22148  ;;  %17958 = vmatprep.mubr.msk.f32.mxu0 %vm2227_vm3, %v5245_v22  ;;  %v24644_v22 = vpack.c.bf16 %v14934_v61, %v14933_v36 }
 0x835   :  { %v22151_v15 = vpop.eup %22150  ;;  %17959 = vmatmul.mubr.msk.f32.gmra.mrb[34].mxu0 %vm2227_vm3, %v5247_v1  ;;  %v5251_v12 = vmul.f32 %v22149_v56, %v22133_v29  ;;  %v14918_v1 = vld [vmem:[%s28112_s10 + $0x1] ss:$0 sm:$0xff] }
 0x836   :  { %20266 = vmatpush3.bf16.msra.mxu0 %v24574_v38  ;;  %v5249_v24 = vmul.f32 %v22151_v15, %v22135_v7  ;;  %28354 = vst [vmem:[#allocation46_spill] sm:$0xff] %v24644_v22  ;;  %v5481_v56 = vadd.f32 %v14918_v1, %v24523_v17  ;;  %v14936_v17 = vld [vmem:[%s28111_s11 + $0x1] ss:$0 sm:$0xff] }
 0x837   :  { %20268 = vmatprep.subr.bf16.mxu0 %v24586_v16 }
 0x838   :  { %v22153_v47 = vpop.eup %22152  ;;  %17961 = vmatprep.mubr.msk.f32.mxu0 %vm2227_vm3, %v5249_v24 }
 0x839   :  { %v22155_v46 = vpop.eup %22154  ;;  %17962 = vmatmul.mubr.msk.f32.gmra.mrb[36].mxu0 %vm2227_vm3, %v5251_v12  ;;  %v5255_v29 = vmul.f32 %v22153_v47, %v24554_v59  ;;  %v24624_v59 = vpack.c.bf16 %v14930_v11, %v14929_v63 }
 0x83a   :  { %20270 = vmatpush3.bf16.msra.mxu0 %v24586_v16  ;;  %v5253_v7 = vmul.f32 %v22155_v46, %v22139_v28  ;;  %v14931_v28 = vld [vmem:[%s28317_s1 + $0xe0] sm:$0xff] }
 0x83b   :  { %20272 = vmatprep.subr.bf16.mxu0 %v24598_v52  ;;  %28352 = vst [vmem:[#allocation44_spill] sm:$0xff] %v24624_v59  ;;  %v24634_v40 = vpack.c.bf16 %v14932_v58, %v14931_v28 }
 0x83c   :  { %17964 = vmatprep.mubr.msk.f32.mxu0 %vm2227_vm3, %v5253_v7 }
 0x83d   :  { %17965 = vmatmul.mubr.msk.f32.gmra.mrb[38].mxu0 %vm2227_vm3, %v5255_v29  ;;  %28353 = vst [vmem:[#allocation45_spill] sm:$0xff] %v24634_v40 }
 0x83e   :  { %20274 = vmatpush3.bf16.msra.mxu0 %v24598_v52  ;;  %18043 = vmatprep.mubr.f32.mxu0 %v24129_v23 }
 0x83f   :  { %20276 = vmatprep.subr.bf16.mxu0 %v24611_v13 }
 0x842   :  { %20278 = vmatpush3.bf16.msra.mxu0 %v24611_v13 }
 0x843   :  { %20280 = vmatprep.subr.bf16.mxu0 %v24624_v59 }
 0x846   :  { %20282 = vmatpush3.bf16.msra.mxu0 %v24624_v59 }
 0x847   :  { %20284 = vmatprep.subr.bf16.mxu0 %v24634_v40 }
 0x84a   :  { %20286 = vmatpush3.bf16.msra.mxu0 %v24634_v40 }
 0x84b   :  { %20288 = vmatprep.subr.bf16.mxu0 %v24644_v22 }
 0x84e   :  { %20290 = vmatpush3.bf16.msra.mxu0 %v24644_v22 }
 0x851   :  { %18044 = vmatmul.mubr.f32.vlgmr.msra.gmra.mrb[40].mxu0 %v24144_v26 }
 0x852   :  { %18046 = vmatprep.mubr.f32.mxu0 %v24150_v55 }
 0x855   :  { %18047 = vmatmul.mubr.f32.gmra.mrb[42].mxu0 %v24166_v57 }
 0x856   :  { %18049 = vmatprep.mubr.f32.mxu0 %v24174_v14 }
 0x859   :  { %18050 = vmatmul.mubr.f32.gmra.mrb[44].mxu0 %v24190_v42 }
 0x85a   :  { %18052 = vmatprep.mubr.f32.mxu0 %v24198_v48 }
 0x85d   :  { %18053 = vmatmul.mubr.f32.gmra.mrb[46].mxu0 %v24212_v21 }
 0x85e   :  { %18115 = vmatprep.mubr.msk.f32.mxu0 %vm5006_vm5, %v5481_v56 }
 0x904   :  { %v24661_v53 = vpop.f32.mrb[32].mxu0 }
 0x905   :  { %v24663_v60 = vpop.f32.mrb[33].mxu0 }
 0x908   :  { %v24665_v15 = vpop.f32.mrb[34].mxu0 }
 0x909   :  { %v24667_v24 = vpop.f32.mrb[35].mxu0 }
 0x90c   :  { %v24669_v12 = vpop.f32.mrb[36].mxu0 }
 0x90d   :  { %v24671_v47 = vpop.f32.mrb[37].mxu0 }
 0x910   :  { %v24673_v18 = vpop.f32.mrb[38].mxu0 }
 0x911   :  { %v24675_v50 = vpop.f32.mrb[39].mxu0 }
 0x924   :  { %v18045_v46 = vpop.f32.mrb[40].mxu0 }
 0x925   :  { %v5616_v7 = vadd.f32 %v18045_v46, %v14936_v17  ;;  %v5610_v29 = vpop.f32.mrb[41].mxu0 }
 0x926   :  { %v5611_v63 = vadd.f32 %v14936_v17, %v5610_v29 }
 0x928   :  { %v20323_v11 = vpack.c.bf16 %v5616_v7, %v5611_v63  ;;  %v18048_v28 = vpop.f32.mrb[42].mxu0 }
 0x929   :  { %v5626_v58 = vadd.f32 %v18048_v28, %v14936_v17  ;;  %v5620_v36 = vpop.f32.mrb[43].mxu0 }
 0x92a   :  { %v5621_v61 = vadd.f32 %v14936_v17, %v5620_v36  ;;  %20325 = vmatprep.subr.msk.bf16.mxu0 %vm24272_vm6, %v20323_v11 }
 0x92b   :  { %20328 = vmatpush3.bf16.xpose.msk.msra.mxu0 %vm24272_vm6, %v20323_v11  ;;  %v5511_v11 = vadd.f32 %v14918_v1, %v24535_v4 }
 0x92c   :  { %v20329_v56 = vpack.c.bf16 %v5626_v58, %v5621_v61  ;;  %v18051_v22 = vpop.f32.mrb[44].mxu0 }
 0x92d   :  { %v5636_v40 = vadd.f32 %v18051_v22, %v14936_v17  ;;  %v5630_v59 = vpop.f32.mrb[45].mxu0  ;;  %v5501_v22 = vadd.f32 %v14918_v1, %v24531_v30 }
 0x92e   :  { %v5631_v13 = vadd.f32 %v14936_v17, %v5630_v59  ;;  %20331 = vmatprep.subr.msk.bf16.mxu0 %vm24272_vm6, %v20329_v56  ;;  %v5491_v59 = vadd.f32 %v14918_v1, %v24527_v44 }
 0x930   :  { %v20335_v46 = vpack.c.bf16 %v5636_v40, %v5631_v13  ;;  %v18054_v7 = vpop.f32.mrb[46].mxu0  ;;  %v5486_v13 = vadd.f32 %v24521_v10, %v14918_v1  ;;  %v5496_v40 = vadd.f32 %v24525_v5, %v14918_v1  ;;  %v5516_v10 = vadd.f32 %v24533_v0, %v14918_v1 }
 0x931   :  { %v5646_v29 = vadd.f32 %v18054_v7, %v14936_v17  ;;  %v5640_v63 = vpop.f32.mrb[47].mxu0 }
 0x932   :  { %v5641_v28 = vadd.f32 %v14936_v17, %v5640_v63  ;;  %v5506_v17 = vadd.f32 %v24529_v33, %v14918_v1 }
 0x933   :  { %20334 = vmatpush3.bf16.xpose.msk.msra.mxu0 %vm24272_vm6, %v20329_v56 }
 0x934   :  { %v20341_v36 = vpack.c.bf16 %v5646_v29, %v5641_v28  ;;  %20337 = vmatprep.subr.msk.bf16.mxu0 %vm24272_vm6, %v20335_v46 }
 0x93b   :  { %20340 = vmatpush3.bf16.xpose.msk.msra.mxu0 %vm24272_vm6, %v20335_v46 }
 0x93c   :  { %20343 = vmatprep.subr.msk.bf16.mxu0 %vm24272_vm6, %v20341_v36 }
 0x943   :  { %20346 = vmatpush3.bf16.xpose.msk.msra.mxu0 %vm24272_vm6, %v20341_v36 }
 0x94a   :  { %18116 = vmatmul.mubr.msk.f32.vlgmr.msra.gmra.mrb[48].mxu0 %vm5006_vm5, %v5486_v13 }
 0x94b   :  { %18118 = vmatprep.mubr.msk.f32.mxu0 %vm5006_vm5, %v5491_v59 }
 0x94e   :  { %18119 = vmatmul.mubr.msk.f32.gmra.mrb[50].mxu0 %vm5006_vm5, %v5496_v40 }
 0x94f   :  { %18121 = vmatprep.mubr.msk.f32.mxu0 %vm5006_vm5, %v5501_v22 }
 0x952   :  { %18122 = vmatmul.mubr.msk.f32.gmra.mrb[52].mxu0 %vm5006_vm5, %v5506_v17 }
 0x953   :  { %18124 = vmatprep.mubr.msk.f32.mxu0 %vm5006_vm5, %v5511_v11 }
 0x956   :  { %18125 = vmatmul.mubr.msk.f32.gmra.mrb[54].mxu0 %vm5006_vm5, %v5516_v10 }
 0xa1d   :  { %v18117_v44 = vpop.f32.mrb[48].mxu0 }
 0xa1e   :  { %v5933_v5 = vmul.f32 0.17677669, %v18117_v44  ;;  %v5893_v58 = vpop.f32.mrb[49].mxu0 }
 0xa1f   :  { %v5932_v30 = vmul.f32 0.17677669, %v5893_v58 }
 0xa20   :  { %v5943_v61 = vsel %vm2227_vm3, %v5933_v5, -inf }
 0xa21   :  { %5944 = vmax.xlane.f32.xlu1 %v5943_v61  ;;  %v18120_v56 = vpop.f32.mrb[50].mxu0  ;;  %v5940_v33 = vsel %vm2227_vm3, %v5932_v30, -inf }
 0xa22   :  { %v5935_v46 = vmul.f32 0.17677669, %v18120_v56  ;;  %5941 = vmax.xlane.f32.xlu0 %v5940_v33  ;;  %v5903_v4 = vpop.f32.mrb[51].mxu0 }
 0xa23   :  { %v5934_v7 = vmul.f32 0.17677669, %v5903_v4 }
 0xa24   :  { %v5949_v29 = vsel %vm2227_vm3, %v5935_v46, -inf }
 0xa25   :  { %5950 = vmax.xlane.f32.xlu1 %v5949_v29  ;;  %v18123_v0 = vpop.f32.mrb[52].mxu0  ;;  %v5946_v1 = vsel %vm2227_vm3, %v5934_v7, -inf }
 0xa26   :  { %v5937_v63 = vmul.f32 0.17677669, %v18123_v0  ;;  %5947 = vmax.xlane.f32.xlu0 %v5946_v1  ;;  %v5913_v28 = vpop.f32.mrb[53].mxu0 }
 0xa27   :  { %v5936_v36 = vmul.f32 0.17677669, %v5913_v28 }
 0xa28   :  { %v5955_v13 = vsel %vm2227_vm3, %v5937_v63, -inf }
 0xa29   :  { %5956 = vmax.xlane.f32.xlu1 %v5955_v13  ;;  %v18126_v59 = vpop.f32.mrb[54].mxu0  ;;  %v5952_v40 = vsel %vm2227_vm3, %v5936_v36, -inf }
 0xa2a   :  { %v5939_v22 = vmul.f32 0.17677669, %v18126_v59  ;;  %5953 = vmax.xlane.f32.xlu0 %v5952_v40  ;;  %v5923_v17 = vpop.f32.mrb[55].mxu0 }
 0xa2b   :  { %v5938_v11 = vmul.f32 0.17677669, %v5923_v17 }
 0xa2c   :  { %v5961_v10 = vsel %vm2227_vm3, %v5939_v22, -inf }
 0xa2d   :  { %5962 = vmax.xlane.f32.xlu1 %v5961_v10  ;;  %v5958_v44 = vsel %vm2227_vm3, %v5938_v11, -inf }
 0xa2e   :  { %5959 = vmax.xlane.f32.xlu0 %v5958_v44 }
 0xaae   :  { %v5945_v58 = vpop.xlane.xlu1 %5944 }
 0xaaf   :  { %v5965_v61 = vsub.f32 %v5933_v5, %v5945_v58  ;;  %v5942_v56 = vpop.xlane.xlu0 %5941 }
 0xab0   :  { %v5964_v33 = vsub.f32 %v5932_v30, %v5942_v56 }
 0xab1   :  { %v5974_v4 = vmul.f32 1.442695, %v5965_v61 }
 0xab2   :  { %v5972_v29 = vmul.f32 1.442695, %v5964_v33  ;;  %v5951_v0 = vpop.xlane.xlu1 %5950 }
 0xab3   :  { %22156 = vpow2.f32 %v5974_v4  ;;  %v5967_v1 = vsub.f32 %v5935_v46, %v5951_v0  ;;  %v5948_v28 = vpop.xlane.xlu0 %5947 }
 0xab4   :  { %22158 = vpow2.f32 %v5972_v29  ;;  %v5966_v13 = vsub.f32 %v5934_v7, %v5948_v28 }
 0xab5   :  { %v5978_v59 = vmul.f32 1.442695, %v5967_v1 }
 0xab6   :  { %v5976_v40 = vmul.f32 1.442695, %v5966_v13  ;;  %v5957_v17 = vpop.xlane.xlu1 %5956 }
 0xab7   :  { %22160 = vpow2.f32 %v5978_v59  ;;  %v5969_v10 = vsub.f32 %v5937_v63, %v5957_v17  ;;  %v5954_v52 = vpop.xlane.xlu0 %5953 }
 0xab8   :  { %22162 = vpow2.f32 %v5976_v40  ;;  %v5968_v44 = vsub.f32 %v5936_v36, %v5954_v52 }
 0xab9   :  { %v5982_v16 = vmul.f32 1.442695, %v5969_v10  ;;  %v14999_v10 = vld [vmem:[%s28316_s27 + $0x100] sm:$0xff] }
 0xaba   :  { %v5980_v5 = vmul.f32 1.442695, %v5968_v44  ;;  %v5963_v58 = vpop.xlane.xlu1 %5962  ;;  %v15000_v44 = vld [vmem:[%s28316_s27 + $0x108] sm:$0xff] }
 0xabb   :  { %22164 = vpow2.f32 %v5982_v16  ;;  %v5971_v30 = vsub.f32 %v5939_v22, %v5963_v58  ;;  %v5960_v61 = vpop.xlane.xlu0 %5959  ;;  %v14979_v58 = vld [vmem:[%s28114_s13 + $0x20] sm:$0xff] }
 0xabc   :  { %22166 = vpow2.f32 %v5980_v5  ;;  %v5970_v56 = vsub.f32 %v5938_v11, %v5960_v61  ;;  %v24750_v5 = vpack.c.bf16 %v15000_v44, %v14999_v10  ;;  %v14981_v61 = vld [vmem:[%s28114_s13 + $0x30] sm:$0xff]  ;;  %v15002_v10 = vld [vmem:[%s28316_s27 + $0x118] sm:$0xff] }
 0xabd   :  { %v24718_v46 = vpop.eup %22156  ;;  %v5986_v33 = vmul.f32 1.442695, %v5971_v30  ;;  %v14980_v30 = vld [vmem:[%s28114_s13 + $0x28] sm:$0xff] }
 0xabe   :  { %v22159_v7 = vpop.eup %22158  ;;  %v5984_v4 = vmul.f32 1.442695, %v5970_v56  ;;  %v5991_v29 = vsel %vm2227_vm3, %v24718_v46, 0.0  ;;  %20380 = vmatprep.subr.bf16.mxu1 %v24750_v5  ;;  %v24762_v56 = vpack.c.bf16 %v14980_v30, %v14979_v58 }
 0xabf   :  { %22168 = vpow2.f32 %v5986_v33  ;;  %5992 = vadd.xlane.f32.xlu1 %v5991_v29  ;;  %v5988_v52 = vsel %vm2227_vm3, %v22159_v7, 0.0  ;;  %v14982_v33 = vld [vmem:[%s28114_s13 + $0x38] sm:$0xff] }
 0xac0   :  { %22170 = vpow2.f32 %v5984_v4  ;;  %5989 = vadd.xlane.f32.xlu0 %v5988_v52  ;;  %v24767_v4 = vpack.c.bf16 %v14982_v33, %v14981_v61  ;;  %20364 = vmatprep.subr.bf16.mxu0 %v24762_v56 }
 0xac1   :  { %v24723_v63 = vpop.eup %22160  ;;  %20366 = vmatpush3.bf16.msra.mxu0 %v24762_v56 }
 0xac2   :  { %v22163_v16 = vpop.eup %22162  ;;  %v5997_v36 = vsel %vm2227_vm3, %v24723_v63, 0.0  ;;  %20368 = vmatprep.subr.bf16.mxu0 %v24767_v4 }
 0xac3   :  { %5998 = vadd.xlane.f32.xlu1 %v5997_v36  ;;  %v5994_v22 = vsel %vm2227_vm3, %v22163_v16, 0.0 }
 0xac4   :  { %5995 = vadd.xlane.f32.xlu0 %v5994_v22 }
 0xac5   :  { %v24728_v11 = vpop.eup %22164  ;;  %20370 = vmatpush3.bf16.msra.mxu0 %v24767_v4 }
 0xac6   :  { %v24730_v0 = vpop.eup %22166  ;;  %v6003_v1 = vsel %vm2227_vm3, %v24728_v11, 0.0 }
 0xac7   :  { %6004 = vadd.xlane.f32.xlu1 %v6003_v1  ;;  %v6000_v28 = vsel %vm2227_vm3, %v24730_v0, 0.0 }
 0xac8   :  { %6001 = vadd.xlane.f32.xlu0 %v6000_v28 }
 0xac9   :  { %v24736_v13 = vpop.eup %22168 }
 0xaca   :  { %v24738_v59 = vpop.eup %22170  ;;  %v6009_v40 = vsel %vm2227_vm3, %v24736_v13, 0.0 }
 0xacb   :  { %6010 = vadd.xlane.f32.xlu1 %v6009_v40  ;;  %v6006_v17 = vsel %vm2227_vm3, %v24738_v59, 0.0 }
 0xacc   :  { %6007 = vadd.xlane.f32.xlu0 %v6006_v17  ;;  %v15001_v17 = vld [vmem:[%s28316_s27 + $0x110] sm:$0xff] }
 0xb4c   :  { %v5993_v29 = vpop.xlane.xlu1 %5992 }
 0xb4d   :  { %22172 = vrcp.f32 %v5993_v29  ;;  %v5990_v52 = vpop.xlane.xlu0 %5989  ;;  %v24780_v29 = vpack.c.bf16 %v15002_v10, %v15001_v17  ;;  %v15005_v17 = vld [vmem:[%s28316_s27 + $0x130] sm:$0xff]  ;;  %v15006_v10 = vld [vmem:[%s28316_s27 + $0x138] sm:$0xff] }
 0xb4e   :  { %22174 = vrcp.f32 %v5990_v52 }
 0xb50   :  { %v5999_v36 = vpop.xlane.xlu1 %5998 }
 0xb51   :  { %22176 = vrcp.f32 %v5999_v36  ;;  %v5996_v22 = vpop.xlane.xlu0 %5995  ;;  %v15003_v36 = vld [vmem:[%s28316_s27 + $0x120] sm:$0xff] }
 0xb52   :  { %22178 = vrcp.f32 %v5996_v22  ;;  %v15004_v22 = vld [vmem:[%s28316_s27 + $0x128] sm:$0xff] }
 0xb54   :  { %v6005_v1 = vpop.xlane.xlu1 %6004 }
 0xb55   :  { %22180 = vrcp.f32 %v6005_v1  ;;  %v6002_v28 = vpop.xlane.xlu0 %6001 }
 0xb56   :  { %22182 = vrcp.f32 %v6002_v28  ;;  %v24793_v28 = vpack.c.bf16 %v15004_v22, %v15003_v36  ;;  %v15009_v22 = vld [vmem:[%s28316_s27 + $0x150] sm:$0xff] }
 0xb57   :  { %v22173_v40 = vpop.eup %22172 }
 0xb58   :  { %v22175_v44 = vpop.eup %22174  ;;  %v6011_v58 = vpop.xlane.xlu1 %6010  ;;  %v6015_v33 = vmul.f32 %v22173_v40, %v24718_v46 }
 0xb59   :  { %22184 = vrcp.f32 %v6011_v58  ;;  %v6008_v30 = vpop.xlane.xlu0 %6007  ;;  %v6013_v61 = vmul.f32 %v22175_v44, %v22159_v7  ;;  %v24807_v58 = vpack.c.bf16 %v15006_v10, %v15005_v17  ;;  %v15014_v17 = vld [vmem:[%s28316_s27 + $0x178] sm:$0xff] }
 0xb5a   :  { %22186 = vrcp.f32 %v6008_v30 }
 0xb5b   :  { %v22177_v52 = vpop.eup %22176  ;;  %18143 = vmatprep.mubr.msk.f32.mxu1 %vm2227_vm3, %v6013_v61  ;;  %28355 = vst [vmem:[#allocation47_spill] sm:$0xff] %v24807_v58  ;;  %v15007_v61 = vld [vmem:[%s28316_s27 + $0x140] sm:$0xff] }
 0xb5c   :  { %v22179_v1 = vpop.eup %22178  ;;  %18144 = vmatmul.mubr.msk.f32.vlgmr.msra.gmra.mrb[48].mxu1 %vm2227_vm3, %v6015_v33  ;;  %v6019_v7 = vmul.f32 %v22177_v52, %v24723_v63  ;;  %v15008_v33 = vld [vmem:[%s28316_s27 + $0x148] sm:$0xff] }
 0xb5d   :  { %20382 = vmatpush3.bf16.msra.mxu1 %v24750_v5  ;;  %v6017_v46 = vmul.f32 %v22179_v1, %v22163_v16  ;;  %v24821_v36 = vpack.c.bf16 %v15008_v33, %v15007_v61  ;;  %v15010_v1 = vld [vmem:[%s28316_s27 + $0x158] sm:$0xff] }
 0xb5e   :  { %20384 = vmatprep.subr.bf16.mxu1 %v24780_v29  ;;  %v15038_v61 = vld [vmem:[%s28325_s8 + $0x118] sm:$0xff] }
 0xb5f   :  { %v22181_v40 = vpop.eup %22180  ;;  %18146 = vmatprep.mubr.msk.f32.mxu1 %vm2227_vm3, %v6017_v46  ;;  %28356 = vst [vmem:[#allocation48_spill] sm:$0xff] %v24821_v36  ;;  %v15012_v46 = vld [vmem:[%s28316_s27 + $0x168] sm:$0xff] }
 0xb60   :  { %v22183_v44 = vpop.eup %22182  ;;  %18147 = vmatmul.mubr.msk.f32.gmra.mrb[50].mxu1 %vm2227_vm3, %v6019_v7  ;;  %v6023_v16 = vmul.f32 %v22181_v40, %v24728_v11  ;;  %v15013_v40 = vld [vmem:[%s28316_s27 + $0x170] sm:$0xff] }
 0xb61   :  { %20386 = vmatpush3.bf16.msra.mxu1 %v24780_v29  ;;  %v6021_v63 = vmul.f32 %v22183_v44, %v24730_v0  ;;  %v24854_v10 = vpack.c.bf16 %v15014_v17, %v15013_v40  ;;  %v15035_v44 = vld [vmem:[%s28325_s8 + $0x100] sm:$0xff]  ;;  %v15044_v40 = vld [vmem:[%s28325_s8 + $0x148] sm:$0xff] }
 0xb62   :  { %20388 = vmatprep.subr.bf16.mxu1 %v24793_v28 }
 0xb63   :  { %v22185_v30 = vpop.eup %22184  ;;  %18149 = vmatprep.mubr.msk.f32.mxu1 %vm2227_vm3, %v6021_v63  ;;  %28359 = vst [vmem:[#allocation51_spill] sm:$0xff] %v24854_v10  ;;  %v15036_v63 = vld [vmem:[%s28325_s8 + $0x108] sm:$0xff] }
 0xb64   :  { %v22187_v52 = vpop.eup %22186  ;;  %18150 = vmatmul.mubr.msk.f32.gmra.mrb[52].mxu1 %vm2227_vm3, %v6023_v16  ;;  %v6027_v0 = vmul.f32 %v22185_v30, %v24736_v13  ;;  %v24834_v13 = vpack.c.bf16 %v15010_v1, %v15009_v22  ;;  %v24864_v16 = vpack.c.bf16 %v15036_v63, %v15035_v44  ;;  %v15037_v30 = vld [vmem:[%s28325_s8 + $0x110] sm:$0xff]  ;;  %v15042_v1 = vld [vmem:[%s28325_s8 + $0x138] sm:$0xff] }
 0xb65   :  { %20390 = vmatpush3.bf16.msra.mxu1 %v24793_v28  ;;  %v6025_v11 = vmul.f32 %v22187_v52, %v24738_v59  ;;  %v15011_v59 = vld [vmem:[%s28316_s27 + $0x160] sm:$0xff]  ;;  %v24874_v33 = vpack.c.bf16 %v15038_v61, %v15037_v30  ;;  %v15041_v22 = vld [vmem:[%s28325_s8 + $0x130] sm:$0xff]  ;;  %v15046_v63 = vld [vmem:[%s28325_s8 + $0x158] sm:$0xff] }
 0xb66   :  { %20392 = vmatprep.subr.bf16.mxu1 %v24807_v58  ;;  %28357 = vst [vmem:[#allocation49_spill] sm:$0xff] %v24834_v13  ;;  %v24844_v7 = vpack.c.bf16 %v15012_v46, %v15011_v59  ;;  %28360 = vst [vmem:[#allocation52_spill] sm:$0xff] %v24864_v16  ;;  %v15039_v52 = vld [vmem:[%s28325_s8 + $0x120] sm:$0xff]  ;;  %v24898_v59 = vpack.c.bf16 %v15042_v1, %v15041_v22  ;;  %v15045_v44 = vld [vmem:[%s28325_s8 + $0x150] sm:$0xff] }
 0xb67   :  { %18152 = vmatprep.mubr.msk.f32.mxu1 %vm2227_vm3, %v6025_v11  ;;  %28361 = vst [vmem:[#allocation53_spill] sm:$0xff] %v24874_v33  ;;  %v15040_v11 = vld [vmem:[%s28325_s8 + $0x128] sm:$0xff]  ;;  %v15043_v46 = vld [vmem:[%s28325_s8 + $0x140] sm:$0xff]  ;;  %v24922_v30 = vpack.c.bf16 %v15046_v63, %v15045_v44  ;;  %v15049_v22 = vld [vmem:[%s28325_s8 + $0x170] sm:$0xff] }
 0xb68   :  { %18153 = vmatmul.mubr.msk.f32.gmra.mrb[54].mxu1 %vm2227_vm3, %v6027_v0  ;;  %28358 = vst [vmem:[#allocation50_spill] sm:$0xff] %v24844_v7  ;;  %v24886_v0 = vpack.c.bf16 %v15040_v11, %v15039_v52  ;;  %28363 = vst [vmem:[#allocation55_spill] sm:$0xff] %v24898_v59  ;;  %v24910_v17 = vpack.c.bf16 %v15044_v40, %v15043_v46  ;;  %v15047_v61 = vld [vmem:[%s28325_s8 + $0x160] sm:$0xff]  ;;  %v15048_v52 = vld [vmem:[%s28325_s8 + $0x168] sm:$0xff] }
 0xb69   :  { %20394 = vmatpush3.bf16.msra.mxu1 %v24807_v58  ;;  %18227 = vmatprep.mubr.f32.mxu1 %v24129_v23  ;;  %28365 = vst [vmem:[#allocation57_spill] sm:$0xff] %v24922_v30  ;;  %v24932_v11 = vpack.c.bf16 %v15048_v52, %v15047_v61  ;;  %v15050_v1 = vld [vmem:[%s28325_s8 + $0x178] sm:$0xff]  ;;  %v5385_v40 = vld [vmem:[%s28114_s13] sm:$0xff]  ;;  %v5386_v44 = vld [vmem:[%s28114_s13 + $0x8] sm:$0xff] }
 0xb6a   :  { %20396 = vmatprep.subr.bf16.mxu1 %v24821_v36  ;;  %28362 = vst [vmem:[#allocation54_spill] sm:$0xff] %v24886_v0  ;;  %28364 = vst [vmem:[#allocation56_spill] sm:$0xff] %v24910_v17  ;;  %v24942_v46 = vpack.c.bf16 %v15050_v1, %v15049_v22  ;;  %v24960_v63 = vpack.c.bf16 %v5386_v44, %v5385_v40  ;;  %v5387_v61 = vld [vmem:[%s28114_s13 + $0x10] sm:$0xff]  ;;  %v5388_v52 = vld [vmem:[%s28114_s13 + $0x18] sm:$0xff] }
 0xb6b   :  { %28366 = vst [vmem:[#allocation58_spill] sm:$0xff] %v24932_v11  ;;  %v15017_v40 = vld [vmem:[%s28317_s1 + $0x100] sm:$0xff]  ;;  %v15018_v44 = vld [vmem:[%s28317_s1 + $0x108] sm:$0xff] }
 0xb6c   :  { %28367 = vst [vmem:[#allocation59_spill] sm:$0xff] %v24942_v46  ;;  %20372 = vmatprep.subr.bf16.mxu0 %v24960_v63 }
 0xb6d   :  { %20398 = vmatpush3.bf16.msra.mxu1 %v24821_v36 }
 0xb6e   :  { %20400 = vmatprep.subr.bf16.mxu1 %v24834_v13 }
 0xb71   :  { %20402 = vmatpush3.bf16.msra.mxu1 %v24834_v13 }
 0xb72   :  { %20404 = vmatprep.subr.bf16.mxu1 %v24844_v7 }
 0xb75   :  { %20406 = vmatpush3.bf16.msra.mxu1 %v24844_v7 }
 0xb76   :  { %20408 = vmatprep.subr.bf16.mxu1 %v24854_v10 }
 0xb79   :  { %20410 = vmatpush3.bf16.msra.mxu1 %v24854_v10 }
 0xb7a   :  { %20444 = vmatprep.subr.bf16.mxu1 %v24864_v16 }
 0xb7c   :  { %18228 = vmatmul.mubr.f32.vlgmr.msra.gmra.mrb[56].mxu1 %v24144_v26 }
 0xb7d   :  { %18230 = vmatprep.mubr.f32.mxu1 %v24150_v55  ;;  %20446 = vmatpush3.bf16.msra.mxu1 %v24864_v16 }
 0xb7e   :  { %20448 = vmatprep.subr.bf16.mxu1 %v24874_v33 }
 0xb80   :  { %18231 = vmatmul.mubr.f32.gmra.mrb[58].mxu1 %v24166_v57 }
 0xb81   :  { %18233 = vmatprep.mubr.f32.mxu1 %v24174_v14  ;;  %20450 = vmatpush3.bf16.msra.mxu1 %v24874_v33 }
 0xb82   :  { %20452 = vmatprep.subr.bf16.mxu1 %v24886_v0 }
 0xb84   :  { %18234 = vmatmul.mubr.f32.gmra.mrb[60].mxu1 %v24190_v42 }
 0xb85   :  { %18236 = vmatprep.mubr.f32.mxu1 %v24198_v48  ;;  %20454 = vmatpush3.bf16.msra.mxu1 %v24886_v0 }
 0xb86   :  { %20456 = vmatprep.subr.bf16.mxu1 %v24898_v59 }
 0xb88   :  { %18237 = vmatmul.mubr.f32.gmra.mrb[62].mxu1 %v24212_v21 }
 0xb89   :  { %20458 = vmatpush3.bf16.msra.mxu1 %v24898_v59  ;;  %18315 = vmatprep.mubr.f32.mxu1 %v24129_v23 }
 0xb8a   :  { %20460 = vmatprep.subr.bf16.mxu1 %v24910_v17 }
 0xb8d   :  { %20462 = vmatpush3.bf16.msra.mxu1 %v24910_v17 }
 0xb8e   :  { %20464 = vmatprep.subr.bf16.mxu1 %v24922_v30 }
 0xb91   :  { %20466 = vmatpush3.bf16.msra.mxu1 %v24922_v30 }
 0xb92   :  { %20468 = vmatprep.subr.bf16.mxu1 %v24932_v11 }
 0xb95   :  { %20470 = vmatpush3.bf16.msra.mxu1 %v24932_v11 }
 0xb96   :  { %20472 = vmatprep.subr.bf16.mxu1 %v24942_v46 }
 0xb99   :  { %20474 = vmatpush3.bf16.msra.mxu1 %v24942_v46  ;;  %v24969_v46 = vpack.c.bf16 %v5388_v52, %v5387_v61  ;;  %v24981_v61 = vpack.c.bf16 %v15018_v44, %v15017_v40  ;;  %v15021_v44 = vld [vmem:[%s28317_s1 + $0x120] sm:$0xff] }
 0xb9b   :  { %28368 = vst [vmem:[#allocation60_spill] sm:$0xff] %v24969_v46  ;;  %28369 = vst [vmem:[#allocation61_spill] sm:$0xff] %v24981_v61 }
 0xb9c   :  { %18316 = vmatmul.mubr.f32.vlgmr.msra.gmra.mrb[64].mxu1 %v24144_v26 }
 0xb9d   :  { %18318 = vmatprep.mubr.f32.mxu1 %v24150_v55 }
 0xba0   :  { %18319 = vmatmul.mubr.f32.gmra.mrb[66].mxu1 %v24166_v57 }
 0xba1   :  { %18321 = vmatprep.mubr.f32.mxu1 %v24174_v14 }
 0xba4   :  { %18322 = vmatmul.mubr.f32.gmra.mrb[68].mxu1 %v24190_v42 }
 0xba5   :  { %18324 = vmatprep.mubr.f32.mxu1 %v24198_v48 }
 0xba8   :  { %18325 = vmatmul.mubr.f32.gmra.mrb[70].mxu1 %v24212_v21 }
 0xc2f   :  { %v18145_v22 = vpop.f32.mrb[48].mxu1 }
 0xc30   :  { %v6118_v1 = vpop.f32.mrb[49].mxu1 }
 0xc31   :  { %18163 = vmatprep.mubr.msk.f32.mxu0 %vm5006_vm5, %v6118_v1 }
 0xc32   :  { %18164 = vmatmul.mubr.msk.f32.vlgmr.msra.gmra.mrb[56].mxu0 %vm5006_vm5, %v18145_v22 }
 0xc33   :  { %20374 = vmatpush3.bf16.msra.mxu0 %v24960_v63  ;;  %v18148_v11 = vpop.f32.mrb[50].mxu1 }
 0xc34   :  { %v6128_v30 = vpop.f32.mrb[51].mxu1  ;;  %20376 = vmatprep.subr.bf16.mxu0 %v24969_v46 }
 0xc35   :  { %18166 = vmatprep.mubr.msk.f32.mxu0 %vm5006_vm5, %v6128_v30  ;;  %v15019_v30 = vld [vmem:[%s28317_s1 + $0x110] sm:$0xff] }
 0xc36   :  { %18167 = vmatmul.mubr.msk.f32.gmra.mrb[58].mxu0 %vm5006_vm5, %v18148_v11  ;;  %v15020_v11 = vld [vmem:[%s28317_s1 + $0x118] sm:$0xff] }
 0xc37   :  { %v18151_v52 = vpop.f32.mrb[52].mxu1  ;;  %20378 = vmatpush3.bf16.msra.mxu0 %v24969_v46  ;;  %v24999_v40 = vpack.c.bf16 %v15020_v11, %v15019_v30  ;;  %v15028_v30 = vld [vmem:[%s28317_s1 + $0x158] sm:$0xff] }
 0xc38   :  { %v6138_v1 = vpop.f32.mrb[53].mxu1  ;;  %20412 = vmatprep.subr.bf16.mxu0 %v24981_v61 }
 0xc39   :  { %18169 = vmatprep.mubr.msk.f32.mxu0 %vm5006_vm5, %v6138_v1  ;;  %28370 = vst [vmem:[#allocation62_spill] sm:$0xff] %v24999_v40  ;;  %v15024_v1 = vld [vmem:[%s28317_s1 + $0x138] sm:$0xff] }
 0xc3a   :  { %18170 = vmatmul.mubr.msk.f32.gmra.mrb[60].mxu0 %vm5006_vm5, %v18151_v52  ;;  %v15023_v52 = vld [vmem:[%s28317_s1 + $0x130] sm:$0xff] }
 0xc3b   :  { %v18154_v22 = vpop.f32.mrb[54].mxu1 }
 0xc3c   :  { %v6148_v17 = vpop.f32.mrb[55].mxu1 }
 0xc3d   :  { %18172 = vmatprep.mubr.msk.f32.mxu0 %vm5006_vm5, %v6148_v17  ;;  %v15022_v17 = vld [vmem:[%s28317_s1 + $0x128] sm:$0xff] }
 0xc3e   :  { %18173 = vmatmul.mubr.msk.f32.gmra.mrb[62].mxu0 %vm5006_vm5, %v18154_v22  ;;  %v15026_v22 = vld [vmem:[%s28317_s1 + $0x148] sm:$0xff] }
 0xc3f   :  { %18183 = vmatprep.mubr.msk.f32.mxu0 %vm5006_vm5, %v24663_v60  ;;  %v25013_v60 = vpack.c.bf16 %v15022_v17, %v15021_v44  ;;  %v15029_v44 = vld [vmem:[%s28317_s1 + $0x160] sm:$0xff]  ;;  %v15030_v17 = vld [vmem:[%s28317_s1 + $0x168] sm:$0xff] }
 0xc41   :  { %28371 = vst [vmem:[#allocation63_spill] sm:$0xff] %v25013_v60 }
 0xc42   :  { %18184 = vmatmul.mubr.msk.f32.vlgmr.msra.gmra.mrb[56].mxu0 %vm5006_vm5, %v24661_v53  ;;  %v25027_v53 = vpack.c.bf16 %v15024_v1, %v15023_v52  ;;  %v25070_v1 = vpack.c.bf16 %v15030_v17, %v15029_v44 }
 0xc43   :  { %20414 = vmatpush3.bf16.msra.mxu0 %v24981_v61  ;;  %18186 = vmatprep.mubr.msk.f32.mxu0 %vm5006_vm5, %v24667_v24  ;;  %v15025_v24 = vld [vmem:[%s28317_s1 + $0x140] sm:$0xff] }
 0xc44   :  { %20416 = vmatprep.subr.bf16.mxu0 %v24999_v40  ;;  %28372 = vst [vmem:[#allocation64_spill] sm:$0xff] %v25027_v53  ;;  %28375 = vst [vmem:[#allocation67_spill] sm:$0xff] %v25070_v1 }
 0xc46   :  { %18187 = vmatmul.mubr.msk.f32.gmra.mrb[58].mxu0 %vm5006_vm5, %v24665_v15  ;;  %v25041_v15 = vpack.c.bf16 %v15026_v22, %v15025_v24  ;;  %v15031_v24 = vld [vmem:[%s28317_s1 + $0x170] sm:$0xff]  ;;  %v15032_v22 = vld [vmem:[%s28317_s1 + $0x178] sm:$0xff] }
 0xc47   :  { %20418 = vmatpush3.bf16.msra.mxu0 %v24999_v40  ;;  %18189 = vmatprep.mubr.msk.f32.mxu0 %vm5006_vm5, %v24671_v47  ;;  %v15027_v47 = vld [vmem:[%s28317_s1 + $0x150] sm:$0xff] }
 0xc48   :  { %20420 = vmatprep.subr.bf16.mxu0 %v25013_v60  ;;  %28373 = vst [vmem:[#allocation65_spill] sm:$0xff] %v25041_v15  ;;  %v25056_v11 = vpack.c.bf16 %v15028_v30, %v15027_v47 }
 0xc4a   :  { %18190 = vmatmul.mubr.msk.f32.gmra.mrb[60].mxu0 %vm5006_vm5, %v24669_v12  ;;  %28374 = vst [vmem:[#allocation66_spill] sm:$0xff] %v25056_v11 }
 0xc4b   :  { %20422 = vmatpush3.bf16.msra.mxu0 %v25013_v60  ;;  %18192 = vmatprep.mubr.msk.f32.mxu0 %vm5006_vm5, %v24675_v50 }
 0xc4c   :  { %20424 = vmatprep.subr.bf16.mxu0 %v25027_v53 }
 0xc4e   :  { %18193 = vmatmul.mubr.msk.f32.gmra.mrb[62].mxu0 %vm5006_vm5, %v24673_v18 }
 0xc4f   :  { %v25051_v12 = vpop.f32.mrb[56].mxu1  ;;  %20426 = vmatpush3.bf16.msra.mxu0 %v25027_v53  ;;  %18271 = vmatprep.mubr.f32.mxu0 %v24129_v23 }
 0xc50   :  { %v6511_v50 = vpop.f32.mrb[57].mxu1  ;;  %20428 = vmatprep.subr.bf16.mxu0 %v25041_v15 }
 0xc53   :  { %v25064_v18 = vpop.f32.mrb[58].mxu1  ;;  %20430 = vmatpush3.bf16.msra.mxu0 %v25041_v15  ;;  %v25084_v15 = vpack.c.bf16 %v15032_v22, %v15031_v24  ;;  %v25100_v24 = vld [vmem:[%s28112_s10 + $0x2] ss:$0 sm:$0xff] }
 0xc54   :  { %v25067_v52 = vpop.f32.mrb[59].mxu1  ;;  %20432 = vmatprep.subr.bf16.mxu0 %v25056_v11  ;;  %v6512_v22 = vadd.f32 %v25100_v24, %v6511_v50 }
 0xc55   :  { %28376 = vst [vmem:[#allocation68_spill] sm:$0xff] %v25084_v15 }
 0xc57   :  { %v25078_v47 = vpop.f32.mrb[60].mxu1  ;;  %20434 = vmatpush3.bf16.msra.mxu0 %v25056_v11 }
 0xc58   :  { %v25081_v30 = vpop.f32.mrb[61].mxu1  ;;  %20436 = vmatprep.subr.bf16.mxu0 %v25070_v1 }
 0xc5b   :  { %v25086_v44 = vpop.f32.mrb[62].mxu1  ;;  %20438 = vmatpush3.bf16.msra.mxu0 %v25070_v1 }
 0xc5c   :  { %v25089_v17 = vpop.f32.mrb[63].mxu1  ;;  %20440 = vmatprep.subr.bf16.mxu0 %v25084_v15 }
 0xc5f   :  { %20442 = vmatpush3.bf16.msra.mxu0 %v25084_v15  ;;  %v15052_v15 = vld [vmem:[%s28113_s12 + $0x2] ss:$0 sm:$0xff] }
 0xc62   :  { %18272 = vmatmul.mubr.f32.vlgmr.msra.gmra.mrb[64].mxu0 %v24144_v26 }
 0xc63   :  { %18274 = vmatprep.mubr.f32.mxu0 %v24150_v55 }
 0xc66   :  { %18275 = vmatmul.mubr.f32.gmra.mrb[66].mxu0 %v24166_v57 }
 0xc67   :  { %18277 = vmatprep.mubr.f32.mxu0 %v24174_v14 }
 0xc6a   :  { %18278 = vmatmul.mubr.f32.gmra.mrb[68].mxu0 %v24190_v42 }
 0xc6b   :  { %18280 = vmatprep.mubr.f32.mxu0 %v24198_v48 }
 0xc6e   :  { %18281 = vmatmul.mubr.f32.gmra.mrb[70].mxu0 %v24212_v21 }
 0xc6f   :  { %v18317_v1 = vpop.f32.mrb[64].mxu1  ;;  %18343 = vmatprep.mubr.msk.f32.mxu0 %vm5006_vm5, %v6512_v22 }
 0xc70   :  { %v6777_v11 = vadd.f32 %v18317_v1, %v15052_v15  ;;  %v6771_v53 = vpop.f32.mrb[65].mxu1 }
 0xc71   :  { %v6772_v60 = vadd.f32 %v15052_v15, %v6771_v53 }
 0xc73   :  { %v20499_v40 = vpack.c.bf16 %v6777_v11, %v6772_v60  ;;  %v18320_v61 = vpop.f32.mrb[66].mxu1 }
 0xc74   :  { %v6787_v46 = vadd.f32 %v18320_v61, %v15052_v15  ;;  %v6781_v59 = vpop.f32.mrb[67].mxu1 }
 0xc75   :  { %v6782_v0 = vadd.f32 %v15052_v15, %v6781_v59  ;;  %20500 = vmatprep.subr.bf16.mxu1 %v20499_v40 }
 0xc76   :  { %20502 = vmatpush3.bf16.msra.mxu1 %v20499_v40 }
 0xc77   :  { %v20503_v50 = vpack.c.bf16 %v6787_v46, %v6782_v0  ;;  %v18323_v33 = vpop.f32.mrb[68].mxu1  ;;  %v15034_v0 = vld [vmem:[%s28111_s11 + $0x2] ss:$0 sm:$0xff] }
 0xc78   :  { %v6797_v16 = vadd.f32 %v18323_v33, %v15052_v15  ;;  %v6791_v10 = vpop.f32.mrb[69].mxu1 }
 0xc79   :  { %v6792_v7 = vadd.f32 %v15052_v15, %v6791_v10  ;;  %20504 = vmatprep.subr.bf16.mxu1 %v20503_v50 }
 0xc7a   :  { %20506 = vmatpush3.bf16.msra.mxu1 %v20503_v50 }
 0xc7b   :  { %v20507_v13 = vpack.c.bf16 %v6797_v16, %v6792_v7  ;;  %v18326_v36 = vpop.f32.mrb[70].mxu1 }
 0xc7c   :  { %v6807_v22 = vadd.f32 %v18326_v36, %v15052_v15  ;;  %v6801_v1 = vpop.f32.mrb[71].mxu1 }
 0xc7d   :  { %v6802_v58 = vadd.f32 %v15052_v15, %v6801_v1  ;;  %20508 = vmatprep.subr.bf16.mxu1 %v20507_v13 }
 0xc7e   :  { %20510 = vmatpush3.bf16.msra.mxu1 %v20507_v13 }
 0xc7f   :  { %v20511_v60 = vpack.c.bf16 %v6807_v22, %v6802_v58 }
 0xc81   :  { %20512 = vmatprep.subr.bf16.mxu1 %v20511_v60 }
 0xc82   :  { %20514 = vmatpush3.bf16.msra.mxu1 %v20511_v60 }
 0xd35   :  { %v18273_v59 = vpop.f32.mrb[64].mxu0 }
 0xd36   :  { %v6647_v33 = vadd.f32 %v18273_v59, %v15034_v0  ;;  %v6641_v46 = vpop.f32.mrb[65].mxu0 }
 0xd37   :  { %v6642_v10 = vadd.f32 %v15034_v0, %v6641_v46  ;;  %v6517_v46 = vadd.f32 %v25051_v12, %v25100_v24  ;;  %v6537_v12 = vadd.f32 %v25078_v47, %v25100_v24 }
 0xd39   :  { %v20475_v61 = vpack.c.bf16 %v6647_v33, %v6642_v10  ;;  %v18276_v40 = vpop.f32.mrb[66].mxu0  ;;  %v6527_v10 = vadd.f32 %v25064_v18, %v25100_v24  ;;  %v6547_v18 = vadd.f32 %v25086_v44, %v25100_v24 }
 0xd3a   :  { %v6657_v7 = vadd.f32 %v18276_v40, %v15034_v0  ;;  %v6651_v16 = vpop.f32.mrb[67].mxu0 }
 0xd3b   :  { %v6652_v36 = vadd.f32 %v15034_v0, %v6651_v16  ;;  %20477 = vmatprep.subr.msk.bf16.mxu0 %vm24272_vm6, %v20475_v61 }
 0xd3c   :  { %20480 = vmatpush3.bf16.xpose.msk.msra.mxu0 %vm24272_vm6, %v20475_v61  ;;  %v6532_v61 = vadd.f32 %v25100_v24, %v25081_v30 }
 0xd3d   :  { %v20481_v58 = vpack.c.bf16 %v6657_v7, %v6652_v36  ;;  %v18279_v13 = vpop.f32.mrb[68].mxu0 }
 0xd3e   :  { %v6667_v53 = vadd.f32 %v18279_v13, %v15034_v0  ;;  %v6661_v15 = vpop.f32.mrb[69].mxu0 }
 0xd3f   :  { %v6662_v11 = vadd.f32 %v15034_v0, %v6661_v15  ;;  %20483 = vmatprep.subr.msk.bf16.mxu0 %vm24272_vm6, %v20481_v58 }
 0xd41   :  { %v20487_v50 = vpack.c.bf16 %v6667_v53, %v6662_v11  ;;  %v18282_v22 = vpop.f32.mrb[70].mxu0 }
 0xd42   :  { %v6677_v1 = vadd.f32 %v18282_v22, %v15034_v0  ;;  %v6671_v60 = vpop.f32.mrb[71].mxu0 }
 0xd43   :  { %v6672_v59 = vadd.f32 %v15034_v0, %v6671_v60  ;;  %v6522_v0 = vadd.f32 %v25100_v24, %v25067_v52  ;;  %v6542_v52 = vadd.f32 %v25100_v24, %v25089_v17 }
 0xd44   :  { %20486 = vmatpush3.bf16.xpose.msk.msra.mxu0 %vm24272_vm6, %v20481_v58 }
 0xd45   :  { %v20493_v33 = vpack.c.bf16 %v6677_v1, %v6672_v59  ;;  %20489 = vmatprep.subr.msk.bf16.mxu0 %vm24272_vm6, %v20487_v50 }
 0xd4c   :  { %20492 = vmatpush3.bf16.xpose.msk.msra.mxu0 %vm24272_vm6, %v20487_v50 }
 0xd4d   :  { %20495 = vmatprep.subr.msk.bf16.mxu0 %vm24272_vm6, %v20493_v33 }
 0xd54   :  { %20498 = vmatpush3.bf16.xpose.msk.msra.mxu0 %vm24272_vm6, %v20493_v33 }
 0xd5b   :  { %18344 = vmatmul.mubr.msk.f32.vlgmr.msra.gmra.mrb[72].mxu0 %vm5006_vm5, %v6517_v46 }
 0xd5c   :  { %18346 = vmatprep.mubr.msk.f32.mxu0 %vm5006_vm5, %v6522_v0 }
 0xd5f   :  { %18347 = vmatmul.mubr.msk.f32.gmra.mrb[74].mxu0 %vm5006_vm5, %v6527_v10 }
 0xd60   :  { %18349 = vmatprep.mubr.msk.f32.mxu0 %vm5006_vm5, %v6532_v61 }
 0xd63   :  { %18350 = vmatmul.mubr.msk.f32.gmra.mrb[76].mxu0 %vm5006_vm5, %v6537_v12 }
 0xd64   :  { %18352 = vmatprep.mubr.msk.f32.mxu0 %vm5006_vm5, %v6542_v52 }
 0xd67   :  { %18353 = vmatmul.mubr.msk.f32.gmra.mrb[78].mxu0 %vm5006_vm5, %v6547_v18 }
 0xe2e   :  { %v18345_v30 = vpop.f32.mrb[72].mxu0 }
 0xe2f   :  { %v6964_v40 = vmul.f32 0.17677669, %v18345_v30  ;;  %v6924_v7 = vpop.f32.mrb[73].mxu0 }
 0xe30   :  { %v6963_v16 = vmul.f32 0.17677669, %v6924_v7 }
 0xe31   :  { %v6974_v36 = vsel %vm2227_vm3, %v6964_v40, -inf }
 0xe32   :  { %6975 = vmax.xlane.f32.xlu1 %v6974_v36  ;;  %v18348_v47 = vpop.f32.mrb[74].mxu0  ;;  %v6971_v58 = vsel %vm2227_vm3, %v6963_v16, -inf }
 0xe33   :  { %v6966_v17 = vmul.f32 0.17677669, %v18348_v47  ;;  %6972 = vmax.xlane.f32.xlu0 %v6971_v58  ;;  %v6934_v13 = vpop.f32.mrb[75].mxu0 }
 0xe34   :  { %v6965_v53 = vmul.f32 0.17677669, %v6934_v13 }
 0xe35   :  { %v6980_v15 = vsel %vm2227_vm3, %v6966_v17, -inf }
 0xe36   :  { %6981 = vmax.xlane.f32.xlu1 %v6980_v15  ;;  %v18351_v44 = vpop.f32.mrb[76].mxu0  ;;  %v6977_v24 = vsel %vm2227_vm3, %v6965_v53, -inf }
 0xe37   :  { %v6968_v11 = vmul.f32 0.17677669, %v18351_v44  ;;  %6978 = vmax.xlane.f32.xlu0 %v6977_v24  ;;  %v6944_v50 = vpop.f32.mrb[77].mxu0 }
 0xe38   :  { %v6967_v22 = vmul.f32 0.17677669, %v6944_v50 }
 0xe39   :  { %v6986_v1 = vsel %vm2227_vm3, %v6968_v11, -inf }
 0xe3a   :  { %6987 = vmax.xlane.f32.xlu1 %v6986_v1  ;;  %v18354_v60 = vpop.f32.mrb[78].mxu0  ;;  %v6983_v59 = vsel %vm2227_vm3, %v6967_v22, -inf }
 0xe3b   :  { %v6970_v33 = vmul.f32 0.17677669, %v18354_v60  ;;  %6984 = vmax.xlane.f32.xlu0 %v6983_v59  ;;  %v6954_v46 = vpop.f32.mrb[79].mxu0 }
 0xe3c   :  { %v6969_v0 = vmul.f32 0.17677669, %v6954_v46 }
 0xe3d   :  { %v6992_v10 = vsel %vm2227_vm3, %v6970_v33, -inf }
 0xe3e   :  { %6993 = vmax.xlane.f32.xlu1 %v6992_v10  ;;  %v6989_v61 = vsel %vm2227_vm3, %v6969_v0, -inf }
 0xe3f   :  { %6990 = vmax.xlane.f32.xlu0 %v6989_v61 }
 0xebf   :  { %v6976_v12 = vpop.xlane.xlu1 %6975 }
 0xec0   :  { %v6996_v52 = vsub.f32 %v6964_v40, %v6976_v12  ;;  %v6973_v18 = vpop.xlane.xlu0 %6972 }
 0xec1   :  { %v6995_v30 = vsub.f32 %v6963_v16, %v6973_v18 }
 0xec2   :  { %v7005_v7 = vmul.f32 1.442695, %v6996_v52 }
 0xec3   :  { %v7003_v36 = vmul.f32 1.442695, %v6995_v30  ;;  %v6982_v47 = vpop.xlane.xlu1 %6981 }
 0xec4   :  { %22188 = vpow2.f32 %v7005_v7  ;;  %v6998_v58 = vsub.f32 %v6966_v17, %v6982_v47  ;;  %v6979_v13 = vpop.xlane.xlu0 %6978 }
 0xec5   :  { %22190 = vpow2.f32 %v7003_v36  ;;  %v6997_v15 = vsub.f32 %v6965_v53, %v6979_v13 }
 0xec6   :  { %v7009_v44 = vmul.f32 1.442695, %v6998_v58 }
 0xec7   :  { %v7007_v24 = vmul.f32 1.442695, %v6997_v15  ;;  %v6988_v50 = vpop.xlane.xlu1 %6987 }
 0xec8   :  { %22192 = vpow2.f32 %v7009_v44  ;;  %v7000_v1 = vsub.f32 %v6968_v11, %v6988_v50  ;;  %v6985_v60 = vpop.xlane.xlu0 %6984 }
 0xec9   :  { %22194 = vpow2.f32 %v7007_v24  ;;  %v6999_v59 = vsub.f32 %v6967_v22, %v6985_v60  ;;  %v15090_v60 = vld [vmem:[%s28316_s27 + $0x188] sm:$0xff] }
 0xeca   :  { %v7013_v46 = vmul.f32 1.442695, %v7000_v1  ;;  %v15089_v1 = vld [vmem:[%s28316_s27 + $0x180] sm:$0xff] }
 0xecb   :  { %v7011_v40 = vmul.f32 1.442695, %v6999_v59  ;;  %v6994_v10 = vpop.xlane.xlu1 %6993  ;;  %v25187_v59 = vpack.c.bf16 %v15090_v60, %v15089_v1 }
 0xecc   :  { %22196 = vpow2.f32 %v7013_v46  ;;  %v7002_v16 = vsub.f32 %v6970_v33, %v6994_v10  ;;  %v6991_v61 = vpop.xlane.xlu0 %6990  ;;  %v15077_v46 = vld [vmem:[%s28114_s13 + $0x40] sm:$0xff]  ;;  %v15079_v10 = vld [vmem:[%s28114_s13 + $0x50] sm:$0xff] }
 0xecd   :  { %22198 = vpow2.f32 %v7011_v40  ;;  %v7001_v12 = vsub.f32 %v6969_v0, %v6991_v61  ;;  %20524 = vmatprep.subr.bf16.mxu1 %v25187_v59  ;;  %v15078_v40 = vld [vmem:[%s28114_s13 + $0x48] sm:$0xff]  ;;  %v15080_v61 = vld [vmem:[%s28114_s13 + $0x58] sm:$0xff] }
 0xece   :  { %v22189_v17 = vpop.eup %22188  ;;  %v7017_v52 = vmul.f32 1.442695, %v7002_v16  ;;  %v25199_v16 = vpack.c.bf16 %v15078_v40, %v15077_v46 }
 0xecf   :  { %v22191_v18 = vpop.eup %22190  ;;  %v7015_v53 = vmul.f32 1.442695, %v7001_v12  ;;  %v7022_v30 = vsel %vm2227_vm3, %v22189_v17, 0.0  ;;  %v25204_v12 = vpack.c.bf16 %v15080_v61, %v15079_v10 }
 0xed0   :  { %22200 = vpow2.f32 %v7017_v52  ;;  %7023 = vadd.xlane.f32.xlu1 %v7022_v30  ;;  %v7019_v11 = vsel %vm2227_vm3, %v22191_v18, 0.0  ;;  %20516 = vmatprep.subr.bf16.mxu0 %v25199_v16 }
 0xed1   :  { %22202 = vpow2.f32 %v7015_v53  ;;  %7020 = vadd.xlane.f32.xlu0 %v7019_v11  ;;  %20518 = vmatpush3.bf16.msra.mxu0 %v25199_v16 }
 0xed2   :  { %v25160_v22 = vpop.eup %22192  ;;  %20520 = vmatprep.subr.bf16.mxu0 %v25204_v12 }
 0xed3   :  { %v22195_v7 = vpop.eup %22194  ;;  %v7028_v33 = vsel %vm2227_vm3, %v25160_v22, 0.0 }
 0xed4   :  { %7029 = vadd.xlane.f32.xlu1 %v7028_v33  ;;  %v7025_v0 = vsel %vm2227_vm3, %v22195_v7, 0.0 }
 0xed5   :  { %7026 = vadd.xlane.f32.xlu0 %v7025_v0  ;;  %20522 = vmatpush3.bf16.msra.mxu0 %v25204_v12 }
 0xed6   :  { %v25165_v36 = vpop.eup %22196 }
 0xed7   :  { %v25167_v47 = vpop.eup %22198  ;;  %v7034_v58 = vsel %vm2227_vm3, %v25165_v36, 0.0 }
 0xed8   :  { %7035 = vadd.xlane.f32.xlu1 %v7034_v58  ;;  %v7031_v13 = vsel %vm2227_vm3, %v25167_v47, 0.0 }
 0xed9   :  { %7032 = vadd.xlane.f32.xlu0 %v7031_v13  ;;  %v15091_v13 = vld [vmem:[%s28316_s27 + $0x190] sm:$0xff] }
 0xeda   :  { %v25173_v15 = vpop.eup %22200 }
 0xedb   :  { %v25175_v44 = vpop.eup %22202  ;;  %v7040_v24 = vsel %vm2227_vm3, %v25173_v15, 0.0 }
 0xedc   :  { %7041 = vadd.xlane.f32.xlu1 %v7040_v24  ;;  %v7037_v50 = vsel %vm2227_vm3, %v25175_v44, 0.0  ;;  %v15092_v24 = vld [vmem:[%s28316_s27 + $0x198] sm:$0xff] }
 0xedd   :  { %7038 = vadd.xlane.f32.xlu0 %v7037_v50  ;;  %v25216_v10 = vpack.c.bf16 %v15092_v24, %v15091_v13 }
 0xf5d   :  { %v7024_v52 = vpop.xlane.xlu1 %7023 }
 0xf5e   :  { %22204 = vrcp.f32 %v7024_v52  ;;  %v7021_v53 = vpop.xlane.xlu0 %7020  ;;  %v15093_v52 = vld [vmem:[%s28316_s27 + $0x1a0] sm:$0xff] }
 0xf5f   :  { %22206 = vrcp.f32 %v7021_v53  ;;  %v15094_v53 = vld [vmem:[%s28316_s27 + $0x1a8] sm:$0xff] }
 0xf61   :  { %v7030_v30 = vpop.xlane.xlu1 %7029 }
 0xf62   :  { %22208 = vrcp.f32 %v7030_v30  ;;  %v7027_v11 = vpop.xlane.xlu0 %7026 }
 0xf63   :  { %22210 = vrcp.f32 %v7027_v11  ;;  %v25229_v11 = vpack.c.bf16 %v15094_v53, %v15093_v52  ;;  %v15100_v52 = vld [vmem:[%s28316_s27 + $0x1d8] sm:$0xff]  ;;  %v15102_v53 = vld [vmem:[%s28316_s27 + $0x1e8] sm:$0xff] }
 0xf65   :  { %v7036_v33 = vpop.xlane.xlu1 %7035 }
 0xf66   :  { %22212 = vrcp.f32 %v7036_v33  ;;  %v7033_v0 = vpop.xlane.xlu0 %7032 }
 0xf67   :  { %22214 = vrcp.f32 %v7033_v0  ;;  %v15095_v0 = vld [vmem:[%s28316_s27 + $0x1b0] sm:$0xff] }
 0xf68   :  { %v22205_v58 = vpop.eup %22204 }
 0xf69   :  { %v22207_v50 = vpop.eup %22206  ;;  %v7042_v1 = vpop.xlane.xlu1 %7041  ;;  %v7046_v40 = vmul.f32 %v22205_v58, %v22189_v17  ;;  %v15096_v58 = vld [vmem:[%s28316_s27 + $0x1b8] sm:$0xff] }
 0xf6a   :  { %22216 = vrcp.f32 %v7042_v1  ;;  %v7039_v60 = vpop.xlane.xlu0 %7038  ;;  %v7044_v46 = vmul.f32 %v22207_v50, %v22191_v18  ;;  %v25243_v24 = vpack.c.bf16 %v15096_v58, %v15095_v0  ;;  %v15097_v1 = vld [vmem:[%s28316_s27 + $0x1c0] sm:$0xff]  ;;  %v15126_v58 = vld [vmem:[%s28325_s8 + $0x188] sm:$0xff] }
 0xf6b   :  { %22218 = vrcp.f32 %v7039_v60  ;;  %v15098_v60 = vld [vmem:[%s28316_s27 + $0x1c8] sm:$0xff]  ;;  %v15125_v0 = vld [vmem:[%s28325_s8 + $0x180] sm:$0xff] }
 0xf6c   :  { %v22209_v61 = vpop.eup %22208  ;;  %18371 = vmatprep.mubr.msk.f32.mxu1 %vm2227_vm3, %v7044_v46 }
 0xf6d   :  { %v22211_v30 = vpop.eup %22210  ;;  %18372 = vmatmul.mubr.msk.f32.vlgmr.msra.gmra.mrb[72].mxu1 %vm2227_vm3, %v7046_v40  ;;  %v7050_v18 = vmul.f32 %v22209_v61, %v25160_v22  ;;  %v25257_v40 = vpack.c.bf16 %v15098_v60, %v15097_v1  ;;  %v15099_v61 = vld [vmem:[%s28316_s27 + $0x1d0] sm:$0xff]  ;;  %v15129_v1 = vld [vmem:[%s28325_s8 + $0x1a0] sm:$0xff]  ;;  %v15130_v60 = vld [vmem:[%s28325_s8 + $0x1a8] sm:$0xff] }
 0xf6e   :  { %20526 = vmatpush3.bf16.msra.mxu1 %v25187_v59  ;;  %v7048_v17 = vmul.f32 %v22211_v30, %v22195_v7 }
 0xf6f   :  { %20528 = vmatprep.subr.bf16.mxu1 %v25216_v10 }
 0xf70   :  { %v22213_v33 = vpop.eup %22212  ;;  %18374 = vmatprep.mubr.msk.f32.mxu1 %vm2227_vm3, %v7048_v17  ;;  %v15103_v17 = vld [vmem:[%s28316_s27 + $0x1f0] sm:$0xff] }
 0xf71   :  { %v22215_v13 = vpop.eup %22214  ;;  %18375 = vmatmul.mubr.msk.f32.gmra.mrb[74].mxu1 %vm2227_vm3, %v7050_v18  ;;  %v7054_v7 = vmul.f32 %v22213_v33, %v25165_v36  ;;  %v15104_v18 = vld [vmem:[%s28316_s27 + $0x1f8] sm:$0xff] }
 0xf72   :  { %20530 = vmatpush3.bf16.msra.mxu1 %v25216_v10  ;;  %v7052_v22 = vmul.f32 %v22215_v13, %v25167_v47  ;;  %v25290_v33 = vpack.c.bf16 %v15104_v18, %v15103_v17  ;;  %v25300_v13 = vpack.c.bf16 %v15126_v58, %v15125_v0  ;;  %v15135_v17 = vld [vmem:[%s28325_s8 + $0x1d0] sm:$0xff]  ;;  %v15136_v18 = vld [vmem:[%s28325_s8 + $0x1d8] sm:$0xff]  ;;  %v15137_v58 = vld [vmem:[%s28325_s8 + $0x1e0] sm:$0xff] }
 0xf73   :  { %20532 = vmatprep.subr.bf16.mxu1 %v25229_v11  ;;  %v25358_v0 = vpack.c.bf16 %v15136_v18, %v15135_v17  ;;  %v15109_v17 = vld [vmem:[%s28317_s1 + $0x190] sm:$0xff]  ;;  %v15110_v18 = vld [vmem:[%s28317_s1 + $0x198] sm:$0xff] }
 0xf74   :  { %v22217_v50 = vpop.eup %22216  ;;  %18377 = vmatprep.mubr.msk.f32.mxu1 %vm2227_vm3, %v7052_v22  ;;  %28379 = vst [vmem:[#allocation71_spill] sm:$0xff] %v25290_v33  ;;  %28380 = vst [vmem:[#allocation72_spill] sm:$0xff] %v25300_v13  ;;  %v15127_v22 = vld [vmem:[%s28325_s8 + $0x190] sm:$0xff] }
 0xf75   :  { %v22219_v46 = vpop.eup %22218  ;;  %18378 = vmatmul.mubr.msk.f32.gmra.mrb[76].mxu1 %vm2227_vm3, %v7054_v7  ;;  %v7058_v47 = vmul.f32 %v22217_v50, %v25173_v15  ;;  %v25270_v15 = vpack.c.bf16 %v15100_v52, %v15099_v61  ;;  %v15128_v7 = vld [vmem:[%s28325_s8 + $0x198] sm:$0xff]  ;;  %v15133_v52 = vld [vmem:[%s28325_s8 + $0x1c0] sm:$0xff]  ;;  %28385 = vst [vmem:[#allocation77_spill] sm:$0xff] %v25358_v0 }
 0xf76   :  { %20534 = vmatpush3.bf16.msra.mxu1 %v25229_v11  ;;  %v7056_v36 = vmul.f32 %v22219_v46, %v25175_v44  ;;  %v15101_v44 = vld [vmem:[%s28316_s27 + $0x1e0] sm:$0xff]  ;;  %v25310_v50 = vpack.c.bf16 %v15128_v7, %v15127_v22  ;;  %v25322_v46 = vpack.c.bf16 %v15130_v60, %v15129_v1  ;;  %v15138_v22 = vld [vmem:[%s28325_s8 + $0x1e8] sm:$0xff]  ;;  %v15139_v1 = vld [vmem:[%s28325_s8 + $0x1f0] sm:$0xff] }
 0xf77   :  { %20536 = vmatprep.subr.bf16.mxu1 %v25243_v24  ;;  %28377 = vst [vmem:[#allocation69_spill] sm:$0xff] %v25270_v15  ;;  %v25280_v30 = vpack.c.bf16 %v15102_v53, %v15101_v44  ;;  %v15134_v44 = vld [vmem:[%s28325_s8 + $0x1c8] sm:$0xff]  ;;  %v25368_v7 = vpack.c.bf16 %v15138_v22, %v15137_v58  ;;  %v15140_v60 = vld [vmem:[%s28325_s8 + $0x1f8] sm:$0xff] }
 0xf78   :  { %18380 = vmatprep.mubr.msk.f32.mxu1 %vm2227_vm3, %v7056_v36  ;;  %28381 = vst [vmem:[#allocation73_spill] sm:$0xff] %v25310_v50  ;;  %28382 = vst [vmem:[#allocation74_spill] sm:$0xff] %v25322_v46  ;;  %v15131_v36 = vld [vmem:[%s28325_s8 + $0x1b0] sm:$0xff]  ;;  %v25346_v53 = vpack.c.bf16 %v15134_v44, %v15133_v52  ;;  %v15108_v52 = vld [vmem:[%s28317_s1 + $0x188] sm:$0xff] }
 0xf79   :  { %18381 = vmatmul.mubr.msk.f32.gmra.mrb[78].mxu1 %vm2227_vm3, %v7058_v47  ;;  %28378 = vst [vmem:[#allocation70_spill] sm:$0xff] %v25280_v30  ;;  %v15132_v47 = vld [vmem:[%s28325_s8 + $0x1b8] sm:$0xff]  ;;  %28386 = vst [vmem:[#allocation78_spill] sm:$0xff] %v25368_v7 }
 0xf7a   :  { %20538 = vmatpush3.bf16.msra.mxu1 %v25243_v24  ;;  %18435 = vmatprep.mubr.f32.mxu1 %v24129_v23  ;;  %v25334_v61 = vpack.c.bf16 %v15132_v47, %v15131_v36  ;;  %28384 = vst [vmem:[#allocation76_spill] sm:$0xff] %v25346_v53  ;;  %v25378_v36 = vpack.c.bf16 %v15140_v60, %v15139_v1  ;;  %v15107_v47 = vld [vmem:[%s28317_s1 + $0x180] sm:$0xff] }
 0xf7b   :  { %20540 = vmatprep.subr.bf16.mxu1 %v25257_v40  ;;  %v25396_v44 = vpack.c.bf16 %v15108_v52, %v15107_v47  ;;  %v25405_v1 = vpack.c.bf16 %v15110_v18, %v15109_v17  ;;  %v15111_v60 = vld [vmem:[%s28317_s1 + $0x1a0] sm:$0xff]  ;;  %v15112_v47 = vld [vmem:[%s28317_s1 + $0x1a8] sm:$0xff]  ;;  %v15113_v18 = vld [vmem:[%s28317_s1 + $0x1b0] sm:$0xff] }
 0xf7c   :  { %28383 = vst [vmem:[#allocation75_spill] sm:$0xff] %v25334_v61  ;;  %28387 = vst [vmem:[#allocation79_spill] sm:$0xff] %v25378_v36  ;;  %v25417_v17 = vpack.c.bf16 %v15112_v47, %v15111_v60  ;;  %v15116_v47 = vld [vmem:[%s28317_s1 + $0x1c8] sm:$0xff] }
 0xf7d   :  { %20556 = vmatprep.subr.bf16.mxu0 %v25396_v44  ;;  %28388 = vst [vmem:[#allocation80_spill] sm:$0xff] %v25405_v1 }
 0xf7e   :  { %20542 = vmatpush3.bf16.msra.mxu1 %v25257_v40  ;;  %28389 = vst [vmem:[#allocation81_spill] sm:$0xff] %v25417_v17 }
 0xf7f   :  { %20544 = vmatprep.subr.bf16.mxu1 %v25270_v15 }
 0xf82   :  { %20546 = vmatpush3.bf16.msra.mxu1 %v25270_v15 }
 0xf83   :  { %20548 = vmatprep.subr.bf16.mxu1 %v25280_v30 }
 0xf86   :  { %20550 = vmatpush3.bf16.msra.mxu1 %v25280_v30 }
 0xf87   :  { %20552 = vmatprep.subr.bf16.mxu1 %v25290_v33 }
 0xf8a   :  { %20554 = vmatpush3.bf16.msra.mxu1 %v25290_v33 }
 0xf8b   :  { %20588 = vmatprep.subr.bf16.mxu1 %v25300_v13 }
 0xf8d   :  { %18436 = vmatmul.mubr.f32.vlgmr.msra.gmra.mrb[80].mxu1 %v24144_v26 }
 0xf8e   :  { %18438 = vmatprep.mubr.f32.mxu1 %v24150_v55  ;;  %20590 = vmatpush3.bf16.msra.mxu1 %v25300_v13 }
 0xf8f   :  { %20592 = vmatprep.subr.bf16.mxu1 %v25310_v50 }
 0xf91   :  { %18439 = vmatmul.mubr.f32.gmra.mrb[82].mxu1 %v24166_v57 }
 0xf92   :  { %18441 = vmatprep.mubr.f32.mxu1 %v24174_v14  ;;  %20594 = vmatpush3.bf16.msra.mxu1 %v25310_v50 }
 0xf93   :  { %20596 = vmatprep.subr.bf16.mxu1 %v25322_v46 }
 0xf95   :  { %18442 = vmatmul.mubr.f32.gmra.mrb[84].mxu1 %v24190_v42 }
 0xf96   :  { %18444 = vmatprep.mubr.f32.mxu1 %v24198_v48  ;;  %20598 = vmatpush3.bf16.msra.mxu1 %v25322_v46 }
 0xf97   :  { %20600 = vmatprep.subr.bf16.mxu1 %v25334_v61 }
 0xf99   :  { %18445 = vmatmul.mubr.f32.gmra.mrb[86].mxu1 %v24212_v21 }
 0xf9a   :  { %20602 = vmatpush3.bf16.msra.mxu1 %v25334_v61  ;;  %18523 = vmatprep.mubr.f32.mxu1 %v24129_v23 }
 0xf9b   :  { %20604 = vmatprep.subr.bf16.mxu1 %v25346_v53 }
 0xf9e   :  { %20606 = vmatpush3.bf16.msra.mxu1 %v25346_v53 }
 0xf9f   :  { %20608 = vmatprep.subr.bf16.mxu1 %v25358_v0 }
 0xfa2   :  { %20610 = vmatpush3.bf16.msra.mxu1 %v25358_v0 }
 0xfa3   :  { %20612 = vmatprep.subr.bf16.mxu1 %v25368_v7 }
 0xfa6   :  { %20614 = vmatpush3.bf16.msra.mxu1 %v25368_v7 }
 0xfa7   :  { %20616 = vmatprep.subr.bf16.mxu1 %v25378_v36 }
 0xfaa   :  { %20618 = vmatpush3.bf16.msra.mxu1 %v25378_v36 }
 0xfad   :  { %18524 = vmatmul.mubr.f32.vlgmr.msra.gmra.mrb[88].mxu1 %v24144_v26 }
 0xfae   :  { %18526 = vmatprep.mubr.f32.mxu1 %v24150_v55 }
 0xfb1   :  { %18527 = vmatmul.mubr.f32.gmra.mrb[90].mxu1 %v24166_v57 }
 0xfb2   :  { %18529 = vmatprep.mubr.f32.mxu1 %v24174_v14 }
 0xfb5   :  { %18530 = vmatmul.mubr.f32.gmra.mrb[92].mxu1 %v24190_v42 }
 0xfb6   :  { %18532 = vmatprep.mubr.f32.mxu1 %v24198_v48 }
 0xfb9   :  { %18533 = vmatmul.mubr.f32.gmra.mrb[94].mxu1 %v24212_v21 }
0x1040   :  { %v18373_v58 = vpop.f32.mrb[72].mxu1 }
0x1041   :  { %v7149_v22 = vpop.f32.mrb[73].mxu1 }
0x1042   :  { %18391 = vmatprep.mubr.msk.f32.mxu0 %vm5006_vm5, %v7149_v22  ;;  %v15114_v22 = vld [vmem:[%s28317_s1 + $0x1b8] sm:$0xff] }
0x1043   :  { %18392 = vmatmul.mubr.msk.f32.vlgmr.msra.gmra.mrb[56].mxu0 %vm5006_vm5, %v18373_v58  ;;  %v25429_v60 = vpack.c.bf16 %v15114_v22, %v15113_v18  ;;  %v15118_v22 = vld [vmem:[%s28317_s1 + $0x1d8] sm:$0xff] }
0x1044   :  { %20558 = vmatpush3.bf16.msra.mxu0 %v25396_v44  ;;  %v18376_v52 = vpop.f32.mrb[74].mxu1 }
0x1045   :  { %v7159_v36 = vpop.f32.mrb[75].mxu1  ;;  %20560 = vmatprep.subr.bf16.mxu0 %v25405_v1  ;;  %28390 = vst [vmem:[#allocation82_spill] sm:$0xff] %v25429_v60 }
0x1046   :  { %18394 = vmatprep.mubr.msk.f32.mxu0 %vm5006_vm5, %v7159_v36  ;;  %v15115_v36 = vld [vmem:[%s28317_s1 + $0x1c0] sm:$0xff] }
0x1047   :  { %18395 = vmatmul.mubr.msk.f32.gmra.mrb[58].mxu0 %vm5006_vm5, %v18376_v52  ;;  %v25441_v18 = vpack.c.bf16 %v15116_v47, %v15115_v36  ;;  %v15120_v36 = vld [vmem:[%s28317_s1 + $0x1e8] sm:$0xff] }
0x1048   :  { %20562 = vmatpush3.bf16.msra.mxu0 %v25405_v1  ;;  %v18379_v58 = vpop.f32.mrb[76].mxu1 }
0x1049   :  { %v7169_v7 = vpop.f32.mrb[77].mxu1  ;;  %20564 = vmatprep.subr.bf16.mxu0 %v25417_v17  ;;  %28391 = vst [vmem:[#allocation83_spill] sm:$0xff] %v25441_v18 }
0x104a   :  { %18397 = vmatprep.mubr.msk.f32.mxu0 %vm5006_vm5, %v7169_v7  ;;  %v15117_v7 = vld [vmem:[%s28317_s1 + $0x1d0] sm:$0xff] }
0x104b   :  { %18398 = vmatmul.mubr.msk.f32.gmra.mrb[60].mxu0 %vm5006_vm5, %v18379_v58  ;;  %v25454_v58 = vpack.c.bf16 %v15118_v22, %v15117_v7 }
0x104c   :  { %20566 = vmatpush3.bf16.msra.mxu0 %v25417_v17  ;;  %v18382_v52 = vpop.f32.mrb[78].mxu1 }
0x104d   :  { %v7179_v1 = vpop.f32.mrb[79].mxu1  ;;  %20568 = vmatprep.subr.bf16.mxu0 %v25429_v60  ;;  %28392 = vst [vmem:[#allocation84_spill] sm:$0xff] %v25454_v58 }
0x104e   :  { %18400 = vmatprep.mubr.msk.f32.mxu0 %vm5006_vm5, %v7179_v1  ;;  %v15119_v1 = vld [vmem:[%s28317_s1 + $0x1e0] sm:$0xff] }
0x104f   :  { %18401 = vmatmul.mubr.msk.f32.gmra.mrb[62].mxu0 %vm5006_vm5, %v18382_v52  ;;  %v25464_v47 = vpack.c.bf16 %v15120_v36, %v15119_v1  ;;  %v15122_v52 = vld [vmem:[%s28317_s1 + $0x1f8] sm:$0xff] }
0x1050   :  { %20570 = vmatpush3.bf16.msra.mxu0 %v25429_v60  ;;  %18479 = vmatprep.mubr.f32.mxu0 %v24129_v23  ;;  %v15121_v23 = vld [vmem:[%s28317_s1 + $0x1f0] sm:$0xff] }
0x1051   :  { %20572 = vmatprep.subr.bf16.mxu0 %v25441_v18  ;;  %28393 = vst [vmem:[#allocation85_spill] sm:$0xff] %v25464_v47  ;;  %v25474_v7 = vpack.c.bf16 %v15122_v52, %v15121_v23 }
0x1053   :  { %28394 = vst [vmem:[#allocation86_spill] sm:$0xff] %v25474_v7 }
0x1054   :  { %20574 = vmatpush3.bf16.msra.mxu0 %v25441_v18 }
0x1055   :  { %20576 = vmatprep.subr.bf16.mxu0 %v25454_v58 }
0x1058   :  { %20578 = vmatpush3.bf16.msra.mxu0 %v25454_v58 }
0x1059   :  { %20580 = vmatprep.subr.bf16.mxu0 %v25464_v47 }
0x105c   :  { %20582 = vmatpush3.bf16.msra.mxu0 %v25464_v47 }
0x105d   :  { %20584 = vmatprep.subr.bf16.mxu0 %v25474_v7 }
0x1060   :  { %v25478_v22 = vpop.f32.mrb[80].mxu1  ;;  %20586 = vmatpush3.bf16.msra.mxu0 %v25474_v7  ;;  %v25496_v7 = vld [vmem:[%s28112_s10 + $0x3] ss:$0 sm:$0xff] }
0x1061   :  { %v7421_v1 = vpop.f32.mrb[81].mxu1 }
0x1063   :  { %18480 = vmatmul.mubr.f32.vlgmr.msra.gmra.mrb[80].mxu0 %v24144_v26 }
0x1064   :  { %v25482_v36 = vpop.f32.mrb[82].mxu1  ;;  %18482 = vmatprep.mubr.f32.mxu0 %v24150_v55 }
0x1065   :  { %v25485_v58 = vpop.f32.mrb[83].mxu1 }
0x1067   :  { %18483 = vmatmul.mubr.f32.gmra.mrb[82].mxu0 %v24166_v57  ;;  %v7422_v57 = vadd.f32 %v25496_v7, %v7421_v1 }
0x1068   :  { %v25488_v23 = vpop.f32.mrb[84].mxu1  ;;  %18485 = vmatprep.mubr.f32.mxu0 %v24174_v14  ;;  %v15142_v14 = vld [vmem:[%s28113_s12 + $0x3] ss:$0 sm:$0xff] }
0x1069   :  { %v25491_v52 = vpop.f32.mrb[85].mxu1 }
0x106b   :  { %18486 = vmatmul.mubr.f32.gmra.mrb[84].mxu0 %v24190_v42 }
0x106c   :  { %v25499_v26 = vpop.f32.mrb[86].mxu1  ;;  %18488 = vmatprep.mubr.f32.mxu0 %v24198_v48 }
0x106d   :  { %v25502_v55 = vpop.f32.mrb[87].mxu1 }
0x106f   :  { %18489 = vmatmul.mubr.f32.gmra.mrb[86].mxu0 %v24212_v21 }
0x1070   :  { %18551 = vmatprep.mubr.msk.f32.mxu0 %vm5006_vm5, %v7422_v57 }
0x1080   :  { %v18525_v47 = vpop.f32.mrb[88].mxu1 }
0x1081   :  { %v7687_v18 = vadd.f32 %v18525_v47, %v15142_v14  ;;  %v7681_v60 = vpop.f32.mrb[89].mxu1 }
0x1082   :  { %v7682_v42 = vadd.f32 %v15142_v14, %v7681_v60 }
0x1084   :  { %v20643_v17 = vpack.c.bf16 %v7687_v18, %v7682_v42  ;;  %v18528_v0 = vpop.f32.mrb[90].mxu1 }
0x1085   :  { %v7697_v53 = vadd.f32 %v18528_v0, %v15142_v14  ;;  %v7691_v48 = vpop.f32.mrb[91].mxu1 }
0x1086   :  { %v7692_v61 = vadd.f32 %v15142_v14, %v7691_v48  ;;  %20644 = vmatprep.subr.bf16.mxu1 %v20643_v17 }
0x1087   :  { %20646 = vmatpush3.bf16.msra.mxu1 %v20643_v17 }
0x1088   :  { %v20647_v1 = vpack.c.bf16 %v7697_v53, %v7692_v61  ;;  %v18531_v46 = vpop.f32.mrb[92].mxu1 }
0x1089   :  { %v7707_v21 = vadd.f32 %v18531_v46, %v15142_v14  ;;  %v7701_v50 = vpop.f32.mrb[93].mxu1  ;;  %v15124_v46 = vld [vmem:[%s28111_s11 + $0x3] ss:$0 sm:$0xff] }
0x108a   :  { %v7702_v57 = vadd.f32 %v15142_v14, %v7701_v50  ;;  %20648 = vmatprep.subr.bf16.mxu1 %v20647_v1 }
0x108b   :  { %20650 = vmatpush3.bf16.msra.mxu1 %v20647_v1 }
0x108c   :  { %v20651_v13 = vpack.c.bf16 %v7707_v21, %v7702_v57  ;;  %v18534_v33 = vpop.f32.mrb[94].mxu1 }
0x108d   :  { %v7717_v30 = vadd.f32 %v18534_v33, %v15142_v14  ;;  %v7711_v47 = vpop.f32.mrb[95].mxu1 }
0x108e   :  { %v7712_v15 = vadd.f32 %v15142_v14, %v7711_v47  ;;  %20652 = vmatprep.subr.bf16.mxu1 %v20651_v13 }
0x108f   :  { %20654 = vmatpush3.bf16.msra.mxu1 %v20651_v13 }
0x1090   :  { %v20655_v60 = vpack.c.bf16 %v7717_v30, %v7712_v15 }
0x1092   :  { %20656 = vmatprep.subr.bf16.mxu1 %v20655_v60 }
0x1093   :  { %20658 = vmatpush3.bf16.msra.mxu1 %v20655_v60 }
0x1094   :  { %20668 = vmatprep.subr.bf16.mxu1 %v23916_v37 }
0x1136   :  { %v18481_v61 = vpop.f32.mrb[80].mxu0 }
0x1137   :  { %v7557_v50 = vadd.f32 %v18481_v61, %v15124_v46  ;;  %v7551_v53 = vpop.f32.mrb[81].mxu0 }
0x1138   :  { %v7552_v0 = vadd.f32 %v15124_v46, %v7551_v53  ;;  %v7427_v53 = vadd.f32 %v25478_v22, %v25496_v7  ;;  %v7447_v22 = vadd.f32 %v25488_v23, %v25496_v7 }
0x113a   :  { %v20619_v17 = vpack.c.bf16 %v7557_v50, %v7552_v0  ;;  %v18484_v18 = vpop.f32.mrb[82].mxu0  ;;  %v7437_v0 = vadd.f32 %v25482_v36, %v25496_v7  ;;  %v7457_v36 = vadd.f32 %v25499_v26, %v25496_v7 }
0x113b   :  { %v7567_v33 = vadd.f32 %v18484_v18, %v15124_v46  ;;  %v7561_v42 = vpop.f32.mrb[83].mxu0 }
0x113c   :  { %v7562_v14 = vadd.f32 %v15124_v46, %v7561_v42  ;;  %20621 = vmatprep.subr.msk.bf16.mxu0 %vm24272_vm6, %v20619_v17 }
0x113d   :  { %20624 = vmatpush3.bf16.xpose.msk.msra.mxu0 %vm24272_vm6, %v20619_v17  ;;  %v7442_v17 = vadd.f32 %v25496_v7, %v25491_v52 }
0x113e   :  { %v20625_v15 = vpack.c.bf16 %v7567_v33, %v7562_v14  ;;  %v18487_v30 = vpop.f32.mrb[84].mxu0 }
0x113f   :  { %v7577_v13 = vadd.f32 %v18487_v30, %v15124_v46  ;;  %v7571_v48 = vpop.f32.mrb[85].mxu0 }
0x1140   :  { %v7572_v1 = vadd.f32 %v15124_v46, %v7571_v48  ;;  %20627 = vmatprep.subr.msk.bf16.mxu0 %vm24272_vm6, %v20625_v15 }
0x1142   :  { %v20631_v21 = vpack.c.bf16 %v7577_v13, %v7572_v1  ;;  %v18490_v57 = vpop.f32.mrb[86].mxu0 }
0x1143   :  { %v7587_v47 = vadd.f32 %v18490_v57, %v15124_v46  ;;  %v7581_v60 = vpop.f32.mrb[87].mxu0 }
0x1144   :  { %v7582_v61 = vadd.f32 %v15124_v46, %v7581_v60  ;;  %v7432_v46 = vadd.f32 %v25496_v7, %v25485_v58  ;;  %v7452_v58 = vadd.f32 %v25496_v7, %v25502_v55 }
0x1145   :  { %20630 = vmatpush3.bf16.xpose.msk.msra.mxu0 %vm24272_vm6, %v20625_v15 }
0x1146   :  { %v20637_v50 = vpack.c.bf16 %v7587_v47, %v7582_v61  ;;  %20633 = vmatprep.subr.msk.bf16.mxu0 %vm24272_vm6, %v20631_v21 }
0x114d   :  { %20636 = vmatpush3.bf16.xpose.msk.msra.mxu0 %vm24272_vm6, %v20631_v21 }
0x114e   :  { %20639 = vmatprep.subr.msk.bf16.mxu0 %vm24272_vm6, %v20637_v50 }
0x1155   :  { %20642 = vmatpush3.bf16.xpose.msk.msra.mxu0 %vm24272_vm6, %v20637_v50 }
0x115c   :  { %18552 = vmatmul.mubr.msk.f32.vlgmr.msra.gmra.mrb[88].mxu0 %vm5006_vm5, %v7427_v53 }
0x115d   :  { %18554 = vmatprep.mubr.msk.f32.mxu0 %vm5006_vm5, %v7432_v46 }
0x1160   :  { %18555 = vmatmul.mubr.msk.f32.gmra.mrb[90].mxu0 %vm5006_vm5, %v7437_v0 }
0x1161   :  { %18557 = vmatprep.mubr.msk.f32.mxu0 %vm5006_vm5, %v7442_v17 }
0x1164   :  { %18558 = vmatmul.mubr.msk.f32.gmra.mrb[92].mxu0 %vm5006_vm5, %v7447_v22 }
0x1165   :  { %18560 = vmatprep.mubr.msk.f32.mxu0 %vm5006_vm5, %v7452_v58 }
0x1168   :  { %18561 = vmatmul.mubr.msk.f32.gmra.mrb[94].mxu0 %vm5006_vm5, %v7457_v36 }
0x122f   :  { %v18553_v52 = vpop.f32.mrb[88].mxu0 }
0x1230   :  { %v7874_v18 = vmul.f32 0.17677669, %v18553_v52  ;;  %v7834_v33 = vpop.f32.mrb[89].mxu0 }
0x1231   :  { %v7873_v42 = vmul.f32 0.17677669, %v7834_v33 }
0x1232   :  { %v7884_v14 = vsel %vm2227_vm3, %v7874_v18, -inf }
0x1233   :  { %7885 = vmax.xlane.f32.xlu1 %v7884_v14  ;;  %v18556_v23 = vpop.f32.mrb[90].mxu0  ;;  %v7881_v15 = vsel %vm2227_vm3, %v7873_v42, -inf }
0x1234   :  { %v7876_v55 = vmul.f32 0.17677669, %v18556_v23  ;;  %7882 = vmax.xlane.f32.xlu0 %v7881_v15  ;;  %v7844_v30 = vpop.f32.mrb[91].mxu0 }
0x1235   :  { %v7875_v13 = vmul.f32 0.17677669, %v7844_v30 }
0x1236   :  { %v7890_v48 = vsel %vm2227_vm3, %v7876_v55, -inf }
0x1237   :  { %7891 = vmax.xlane.f32.xlu1 %v7890_v48  ;;  %v18559_v7 = vpop.f32.mrb[92].mxu0  ;;  %v7887_v26 = vsel %vm2227_vm3, %v7875_v13, -inf }
0x1238   :  { %v7878_v1 = vmul.f32 0.17677669, %v18559_v7  ;;  %7888 = vmax.xlane.f32.xlu0 %v7887_v26  ;;  %v7854_v21 = vpop.f32.mrb[93].mxu0 }
0x1239   :  { %v7877_v57 = vmul.f32 0.17677669, %v7854_v21 }
0x123a   :  { %v7896_v47 = vsel %vm2227_vm3, %v7878_v1, -inf }
0x123b   :  { %7897 = vmax.xlane.f32.xlu1 %v7896_v47  ;;  %v18562_v60 = vpop.f32.mrb[94].mxu0  ;;  %v7893_v61 = vsel %vm2227_vm3, %v7877_v57, -inf }
0x123c   :  { %v7880_v50 = vmul.f32 0.17677669, %v18562_v60  ;;  %7894 = vmax.xlane.f32.xlu0 %v7893_v61  ;;  %v7864_v53 = vpop.f32.mrb[95].mxu0 }
0x123d   :  { %v7879_v46 = vmul.f32 0.17677669, %v7864_v53 }
0x123e   :  { %v7902_v0 = vsel %vm2227_vm3, %v7880_v50, -inf }
0x123f   :  { %7903 = vmax.xlane.f32.xlu1 %v7902_v0  ;;  %v7899_v17 = vsel %vm2227_vm3, %v7879_v46, -inf }
0x1240   :  { %7900 = vmax.xlane.f32.xlu0 %v7899_v17 }
0x12c0   :  { %v7886_v22 = vpop.xlane.xlu1 %7885 }
0x12c1   :  { %v7906_v58 = vsub.f32 %v7874_v18, %v7886_v22  ;;  %v7883_v36 = vpop.xlane.xlu0 %7882 }
0x12c2   :  { %v7905_v52 = vsub.f32 %v7873_v42, %v7883_v36 }
0x12c3   :  { %v7915_v33 = vmul.f32 1.442695, %v7906_v58 }
0x12c4   :  { %v7913_v14 = vmul.f32 1.442695, %v7905_v52  ;;  %v7892_v23 = vpop.xlane.xlu1 %7891 }
0x12c5   :  { %22220 = vpow2.f32 %v7915_v33  ;;  %v7908_v15 = vsub.f32 %v7876_v55, %v7892_v23  ;;  %v7889_v30 = vpop.xlane.xlu0 %7888 }
0x12c6   :  { %22222 = vpow2.f32 %v7913_v14  ;;  %v7907_v48 = vsub.f32 %v7875_v13, %v7889_v30 }
0x12c7   :  { %v7919_v7 = vmul.f32 1.442695, %v7908_v15 }
0x12c8   :  { %v7917_v26 = vmul.f32 1.442695, %v7907_v48  ;;  %v7898_v21 = vpop.xlane.xlu1 %7897 }
0x12c9   :  { %22224 = vpow2.f32 %v7919_v7  ;;  %v7910_v47 = vsub.f32 %v7878_v1, %v7898_v21  ;;  %v7895_v60 = vpop.xlane.xlu0 %7894 }
0x12ca   :  { %22226 = vpow2.f32 %v7917_v26  ;;  %v7909_v61 = vsub.f32 %v7877_v57, %v7895_v60  ;;  %v25586_v60 = vmax.f32 %v23888_v54, 0.0  ;;  %v25602_v54 = vmax.f32 %v23901_v45, 0.0 }
0x12cb   :  { %v7923_v53 = vmul.f32 1.442695, %v7910_v47  ;;  %v25583_v47 = vmax.f32 %v23886_v3, 0.0  ;;  %v25599_v3 = vmax.f32 %v23899_v25, 0.0 }
0x12cc   :  { %v7921_v18 = vmul.f32 1.442695, %v7909_v61  ;;  %v7904_v0 = vpop.xlane.xlu1 %7903  ;;  %28396 = vst [vmem:[#allocation88_spill] sm:$0xff] %v25586_v60  ;;  %v25591_v61 = vmax.f32 %v23894_v8, 0.0  ;;  %28400 = vst [vmem:[#allocation92_spill] sm:$0xff] %v25602_v54  ;;  %v25607_v8 = vmax.f32 %v23903_v31, 0.0 }
0x12cd   :  { %22228 = vpow2.f32 %v7923_v53  ;;  %v7912_v42 = vsub.f32 %v7880_v50, %v7904_v0  ;;  %v7901_v17 = vpop.xlane.xlu0 %7900  ;;  %28395 = vst [vmem:[#allocation87_spill] sm:$0xff] %v25583_v47  ;;  %v25594_v53 = vmax.f32 %v23896_v20, 0.0  ;;  %28399 = vst [vmem:[#allocation91_spill] sm:$0xff] %v25599_v3  ;;  %v25610_v20 = vmax.f32 %v23905_v35, 0.0 }
0x12ce   :  { %22230 = vpow2.f32 %v7921_v18  ;;  %v7911_v22 = vsub.f32 %v7879_v46, %v7901_v17  ;;  %28397 = vst [vmem:[#allocation89_spill] sm:$0xff] %v25591_v61  ;;  %28401 = vst [vmem:[#allocation93_spill] sm:$0xff] %v25607_v8 }
0x12cf   :  { %v22221_v55 = vpop.eup %22220  ;;  %v7927_v58 = vmul.f32 1.442695, %v7912_v42  ;;  %28398 = vst [vmem:[#allocation90_spill] sm:$0xff] %v25594_v53  ;;  %28402 = vst [vmem:[#allocation94_spill] sm:$0xff] %v25610_v20 }
0x12d0   :  { %v22223_v36 = vpop.eup %22222  ;;  %v7925_v13 = vmul.f32 1.442695, %v7911_v22  ;;  %v7932_v52 = vsel %vm2227_vm3, %v22221_v55, 0.0 }
0x12d1   :  { %22232 = vpow2.f32 %v7927_v58  ;;  %7933 = vadd.xlane.f32.xlu1 %v7932_v52  ;;  %v7929_v1 = vsel %vm2227_vm3, %v22223_v36, 0.0 }
0x12d2   :  { %22234 = vpow2.f32 %v7925_v13  ;;  %7930 = vadd.xlane.f32.xlu0 %v7929_v1 }
0x12d3   :  { %v25561_v57 = vpop.eup %22224 }
0x12d4   :  { %v22227_v33 = vpop.eup %22226  ;;  %v7938_v50 = vsel %vm2227_vm3, %v25561_v57, 0.0 }
0x12d5   :  { %7939 = vadd.xlane.f32.xlu1 %v7938_v50  ;;  %v7935_v46 = vsel %vm2227_vm3, %v22227_v33, 0.0 }
0x12d6   :  { %7936 = vadd.xlane.f32.xlu0 %v7935_v46 }
0x12d7   :  { %v25566_v14 = vpop.eup %22228 }
0x12d8   :  { %v25568_v23 = vpop.eup %22230  ;;  %v7944_v15 = vsel %vm2227_vm3, %v25566_v14, 0.0 }
0x12d9   :  { %7945 = vadd.xlane.f32.xlu1 %v7944_v15  ;;  %v7941_v30 = vsel %vm2227_vm3, %v25568_v23, 0.0 }
0x12da   :  { %7942 = vadd.xlane.f32.xlu0 %v7941_v30 }
0x12db   :  { %v25574_v48 = vpop.eup %22232 }
0x12dc   :  { %v25576_v7 = vpop.eup %22234  ;;  %v7950_v26 = vsel %vm2227_vm3, %v25574_v48, 0.0 }
0x12dd   :  { %7951 = vadd.xlane.f32.xlu1 %v7950_v26  ;;  %v7947_v21 = vsel %vm2227_vm3, %v25576_v7, 0.0 }
0x12de   :  { %7948 = vadd.xlane.f32.xlu0 %v7947_v21 }
0x12e1   :  { %4419 = vadd.xlane.f32.xlu1 %v25583_v47 }
0x12e2   :  { %4417 = vadd.xlane.f32.xlu0 %v25586_v60 }
0x12e5   :  { %4423 = vadd.xlane.f32.xlu1 %v25591_v61 }
0x12e6   :  { %4421 = vadd.xlane.f32.xlu0 %v25594_v53 }
0x12e9   :  { %4427 = vadd.xlane.f32.xlu1 %v25599_v3 }
0x12ea   :  { %4425 = vadd.xlane.f32.xlu0 %v25602_v54 }
0x12ed   :  { %4431 = vadd.xlane.f32.xlu1 %v25607_v8 }
0x12ee   :  { %4429 = vadd.xlane.f32.xlu0 %v25610_v20 }
0x135e   :  { %v7934_v18 = vpop.xlane.xlu1 %7933 }
0x135f   :  { %22236 = vrcp.f32 %v7934_v18  ;;  %v7931_v25 = vpop.xlane.xlu0 %7930 }
0x1360   :  { %22238 = vrcp.f32 %v7931_v25 }
0x1362   :  { %v7940_v45 = vpop.xlane.xlu1 %7939 }
0x1363   :  { %22240 = vrcp.f32 %v7940_v45  ;;  %v7937_v0 = vpop.xlane.xlu0 %7936 }
0x1364   :  { %22242 = vrcp.f32 %v7937_v0 }
0x1366   :  { %v7946_v42 = vpop.xlane.xlu1 %7945 }
0x1367   :  { %22244 = vrcp.f32 %v7946_v42  ;;  %v7943_v17 = vpop.xlane.xlu0 %7942 }
0x1368   :  { %22246 = vrcp.f32 %v7943_v17 }
0x1369   :  { %v22237_v31 = vpop.eup %22236 }
0x136a   :  { %v22239_v22 = vpop.eup %22238  ;;  %v7952_v35 = vpop.xlane.xlu1 %7951  ;;  %v7956_v52 = vmul.f32 %v22237_v31, %v22221_v55 }
0x136b   :  { %22248 = vrcp.f32 %v7952_v35  ;;  %v7949_v58 = vpop.xlane.xlu0 %7948  ;;  %v7954_v13 = vmul.f32 %v22239_v22, %v22223_v36 }
0x136c   :  { %22250 = vrcp.f32 %v7949_v58 }
0x136d   :  { %v22241_v1 = vpop.eup %22240  ;;  %18579 = vmatprep.mubr.msk.f32.mxu1 %vm2227_vm3, %v7954_v13 }
0x136e   :  { %v22243_v50 = vpop.eup %22242  ;;  %v4420_v46 = vpop.xlane.xlu1 %4419  ;;  %18580 = vmatmul.mubr.msk.f32.vlgmr.msra.gmra.mrb[96].mxu1 %vm2227_vm3, %v7956_v52  ;;  %v7960_v18 = vmul.f32 %v22241_v1, %v25561_v57 }
0x136f   :  { %v4443_v15 = vmul.f32 0.0078125, %v4420_v46  ;;  %v4418_v30 = vpop.xlane.xlu0 %4417  ;;  %v7958_v26 = vmul.f32 %v22243_v50, %v22227_v33  ;;  %20670 = vmatpush3.bf16.msra.mxu1 %v23916_v37 }
0x1370   :  { %v4442_v21 = vmul.f32 0.0078125, %v4418_v30  ;;  %20672 = vmatprep.subr.bf16.mxu1 %v23929_v6 }
0x1371   :  { %v22245_v36 = vpop.eup %22244  ;;  %18582 = vmatprep.mubr.msk.f32.mxu1 %vm2227_vm3, %v7958_v26  ;;  %v25621_v55 = vsub.f32 %v25583_v47, %v4443_v15 }
0x1372   :  { %v22247_v25 = vpop.eup %22246  ;;  %v4424_v45 = vpop.xlane.xlu1 %4423  ;;  %18583 = vmatmul.mubr.msk.f32.gmra.mrb[98].mxu1 %vm2227_vm3, %v7960_v18  ;;  %v25625_v0 = vsub.f32 %v25586_v60, %v4442_v21  ;;  %v7964_v31 = vmul.f32 %v22245_v36, %v25566_v14 }
0x1373   :  { %v4445_v33 = vmul.f32 0.0078125, %v4424_v45  ;;  %v4422_v37 = vpop.xlane.xlu0 %4421  ;;  %v4475_v57 = vmul.f32 %v25621_v55, %v25621_v55  ;;  %v7962_v42 = vmul.f32 %v22247_v25, %v25568_v23  ;;  %20674 = vmatpush3.bf16.msra.mxu1 %v23929_v6 }
0x1374   :  { %v4444_v17 = vmul.f32 0.0078125, %v4422_v37  ;;  %v4474_v22 = vmul.f32 %v25625_v0, %v25625_v0  ;;  %20676 = vmatprep.subr.bf16.mxu1 %v23991_v27 }
0x1375   :  { %v22249_v35 = vpop.eup %22248  ;;  %4500 = vadd.xlane.f32.xlu1 %v4475_v57  ;;  %18585 = vmatprep.mubr.msk.f32.mxu1 %vm2227_vm3, %v7962_v42  ;;  %v25637_v58 = vsub.f32 %v25591_v61, %v4445_v33  ;;  %v15168_v57 = vld [vmem:[%s28114_s13 + $0x68] sm:$0xff] }
0x1376   :  { %v22251_v13 = vpop.eup %22250  ;;  %v4428_v52 = vpop.xlane.xlu1 %4427  ;;  %18586 = vmatmul.mubr.msk.f32.gmra.mrb[100].mxu1 %vm2227_vm3, %v7964_v31  ;;  %4498 = vadd.xlane.f32.xlu0 %v4474_v22  ;;  %v25641_v6 = vsub.f32 %v25594_v53, %v4444_v17  ;;  %v7968_v15 = vmul.f32 %v22249_v35, %v25574_v48 }
0x1377   :  { %v4447_v14 = vmul.f32 0.0078125, %v4428_v52  ;;  %v4426_v23 = vpop.xlane.xlu0 %4425  ;;  %v4477_v1 = vmul.f32 %v25637_v58, %v25637_v58  ;;  %v7966_v50 = vmul.f32 %v22251_v13, %v25576_v7  ;;  %20678 = vmatpush3.bf16.msra.mxu1 %v23991_v27 }
0x1378   :  { %v4446_v46 = vmul.f32 0.0078125, %v4426_v23  ;;  %v4476_v30 = vmul.f32 %v25641_v6, %v25641_v6  ;;  %20680 = vmatprep.subr.bf16.mxu1 %v24013_v62 }
0x1379   :  { %4504 = vadd.xlane.f32.xlu1 %v4477_v1  ;;  %18588 = vmatprep.mubr.msk.f32.mxu1 %vm2227_vm3, %v7966_v50  ;;  %v25653_v26 = vsub.f32 %v25599_v3, %v4447_v14 }
0x137a   :  { %v4432_v21 = vpop.xlane.xlu1 %4431  ;;  %18589 = vmatmul.mubr.msk.f32.gmra.mrb[102].mxu1 %vm2227_vm3, %v7968_v15  ;;  %4502 = vadd.xlane.f32.xlu0 %v4476_v30  ;;  %v25657_v27 = vsub.f32 %v25602_v54, %v4446_v46 }
0x137b   :  { %v4449_v7 = vmul.f32 0.0078125, %v4432_v21  ;;  %v4430_v48 = vpop.xlane.xlu0 %4429  ;;  %v4479_v18 = vmul.f32 %v25653_v26, %v25653_v26  ;;  %20682 = vmatpush3.bf16.msra.mxu1 %v24013_v62 }
0x137c   :  { %v4448_v36 = vmul.f32 0.0078125, %v4430_v48  ;;  %v4478_v25 = vmul.f32 %v25657_v27, %v25657_v27  ;;  %20684 = vmatprep.subr.bf16.mxu1 %v24033_v19 }
0x137d   :  { %4508 = vadd.xlane.f32.xlu1 %v4479_v18  ;;  %v25666_v45 = vsub.f32 %v25607_v8, %v4449_v7 }
0x137e   :  { %4506 = vadd.xlane.f32.xlu0 %v4478_v25  ;;  %v25669_v33 = vsub.f32 %v25610_v20, %v4448_v36 }
0x137f   :  { %v4481_v37 = vmul.f32 %v25666_v45, %v25666_v45  ;;  %20686 = vmatpush3.bf16.msra.mxu1 %v24033_v19  ;;  %v15167_v19 = vld [vmem:[%s28114_s13 + $0x60] sm:$0xff] }
0x1380   :  { %v4480_v62 = vmul.f32 %v25669_v33, %v25669_v33  ;;  %20688 = vmatprep.subr.bf16.mxu1 %v24053_v43  ;;  %v25689_v42 = vpack.c.bf16 %v15168_v57, %v15167_v19 }
0x1381   :  { %4512 = vadd.xlane.f32.xlu1 %v4481_v37 }
0x1382   :  { %4510 = vadd.xlane.f32.xlu0 %v4480_v62  ;;  %20660 = vmatprep.subr.bf16.mxu0 %v25689_v42 }
0x1383   :  { %20690 = vmatpush3.bf16.msra.mxu1 %v24053_v43  ;;  %20662 = vmatpush3.bf16.msra.mxu0 %v25689_v42  ;;  %v15169_v43 = vld [vmem:[%s28114_s13 + $0x70] sm:$0xff] }
0x1384   :  { %20692 = vmatprep.subr.bf16.mxu1 %v24073_v39 }
0x1387   :  { %20694 = vmatpush3.bf16.msra.mxu1 %v24073_v39  ;;  %v15170_v39 = vld [vmem:[%s28114_s13 + $0x78] sm:$0xff] }
0x1388   :  { %20696 = vmatprep.subr.bf16.mxu1 %v24093_v41 }
0x138b   :  { %20698 = vmatpush3.bf16.msra.mxu1 %v24093_v41  ;;  %v25699_v41 = vpack.c.bf16 %v15170_v39, %v15169_v43 }
0x138c   :  { %20732 = vmatprep.subr.bf16.mxu1 %v24113_v32 }
0x138d   :  { %20664 = vmatprep.subr.bf16.mxu0 %v25699_v41 }
0x138e   :  { %20666 = vmatpush3.bf16.msra.mxu0 %v25699_v41 }
0x138f   :  { %20700 = vmatprep.subr.bf16.mxu0 %v23927_v2 }
0x1402   :  { %v4501_v17 = vpop.xlane.xlu1 %4500 }
0x1403   :  { %v4523_v31 = vmul.f32 0.0078125, %v4501_v17  ;;  %v4499_v22 = vpop.xlane.xlu0 %4498 }
0x1404   :  { %v4522_v35 = vmul.f32 0.0078125, %v4499_v22 }
0x1405   :  { %v4539_v13 = vadd.f32 1e-05, %v4523_v31 }
0x1406   :  { %v4538_v52 = vadd.f32 1e-05, %v4522_v35  ;;  %v4505_v14 = vpop.xlane.xlu1 %4504  ;;  %v22428_v35 = vld [vmem:[%s28109_s5] ss:$0 sm:$0xff] }
0x1407   :  { %22252 = vrsqrt.f32 %v4539_v13  ;;  %v4525_v23 = vmul.f32 0.0078125, %v4505_v14  ;;  %v4503_v1 = vpop.xlane.xlu0 %4502 }
0x1408   :  { %22254 = vrsqrt.f32 %v4538_v52  ;;  %v4524_v50 = vmul.f32 0.0078125, %v4503_v1 }
0x1409   :  { %v4541_v46 = vadd.f32 1e-05, %v4525_v23 }
0x140a   :  { %v4540_v15 = vadd.f32 1e-05, %v4524_v50  ;;  %v4509_v30 = vpop.xlane.xlu1 %4508  ;;  %v22429_v50 = vld [vmem:[%s28110_s6] ss:$0 sm:$0xff] }
0x140b   :  { %22256 = vrsqrt.f32 %v4541_v46  ;;  %v4527_v21 = vmul.f32 0.0078125, %v4509_v30  ;;  %v4507_v7 = vpop.xlane.xlu0 %4506 }
0x140c   :  { %22258 = vrsqrt.f32 %v4540_v15  ;;  %v4526_v48 = vmul.f32 0.0078125, %v4507_v7 }
0x140d   :  { %v4543_v18 = vadd.f32 1e-05, %v4527_v21 }
0x140e   :  { %v4542_v36 = vadd.f32 1e-05, %v4526_v48  ;;  %v4513_v25 = vpop.xlane.xlu1 %4512 }
0x140f   :  { %22260 = vrsqrt.f32 %v4543_v18  ;;  %v4529_v37 = vmul.f32 0.0078125, %v4513_v25  ;;  %v4511_v62 = vpop.xlane.xlu0 %4510 }
0x1410   :  { %22262 = vrsqrt.f32 %v4542_v36  ;;  %v4528_v19 = vmul.f32 0.0078125, %v4511_v62 }
0x1411   :  { %v22253_v57 = vpop.eup %22252  ;;  %v4545_v43 = vadd.f32 1e-05, %v4529_v37 }
0x1412   :  { %v22255_v39 = vpop.eup %22254  ;;  %v4571_v17 = vmul.f32 %v22253_v57, %v25621_v55  ;;  %v4544_v31 = vadd.f32 1e-05, %v4528_v19 }
0x1413   :  { %v4570_v22 = vmul.f32 %v22255_v39, %v25625_v0  ;;  %22264 = vrsqrt.f32 %v4545_v43 }
0x1414   :  { %v4593_v13 = vmul.f32 %v22428_v35, %v4571_v17  ;;  %22266 = vrsqrt.f32 %v4544_v31  ;;  %v28403_v17 = vld [vmem:[#allocation20_spill] sm:$0xff] }
0x1415   :  { %v22257_v52 = vpop.eup %22256  ;;  %v4592_v14 = vmul.f32 %v22428_v35, %v4570_v22  ;;  %v28407_v31 = vld [vmem:[#allocation24_spill] sm:$0xff] }
0x1416   :  { %v22259_v23 = vpop.eup %22258  ;;  %v4573_v1 = vmul.f32 %v22257_v52, %v25637_v58  ;;  %v25716_v46 = vadd.f32 %v22429_v50, %v4593_v13 }
0x1417   :  { %v25713_v55 = vadd.f32 %v22429_v50, %v4592_v14  ;;  %v4572_v0 = vmul.f32 %v22259_v23, %v25641_v6  ;;  %v28408_v14 = vld [vmem:[#allocation13_spill] sm:$0xff] }
0x1418   :  { %v4595_v15 = vmul.f32 %v22428_v35, %v4573_v1 }
0x1419   :  { %v22261_v30 = vpop.eup %22260  ;;  %v4594_v21 = vmul.f32 %v22428_v35, %v4572_v0  ;;  %18643 = vmatprep.mubr.f32.mxu1 %v25713_v55 }
0x141a   :  { %v22263_v7 = vpop.eup %22262  ;;  %v4575_v48 = vmul.f32 %v22261_v30, %v25653_v26  ;;  %18644 = vmatmul.mubr.f32.vlgmr.msra.gmra.mrb[104].mxu1 %v25716_v46  ;;  %v25725_v36 = vadd.f32 %v22429_v50, %v4595_v15  ;;  %v28410_v15 = vld [vmem:[#allocation15_spill] sm:$0xff]  ;;  %v28411_v30 = vld [vmem:[#allocation16_spill] sm:$0xff] }
0x141b   :  { %v25721_v58 = vadd.f32 %v22429_v50, %v4594_v21  ;;  %v4574_v18 = vmul.f32 %v22263_v7, %v25657_v27  ;;  %20734 = vmatpush3.bf16.msra.mxu1 %v24113_v32  ;;  %v28412_v21 = vld [vmem:[#allocation17_spill] sm:$0xff]  ;;  %v28413_v7 = vld [vmem:[#allocation18_spill] sm:$0xff] }
0x141c   :  { %v4597_v6 = vmul.f32 %v22428_v35, %v4575_v48  ;;  %20736 = vmatprep.subr.bf16.mxu1 %v24147_v51  ;;  %v28414_v48 = vld [vmem:[#allocation19_spill] sm:$0xff] }
0x141d   :  { %v22265_v25 = vpop.eup %22264  ;;  %v4596_v37 = vmul.f32 %v22428_v35, %v4574_v18  ;;  %18646 = vmatprep.mubr.f32.mxu1 %v25721_v58 }
0x141e   :  { %v22267_v62 = vpop.eup %22266  ;;  %v4577_v26 = vmul.f32 %v22265_v25, %v25666_v45  ;;  %18647 = vmatmul.mubr.f32.gmra.mrb[106].mxu1 %v25725_v36  ;;  %v25735_v32 = vadd.f32 %v22429_v50, %v4597_v6  ;;  %v25801_v25 = vld [vmem:[%s28112_s10] ss:$0 sm:$0xff] }
0x141f   :  { %v25731_v19 = vadd.f32 %v22429_v50, %v4596_v37  ;;  %v4576_v27 = vmul.f32 %v22267_v62, %v25669_v33  ;;  %20738 = vmatpush3.bf16.msra.mxu1 %v24147_v51  ;;  %v28404_v51 = vld [vmem:[#allocation21_spill] sm:$0xff]  ;;  %v28405_v33 = vld [vmem:[#allocation22_spill] sm:$0xff] }
0x1420   :  { %v4599_v57 = vmul.f32 %v22428_v35, %v4577_v26  ;;  %20740 = vmatprep.subr.bf16.mxu1 %v24171_v9 }
0x1421   :  { %v4598_v43 = vmul.f32 %v22428_v35, %v4576_v27  ;;  %18649 = vmatprep.mubr.f32.mxu1 %v25731_v19 }
0x1422   :  { %18650 = vmatmul.mubr.f32.gmra.mrb[108].mxu1 %v25735_v32  ;;  %v25743_v45 = vadd.f32 %v22429_v50, %v4599_v57 }
0x1423   :  { %v25740_v39 = vadd.f32 %v22429_v50, %v4598_v43  ;;  %20742 = vmatpush3.bf16.msra.mxu1 %v24171_v9  ;;  %v28406_v9 = vld [vmem:[#allocation23_spill] sm:$0xff]  ;;  %v28409_v50 = vld [vmem:[#allocation14_spill] sm:$0xff] }
0x1424   :  { %20744 = vmatprep.subr.bf16.mxu1 %v28403_v17 }
0x1425   :  { %18652 = vmatprep.mubr.f32.mxu1 %v25740_v39 }
0x1426   :  { %18653 = vmatmul.mubr.f32.gmra.mrb[110].mxu1 %v25743_v45 }
0x1427   :  { %20746 = vmatpush3.bf16.msra.mxu1 %v28403_v17  ;;  %18731 = vmatprep.mubr.f32.mxu1 %v25713_v55 }
0x1428   :  { %20748 = vmatprep.subr.bf16.mxu1 %v28404_v51 }
0x142b   :  { %20750 = vmatpush3.bf16.msra.mxu1 %v28404_v51 }
0x142c   :  { %20752 = vmatprep.subr.bf16.mxu1 %v28405_v33 }
0x142f   :  { %20754 = vmatpush3.bf16.msra.mxu1 %v28405_v33  ;;  %v22431_v33 = vld [vmem:[%s28113_s12] ss:$0 sm:$0xff] }
0x1430   :  { %20756 = vmatprep.subr.bf16.mxu1 %v28406_v9 }
0x1433   :  { %20758 = vmatpush3.bf16.msra.mxu1 %v28406_v9 }
0x1434   :  { %20760 = vmatprep.subr.bf16.mxu1 %v28407_v31 }
0x1437   :  { %20762 = vmatpush3.bf16.msra.mxu1 %v28407_v31 }
0x143a   :  { %18732 = vmatmul.mubr.f32.vlgmr.msra.gmra.mrb[112].mxu1 %v25716_v46 }
0x143b   :  { %18734 = vmatprep.mubr.f32.mxu1 %v25721_v58 }
0x143e   :  { %18735 = vmatmul.mubr.f32.gmra.mrb[114].mxu1 %v25725_v36 }
0x143f   :  { %18737 = vmatprep.mubr.f32.mxu1 %v25731_v19 }
0x1441   :  { %v18581_v22 = vpop.f32.mrb[96].mxu1 }
0x1442   :  { %18738 = vmatmul.mubr.f32.gmra.mrb[116].mxu1 %v25735_v32  ;;  %v8059_v35 = vpop.f32.mrb[97].mxu1 }
0x1443   :  { %18740 = vmatprep.mubr.f32.mxu1 %v25740_v39  ;;  %18599 = vmatprep.mubr.msk.f32.mxu0 %vm5006_vm5, %v8059_v35 }
0x1444   :  { %18600 = vmatmul.mubr.msk.f32.vlgmr.msra.gmra.mrb[56].mxu0 %vm5006_vm5, %v18581_v22 }
0x1445   :  { %20702 = vmatpush3.bf16.msra.mxu0 %v23927_v2  ;;  %v18584_v13 = vpop.f32.mrb[98].mxu1 }
0x1446   :  { %18741 = vmatmul.mubr.f32.gmra.mrb[118].mxu1 %v25743_v45  ;;  %v8069_v52 = vpop.f32.mrb[99].mxu1  ;;  %20704 = vmatprep.subr.bf16.mxu0 %v28408_v14 }
0x1447   :  { %18602 = vmatprep.mubr.msk.f32.mxu0 %vm5006_vm5, %v8069_v52 }
0x1448   :  { %18603 = vmatmul.mubr.msk.f32.gmra.mrb[58].mxu0 %vm5006_vm5, %v18584_v13 }
0x1449   :  { %20706 = vmatpush3.bf16.msra.mxu0 %v28408_v14  ;;  %v18587_v23 = vpop.f32.mrb[100].mxu1 }
0x144a   :  { %v8079_v1 = vpop.f32.mrb[101].mxu1  ;;  %20708 = vmatprep.subr.bf16.mxu0 %v28409_v50 }
0x144b   :  { %18605 = vmatprep.mubr.msk.f32.mxu0 %vm5006_vm5, %v8079_v1 }
0x144c   :  { %18606 = vmatmul.mubr.msk.f32.gmra.mrb[60].mxu0 %vm5006_vm5, %v18587_v23 }
0x144d   :  { %20710 = vmatpush3.bf16.msra.mxu0 %v28409_v50  ;;  %v18590_v2 = vpop.f32.mrb[102].mxu1 }
0x144e   :  { %v8089_v0 = vpop.f32.mrb[103].mxu1  ;;  %20712 = vmatprep.subr.bf16.mxu0 %v28410_v15 }
0x144f   :  { %18608 = vmatprep.mubr.msk.f32.mxu0 %vm5006_vm5, %v8089_v0 }
0x1450   :  { %18609 = vmatmul.mubr.msk.f32.gmra.mrb[62].mxu0 %vm5006_vm5, %v18590_v2 }
0x1451   :  { %20714 = vmatpush3.bf16.msra.mxu0 %v28410_v15  ;;  %18687 = vmatprep.mubr.f32.mxu0 %v25713_v55 }
0x1452   :  { %20716 = vmatprep.subr.bf16.mxu0 %v28411_v30 }
0x1455   :  { %20718 = vmatpush3.bf16.msra.mxu0 %v28411_v30 }
0x1456   :  { %20720 = vmatprep.subr.bf16.mxu0 %v28412_v21 }
0x1459   :  { %20722 = vmatpush3.bf16.msra.mxu0 %v28412_v21 }
0x145a   :  { %20724 = vmatprep.subr.bf16.mxu0 %v28413_v7 }
0x145d   :  { %20726 = vmatpush3.bf16.msra.mxu0 %v28413_v7 }
0x145e   :  { %20728 = vmatprep.subr.bf16.mxu0 %v28414_v48 }
0x1461   :  { %20730 = vmatpush3.bf16.msra.mxu0 %v28414_v48 }
0x1464   :  { %18688 = vmatmul.mubr.f32.vlgmr.msra.gmra.mrb[96].mxu0 %v25716_v46 }
0x1465   :  { %18690 = vmatprep.mubr.f32.mxu0 %v25721_v58 }
0x1468   :  { %18691 = vmatmul.mubr.f32.gmra.mrb[98].mxu0 %v25725_v36 }
0x1469   :  { %18693 = vmatprep.mubr.f32.mxu0 %v25731_v19 }
0x146c   :  { %18694 = vmatmul.mubr.f32.gmra.mrb[100].mxu0 %v25735_v32 }
0x146d   :  { %18696 = vmatprep.mubr.f32.mxu0 %v25740_v39 }
0x1470   :  { %18697 = vmatmul.mubr.f32.gmra.mrb[102].mxu0 %v25743_v45 }
0x14ed   :  { %v25796_v18 = vpop.f32.mrb[104].mxu1 }
0x14ee   :  { %v8306_v6 = vpop.f32.mrb[105].mxu1 }
0x14ef   :  { %v8307_v37 = vadd.f32 %v25801_v25, %v8306_v6 }
0x14f1   :  { %v25804_v62 = vpop.f32.mrb[106].mxu1  ;;  %18759 = vmatprep.mubr.msk.f32.mxu0 %vm5006_vm5, %v8307_v37 }
0x14f2   :  { %v25807_v26 = vpop.f32.mrb[107].mxu1 }
0x14f5   :  { %v25809_v27 = vpop.f32.mrb[108].mxu1 }
0x14f6   :  { %v25811_v57 = vpop.f32.mrb[109].mxu1 }
0x14f9   :  { %v25813_v43 = vpop.f32.mrb[110].mxu1 }
0x14fa   :  { %v25815_v17 = vpop.f32.mrb[111].mxu1 }
0x150d   :  { %v18733_v51 = vpop.f32.mrb[112].mxu1 }
0x150e   :  { %v8522_v9 = vadd.f32 %v22431_v33, %v18733_v51  ;;  %v8516_v31 = vpop.f32.mrb[113].mxu1 }
0x150f   :  { %v8517_v22 = vadd.f32 %v22431_v33, %v8516_v31 }
0x1511   :  { %v20787_v35 = vpack.c.bf16 %v8522_v9, %v8517_v22  ;;  %v18736_v13 = vpop.f32.mrb[114].mxu1 }
0x1512   :  { %v8532_v52 = vadd.f32 %v22431_v33, %v18736_v13  ;;  %v8526_v14 = vpop.f32.mrb[115].mxu1 }
0x1513   :  { %v8527_v23 = vadd.f32 %v22431_v33, %v8526_v14  ;;  %20788 = vmatprep.subr.bf16.mxu1 %v20787_v35 }
0x1514   :  { %20790 = vmatpush3.bf16.msra.mxu1 %v20787_v35 }
0x1515   :  { %v20791_v1 = vpack.c.bf16 %v8532_v52, %v8527_v23  ;;  %v18739_v50 = vpop.f32.mrb[116].mxu1  ;;  %v28415_v52 = vld [vmem:[#allocation25_spill] sm:$0xff] }
0x1516   :  { %v8542_v2 = vadd.f32 %v22431_v33, %v18739_v50  ;;  %v8536_v0 = vpop.f32.mrb[117].mxu1 }
0x1517   :  { %v8537_v15 = vadd.f32 %v22431_v33, %v8536_v0  ;;  %20792 = vmatprep.subr.bf16.mxu1 %v20791_v1  ;;  %v25820_v30 = vpop.f32.mrb[56].mxu0 }
0x1518   :  { %20794 = vmatpush3.bf16.msra.mxu1 %v20791_v1  ;;  %v25822_v21 = vpop.f32.mrb[57].mxu0  ;;  %v22432_v1 = vld [vmem:[%s28111_s11] ss:$0 sm:$0xff] }
0x1519   :  { %v20795_v7 = vpack.c.bf16 %v8542_v2, %v8537_v15  ;;  %v18742_v48 = vpop.f32.mrb[118].mxu1 }
0x151a   :  { %v8552_v6 = vadd.f32 %v22431_v33, %v18742_v48  ;;  %v8546_v37 = vpop.f32.mrb[119].mxu1 }
0x151b   :  { %v8547_v51 = vadd.f32 %v22431_v33, %v8546_v37  ;;  %20796 = vmatprep.subr.bf16.mxu1 %v20795_v7  ;;  %v25824_v9 = vpop.f32.mrb[58].mxu0 }
0x151c   :  { %20798 = vmatpush3.bf16.msra.mxu1 %v20795_v7  ;;  %v25826_v31 = vpop.f32.mrb[59].mxu0 }
0x151d   :  { %v20799_v22 = vpack.c.bf16 %v8552_v6, %v8547_v51 }
0x151f   :  { %20800 = vmatprep.subr.bf16.mxu1 %v20799_v22  ;;  %v25828_v35 = vpop.f32.mrb[60].mxu0 }
0x1520   :  { %20802 = vmatpush3.bf16.msra.mxu1 %v20799_v22  ;;  %v25830_v13 = vpop.f32.mrb[61].mxu0 }
0x1521   :  { %20804 = vmatprep.subr.bf16.mxu1 %v28415_v52 }
0x1523   :  { %v25833_v14 = vpop.f32.mrb[62].mxu0 }
0x1524   :  { %v25835_v23 = vpop.f32.mrb[63].mxu0 }
0x1537   :  { %v18689_v33 = vpop.f32.mrb[96].mxu0 }
0x1538   :  { %v8417_v50 = vadd.f32 %v22432_v1, %v18689_v33  ;;  %v8411_v2 = vpop.f32.mrb[97].mxu0 }
0x1539   :  { %v8412_v0 = vadd.f32 %v22432_v1, %v8411_v2 }
0x153b   :  { %v20763_v15 = vpack.c.bf16 %v8417_v50, %v8412_v0  ;;  %v18692_v7 = vpop.f32.mrb[98].mxu0 }
0x153c   :  { %v8427_v48 = vadd.f32 %v22432_v1, %v18692_v7  ;;  %v8421_v6 = vpop.f32.mrb[99].mxu0 }
0x153d   :  { %v8422_v37 = vadd.f32 %v22432_v1, %v8421_v6  ;;  %20765 = vmatprep.subr.msk.bf16.mxu0 %vm24272_vm6, %v20763_v15 }
0x153e   :  { %20768 = vmatpush3.bf16.xpose.msk.msra.mxu0 %vm24272_vm6, %v20763_v15 }
0x153f   :  { %v20769_v51 = vpack.c.bf16 %v8427_v48, %v8422_v37  ;;  %v18695_v22 = vpop.f32.mrb[100].mxu0 }
0x1540   :  { %v8437_v20 = vadd.f32 %v22432_v1, %v18695_v22  ;;  %v8431_v8 = vpop.f32.mrb[101].mxu0 }
0x1541   :  { %v8432_v54 = vadd.f32 %v22432_v1, %v8431_v8  ;;  %20771 = vmatprep.subr.msk.bf16.mxu0 %vm24272_vm6, %v20769_v51  ;;  %v8317_v8 = vadd.f32 %v25801_v25, %v25807_v26  ;;  %v28416_v26 = vld [vmem:[#allocation41_spill] sm:$0xff] }
0x1543   :  { %v20775_v33 = vpack.c.bf16 %v8437_v20, %v8432_v54  ;;  %v18698_v50 = vpop.f32.mrb[102].mxu0  ;;  %v8312_v54 = vadd.f32 %v25801_v25, %v25796_v18  ;;  %v8322_v20 = vadd.f32 %v25801_v25, %v25804_v62  ;;  %v8332_v18 = vadd.f32 %v25801_v25, %v25809_v27  ;;  %v28419_v27 = vld [vmem:[#allocation44_spill] sm:$0xff] }
0x1544   :  { %v8447_v2 = vadd.f32 %v22432_v1, %v18698_v50  ;;  %v8441_v0 = vpop.f32.mrb[103].mxu0  ;;  %v8342_v62 = vadd.f32 %v25801_v25, %v25813_v43 }
0x1545   :  { %v8442_v7 = vadd.f32 %v22432_v1, %v8441_v0  ;;  %v8327_v1 = vadd.f32 %v25801_v25, %v25811_v57  ;;  %v28417_v57 = vld [vmem:[#allocation42_spill] sm:$0xff] }
0x1546   :  { %20774 = vmatpush3.bf16.xpose.msk.msra.mxu0 %vm24272_vm6, %v20769_v51 }
0x1547   :  { %v20781_v6 = vpack.c.bf16 %v8447_v2, %v8442_v7  ;;  %20777 = vmatprep.subr.msk.bf16.mxu0 %vm24272_vm6, %v20775_v33 }
0x154e   :  { %20780 = vmatpush3.bf16.xpose.msk.msra.mxu0 %vm24272_vm6, %v20775_v33 }
0x154f   :  { %20783 = vmatprep.subr.msk.bf16.mxu0 %vm24272_vm6, %v20781_v6 }
0x1556   :  { %20786 = vmatpush3.bf16.xpose.msk.msra.mxu0 %vm24272_vm6, %v20781_v6 }
0x1557   :  { %20836 = vmatprep.subr.bf16.mxu0 %v24565_v34 }
0x155d   :  { %18760 = vmatmul.mubr.msk.f32.vlgmr.msra.gmra.mrb[104].mxu0 %vm5006_vm5, %v8312_v54 }
0x155e   :  { %18762 = vmatprep.mubr.msk.f32.mxu0 %vm5006_vm5, %v8317_v8  ;;  %20838 = vmatpush3.bf16.msra.mxu0 %v24565_v34  ;;  %v8337_v34 = vadd.f32 %v25801_v25, %v25815_v17  ;;  %v28420_v17 = vld [vmem:[#allocation45_spill] sm:$0xff]  ;;  %v28421_v25 = vld [vmem:[#allocation46_spill] sm:$0xff] }
0x155f   :  { %20840 = vmatprep.subr.bf16.mxu0 %v24574_v38 }
0x1561   :  { %18763 = vmatmul.mubr.msk.f32.gmra.mrb[106].mxu0 %vm5006_vm5, %v8322_v20 }
0x1562   :  { %18765 = vmatprep.mubr.msk.f32.mxu0 %vm5006_vm5, %v8327_v1  ;;  %20842 = vmatpush3.bf16.msra.mxu0 %v24574_v38  ;;  %v28418_v38 = vld [vmem:[#allocation43_spill] sm:$0xff] }
0x1563   :  { %20844 = vmatprep.subr.bf16.mxu0 %v28416_v26 }
0x1565   :  { %18766 = vmatmul.mubr.msk.f32.gmra.mrb[108].mxu0 %vm5006_vm5, %v8332_v18 }
0x1566   :  { %18768 = vmatprep.mubr.msk.f32.mxu0 %vm5006_vm5, %v8337_v34  ;;  %20846 = vmatpush3.bf16.msra.mxu0 %v28416_v26 }
0x1567   :  { %20848 = vmatprep.subr.bf16.mxu0 %v28417_v57 }
0x1569   :  { %18769 = vmatmul.mubr.msk.f32.gmra.mrb[110].mxu0 %vm5006_vm5, %v8342_v62 }
0x156a   :  { %20850 = vmatpush3.bf16.msra.mxu0 %v28417_v57  ;;  %18875 = vmatprep.mubr.f32.mxu0 %v25713_v55 }
0x156b   :  { %20852 = vmatprep.subr.bf16.mxu0 %v28418_v38 }
0x156e   :  { %20854 = vmatpush3.bf16.msra.mxu0 %v28418_v38 }
0x156f   :  { %20856 = vmatprep.subr.bf16.mxu0 %v28419_v27 }
0x1572   :  { %20858 = vmatpush3.bf16.msra.mxu0 %v28419_v27 }
0x1573   :  { %20860 = vmatprep.subr.bf16.mxu0 %v28420_v17 }
0x1576   :  { %20862 = vmatpush3.bf16.msra.mxu0 %v28420_v17 }
0x1577   :  { %20864 = vmatprep.subr.bf16.mxu0 %v28421_v25 }
0x157a   :  { %20866 = vmatpush3.bf16.msra.mxu0 %v28421_v25 }
0x157d   :  { %18876 = vmatmul.mubr.f32.vlgmr.msra.gmra.mrb[112].mxu0 %v25716_v46 }
0x157e   :  { %18878 = vmatprep.mubr.f32.mxu0 %v25721_v58 }
0x1581   :  { %18879 = vmatmul.mubr.f32.gmra.mrb[114].mxu0 %v25725_v36 }
0x1582   :  { %18881 = vmatprep.mubr.f32.mxu0 %v25731_v19 }
0x1585   :  { %18882 = vmatmul.mubr.f32.gmra.mrb[116].mxu0 %v25735_v32 }
0x1586   :  { %18884 = vmatprep.mubr.f32.mxu0 %v25740_v39 }
0x1589   :  { %18885 = vmatmul.mubr.f32.gmra.mrb[118].mxu0 %v25743_v45 }
0x1630   :  { %v18761_v43 = vpop.f32.mrb[104].mxu0 }
0x1631   :  { %v25901_v15 = vmul.f32 0.17677669, %v18761_v43  ;;  %v8669_v48 = vpop.f32.mrb[105].mxu0  ;;  %v22433_v43 = vld [vmem:[%s28111_s11 + $0x1] ss:$0 sm:$0xff] }
0x1632   :  { %v25903_v37 = vmul.f32 0.17677669, %v8669_v48 }
0x1633   :  { %v8719_v51 = vsel %vm2227_vm3, %v25901_v15, -inf }
0x1634   :  { %8720 = vmax.xlane.f32.xlu1 %v8719_v51  ;;  %v18764_v22 = vpop.f32.mrb[106].mxu0  ;;  %v8716_v33 = vsel %vm2227_vm3, %v25903_v37, -inf }
0x1635   :  { %v25909_v50 = vmul.f32 0.17677669, %v18764_v22  ;;  %8717 = vmax.xlane.f32.xlu0 %v8716_v33  ;;  %v8679_v2 = vpop.f32.mrb[107].mxu0 }
0x1636   :  { %v25911_v0 = vmul.f32 0.17677669, %v8679_v2 }
0x1637   :  { %v8725_v7 = vsel %vm2227_vm3, %v25909_v50, -inf }
0x1638   :  { %8726 = vmax.xlane.f32.xlu1 %v8725_v7  ;;  %v18767_v6 = vpop.f32.mrb[108].mxu0  ;;  %v8722_v54 = vsel %vm2227_vm3, %v25911_v0, -inf }
0x1639   :  { %v25917_v8 = vmul.f32 0.17677669, %v18767_v6  ;;  %8723 = vmax.xlane.f32.xlu0 %v8722_v54  ;;  %v8689_v20 = vpop.f32.mrb[109].mxu0 }
0x163a   :  { %v25919_v1 = vmul.f32 0.17677669, %v8689_v20 }
0x163b   :  { %v8731_v18 = vsel %vm2227_vm3, %v25917_v8, -inf }
0x163c   :  { %8732 = vmax.xlane.f32.xlu1 %v8731_v18  ;;  %v18770_v26 = vpop.f32.mrb[110].mxu0  ;;  %v8728_v34 = vsel %vm2227_vm3, %v25919_v1, -inf }
0x163d   :  { %v25925_v62 = vmul.f32 0.17677669, %v18770_v26  ;;  %8729 = vmax.xlane.f32.xlu0 %v8728_v34  ;;  %v8699_v57 = vpop.f32.mrb[111].mxu0 }
0x163e   :  { %v25927_v38 = vmul.f32 0.17677669, %v8699_v57 }
0x163f   :  { %v8737_v27 = vsel %vm2227_vm3, %v25925_v62, -inf }
0x1640   :  { %8738 = vmax.xlane.f32.xlu1 %v8737_v27  ;;  %v8734_v17 = vsel %vm2227_vm3, %v25927_v38, -inf }
0x1641   :  { %8735 = vmax.xlane.f32.xlu0 %v8734_v17 }
0x1650   :  { %v18877_v25 = vpop.f32.mrb[112].mxu0 }
0x1651   :  { %v9110_v48 = vadd.f32 %v22433_v43, %v18877_v25  ;;  %v9104_v51 = vpop.f32.mrb[113].mxu0 }
0x1652   :  { %v9105_v22 = vadd.f32 %v22433_v43, %v9104_v51 }
0x1654   :  { %v20899_v33 = vpack.c.bf16 %v9110_v48, %v9105_v22  ;;  %v18880_v2 = vpop.f32.mrb[114].mxu0 }
0x1655   :  { %v9120_v7 = vadd.f32 %v22433_v43, %v18880_v2  ;;  %v9114_v6 = vpop.f32.mrb[115].mxu0 }
0x1656   :  { %v9115_v54 = vadd.f32 %v22433_v43, %v9114_v6  ;;  %20901 = vmatprep.subr.msk.bf16.mxu0 %vm24272_vm6, %v20899_v33 }
0x1657   :  { %20904 = vmatpush3.bf16.xpose.msk.msra.mxu0 %vm24272_vm6, %v20899_v33 }
0x1658   :  { %v20905_v20 = vpack.c.bf16 %v9120_v7, %v9115_v54  ;;  %v18883_v18 = vpop.f32.mrb[116].mxu0 }
0x1659   :  { %v9130_v26 = vadd.f32 %v22433_v43, %v18883_v18  ;;  %v9124_v34 = vpop.f32.mrb[117].mxu0 }
0x165a   :  { %v9125_v57 = vadd.f32 %v22433_v43, %v9124_v34  ;;  %20907 = vmatprep.subr.msk.bf16.mxu0 %vm24272_vm6, %v20905_v20 }
0x165c   :  { %v20911_v27 = vpack.c.bf16 %v9130_v26, %v9125_v57  ;;  %v18886_v17 = vpop.f32.mrb[118].mxu0 }
0x165d   :  { %v9140_v25 = vadd.f32 %v22433_v43, %v18886_v17  ;;  %v9134_v48 = vpop.f32.mrb[119].mxu0 }
0x165e   :  { %v9135_v51 = vadd.f32 %v22433_v43, %v9134_v48 }
0x165f   :  { %20910 = vmatpush3.bf16.xpose.msk.msra.mxu0 %vm24272_vm6, %v20905_v20 }
0x1660   :  { %v20917_v22 = vpack.c.bf16 %v9140_v25, %v9135_v51  ;;  %20913 = vmatprep.subr.msk.bf16.mxu0 %vm24272_vm6, %v20911_v27 }
0x1667   :  { %20916 = vmatpush3.bf16.xpose.msk.msra.mxu0 %vm24272_vm6, %v20911_v27 }
0x1668   :  { %20919 = vmatprep.subr.msk.bf16.mxu0 %vm24272_vm6, %v20917_v22 }
0x166f   :  { %20922 = vmatpush3.bf16.xpose.msk.msra.mxu0 %vm24272_vm6, %v20917_v22 }
0x1670   :  { %20940 = vmatprep.subr.bf16.mxu0 %v24762_v56 }
0x16c1   :  { %v8721_v33 = vpop.xlane.xlu1 %8720 }
0x16c2   :  { %v8741_v43 = vsub.f32 %v25901_v15, %v8721_v33  ;;  %v8718_v2 = vpop.xlane.xlu0 %8717 }
0x16c3   :  { %v8740_v7 = vsub.f32 %v25903_v37, %v8718_v2 }
0x16c4   :  { %v8750_v6 = vmul.f32 1.442695, %v8741_v43 }
0x16c5   :  { %v8748_v54 = vmul.f32 1.442695, %v8740_v7  ;;  %v8727_v20 = vpop.xlane.xlu1 %8726 }
0x16c6   :  { %22268 = vpow2.f32 %v8750_v6  ;;  %v8743_v18 = vsub.f32 %v25909_v50, %v8727_v20  ;;  %v8724_v26 = vpop.xlane.xlu0 %8723 }
0x16c7   :  { %22270 = vpow2.f32 %v8748_v54  ;;  %v8742_v34 = vsub.f32 %v25911_v0, %v8724_v26 }
0x16c8   :  { %v8754_v57 = vmul.f32 1.442695, %v8743_v18 }
0x16c9   :  { %v8752_v27 = vmul.f32 1.442695, %v8742_v34  ;;  %v8733_v17 = vpop.xlane.xlu1 %8732 }
0x16ca   :  { %22272 = vpow2.f32 %v8754_v57  ;;  %v8745_v25 = vsub.f32 %v25917_v8, %v8733_v17  ;;  %v8730_v15 = vpop.xlane.xlu0 %8729 }
0x16cb   :  { %22274 = vpow2.f32 %v8752_v27  ;;  %v8744_v37 = vsub.f32 %v25919_v1, %v8730_v15 }
0x16cc   :  { %v8758_v48 = vmul.f32 1.442695, %v8745_v25 }
0x16cd   :  { %v8756_v51 = vmul.f32 1.442695, %v8744_v37  ;;  %v8739_v22 = vpop.xlane.xlu1 %8738 }
0x16ce   :  { %22276 = vpow2.f32 %v8758_v48  ;;  %v8747_v50 = vsub.f32 %v25925_v62, %v8739_v22  ;;  %v8736_v33 = vpop.xlane.xlu0 %8735 }
0x16cf   :  { %22278 = vpow2.f32 %v8756_v51  ;;  %v8746_v0 = vsub.f32 %v25927_v38, %v8736_v33 }
0x16d0   :  { %v22269_v43 = vpop.eup %22268  ;;  %v8762_v2 = vmul.f32 1.442695, %v8747_v50 }
0x16d1   :  { %v22271_v7 = vpop.eup %22270  ;;  %v8760_v6 = vmul.f32 1.442695, %v8746_v0  ;;  %v8767_v8 = vsel %vm2227_vm3, %v22269_v43, 0.0 }
0x16d2   :  { %22280 = vpow2.f32 %v8762_v2  ;;  %8768 = vadd.xlane.f32.xlu1 %v8767_v8  ;;  %v8764_v1 = vsel %vm2227_vm3, %v22271_v7, 0.0 }
0x16d3   :  { %22282 = vpow2.f32 %v8760_v6  ;;  %8765 = vadd.xlane.f32.xlu0 %v8764_v1 }
0x16d4   :  { %v22273_v54 = vpop.eup %22272 }
0x16d5   :  { %v22275_v20 = vpop.eup %22274  ;;  %v8773_v62 = vsel %vm2227_vm3, %v22273_v54, 0.0 }
0x16d6   :  { %8774 = vadd.xlane.f32.xlu1 %v8773_v62  ;;  %v8770_v18 = vsel %vm2227_vm3, %v22275_v20, 0.0 }
0x16d7   :  { %8771 = vadd.xlane.f32.xlu0 %v8770_v18 }
0x16d8   :  { %v22277_v38 = vpop.eup %22276 }
0x16d9   :  { %v22279_v26 = vpop.eup %22278  ;;  %v8779_v34 = vsel %vm2227_vm3, %v22277_v38, 0.0 }
0x16da   :  { %8780 = vadd.xlane.f32.xlu1 %v8779_v34  ;;  %v8776_v57 = vsel %vm2227_vm3, %v22279_v26, 0.0 }
0x16db   :  { %8777 = vadd.xlane.f32.xlu0 %v8776_v57 }
0x16dc   :  { %v22281_v27 = vpop.eup %22280 }
0x16dd   :  { %v22283_v17 = vpop.eup %22282  ;;  %v8785_v25 = vsel %vm2227_vm3, %v22281_v27, 0.0 }
0x16de   :  { %8786 = vadd.xlane.f32.xlu1 %v8785_v25  ;;  %v8782_v15 = vsel %vm2227_vm3, %v22283_v17, 0.0  ;;  %v28422_v25 = vld [vmem:[#allocation26_spill] sm:$0xff] }
0x16df   :  { %8783 = vadd.xlane.f32.xlu0 %v8782_v15 }
0x175f   :  { %v8769_v37 = vpop.xlane.xlu1 %8768 }
0x1760   :  { %22284 = vrcp.f32 %v8769_v37  ;;  %v8766_v48 = vpop.xlane.xlu0 %8765 }
0x1761   :  { %22286 = vrcp.f32 %v8766_v48 }
0x1763   :  { %v8775_v51 = vpop.xlane.xlu1 %8774 }
0x1764   :  { %22288 = vrcp.f32 %v8775_v51  ;;  %v8772_v22 = vpop.xlane.xlu0 %8771 }
0x1765   :  { %22290 = vrcp.f32 %v8772_v22 }
0x1767   :  { %v8781_v50 = vpop.xlane.xlu1 %8780 }
0x1768   :  { %22292 = vrcp.f32 %v8781_v50  ;;  %v8778_v33 = vpop.xlane.xlu0 %8777 }
0x1769   :  { %22294 = vrcp.f32 %v8778_v33  ;;  %v28429_v33 = vld [vmem:[#allocation33_spill] sm:$0xff] }
0x176a   :  { %v22285_v0 = vpop.eup %22284 }
0x176b   :  { %v22287_v2 = vpop.eup %22286  ;;  %v8787_v6 = vpop.xlane.xlu1 %8786  ;;  %v8791_v62 = vmul.f32 %v22285_v0, %v22269_v43  ;;  %v28430_v0 = vld [vmem:[#allocation34_spill] sm:$0xff] }
0x176c   :  { %22296 = vrcp.f32 %v8787_v6  ;;  %v8784_v8 = vpop.xlane.xlu0 %8783  ;;  %v8789_v1 = vmul.f32 %v22287_v2, %v22271_v7  ;;  %v28423_v7 = vld [vmem:[#allocation27_spill] sm:$0xff]  ;;  %v28432_v6 = vld [vmem:[#allocation36_spill] sm:$0xff] }
0x176d   :  { %22298 = vrcp.f32 %v8784_v8  ;;  %v28431_v2 = vld [vmem:[#allocation35_spill] sm:$0xff]  ;;  %v28433_v8 = vld [vmem:[#allocation37_spill] sm:$0xff] }
0x176e   :  { %v22289_v18 = vpop.eup %22288  ;;  %18787 = vmatprep.mubr.msk.f32.mxu1 %vm2227_vm3, %v8789_v1  ;;  %v28434_v1 = vld [vmem:[#allocation38_spill] sm:$0xff] }
0x176f   :  { %v22291_v34 = vpop.eup %22290  ;;  %18788 = vmatmul.mubr.msk.f32.vlgmr.msra.gmra.mrb[120].mxu1 %vm2227_vm3, %v8791_v62  ;;  %v8795_v15 = vmul.f32 %v22289_v18, %v22273_v54  ;;  %v28435_v62 = vld [vmem:[#allocation39_spill] sm:$0xff]  ;;  %v28436_v18 = vld [vmem:[#allocation40_spill] sm:$0xff] }
0x1770   :  { %20806 = vmatpush3.bf16.msra.mxu1 %v28415_v52  ;;  %v8793_v57 = vmul.f32 %v22291_v34, %v22275_v20  ;;  %v28424_v20 = vld [vmem:[#allocation28_spill] sm:$0xff] }
0x1771   :  { %20808 = vmatprep.subr.bf16.mxu1 %v28422_v25 }
0x1772   :  { %v22293_v37 = vpop.eup %22292  ;;  %18790 = vmatprep.mubr.msk.f32.mxu1 %vm2227_vm3, %v8793_v57 }
0x1773   :  { %v22295_v48 = vpop.eup %22294  ;;  %18791 = vmatmul.mubr.msk.f32.gmra.mrb[122].mxu1 %vm2227_vm3, %v8795_v15  ;;  %v8799_v51 = vmul.f32 %v22293_v37, %v22277_v38  ;;  %v28425_v38 = vld [vmem:[#allocation29_spill] sm:$0xff] }
0x1774   :  { %20810 = vmatpush3.bf16.msra.mxu1 %v28422_v25  ;;  %v8797_v43 = vmul.f32 %v22295_v48, %v22279_v26  ;;  %v28426_v26 = vld [vmem:[#allocation30_spill] sm:$0xff] }
0x1775   :  { %20812 = vmatprep.subr.bf16.mxu1 %v28423_v7 }
0x1776   :  { %v22297_v22 = vpop.eup %22296  ;;  %18793 = vmatprep.mubr.msk.f32.mxu1 %vm2227_vm3, %v8797_v43 }
0x1777   :  { %v22299_v52 = vpop.eup %22298  ;;  %18794 = vmatmul.mubr.msk.f32.gmra.mrb[124].mxu1 %vm2227_vm3, %v8799_v51  ;;  %v8803_v50 = vmul.f32 %v22297_v22, %v22281_v27  ;;  %v28428_v27 = vld [vmem:[#allocation32_spill] sm:$0xff] }
0x1778   :  { %20814 = vmatpush3.bf16.msra.mxu1 %v28423_v7  ;;  %v8801_v54 = vmul.f32 %v22299_v52, %v22283_v17  ;;  %v28427_v17 = vld [vmem:[#allocation31_spill] sm:$0xff]  ;;  %v22434_v52 = vld [vmem:[%s28112_s10 + $0x1] ss:$0 sm:$0xff] }
0x1779   :  { %20816 = vmatprep.subr.bf16.mxu1 %v28424_v20 }
0x177a   :  { %18796 = vmatprep.mubr.msk.f32.mxu1 %vm2227_vm3, %v8801_v54 }
0x177b   :  { %18797 = vmatmul.mubr.msk.f32.gmra.mrb[126].mxu1 %vm2227_vm3, %v8803_v50 }
0x177c   :  { %20818 = vmatpush3.bf16.msra.mxu1 %v28424_v20  ;;  %18831 = vmatprep.mubr.f32.mxu1 %v25713_v55 }
0x177d   :  { %20820 = vmatprep.subr.bf16.mxu1 %v28425_v38 }
0x1780   :  { %20822 = vmatpush3.bf16.msra.mxu1 %v28425_v38 }
0x1781   :  { %20824 = vmatprep.subr.bf16.mxu1 %v28426_v26 }
0x1784   :  { %20826 = vmatpush3.bf16.msra.mxu1 %v28426_v26 }
0x1785   :  { %20828 = vmatprep.subr.bf16.mxu1 %v28427_v17 }
0x1788   :  { %20830 = vmatpush3.bf16.msra.mxu1 %v28427_v17 }
0x1789   :  { %20832 = vmatprep.subr.bf16.mxu1 %v28428_v27 }
0x178c   :  { %20834 = vmatpush3.bf16.msra.mxu1 %v28428_v27 }
0x178d   :  { %20868 = vmatprep.subr.bf16.mxu1 %v28429_v33 }
0x178f   :  { %18832 = vmatmul.mubr.f32.vlgmr.msra.gmra.mrb[128].mxu1 %v25716_v46 }
0x1790   :  { %18834 = vmatprep.mubr.f32.mxu1 %v25721_v58  ;;  %20870 = vmatpush3.bf16.msra.mxu1 %v28429_v33 }
0x1791   :  { %20872 = vmatprep.subr.bf16.mxu1 %v28430_v0 }
0x1793   :  { %18835 = vmatmul.mubr.f32.gmra.mrb[130].mxu1 %v25725_v36 }
0x1794   :  { %18837 = vmatprep.mubr.f32.mxu1 %v25731_v19  ;;  %20874 = vmatpush3.bf16.msra.mxu1 %v28430_v0 }
0x1795   :  { %20876 = vmatprep.subr.bf16.mxu1 %v28431_v2 }
0x1797   :  { %18838 = vmatmul.mubr.f32.gmra.mrb[132].mxu1 %v25735_v32 }
0x1798   :  { %18840 = vmatprep.mubr.f32.mxu1 %v25740_v39  ;;  %20878 = vmatpush3.bf16.msra.mxu1 %v28431_v2 }
0x1799   :  { %20880 = vmatprep.subr.bf16.mxu1 %v28432_v6 }
0x179b   :  { %18841 = vmatmul.mubr.f32.gmra.mrb[134].mxu1 %v25743_v45 }
0x179c   :  { %20882 = vmatpush3.bf16.msra.mxu1 %v28432_v6  ;;  %18919 = vmatprep.mubr.f32.mxu1 %v25713_v55 }
0x179d   :  { %20884 = vmatprep.subr.bf16.mxu1 %v28433_v8 }
0x17a0   :  { %20886 = vmatpush3.bf16.msra.mxu1 %v28433_v8 }
0x17a1   :  { %20888 = vmatprep.subr.bf16.mxu1 %v28434_v1 }
0x17a4   :  { %20890 = vmatpush3.bf16.msra.mxu1 %v28434_v1 }
0x17a5   :  { %20892 = vmatprep.subr.bf16.mxu1 %v28435_v62 }
0x17a8   :  { %20894 = vmatpush3.bf16.msra.mxu1 %v28435_v62 }
0x17a9   :  { %20896 = vmatprep.subr.bf16.mxu1 %v28436_v18 }
0x17ac   :  { %20898 = vmatpush3.bf16.msra.mxu1 %v28436_v18 }
0x17af   :  { %18920 = vmatmul.mubr.f32.vlgmr.msra.gmra.mrb[136].mxu1 %v25716_v46 }
0x17b0   :  { %18922 = vmatprep.mubr.f32.mxu1 %v25721_v58 }
0x17b3   :  { %18923 = vmatmul.mubr.f32.gmra.mrb[138].mxu1 %v25725_v36 }
0x17b4   :  { %18925 = vmatprep.mubr.f32.mxu1 %v25731_v19 }
0x17b7   :  { %18926 = vmatmul.mubr.f32.gmra.mrb[140].mxu1 %v25735_v32 }
0x17b8   :  { %18928 = vmatprep.mubr.f32.mxu1 %v25740_v39 }
0x17bb   :  { %18929 = vmatmul.mubr.f32.gmra.mrb[142].mxu1 %v25743_v45 }
0x1842   :  { %v26024_v34 = vpop.f32.mrb[120].mxu1 }
0x1843   :  { %v26026_v57 = vpop.f32.mrb[121].mxu1 }
0x1846   :  { %v26028_v25 = vpop.f32.mrb[122].mxu1 }
0x1847   :  { %v26030_v15 = vpop.f32.mrb[123].mxu1 }
0x184a   :  { %v26032_v37 = vpop.f32.mrb[124].mxu1 }
0x184b   :  { %v26034_v48 = vpop.f32.mrb[125].mxu1 }
0x184e   :  { %v26036_v43 = vpop.f32.mrb[126].mxu1 }
0x184f   :  { %v26038_v7 = vpop.f32.mrb[127].mxu1 }
0x1862   :  { %v18833_v51 = vpop.f32.mrb[128].mxu1 }
0x1863   :  { %v8999_v22 = vpop.f32.mrb[129].mxu1  ;;  %v9005_v20 = vadd.f32 %v22434_v52, %v18833_v51 }
0x1864   :  { %v9000_v54 = vadd.f32 %v22434_v52, %v8999_v22 }
0x1866   :  { %v18836_v50 = vpop.f32.mrb[130].mxu1  ;;  %18947 = vmatprep.mubr.msk.f32.mxu0 %vm5006_vm5, %v9000_v54 }
0x1867   :  { %v9009_v38 = vpop.f32.mrb[131].mxu1  ;;  %18948 = vmatmul.mubr.msk.f32.vlgmr.msra.gmra.mrb[120].mxu0 %vm5006_vm5, %v9005_v20  ;;  %v9015_v17 = vadd.f32 %v22434_v52, %v18836_v50 }
0x1868   :  { %v9010_v26 = vadd.f32 %v22434_v52, %v9009_v38  ;;  %20942 = vmatpush3.bf16.msra.mxu0 %v24762_v56 }
0x1869   :  { %20944 = vmatprep.subr.bf16.mxu0 %v24767_v4 }
0x186a   :  { %v18839_v27 = vpop.f32.mrb[132].mxu1  ;;  %18950 = vmatprep.mubr.msk.f32.mxu0 %vm5006_vm5, %v9010_v26 }
0x186b   :  { %v9019_v33 = vpop.f32.mrb[133].mxu1  ;;  %18951 = vmatmul.mubr.msk.f32.gmra.mrb[122].mxu0 %vm5006_vm5, %v9015_v17  ;;  %v9025_v2 = vadd.f32 %v22434_v52, %v18839_v27 }
0x186c   :  { %v9020_v0 = vadd.f32 %v22434_v52, %v9019_v33  ;;  %20946 = vmatpush3.bf16.msra.mxu0 %v24767_v4  ;;  %v22435_v4 = vld [vmem:[%s28113_s12 + $0x1] ss:$0 sm:$0xff] }
0x186d   :  { %20948 = vmatprep.subr.bf16.mxu0 %v24960_v63 }
0x186e   :  { %v18842_v6 = vpop.f32.mrb[134].mxu1  ;;  %18953 = vmatprep.mubr.msk.f32.mxu0 %vm5006_vm5, %v9020_v0 }
0x186f   :  { %v9029_v8 = vpop.f32.mrb[135].mxu1  ;;  %18954 = vmatmul.mubr.msk.f32.gmra.mrb[124].mxu0 %vm5006_vm5, %v9025_v2  ;;  %v9035_v1 = vadd.f32 %v22434_v52, %v18842_v6 }
0x1870   :  { %v9030_v56 = vadd.f32 %v22434_v52, %v9029_v8 }
0x1872   :  { %18956 = vmatprep.mubr.msk.f32.mxu0 %vm5006_vm5, %v9030_v56 }
0x1873   :  { %18957 = vmatmul.mubr.msk.f32.gmra.mrb[126].mxu0 %vm5006_vm5, %v9035_v1 }
0x1882   :  { %v18921_v62 = vpop.f32.mrb[136].mxu1 }
0x1883   :  { %v9215_v18 = vadd.f32 %v22435_v4, %v18921_v62  ;;  %v9209_v51 = vpop.f32.mrb[137].mxu1 }
0x1884   :  { %v9210_v22 = vadd.f32 %v22435_v4, %v9209_v51 }
0x1886   :  { %v20923_v54 = vpack.c.bf16 %v9215_v18, %v9210_v22  ;;  %v18924_v20 = vpop.f32.mrb[138].mxu1 }
0x1887   :  { %v9225_v50 = vadd.f32 %v22435_v4, %v18924_v20  ;;  %v9219_v38 = vpop.f32.mrb[139].mxu1 }
0x1888   :  { %v9220_v26 = vadd.f32 %v22435_v4, %v9219_v38  ;;  %20924 = vmatprep.subr.bf16.mxu1 %v20923_v54 }
0x1889   :  { %20926 = vmatpush3.bf16.msra.mxu1 %v20923_v54 }
0x188a   :  { %v20927_v52 = vpack.c.bf16 %v9225_v50, %v9220_v26  ;;  %v18927_v17 = vpop.f32.mrb[140].mxu1 }
0x188b   :  { %v9235_v27 = vadd.f32 %v22435_v4, %v18927_v17  ;;  %v9229_v33 = vpop.f32.mrb[141].mxu1 }
0x188c   :  { %v9230_v0 = vadd.f32 %v22435_v4, %v9229_v33  ;;  %20928 = vmatprep.subr.bf16.mxu1 %v20927_v52 }
0x188d   :  { %20930 = vmatpush3.bf16.msra.mxu1 %v20927_v52 }
0x188e   :  { %v20931_v2 = vpack.c.bf16 %v9235_v27, %v9230_v0  ;;  %v18930_v6 = vpop.f32.mrb[142].mxu1 }
0x188f   :  { %v9245_v8 = vadd.f32 %v22435_v4, %v18930_v6  ;;  %v9239_v56 = vpop.f32.mrb[143].mxu1 }
0x1890   :  { %v9240_v1 = vadd.f32 %v22435_v4, %v9239_v56  ;;  %20932 = vmatprep.subr.bf16.mxu1 %v20931_v2 }
0x1891   :  { %20934 = vmatpush3.bf16.msra.mxu1 %v20931_v2 }
0x1892   :  { %v20935_v62 = vpack.c.bf16 %v9245_v8, %v9240_v1 }
0x1894   :  { %20936 = vmatprep.subr.bf16.mxu1 %v20935_v62 }
0x1895   :  { %20938 = vmatpush3.bf16.msra.mxu1 %v20935_v62 }
0x1896   :  { %20956 = vmatprep.subr.bf16.mxu1 %v24750_v5 }
0x193a   :  { %v18949_v18 = vpop.f32.mrb[120].mxu0 }
0x193b   :  { %v9402_v51 = vmul.f32 0.17677669, %v18949_v18  ;;  %v9362_v22 = vpop.f32.mrb[121].mxu0 }
0x193c   :  { %v9401_v54 = vmul.f32 0.17677669, %v9362_v22 }
0x193d   :  { %v9412_v20 = vsel %vm2227_vm3, %v9402_v51, -inf }
0x193e   :  { %9413 = vmax.xlane.f32.xlu1 %v9412_v20  ;;  %v18952_v50 = vpop.f32.mrb[122].mxu0  ;;  %v9409_v38 = vsel %vm2227_vm3, %v9401_v54, -inf }
0x193f   :  { %v9404_v26 = vmul.f32 0.17677669, %v18952_v50  ;;  %9410 = vmax.xlane.f32.xlu0 %v9409_v38  ;;  %v9372_v4 = vpop.f32.mrb[123].mxu0 }
0x1940   :  { %v9403_v52 = vmul.f32 0.17677669, %v9372_v4 }
0x1941   :  { %v9418_v17 = vsel %vm2227_vm3, %v9404_v26, -inf }
0x1942   :  { %9419 = vmax.xlane.f32.xlu1 %v9418_v17  ;;  %v18955_v27 = vpop.f32.mrb[124].mxu0  ;;  %v9415_v33 = vsel %vm2227_vm3, %v9403_v52, -inf }
0x1943   :  { %v9406_v0 = vmul.f32 0.17677669, %v18955_v27  ;;  %9416 = vmax.xlane.f32.xlu0 %v9415_v33  ;;  %v9382_v2 = vpop.f32.mrb[125].mxu0 }
0x1944   :  { %v9405_v6 = vmul.f32 0.17677669, %v9382_v2 }
0x1945   :  { %v9424_v8 = vsel %vm2227_vm3, %v9406_v0, -inf }
0x1946   :  { %9425 = vmax.xlane.f32.xlu1 %v9424_v8  ;;  %v18958_v56 = vpop.f32.mrb[126].mxu0  ;;  %v9421_v1 = vsel %vm2227_vm3, %v9405_v6, -inf }
0x1947   :  { %v9408_v62 = vmul.f32 0.17677669, %v18958_v56  ;;  %9422 = vmax.xlane.f32.xlu0 %v9421_v1  ;;  %v9392_v18 = vpop.f32.mrb[127].mxu0 }
0x1948   :  { %v9407_v22 = vmul.f32 0.17677669, %v9392_v18 }
0x1949   :  { %v9430_v20 = vsel %vm2227_vm3, %v9408_v62, -inf }
0x194a   :  { %9431 = vmax.xlane.f32.xlu1 %v9430_v20  ;;  %v9427_v50 = vsel %vm2227_vm3, %v9407_v22, -inf }
0x194b   :  { %9428 = vmax.xlane.f32.xlu0 %v9427_v50 }
0x19cb   :  { %v9414_v38 = vpop.xlane.xlu1 %9413 }
0x19cc   :  { %v9434_v4 = vsub.f32 %v9402_v51, %v9414_v38  ;;  %v9411_v17 = vpop.xlane.xlu0 %9410 }
0x19cd   :  { %v9433_v27 = vsub.f32 %v9401_v54, %v9411_v17 }
0x19ce   :  { %v9443_v33 = vmul.f32 1.442695, %v9434_v4 }
0x19cf   :  { %v9441_v2 = vmul.f32 1.442695, %v9433_v27  ;;  %v9420_v8 = vpop.xlane.xlu1 %9419 }
0x19d0   :  { %22300 = vpow2.f32 %v9443_v33  ;;  %v9436_v3 = vsub.f32 %v9404_v26, %v9420_v8  ;;  %v9417_v53 = vpop.xlane.xlu0 %9416 }
0x19d1   :  { %22302 = vpow2.f32 %v9441_v2  ;;  %v9435_v56 = vsub.f32 %v9403_v52, %v9417_v53 }
0x19d2   :  { %v9447_v1 = vmul.f32 1.442695, %v9436_v3 }
0x19d3   :  { %v9445_v18 = vmul.f32 1.442695, %v9435_v56  ;;  %v9426_v61 = vpop.xlane.xlu1 %9425 }
0x19d4   :  { %22304 = vpow2.f32 %v9447_v1  ;;  %v9438_v20 = vsub.f32 %v9406_v0, %v9426_v61  ;;  %v9423_v60 = vpop.xlane.xlu0 %9422 }
0x19d5   :  { %22306 = vpow2.f32 %v9445_v18  ;;  %v9437_v50 = vsub.f32 %v9405_v6, %v9423_v60 }
0x19d6   :  { %v9451_v47 = vmul.f32 1.442695, %v9438_v20 }
0x19d7   :  { %v9449_v51 = vmul.f32 1.442695, %v9437_v50  ;;  %v9432_v38 = vpop.xlane.xlu1 %9431 }
0x19d8   :  { %22308 = vpow2.f32 %v9451_v47  ;;  %v9440_v54 = vsub.f32 %v9408_v62, %v9432_v38  ;;  %v9429_v4 = vpop.xlane.xlu0 %9428 }
0x19d9   :  { %22310 = vpow2.f32 %v9449_v51  ;;  %v9439_v17 = vsub.f32 %v9407_v22, %v9429_v4 }
0x19da   :  { %v22301_v26 = vpop.eup %22300  ;;  %v9455_v27 = vmul.f32 1.442695, %v9440_v54 }
0x19db   :  { %v22303_v33 = vpop.eup %22302  ;;  %v9453_v53 = vmul.f32 1.442695, %v9439_v17  ;;  %v9460_v3 = vsel %vm2227_vm3, %v22301_v26, 0.0 }
0x19dc   :  { %22312 = vpow2.f32 %v9455_v27  ;;  %9461 = vadd.xlane.f32.xlu1 %v9460_v3  ;;  %v9457_v61 = vsel %vm2227_vm3, %v22303_v33, 0.0 }
0x19dd   :  { %22314 = vpow2.f32 %v9453_v53  ;;  %9458 = vadd.xlane.f32.xlu0 %v9457_v61 }
0x19de   :  { %v22305_v60 = vpop.eup %22304 }
0x19df   :  { %v22307_v52 = vpop.eup %22306  ;;  %v9466_v47 = vsel %vm2227_vm3, %v22305_v60, 0.0 }
0x19e0   :  { %9467 = vadd.xlane.f32.xlu1 %v9466_v47  ;;  %v9463_v0 = vsel %vm2227_vm3, %v22307_v52, 0.0 }
0x19e1   :  { %9464 = vadd.xlane.f32.xlu0 %v9463_v0 }
0x19e2   :  { %v22309_v6 = vpop.eup %22308 }
0x19e3   :  { %v22311_v62 = vpop.eup %22310  ;;  %v9472_v22 = vsel %vm2227_vm3, %v22309_v6, 0.0 }
0x19e4   :  { %9473 = vadd.xlane.f32.xlu1 %v9472_v22  ;;  %v9469_v2 = vsel %vm2227_vm3, %v22311_v62, 0.0 }
0x19e5   :  { %9470 = vadd.xlane.f32.xlu0 %v9469_v2 }
0x19e6   :  { %v22313_v8 = vpop.eup %22312 }
0x19e7   :  { %v22315_v56 = vpop.eup %22314  ;;  %v9478_v1 = vsel %vm2227_vm3, %v22313_v8, 0.0 }
0x19e8   :  { %9479 = vadd.xlane.f32.xlu1 %v9478_v1  ;;  %v9475_v18 = vsel %vm2227_vm3, %v22315_v56, 0.0 }
0x19e9   :  { %9476 = vadd.xlane.f32.xlu0 %v9475_v18 }
0x1a69   :  { %v9462_v20 = vpop.xlane.xlu1 %9461 }
0x1a6a   :  { %22316 = vrcp.f32 %v9462_v20  ;;  %v9459_v50 = vpop.xlane.xlu0 %9458 }
0x1a6b   :  { %22318 = vrcp.f32 %v9459_v50 }
0x1a6d   :  { %v9468_v51 = vpop.xlane.xlu1 %9467 }
0x1a6e   :  { %22320 = vrcp.f32 %v9468_v51  ;;  %v9465_v38 = vpop.xlane.xlu0 %9464 }
0x1a6f   :  { %22322 = vrcp.f32 %v9465_v38  ;;  %v28444_v38 = vld [vmem:[#allocation54_spill] sm:$0xff] }
0x1a71   :  { %v9474_v54 = vpop.xlane.xlu1 %9473 }
0x1a72   :  { %22324 = vrcp.f32 %v9474_v54  ;;  %v9471_v4 = vpop.xlane.xlu0 %9470  ;;  %v28445_v54 = vld [vmem:[#allocation55_spill] sm:$0xff] }
0x1a73   :  { %22326 = vrcp.f32 %v9471_v4  ;;  %v28446_v4 = vld [vmem:[#allocation56_spill] sm:$0xff] }
0x1a74   :  { %v22317_v17 = vpop.eup %22316 }
0x1a75   :  { %v22319_v27 = vpop.eup %22318  ;;  %v9480_v53 = vpop.xlane.xlu1 %9479  ;;  %v9484_v47 = vmul.f32 %v22317_v17, %v22301_v26  ;;  %v28447_v17 = vld [vmem:[#allocation57_spill] sm:$0xff] }
0x1a76   :  { %22328 = vrcp.f32 %v9480_v53  ;;  %v9477_v3 = vpop.xlane.xlu0 %9476  ;;  %v9482_v61 = vmul.f32 %v22319_v27, %v22303_v33  ;;  %v28448_v27 = vld [vmem:[#allocation58_spill] sm:$0xff]  ;;  %v28449_v53 = vld [vmem:[#allocation59_spill] sm:$0xff] }
0x1a77   :  { %22330 = vrcp.f32 %v9477_v3 }
0x1a78   :  { %v22321_v0 = vpop.eup %22320  ;;  %18975 = vmatprep.mubr.msk.f32.mxu1 %vm2227_vm3, %v9482_v61 }
0x1a79   :  { %v22323_v22 = vpop.eup %22322  ;;  %18976 = vmatmul.mubr.msk.f32.vlgmr.msra.gmra.mrb[144].mxu1 %vm2227_vm3, %v9484_v47  ;;  %v9488_v1 = vmul.f32 %v22321_v0, %v22305_v60 }
0x1a7a   :  { %20958 = vmatpush3.bf16.msra.mxu1 %v24750_v5  ;;  %v9486_v2 = vmul.f32 %v22323_v22, %v22307_v52  ;;  %v28437_v52 = vld [vmem:[#allocation47_spill] sm:$0xff]  ;;  %v28450_v22 = vld [vmem:[#allocation60_spill] sm:$0xff] }
0x1a7b   :  { %20960 = vmatprep.subr.bf16.mxu1 %v24780_v29 }
0x1a7c   :  { %v22325_v18 = vpop.eup %22324  ;;  %18978 = vmatprep.mubr.msk.f32.mxu1 %vm2227_vm3, %v9486_v2 }
0x1a7d   :  { %v22327_v20 = vpop.eup %22326  ;;  %18979 = vmatmul.mubr.msk.f32.gmra.mrb[146].mxu1 %vm2227_vm3, %v9488_v1  ;;  %v9492_v33 = vmul.f32 %v22325_v18, %v22309_v6  ;;  %v28439_v6 = vld [vmem:[#allocation49_spill] sm:$0xff] }
0x1a7e   :  { %20962 = vmatpush3.bf16.msra.mxu1 %v24780_v29  ;;  %v9490_v26 = vmul.f32 %v22327_v20, %v22311_v62  ;;  %v28438_v29 = vld [vmem:[#allocation48_spill] sm:$0xff]  ;;  %v28441_v62 = vld [vmem:[#allocation51_spill] sm:$0xff]  ;;  %v28451_v18 = vld [vmem:[#allocation61_spill] sm:$0xff] }
0x1a7f   :  { %20964 = vmatprep.subr.bf16.mxu1 %v24793_v28 }
0x1a80   :  { %v22329_v50 = vpop.eup %22328  ;;  %18981 = vmatprep.mubr.msk.f32.mxu1 %vm2227_vm3, %v9490_v26  ;;  %v28452_v26 = vld [vmem:[#allocation62_spill] sm:$0xff] }
0x1a81   :  { %v22331_v5 = vpop.eup %22330  ;;  %18982 = vmatmul.mubr.msk.f32.gmra.mrb[148].mxu1 %vm2227_vm3, %v9492_v33  ;;  %v9496_v51 = vmul.f32 %v22329_v50, %v22313_v8  ;;  %v28442_v8 = vld [vmem:[#allocation52_spill] sm:$0xff]  ;;  %v28453_v33 = vld [vmem:[#allocation63_spill] sm:$0xff] }
0x1a82   :  { %20966 = vmatpush3.bf16.msra.mxu1 %v24793_v28  ;;  %v9494_v60 = vmul.f32 %v22331_v5, %v22315_v56  ;;  %v28440_v28 = vld [vmem:[#allocation50_spill] sm:$0xff]  ;;  %v28443_v56 = vld [vmem:[#allocation53_spill] sm:$0xff]  ;;  %v28457_v5 = vld [vmem:[#allocation67_spill] sm:$0xff] }
0x1a83   :  { %20968 = vmatprep.subr.bf16.mxu1 %v28437_v52 }
0x1a84   :  { %18984 = vmatprep.mubr.msk.f32.mxu1 %vm2227_vm3, %v9494_v60 }
0x1a85   :  { %18985 = vmatmul.mubr.msk.f32.gmra.mrb[150].mxu1 %vm2227_vm3, %v9496_v51  ;;  %v28458_v51 = vld [vmem:[#allocation68_spill] sm:$0xff] }
0x1a86   :  { %20970 = vmatpush3.bf16.msra.mxu1 %v28437_v52  ;;  %19059 = vmatprep.mubr.f32.mxu1 %v25713_v55 }
0x1a87   :  { %20972 = vmatprep.subr.bf16.mxu1 %v28438_v29 }
0x1a8a   :  { %20974 = vmatpush3.bf16.msra.mxu1 %v28438_v29  ;;  %v26197_v29 = vld [vmem:[%s28112_s10 + $0x2] ss:$0 sm:$0xff] }
0x1a8b   :  { %20976 = vmatprep.subr.bf16.mxu1 %v28439_v6 }
0x1a8e   :  { %20978 = vmatpush3.bf16.msra.mxu1 %v28439_v6 }
0x1a8f   :  { %20980 = vmatprep.subr.bf16.mxu1 %v28440_v28 }
0x1a92   :  { %20982 = vmatpush3.bf16.msra.mxu1 %v28440_v28 }
0x1a93   :  { %20984 = vmatprep.subr.bf16.mxu1 %v28441_v62 }
0x1a96   :  { %20986 = vmatpush3.bf16.msra.mxu1 %v28441_v62  ;;  %v22437_v62 = vld [vmem:[%s28113_s12 + $0x2] ss:$0 sm:$0xff] }
0x1a97   :  { %21020 = vmatprep.subr.bf16.mxu1 %v28442_v8 }
0x1a99   :  { %19060 = vmatmul.mubr.f32.vlgmr.msra.gmra.mrb[152].mxu1 %v25716_v46 }
0x1a9a   :  { %19062 = vmatprep.mubr.f32.mxu1 %v25721_v58  ;;  %21022 = vmatpush3.bf16.msra.mxu1 %v28442_v8 }
0x1a9b   :  { %21024 = vmatprep.subr.bf16.mxu1 %v28443_v56 }
0x1a9d   :  { %19063 = vmatmul.mubr.f32.gmra.mrb[154].mxu1 %v25725_v36 }
0x1a9e   :  { %19065 = vmatprep.mubr.f32.mxu1 %v25731_v19  ;;  %21026 = vmatpush3.bf16.msra.mxu1 %v28443_v56 }
0x1a9f   :  { %21028 = vmatprep.subr.bf16.mxu1 %v28444_v38 }
0x1aa1   :  { %19066 = vmatmul.mubr.f32.gmra.mrb[156].mxu1 %v25735_v32 }
0x1aa2   :  { %19068 = vmatprep.mubr.f32.mxu1 %v25740_v39  ;;  %21030 = vmatpush3.bf16.msra.mxu1 %v28444_v38 }
0x1aa3   :  { %21032 = vmatprep.subr.bf16.mxu1 %v28445_v54 }
0x1aa5   :  { %19069 = vmatmul.mubr.f32.gmra.mrb[158].mxu1 %v25743_v45 }
0x1aa6   :  { %21034 = vmatpush3.bf16.msra.mxu1 %v28445_v54  ;;  %19147 = vmatprep.mubr.f32.mxu1 %v25713_v55 }
0x1aa7   :  { %21036 = vmatprep.subr.bf16.mxu1 %v28446_v4 }
0x1aaa   :  { %21038 = vmatpush3.bf16.msra.mxu1 %v28446_v4 }
0x1aab   :  { %21040 = vmatprep.subr.bf16.mxu1 %v28447_v17 }
0x1aae   :  { %21042 = vmatpush3.bf16.msra.mxu1 %v28447_v17 }
0x1aaf   :  { %21044 = vmatprep.subr.bf16.mxu1 %v28448_v27 }
0x1ab2   :  { %21046 = vmatpush3.bf16.msra.mxu1 %v28448_v27 }
0x1ab3   :  { %21048 = vmatprep.subr.bf16.mxu1 %v28449_v53 }
0x1ab6   :  { %21050 = vmatpush3.bf16.msra.mxu1 %v28449_v53 }
0x1ab9   :  { %19148 = vmatmul.mubr.f32.vlgmr.msra.gmra.mrb[160].mxu1 %v25716_v46 }
0x1aba   :  { %19150 = vmatprep.mubr.f32.mxu1 %v25721_v58 }
0x1abd   :  { %19151 = vmatmul.mubr.f32.gmra.mrb[162].mxu1 %v25725_v36 }
0x1abe   :  { %19153 = vmatprep.mubr.f32.mxu1 %v25731_v19 }
0x1ac1   :  { %19154 = vmatmul.mubr.f32.gmra.mrb[164].mxu1 %v25735_v32 }
0x1ac2   :  { %19156 = vmatprep.mubr.f32.mxu1 %v25740_v39 }
0x1ac5   :  { %19157 = vmatmul.mubr.f32.gmra.mrb[166].mxu1 %v25743_v45 }
0x1b4c   :  { %v18977_v3 = vpop.f32.mrb[144].mxu1 }
0x1b4d   :  { %v9587_v61 = vpop.f32.mrb[145].mxu1 }
0x1b4e   :  { %18995 = vmatprep.mubr.msk.f32.mxu0 %vm5006_vm5, %v9587_v61 }
0x1b4f   :  { %18996 = vmatmul.mubr.msk.f32.vlgmr.msra.gmra.mrb[128].mxu0 %vm5006_vm5, %v18977_v3 }
0x1b50   :  { %20950 = vmatpush3.bf16.msra.mxu0 %v24960_v63  ;;  %v18980_v47 = vpop.f32.mrb[146].mxu1 }
0x1b51   :  { %v9597_v0 = vpop.f32.mrb[147].mxu1  ;;  %20952 = vmatprep.subr.bf16.mxu0 %v28450_v22 }
0x1b52   :  { %18998 = vmatprep.mubr.msk.f32.mxu0 %vm5006_vm5, %v9597_v0 }
0x1b53   :  { %18999 = vmatmul.mubr.msk.f32.gmra.mrb[130].mxu0 %vm5006_vm5, %v18980_v47 }
0x1b54   :  { %v18983_v2 = vpop.f32.mrb[148].mxu1  ;;  %20954 = vmatpush3.bf16.msra.mxu0 %v28450_v22 }
0x1b55   :  { %v9607_v1 = vpop.f32.mrb[149].mxu1  ;;  %20988 = vmatprep.subr.bf16.mxu0 %v28451_v18 }
0x1b56   :  { %19001 = vmatprep.mubr.msk.f32.mxu0 %vm5006_vm5, %v9607_v1 }
0x1b57   :  { %19002 = vmatmul.mubr.msk.f32.gmra.mrb[132].mxu0 %vm5006_vm5, %v18983_v2 }
0x1b58   :  { %v18986_v20 = vpop.f32.mrb[150].mxu1 }
0x1b59   :  { %v9617_v63 = vpop.f32.mrb[151].mxu1 }
0x1b5a   :  { %19004 = vmatprep.mubr.msk.f32.mxu0 %vm5006_vm5, %v9617_v63 }
0x1b5b   :  { %19005 = vmatmul.mubr.msk.f32.gmra.mrb[134].mxu0 %vm5006_vm5, %v18986_v20 }
0x1b5c   :  { %19015 = vmatprep.mubr.msk.f32.mxu0 %vm5006_vm5, %v26026_v57 }
0x1b5f   :  { %19016 = vmatmul.mubr.msk.f32.vlgmr.msra.gmra.mrb[128].mxu0 %vm5006_vm5, %v26024_v34  ;;  %v28454_v34 = vld [vmem:[#allocation64_spill] sm:$0xff] }
0x1b60   :  { %20990 = vmatpush3.bf16.msra.mxu0 %v28451_v18  ;;  %19018 = vmatprep.mubr.msk.f32.mxu0 %vm5006_vm5, %v26030_v15  ;;  %v28455_v15 = vld [vmem:[#allocation65_spill] sm:$0xff] }
0x1b61   :  { %20992 = vmatprep.subr.bf16.mxu0 %v28452_v26 }
0x1b63   :  { %19019 = vmatmul.mubr.msk.f32.gmra.mrb[130].mxu0 %vm5006_vm5, %v26028_v25 }
0x1b64   :  { %20994 = vmatpush3.bf16.msra.mxu0 %v28452_v26  ;;  %19021 = vmatprep.mubr.msk.f32.mxu0 %vm5006_vm5, %v26034_v48 }
0x1b65   :  { %20996 = vmatprep.subr.bf16.mxu0 %v28453_v33 }
0x1b67   :  { %19022 = vmatmul.mubr.msk.f32.gmra.mrb[132].mxu0 %vm5006_vm5, %v26032_v37 }
0x1b68   :  { %20998 = vmatpush3.bf16.msra.mxu0 %v28453_v33  ;;  %19024 = vmatprep.mubr.msk.f32.mxu0 %vm5006_vm5, %v26038_v7  ;;  %v28456_v7 = vld [vmem:[#allocation66_spill] sm:$0xff] }
0x1b69   :  { %21000 = vmatprep.subr.bf16.mxu0 %v28454_v34 }
0x1b6b   :  { %19025 = vmatmul.mubr.msk.f32.gmra.mrb[134].mxu0 %vm5006_vm5, %v26036_v43 }
0x1b6c   :  { %v26164_v57 = vpop.f32.mrb[152].mxu1  ;;  %21002 = vmatpush3.bf16.msra.mxu0 %v28454_v34  ;;  %19103 = vmatprep.mubr.f32.mxu0 %v25713_v55  ;;  %v22438_v34 = vld [vmem:[%s28111_s11 + $0x2] ss:$0 sm:$0xff] }
0x1b6d   :  { %v9950_v25 = vpop.f32.mrb[153].mxu1  ;;  %21004 = vmatprep.subr.bf16.mxu0 %v28455_v15 }
0x1b6e   :  { %v9951_v6 = vadd.f32 %v26197_v29, %v9950_v25 }
0x1b70   :  { %v26169_v37 = vpop.f32.mrb[154].mxu1  ;;  %21006 = vmatpush3.bf16.msra.mxu0 %v28455_v15 }
0x1b71   :  { %v26172_v48 = vpop.f32.mrb[155].mxu1  ;;  %21008 = vmatprep.subr.bf16.mxu0 %v28456_v7 }
0x1b74   :  { %v26175_v50 = vpop.f32.mrb[156].mxu1  ;;  %21010 = vmatpush3.bf16.msra.mxu0 %v28456_v7 }
0x1b75   :  { %v26178_v43 = vpop.f32.mrb[157].mxu1  ;;  %21012 = vmatprep.subr.bf16.mxu0 %v28457_v5 }
0x1b78   :  { %v26181_v60 = vpop.f32.mrb[158].mxu1  ;;  %21014 = vmatpush3.bf16.msra.mxu0 %v28457_v5 }
0x1b79   :  { %v26184_v52 = vpop.f32.mrb[159].mxu1  ;;  %21016 = vmatprep.subr.bf16.mxu0 %v28458_v51 }
0x1b7c   :  { %21018 = vmatpush3.bf16.msra.mxu0 %v28458_v51 }
0x1b7f   :  { %19104 = vmatmul.mubr.f32.vlgmr.msra.gmra.mrb[136].mxu0 %v25716_v46 }
0x1b80   :  { %19106 = vmatprep.mubr.f32.mxu0 %v25721_v58 }
0x1b83   :  { %19107 = vmatmul.mubr.f32.gmra.mrb[138].mxu0 %v25725_v36 }
0x1b84   :  { %19109 = vmatprep.mubr.f32.mxu0 %v25731_v19 }
0x1b87   :  { %19110 = vmatmul.mubr.f32.gmra.mrb[140].mxu0 %v25735_v32 }
0x1b88   :  { %19112 = vmatprep.mubr.f32.mxu0 %v25740_v39 }
0x1b8b   :  { %19113 = vmatmul.mubr.f32.gmra.mrb[142].mxu0 %v25743_v45 }
0x1b8c   :  { %v19149_v28 = vpop.f32.mrb[160].mxu1  ;;  %19175 = vmatprep.mubr.msk.f32.mxu0 %vm5006_vm5, %v9951_v6 }
0x1b8d   :  { %v10166_v8 = vadd.f32 %v22437_v62, %v19149_v28  ;;  %v10160_v56 = vpop.f32.mrb[161].mxu1 }
0x1b8e   :  { %v10161_v38 = vadd.f32 %v22437_v62, %v10160_v56 }
0x1b90   :  { %v21075_v54 = vpack.c.bf16 %v10166_v8, %v10161_v38  ;;  %v19152_v4 = vpop.f32.mrb[162].mxu1 }
0x1b91   :  { %v10176_v17 = vadd.f32 %v22437_v62, %v19152_v4  ;;  %v10170_v27 = vpop.f32.mrb[163].mxu1 }
0x1b92   :  { %v10171_v53 = vadd.f32 %v22437_v62, %v10170_v27  ;;  %21076 = vmatprep.subr.bf16.mxu1 %v21075_v54 }
0x1b93   :  { %21078 = vmatpush3.bf16.msra.mxu1 %v21075_v54 }
0x1b94   :  { %v21079_v3 = vpack.c.bf16 %v10176_v17, %v10171_v53  ;;  %v19155_v61 = vpop.f32.mrb[164].mxu1 }
0x1b95   :  { %v10186_v47 = vadd.f32 %v22437_v62, %v19155_v61  ;;  %v10180_v0 = vpop.f32.mrb[165].mxu1 }
0x1b96   :  { %v10181_v22 = vadd.f32 %v22437_v62, %v10180_v0  ;;  %21080 = vmatprep.subr.bf16.mxu1 %v21079_v3  ;;  %v9956_v0 = vadd.f32 %v26197_v29, %v26164_v57  ;;  %v9976_v57 = vadd.f32 %v26197_v29, %v26175_v50 }
0x1b97   :  { %21082 = vmatpush3.bf16.msra.mxu1 %v21079_v3 }
0x1b98   :  { %v21083_v2 = vpack.c.bf16 %v10186_v47, %v10181_v22  ;;  %v19158_v1 = vpop.f32.mrb[166].mxu1  ;;  %v9961_v22 = vadd.f32 %v26197_v29, %v26172_v48 }
0x1b99   :  { %v10196_v18 = vadd.f32 %v22437_v62, %v19158_v1  ;;  %v10190_v20 = vpop.f32.mrb[167].mxu1  ;;  %v9971_v1 = vadd.f32 %v26197_v29, %v26178_v43 }
0x1b9a   :  { %v10191_v63 = vadd.f32 %v22437_v62, %v10190_v20  ;;  %21084 = vmatprep.subr.bf16.mxu1 %v21083_v2 }
0x1b9b   :  { %21086 = vmatpush3.bf16.msra.mxu1 %v21083_v2  ;;  %v9966_v2 = vadd.f32 %v26197_v29, %v26169_v37  ;;  %v9986_v37 = vadd.f32 %v26197_v29, %v26181_v60 }
0x1b9c   :  { %v21087_v26 = vpack.c.bf16 %v10196_v18, %v10191_v63 }
0x1b9e   :  { %21088 = vmatprep.subr.bf16.mxu1 %v21087_v26 }
0x1b9f   :  { %21090 = vmatpush3.bf16.msra.mxu1 %v21087_v26 }
0x1ba0   :  { %21100 = vmatprep.subr.bf16.mxu1 %v25187_v59 }
0x1c52   :  { %v19105_v33 = vpop.f32.mrb[136].mxu0 }
0x1c53   :  { %v10061_v25 = vadd.f32 %v22438_v34, %v19105_v33  ;;  %v10055_v15 = vpop.f32.mrb[137].mxu0 }
0x1c54   :  { %v10056_v7 = vadd.f32 %v22438_v34, %v10055_v15 }
0x1c56   :  { %v21051_v5 = vpack.c.bf16 %v10061_v25, %v10056_v7  ;;  %v19108_v51 = vpop.f32.mrb[138].mxu0 }
0x1c57   :  { %v10071_v6 = vadd.f32 %v22438_v34, %v19108_v51  ;;  %v10065_v28 = vpop.f32.mrb[139].mxu0 }
0x1c58   :  { %v10066_v62 = vadd.f32 %v22438_v34, %v10065_v28  ;;  %21053 = vmatprep.subr.msk.bf16.mxu0 %vm24272_vm6, %v21051_v5 }
0x1c59   :  { %21056 = vmatpush3.bf16.xpose.msk.msra.mxu0 %vm24272_vm6, %v21051_v5 }
0x1c5a   :  { %v21057_v8 = vpack.c.bf16 %v10071_v6, %v10066_v62  ;;  %v19111_v56 = vpop.f32.mrb[140].mxu0 }
0x1c5b   :  { %v10081_v38 = vadd.f32 %v22438_v34, %v19111_v56  ;;  %v10075_v54 = vpop.f32.mrb[141].mxu0 }
0x1c5c   :  { %v10076_v4 = vadd.f32 %v22438_v34, %v10075_v54  ;;  %21059 = vmatprep.subr.msk.bf16.mxu0 %vm24272_vm6, %v21057_v8 }
0x1c5e   :  { %v21063_v17 = vpack.c.bf16 %v10081_v38, %v10076_v4  ;;  %v19114_v27 = vpop.f32.mrb[142].mxu0 }
0x1c5f   :  { %v10091_v53 = vadd.f32 %v22438_v34, %v19114_v27  ;;  %v10085_v3 = vpop.f32.mrb[143].mxu0 }
0x1c60   :  { %v10086_v61 = vadd.f32 %v22438_v34, %v10085_v3 }
0x1c61   :  { %21062 = vmatpush3.bf16.xpose.msk.msra.mxu0 %vm24272_vm6, %v21057_v8 }
0x1c62   :  { %v21069_v47 = vpack.c.bf16 %v10091_v53, %v10086_v61  ;;  %21065 = vmatprep.subr.msk.bf16.mxu0 %vm24272_vm6, %v21063_v17 }
0x1c69   :  { %21068 = vmatpush3.bf16.xpose.msk.msra.mxu0 %vm24272_vm6, %v21063_v17 }
0x1c6a   :  { %21071 = vmatprep.subr.msk.bf16.mxu0 %vm24272_vm6, %v21069_v47 }
0x1c71   :  { %21074 = vmatpush3.bf16.xpose.msk.msra.mxu0 %vm24272_vm6, %v21069_v47 }
0x1c72   :  { %21092 = vmatprep.subr.bf16.mxu0 %v25199_v16 }
0x1c78   :  { %19176 = vmatmul.mubr.msk.f32.vlgmr.msra.gmra.mrb[144].mxu0 %vm5006_vm5, %v9956_v0 }
0x1c79   :  { %19178 = vmatprep.mubr.msk.f32.mxu0 %vm5006_vm5, %v9961_v22  ;;  %21094 = vmatpush3.bf16.msra.mxu0 %v25199_v16  ;;  %v9981_v16 = vadd.f32 %v26197_v29, %v26184_v52 }
0x1c7a   :  { %21096 = vmatprep.subr.bf16.mxu0 %v25204_v12 }
0x1c7c   :  { %19179 = vmatmul.mubr.msk.f32.gmra.mrb[146].mxu0 %vm5006_vm5, %v9966_v2 }
0x1c7d   :  { %19181 = vmatprep.mubr.msk.f32.mxu0 %vm5006_vm5, %v9971_v1  ;;  %21098 = vmatpush3.bf16.msra.mxu0 %v25204_v12 }
0x1c7e   :  { %21132 = vmatprep.subr.bf16.mxu0 %v25396_v44 }
0x1c80   :  { %19182 = vmatmul.mubr.msk.f32.gmra.mrb[148].mxu0 %vm5006_vm5, %v9976_v57 }
0x1c81   :  { %19184 = vmatprep.mubr.msk.f32.mxu0 %vm5006_vm5, %v9981_v16 }
0x1c84   :  { %19185 = vmatmul.mubr.msk.f32.gmra.mrb[150].mxu0 %vm5006_vm5, %v9986_v37 }
0x1d4b   :  { %v19177_v48 = vpop.f32.mrb[144].mxu0 }
0x1d4c   :  { %v10353_v43 = vmul.f32 0.17677669, %v19177_v48  ;;  %v10313_v12 = vpop.f32.mrb[145].mxu0 }
0x1d4d   :  { %v10352_v18 = vmul.f32 0.17677669, %v10313_v12 }
0x1d4e   :  { %v10363_v50 = vsel %vm2227_vm3, %v10353_v43, -inf }
0x1d4f   :  { %10364 = vmax.xlane.f32.xlu1 %v10363_v50  ;;  %v19180_v20 = vpop.f32.mrb[146].mxu0  ;;  %v10360_v63 = vsel %vm2227_vm3, %v10352_v18, -inf }
0x1d50   :  { %v10355_v52 = vmul.f32 0.17677669, %v19180_v20  ;;  %10361 = vmax.xlane.f32.xlu0 %v10360_v63  ;;  %v10323_v26 = vpop.f32.mrb[147].mxu0 }
0x1d51   :  { %v10354_v33 = vmul.f32 0.17677669, %v10323_v26 }
0x1d52   :  { %v10369_v34 = vsel %vm2227_vm3, %v10355_v52, -inf }
0x1d53   :  { %10370 = vmax.xlane.f32.xlu1 %v10369_v34  ;;  %v19183_v60 = vpop.f32.mrb[148].mxu0  ;;  %v10366_v29 = vsel %vm2227_vm3, %v10354_v33, -inf }
0x1d54   :  { %v10357_v25 = vmul.f32 0.17677669, %v19183_v60  ;;  %10367 = vmax.xlane.f32.xlu0 %v10366_v29  ;;  %v10333_v15 = vpop.f32.mrb[149].mxu0 }
0x1d55   :  { %v10356_v7 = vmul.f32 0.17677669, %v10333_v15 }
0x1d56   :  { %v10375_v5 = vsel %vm2227_vm3, %v10357_v25, -inf }
0x1d57   :  { %10376 = vmax.xlane.f32.xlu1 %v10375_v5  ;;  %v19186_v51 = vpop.f32.mrb[150].mxu0  ;;  %v10372_v6 = vsel %vm2227_vm3, %v10356_v7, -inf }
0x1d58   :  { %v10359_v28 = vmul.f32 0.17677669, %v19186_v51  ;;  %10373 = vmax.xlane.f32.xlu0 %v10372_v6  ;;  %v10343_v62 = vpop.f32.mrb[151].mxu0 }
0x1d59   :  { %v10358_v8 = vmul.f32 0.17677669, %v10343_v62 }
0x1d5a   :  { %v10381_v56 = vsel %vm2227_vm3, %v10359_v28, -inf }
0x1d5b   :  { %10382 = vmax.xlane.f32.xlu1 %v10381_v56  ;;  %v10378_v38 = vsel %vm2227_vm3, %v10358_v8, -inf }
0x1d5c   :  { %10379 = vmax.xlane.f32.xlu0 %v10378_v38 }
0x1ddc   :  { %v10365_v54 = vpop.xlane.xlu1 %10364 }
0x1ddd   :  { %v10385_v4 = vsub.f32 %v10353_v43, %v10365_v54  ;;  %v10362_v17 = vpop.xlane.xlu0 %10361 }
0x1dde   :  { %v10384_v27 = vsub.f32 %v10352_v18, %v10362_v17 }
0x1ddf   :  { %v10394_v53 = vmul.f32 1.442695, %v10385_v4 }
0x1de0   :  { %v10392_v3 = vmul.f32 1.442695, %v10384_v27  ;;  %v10371_v61 = vpop.xlane.xlu1 %10370 }
0x1de1   :  { %22332 = vpow2.f32 %v10394_v53  ;;  %v10387_v47 = vsub.f32 %v10355_v52, %v10371_v61  ;;  %v10368_v0 = vpop.xlane.xlu0 %10367 }
0x1de2   :  { %22334 = vpow2.f32 %v10392_v3  ;;  %v10386_v22 = vsub.f32 %v10354_v33, %v10368_v0 }
0x1de3   :  { %v10398_v2 = vmul.f32 1.442695, %v10387_v47 }
0x1de4   :  { %v10396_v1 = vmul.f32 1.442695, %v10386_v22  ;;  %v10377_v57 = vpop.xlane.xlu1 %10376 }
0x1de5   :  { %22336 = vpow2.f32 %v10398_v2  ;;  %v10389_v16 = vsub.f32 %v10357_v25, %v10377_v57  ;;  %v10374_v37 = vpop.xlane.xlu0 %10373 }
0x1de6   :  { %22338 = vpow2.f32 %v10396_v1  ;;  %v10388_v48 = vsub.f32 %v10356_v7, %v10374_v37 }
0x1de7   :  { %v10402_v12 = vmul.f32 1.442695, %v10389_v16 }
0x1de8   :  { %v10400_v43 = vmul.f32 1.442695, %v10388_v48  ;;  %v10383_v50 = vpop.xlane.xlu1 %10382 }
0x1de9   :  { %22340 = vpow2.f32 %v10402_v12  ;;  %v10391_v18 = vsub.f32 %v10359_v28, %v10383_v50  ;;  %v10380_v20 = vpop.xlane.xlu0 %10379 }
0x1dea   :  { %22342 = vpow2.f32 %v10400_v43  ;;  %v10390_v63 = vsub.f32 %v10358_v8, %v10380_v20 }
0x1deb   :  { %v22333_v52 = vpop.eup %22332  ;;  %v10406_v26 = vmul.f32 1.442695, %v10391_v18 }
0x1dec   :  { %v22335_v34 = vpop.eup %22334  ;;  %v10404_v33 = vmul.f32 1.442695, %v10390_v63  ;;  %v10411_v60 = vsel %vm2227_vm3, %v22333_v52, 0.0 }
0x1ded   :  { %22344 = vpow2.f32 %v10406_v26  ;;  %10412 = vadd.xlane.f32.xlu1 %v10411_v60  ;;  %v10408_v29 = vsel %vm2227_vm3, %v22335_v34, 0.0  ;;  %v28465_v60 = vld [vmem:[#allocation75_spill] sm:$0xff] }
0x1dee   :  { %22346 = vpow2.f32 %v10404_v33  ;;  %10409 = vadd.xlane.f32.xlu0 %v10408_v29  ;;  %v28462_v33 = vld [vmem:[#allocation72_spill] sm:$0xff] }
0x1def   :  { %v22337_v25 = vpop.eup %22336  ;;  %v28466_v29 = vld [vmem:[#allocation76_spill] sm:$0xff] }
0x1df0   :  { %v22339_v15 = vpop.eup %22338  ;;  %v10417_v7 = vsel %vm2227_vm3, %v22337_v25, 0.0 }
0x1df1   :  { %10418 = vadd.xlane.f32.xlu1 %v10417_v7  ;;  %v10414_v5 = vsel %vm2227_vm3, %v22339_v15, 0.0  ;;  %v28469_v7 = vld [vmem:[#allocation79_spill] sm:$0xff] }
0x1df2   :  { %10415 = vadd.xlane.f32.xlu0 %v10414_v5 }
0x1df3   :  { %v22341_v51 = vpop.eup %22340 }
0x1df4   :  { %v22343_v6 = vpop.eup %22342  ;;  %v10423_v28 = vsel %vm2227_vm3, %v22341_v51, 0.0 }
0x1df5   :  { %10424 = vadd.xlane.f32.xlu1 %v10423_v28  ;;  %v10420_v62 = vsel %vm2227_vm3, %v22343_v6, 0.0 }
0x1df6   :  { %10421 = vadd.xlane.f32.xlu0 %v10420_v62  ;;  %v28470_v62 = vld [vmem:[#allocation80_spill] sm:$0xff] }
0x1df7   :  { %v22345_v8 = vpop.eup %22344 }
0x1df8   :  { %v22347_v56 = vpop.eup %22346  ;;  %v10429_v38 = vsel %vm2227_vm3, %v22345_v8, 0.0 }
0x1df9   :  { %10430 = vadd.xlane.f32.xlu1 %v10429_v38  ;;  %v10426_v54 = vsel %vm2227_vm3, %v22347_v56, 0.0  ;;  %v28471_v38 = vld [vmem:[#allocation81_spill] sm:$0xff] }
0x1dfa   :  { %10427 = vadd.xlane.f32.xlu0 %v10426_v54 }
0x1e7a   :  { %v10413_v4 = vpop.xlane.xlu1 %10412 }
0x1e7b   :  { %22348 = vrcp.f32 %v10413_v4  ;;  %v10410_v17 = vpop.xlane.xlu0 %10409  ;;  %v28472_v4 = vld [vmem:[#allocation82_spill] sm:$0xff] }
0x1e7c   :  { %22350 = vrcp.f32 %v10410_v17  ;;  %v28473_v17 = vld [vmem:[#allocation83_spill] sm:$0xff] }
0x1e7e   :  { %v10419_v27 = vpop.xlane.xlu1 %10418 }
0x1e7f   :  { %22352 = vrcp.f32 %v10419_v27  ;;  %v10416_v53 = vpop.xlane.xlu0 %10415  ;;  %v28474_v27 = vld [vmem:[#allocation84_spill] sm:$0xff] }
0x1e80   :  { %22354 = vrcp.f32 %v10416_v53  ;;  %v28475_v53 = vld [vmem:[#allocation85_spill] sm:$0xff] }
0x1e82   :  { %v10425_v3 = vpop.xlane.xlu1 %10424 }
0x1e83   :  { %22356 = vrcp.f32 %v10425_v3  ;;  %v10422_v61 = vpop.xlane.xlu0 %10421  ;;  %v28476_v3 = vld [vmem:[#allocation86_spill] sm:$0xff] }
0x1e84   :  { %22358 = vrcp.f32 %v10422_v61 }
0x1e85   :  { %v22349_v47 = vpop.eup %22348 }
0x1e86   :  { %v22351_v0 = vpop.eup %22350  ;;  %v10431_v22 = vpop.xlane.xlu1 %10430  ;;  %v10435_v57 = vmul.f32 %v22349_v47, %v22333_v52 }
0x1e87   :  { %22360 = vrcp.f32 %v10431_v22  ;;  %v10428_v2 = vpop.xlane.xlu0 %10427  ;;  %v10433_v1 = vmul.f32 %v22351_v0, %v22335_v34  ;;  %v28461_v34 = vld [vmem:[#allocation71_spill] sm:$0xff] }
0x1e88   :  { %22362 = vrcp.f32 %v10428_v2 }
0x1e89   :  { %v22353_v16 = vpop.eup %22352  ;;  %19203 = vmatprep.mubr.msk.f32.mxu1 %vm2227_vm3, %v10433_v1 }
0x1e8a   :  { %v22355_v37 = vpop.eup %22354  ;;  %19204 = vmatmul.mubr.msk.f32.vlgmr.msra.gmra.mrb[168].mxu1 %vm2227_vm3, %v10435_v57  ;;  %v10439_v12 = vmul.f32 %v22353_v16, %v22337_v25  ;;  %v28467_v25 = vld [vmem:[#allocation77_spill] sm:$0xff] }
0x1e8b   :  { %21102 = vmatpush3.bf16.msra.mxu1 %v25187_v59  ;;  %v10437_v48 = vmul.f32 %v22355_v37, %v22339_v15  ;;  %v28468_v15 = vld [vmem:[#allocation78_spill] sm:$0xff] }
0x1e8c   :  { %21104 = vmatprep.subr.bf16.mxu1 %v25216_v10 }
0x1e8d   :  { %v22357_v43 = vpop.eup %22356  ;;  %19206 = vmatprep.mubr.msk.f32.mxu1 %vm2227_vm3, %v10437_v48 }
0x1e8e   :  { %v22359_v50 = vpop.eup %22358  ;;  %19207 = vmatmul.mubr.msk.f32.gmra.mrb[170].mxu1 %vm2227_vm3, %v10439_v12  ;;  %v10443_v20 = vmul.f32 %v22357_v43, %v22341_v51 }
0x1e8f   :  { %21106 = vmatpush3.bf16.msra.mxu1 %v25216_v10  ;;  %v10441_v18 = vmul.f32 %v22359_v50, %v22343_v6  ;;  %v28459_v10 = vld [vmem:[#allocation69_spill] sm:$0xff] }
0x1e90   :  { %21108 = vmatprep.subr.bf16.mxu1 %v25229_v11 }
0x1e91   :  { %v22361_v63 = vpop.eup %22360  ;;  %19209 = vmatprep.mubr.msk.f32.mxu1 %vm2227_vm3, %v10441_v18 }
0x1e92   :  { %v22363_v59 = vpop.eup %22362  ;;  %19210 = vmatmul.mubr.msk.f32.gmra.mrb[172].mxu1 %vm2227_vm3, %v10443_v20  ;;  %v10447_v26 = vmul.f32 %v22361_v63, %v22345_v8 }
0x1e93   :  { %21110 = vmatpush3.bf16.msra.mxu1 %v25229_v11  ;;  %v10445_v52 = vmul.f32 %v22363_v59, %v22347_v56  ;;  %v28460_v11 = vld [vmem:[#allocation70_spill] sm:$0xff] }
0x1e94   :  { %21112 = vmatprep.subr.bf16.mxu1 %v25243_v24 }
0x1e95   :  { %19212 = vmatprep.mubr.msk.f32.mxu1 %vm2227_vm3, %v10445_v52 }
0x1e96   :  { %19213 = vmatmul.mubr.msk.f32.gmra.mrb[174].mxu1 %vm2227_vm3, %v10447_v26 }
0x1e97   :  { %21114 = vmatpush3.bf16.msra.mxu1 %v25243_v24  ;;  %19267 = vmatprep.mubr.f32.mxu1 %v25713_v55  ;;  %v28463_v24 = vld [vmem:[#allocation73_spill] sm:$0xff] }
0x1e98   :  { %21116 = vmatprep.subr.bf16.mxu1 %v25257_v40 }
0x1e9b   :  { %21118 = vmatpush3.bf16.msra.mxu1 %v25257_v40  ;;  %v28464_v40 = vld [vmem:[#allocation74_spill] sm:$0xff] }
0x1e9c   :  { %21120 = vmatprep.subr.bf16.mxu1 %v28459_v10 }
0x1e9f   :  { %21122 = vmatpush3.bf16.msra.mxu1 %v28459_v10 }
0x1ea0   :  { %21124 = vmatprep.subr.bf16.mxu1 %v28460_v11 }
0x1ea3   :  { %21126 = vmatpush3.bf16.msra.mxu1 %v28460_v11 }
0x1ea4   :  { %21128 = vmatprep.subr.bf16.mxu1 %v28461_v34 }
0x1ea7   :  { %21130 = vmatpush3.bf16.msra.mxu1 %v28461_v34 }
0x1ea8   :  { %21164 = vmatprep.subr.bf16.mxu1 %v28462_v33 }
0x1eaa   :  { %19268 = vmatmul.mubr.f32.vlgmr.msra.gmra.mrb[176].mxu1 %v25716_v46 }
0x1eab   :  { %19270 = vmatprep.mubr.f32.mxu1 %v25721_v58  ;;  %21166 = vmatpush3.bf16.msra.mxu1 %v28462_v33 }
0x1eac   :  { %21168 = vmatprep.subr.bf16.mxu1 %v28463_v24 }
0x1eae   :  { %19271 = vmatmul.mubr.f32.gmra.mrb[178].mxu1 %v25725_v36 }
0x1eaf   :  { %19273 = vmatprep.mubr.f32.mxu1 %v25731_v19  ;;  %21170 = vmatpush3.bf16.msra.mxu1 %v28463_v24 }
0x1eb0   :  { %21172 = vmatprep.subr.bf16.mxu1 %v28464_v40 }
0x1eb2   :  { %19274 = vmatmul.mubr.f32.gmra.mrb[180].mxu1 %v25735_v32 }
0x1eb3   :  { %19276 = vmatprep.mubr.f32.mxu1 %v25740_v39  ;;  %21174 = vmatpush3.bf16.msra.mxu1 %v28464_v40  ;;  %v22441_v40 = vld [vmem:[%s28111_s11 + $0x3] ss:$0 sm:$0xff] }
0x1eb4   :  { %21176 = vmatprep.subr.bf16.mxu1 %v28465_v60 }
0x1eb6   :  { %19277 = vmatmul.mubr.f32.gmra.mrb[182].mxu1 %v25743_v45 }
0x1eb7   :  { %21178 = vmatpush3.bf16.msra.mxu1 %v28465_v60  ;;  %19355 = vmatprep.mubr.f32.mxu1 %v25713_v55 }
0x1eb8   :  { %21180 = vmatprep.subr.bf16.mxu1 %v28466_v29 }
0x1ebb   :  { %21182 = vmatpush3.bf16.msra.mxu1 %v28466_v29 }
0x1ebc   :  { %21184 = vmatprep.subr.bf16.mxu1 %v28467_v25 }
0x1ebf   :  { %21186 = vmatpush3.bf16.msra.mxu1 %v28467_v25 }
0x1ec0   :  { %21188 = vmatprep.subr.bf16.mxu1 %v28468_v15 }
0x1ec3   :  { %21190 = vmatpush3.bf16.msra.mxu1 %v28468_v15 }
0x1ec4   :  { %21192 = vmatprep.subr.bf16.mxu1 %v28469_v7 }
0x1ec7   :  { %21194 = vmatpush3.bf16.msra.mxu1 %v28469_v7 }
0x1eca   :  { %19356 = vmatmul.mubr.f32.vlgmr.msra.gmra.mrb[184].mxu1 %v25716_v46 }
0x1ecb   :  { %19358 = vmatprep.mubr.f32.mxu1 %v25721_v58 }
0x1ece   :  { %19359 = vmatmul.mubr.f32.gmra.mrb[186].mxu1 %v25725_v36 }
0x1ecf   :  { %19361 = vmatprep.mubr.f32.mxu1 %v25731_v19 }
0x1ed2   :  { %19362 = vmatmul.mubr.f32.gmra.mrb[188].mxu1 %v25735_v32 }
0x1ed3   :  { %19364 = vmatprep.mubr.f32.mxu1 %v25740_v39 }
0x1ed6   :  { %19365 = vmatmul.mubr.f32.gmra.mrb[190].mxu1 %v25743_v45 }
0x1f5d   :  { %v19205_v5 = vpop.f32.mrb[168].mxu1 }
0x1f5e   :  { %v10538_v51 = vpop.f32.mrb[169].mxu1 }
0x1f5f   :  { %19223 = vmatprep.mubr.msk.f32.mxu0 %vm5006_vm5, %v10538_v51 }
0x1f60   :  { %19224 = vmatmul.mubr.msk.f32.vlgmr.msra.gmra.mrb[128].mxu0 %vm5006_vm5, %v19205_v5 }
0x1f61   :  { %21134 = vmatpush3.bf16.msra.mxu0 %v25396_v44  ;;  %v19208_v6 = vpop.f32.mrb[170].mxu1 }
0x1f62   :  { %v10548_v28 = vpop.f32.mrb[171].mxu1  ;;  %21136 = vmatprep.subr.bf16.mxu0 %v28470_v62 }
0x1f63   :  { %19226 = vmatprep.mubr.msk.f32.mxu0 %vm5006_vm5, %v10548_v28 }
0x1f64   :  { %19227 = vmatmul.mubr.msk.f32.gmra.mrb[130].mxu0 %vm5006_vm5, %v19208_v6 }
0x1f65   :  { %21138 = vmatpush3.bf16.msra.mxu0 %v28470_v62  ;;  %v19211_v8 = vpop.f32.mrb[172].mxu1 }
0x1f66   :  { %v10558_v56 = vpop.f32.mrb[173].mxu1  ;;  %21140 = vmatprep.subr.bf16.mxu0 %v28471_v38 }
0x1f67   :  { %19229 = vmatprep.mubr.msk.f32.mxu0 %vm5006_vm5, %v10558_v56 }
0x1f68   :  { %19230 = vmatmul.mubr.msk.f32.gmra.mrb[132].mxu0 %vm5006_vm5, %v19211_v8 }
0x1f69   :  { %21142 = vmatpush3.bf16.msra.mxu0 %v28471_v38  ;;  %v19214_v44 = vpop.f32.mrb[174].mxu1 }
0x1f6a   :  { %v10568_v54 = vpop.f32.mrb[175].mxu1  ;;  %21144 = vmatprep.subr.bf16.mxu0 %v28472_v4 }
0x1f6b   :  { %19232 = vmatprep.mubr.msk.f32.mxu0 %vm5006_vm5, %v10568_v54 }
0x1f6c   :  { %19233 = vmatmul.mubr.msk.f32.gmra.mrb[134].mxu0 %vm5006_vm5, %v19214_v44 }
0x1f6d   :  { %21146 = vmatpush3.bf16.msra.mxu0 %v28472_v4  ;;  %19311 = vmatprep.mubr.f32.mxu0 %v25713_v55 }
0x1f6e   :  { %21148 = vmatprep.subr.bf16.mxu0 %v28473_v17 }
0x1f71   :  { %21150 = vmatpush3.bf16.msra.mxu0 %v28473_v17 }
0x1f72   :  { %21152 = vmatprep.subr.bf16.mxu0 %v28474_v27 }
0x1f75   :  { %21154 = vmatpush3.bf16.msra.mxu0 %v28474_v27 }
0x1f76   :  { %21156 = vmatprep.subr.bf16.mxu0 %v28475_v53 }
0x1f79   :  { %21158 = vmatpush3.bf16.msra.mxu0 %v28475_v53 }
0x1f7a   :  { %21160 = vmatprep.subr.bf16.mxu0 %v28476_v3 }
0x1f7d   :  { %v26345_v61 = vpop.f32.mrb[176].mxu1  ;;  %21162 = vmatpush3.bf16.msra.mxu0 %v28476_v3 }
0x1f7e   :  { %v10780_v47 = vpop.f32.mrb[177].mxu1 }
0x1f80   :  { %19312 = vmatmul.mubr.f32.vlgmr.msra.gmra.mrb[152].mxu0 %v25716_v46 }
0x1f81   :  { %v26349_v55 = vpop.f32.mrb[178].mxu1  ;;  %19314 = vmatprep.mubr.f32.mxu0 %v25721_v58  ;;  %v26369_v58 = vld [vmem:[%s28112_s10 + $0x3] ss:$0 sm:$0xff] }
0x1f82   :  { %v26352_v0 = vpop.f32.mrb[179].mxu1  ;;  %v10786_v3 = vadd.f32 %v26369_v58, %v26345_v61 }
0x1f84   :  { %19315 = vmatmul.mubr.f32.gmra.mrb[154].mxu0 %v25725_v36  ;;  %v10781_v36 = vadd.f32 %v26369_v58, %v10780_v47  ;;  %v10791_v47 = vadd.f32 %v26369_v58, %v26352_v0 }
0x1f85   :  { %v26355_v22 = vpop.f32.mrb[180].mxu1  ;;  %19317 = vmatprep.mubr.f32.mxu0 %v25731_v19 }
0x1f86   :  { %v26358_v2 = vpop.f32.mrb[181].mxu1  ;;  %v10806_v61 = vadd.f32 %v26369_v58, %v26355_v22 }
0x1f87   :  { %v10801_v49 = vadd.f32 %v26369_v58, %v26358_v2 }
0x1f88   :  { %19318 = vmatmul.mubr.f32.gmra.mrb[156].mxu0 %v25735_v32  ;;  %v22440_v32 = vld [vmem:[%s28113_s12 + $0x3] ss:$0 sm:$0xff] }
0x1f89   :  { %v26361_v1 = vpop.f32.mrb[182].mxu1  ;;  %19320 = vmatprep.mubr.f32.mxu0 %v25740_v39 }
0x1f8a   :  { %v26364_v46 = vpop.f32.mrb[183].mxu1 }
0x1f8c   :  { %19321 = vmatmul.mubr.f32.gmra.mrb[158].mxu0 %v25743_v45 }
0x1f8d   :  { %19383 = vmatprep.mubr.msk.f32.mxu0 %vm5006_vm5, %v10781_v36  ;;  %v10796_v36 = vadd.f32 %v26369_v58, %v26349_v55  ;;  %v10816_v55 = vadd.f32 %v26369_v58, %v26361_v1 }
0x1f9d   :  { %v19357_v19 = vpop.f32.mrb[184].mxu1 }
0x1f9e   :  { %v10996_v57 = vadd.f32 %v22440_v32, %v19357_v19  ;;  %v10990_v39 = vpop.f32.mrb[185].mxu1 }
0x1f9f   :  { %v10991_v16 = vadd.f32 %v22440_v32, %v10990_v39 }
0x1fa1   :  { %v21219_v37 = vpack.c.bf16 %v10996_v57, %v10991_v16  ;;  %v19360_v48 = vpop.f32.mrb[186].mxu1 }
0x1fa2   :  { %v11006_v12 = vadd.f32 %v22440_v32, %v19360_v48  ;;  %v11000_v43 = vpop.f32.mrb[187].mxu1 }
0x1fa3   :  { %v11001_v50 = vadd.f32 %v22440_v32, %v11000_v43  ;;  %21220 = vmatprep.subr.bf16.mxu1 %v21219_v37 }
0x1fa4   :  { %21222 = vmatpush3.bf16.msra.mxu1 %v21219_v37 }
0x1fa5   :  { %v21223_v18 = vpack.c.bf16 %v11006_v12, %v11001_v50  ;;  %v19363_v20 = vpop.f32.mrb[188].mxu1 }
0x1fa6   :  { %v11016_v45 = vadd.f32 %v22440_v32, %v19363_v20  ;;  %v11010_v63 = vpop.f32.mrb[189].mxu1 }
0x1fa7   :  { %v11011_v59 = vadd.f32 %v22440_v32, %v11010_v63  ;;  %21224 = vmatprep.subr.bf16.mxu1 %v21223_v18 }
0x1fa8   :  { %21226 = vmatpush3.bf16.msra.mxu1 %v21223_v18 }
0x1fa9   :  { %v21227_v52 = vpack.c.bf16 %v11016_v45, %v11011_v59  ;;  %v19366_v26 = vpop.f32.mrb[190].mxu1 }
0x1faa   :  { %v11026_v10 = vadd.f32 %v22440_v32, %v19366_v26  ;;  %v11020_v11 = vpop.f32.mrb[191].mxu1 }
0x1fab   :  { %v11021_v34 = vadd.f32 %v22440_v32, %v11020_v11  ;;  %21228 = vmatprep.subr.bf16.mxu1 %v21227_v52 }
0x1fac   :  { %21230 = vmatpush3.bf16.msra.mxu1 %v21227_v52 }
0x1fad   :  { %v21231_v33 = vpack.c.bf16 %v11026_v10, %v11021_v34 }
0x1faf   :  { %21232 = vmatprep.subr.bf16.mxu1 %v21231_v33 }
0x1fb0   :  { %21234 = vmatpush3.bf16.msra.mxu1 %v21231_v33 }
0x2053   :  { %v19313_v24 = vpop.f32.mrb[152].mxu0 }
0x2054   :  { %v10891_v60 = vadd.f32 %v22441_v40, %v19313_v24  ;;  %v10885_v29 = vpop.f32.mrb[153].mxu0 }
0x2055   :  { %v10886_v25 = vadd.f32 %v22441_v40, %v10885_v29 }
0x2057   :  { %v21195_v15 = vpack.c.bf16 %v10891_v60, %v10886_v25  ;;  %v19316_v7 = vpop.f32.mrb[154].mxu0 }
0x2058   :  { %v10901_v5 = vadd.f32 %v22441_v40, %v19316_v7  ;;  %v10895_v51 = vpop.f32.mrb[155].mxu0 }
0x2059   :  { %v10896_v6 = vadd.f32 %v22441_v40, %v10895_v51  ;;  %21197 = vmatprep.subr.msk.bf16.mxu0 %vm24272_vm6, %v21195_v15 }
0x205a   :  { %21200 = vmatpush3.bf16.xpose.msk.msra.mxu0 %vm24272_vm6, %v21195_v15 }
0x205b   :  { %v21201_v28 = vpack.c.bf16 %v10901_v5, %v10896_v6  ;;  %v19319_v62 = vpop.f32.mrb[156].mxu0 }
0x205c   :  { %v10911_v8 = vadd.f32 %v22441_v40, %v19319_v62  ;;  %v10905_v56 = vpop.f32.mrb[157].mxu0 }
0x205d   :  { %v10906_v38 = vadd.f32 %v22441_v40, %v10905_v56  ;;  %21203 = vmatprep.subr.msk.bf16.mxu0 %vm24272_vm6, %v21201_v28 }
0x205f   :  { %v21207_v44 = vpack.c.bf16 %v10911_v8, %v10906_v38  ;;  %v19322_v54 = vpop.f32.mrb[158].mxu0 }
0x2060   :  { %v10921_v4 = vadd.f32 %v22441_v40, %v19322_v54  ;;  %v10915_v17 = vpop.f32.mrb[159].mxu0 }
0x2061   :  { %v10916_v27 = vadd.f32 %v22441_v40, %v10915_v17 }
0x2062   :  { %21206 = vmatpush3.bf16.xpose.msk.msra.mxu0 %vm24272_vm6, %v21201_v28 }
0x2063   :  { %v21213_v53 = vpack.c.bf16 %v10921_v4, %v10916_v27  ;;  %21209 = vmatprep.subr.msk.bf16.mxu0 %vm24272_vm6, %v21207_v44 }
0x206a   :  { %21212 = vmatpush3.bf16.xpose.msk.msra.mxu0 %vm24272_vm6, %v21207_v44 }
0x206b   :  { %21215 = vmatprep.subr.msk.bf16.mxu0 %vm24272_vm6, %v21213_v53 }
0x2072   :  { %21218 = vmatpush3.bf16.xpose.msk.msra.mxu0 %vm24272_vm6, %v21213_v53 }
0x2073   :  { %21236 = vmatprep.subr.bf16.mxu0 %v25689_v42 }
0x2079   :  { %19384 = vmatmul.mubr.msk.f32.vlgmr.msra.gmra.mrb[160].mxu0 %vm5006_vm5, %v10786_v3 }
0x207a   :  { %19386 = vmatprep.mubr.msk.f32.mxu0 %vm5006_vm5, %v10791_v47  ;;  %21238 = vmatpush3.bf16.msra.mxu0 %v25689_v42  ;;  %v10811_v42 = vadd.f32 %v26369_v58, %v26364_v46 }
0x207b   :  { %21240 = vmatprep.subr.bf16.mxu0 %v25699_v41 }
0x207d   :  { %19387 = vmatmul.mubr.msk.f32.gmra.mrb[162].mxu0 %vm5006_vm5, %v10796_v36 }
0x207e   :  { %19389 = vmatprep.mubr.msk.f32.mxu0 %vm5006_vm5, %v10801_v49  ;;  %21242 = vmatpush3.bf16.msra.mxu0 %v25699_v41 }
0x2081   :  { %19390 = vmatmul.mubr.msk.f32.gmra.mrb[164].mxu0 %vm5006_vm5, %v10806_v61 }
0x2082   :  { %19392 = vmatprep.mubr.msk.f32.mxu0 %vm5006_vm5, %v10811_v42 }
0x2085   :  { %19393 = vmatmul.mubr.msk.f32.gmra.mrb[166].mxu0 %vm5006_vm5, %v10816_v55 }
0x214c   :  { %v19385_v0 = vpop.f32.mrb[160].mxu0 }
0x214d   :  { %v11183_v2 = vmul.f32 0.17677669, %v19385_v0  ;;  %v11143_v19 = vpop.f32.mrb[161].mxu0 }
0x214e   :  { %v11182_v32 = vmul.f32 0.17677669, %v11143_v19 }
0x214f   :  { %v11193_v41 = vsel %vm2227_vm3, %v11183_v2, -inf }
0x2150   :  { %11194 = vmax.xlane.f32.xlu1 %v11193_v41  ;;  %v19388_v22 = vpop.f32.mrb[162].mxu0  ;;  %v11190_v57 = vsel %vm2227_vm3, %v11182_v32, -inf }
0x2151   :  { %v11185_v46 = vmul.f32 0.17677669, %v19388_v22  ;;  %11191 = vmax.xlane.f32.xlu0 %v11190_v57  ;;  %v11153_v39 = vpop.f32.mrb[163].mxu0  ;;  %v28477_v22 = vld [vmem:[#allocation6_spill] sm:$0xff] }
0x2152   :  { %v11184_v16 = vmul.f32 0.17677669, %v11153_v39  ;;  %v11545_v57 = vadd.f32 %v25820_v30, %v28477_v22  ;;  %v26462_v39 = vld [vmem:[%s28115_s14] ss:$0 sm:$0xff] }
0x2153   :  { %v11199_v37 = vsel %vm2227_vm3, %v11185_v46, -inf }
0x2154   :  { %11200 = vmax.xlane.f32.xlu1 %v11199_v37  ;;  %v19391_v1 = vpop.f32.mrb[164].mxu0  ;;  %v11196_v58 = vsel %vm2227_vm3, %v11184_v16, -inf  ;;  %v26471_v30 = vadd.f32 %v26462_v39, %v11545_v57 }
0x2155   :  { %v11187_v48 = vmul.f32 0.17677669, %v19391_v1  ;;  %11197 = vmax.xlane.f32.xlu0 %v11196_v58  ;;  %v11163_v12 = vpop.f32.mrb[165].mxu0 }
0x2156   :  { %v11186_v43 = vmul.f32 0.17677669, %v11163_v12 }
0x2157   :  { %v11205_v50 = vsel %vm2227_vm3, %v11187_v48, -inf }
0x2158   :  { %11206 = vmax.xlane.f32.xlu1 %v11205_v50  ;;  %v19394_v18 = vpop.f32.mrb[166].mxu0  ;;  %v11202_v20 = vsel %vm2227_vm3, %v11186_v43, -inf  ;;  %v28480_v50 = vld [vmem:[#allocation7_spill] sm:$0xff] }
0x2159   :  { %v11189_v45 = vmul.f32 0.17677669, %v19394_v18  ;;  %11203 = vmax.xlane.f32.xlu0 %v11202_v20  ;;  %v11173_v63 = vpop.f32.mrb[167].mxu0  ;;  %v28481_v20 = vld [vmem:[#allocation10_spill] sm:$0xff] }
0x215a   :  { %v11188_v59 = vmul.f32 0.17677669, %v11173_v63 }
0x215b   :  { %v11211_v52 = vsel %vm2227_vm3, %v11189_v45, -inf }
0x215c   :  { %11212 = vmax.xlane.f32.xlu1 %v11211_v52  ;;  %v11208_v26 = vsel %vm2227_vm3, %v11188_v59, -inf  ;;  %v28483_v52 = vld [vmem:[#allocation12_spill] sm:$0xff] }
0x215d   :  { %11209 = vmax.xlane.f32.xlu0 %v11208_v26  ;;  %v11551_v26 = vadd.f32 %v25833_v14, %v28483_v52 }
0x21dd   :  { %v11195_v10 = vpop.xlane.xlu1 %11194 }
0x21de   :  { %v11215_v11 = vsub.f32 %v11183_v2, %v11195_v10  ;;  %v11192_v34 = vpop.xlane.xlu0 %11191 }
0x21df   :  { %v11214_v33 = vsub.f32 %v11182_v32, %v11192_v34 }
0x21e0   :  { %v11224_v24 = vmul.f32 1.442695, %v11215_v11 }
0x21e1   :  { %v11222_v40 = vmul.f32 1.442695, %v11214_v33  ;;  %v11201_v60 = vpop.xlane.xlu1 %11200 }
0x21e2   :  { %22364 = vpow2.f32 %v11224_v24  ;;  %v11217_v29 = vsub.f32 %v11185_v46, %v11201_v60  ;;  %v11198_v25 = vpop.xlane.xlu0 %11197 }
0x21e3   :  { %22366 = vpow2.f32 %v11222_v40  ;;  %v11216_v15 = vsub.f32 %v11184_v16, %v11198_v25  ;;  %v28478_v16 = vld [vmem:[#allocation5_spill] sm:$0xff] }
0x21e4   :  { %v11228_v7 = vmul.f32 1.442695, %v11217_v29  ;;  %v11544_v37 = vadd.f32 %v25822_v21, %v28478_v16  ;;  %v11546_v21 = vadd.f32 %v25826_v31, %v28480_v50 }
0x21e5   :  { %v11226_v5 = vmul.f32 1.442695, %v11216_v15  ;;  %v11207_v51 = vpop.xlane.xlu1 %11206 }
0x21e6   :  { %22368 = vpow2.f32 %v11228_v7  ;;  %v11219_v6 = vsub.f32 %v11187_v48, %v11207_v51  ;;  %v11204_v28 = vpop.xlane.xlu0 %11203  ;;  %v28479_v48 = vld [vmem:[#allocation8_spill] sm:$0xff]  ;;  %v26488_v63 = vadd.f32 %v26462_v39, %v11546_v21 }
0x21e7   :  { %22370 = vpow2.f32 %v11226_v5  ;;  %v11218_v62 = vsub.f32 %v11186_v43, %v11204_v28  ;;  %v11547_v12 = vadd.f32 %v25824_v9, %v28479_v48  ;;  %v26476_v43 = vadd.f32 %v26462_v39, %v11544_v37  ;;  %v28482_v9 = vld [vmem:[#allocation9_spill] sm:$0xff] }
0x21e8   :  { %v11232_v8 = vmul.f32 1.442695, %v11219_v6 }
0x21e9   :  { %v11230_v56 = vmul.f32 1.442695, %v11218_v62  ;;  %v11213_v38 = vpop.xlane.xlu1 %11212  ;;  %v26483_v18 = vadd.f32 %v26462_v39, %v11547_v12  ;;  %v28487_v12 = vld [vmem:[#allocation89_spill] sm:$0xff] }
0x21ea   :  { %22372 = vpow2.f32 %v11232_v8  ;;  %v11221_v44 = vsub.f32 %v11189_v45, %v11213_v38  ;;  %v11210_v54 = vpop.xlane.xlu0 %11209  ;;  %v11549_v45 = vadd.f32 %v25828_v35, %v28481_v20  ;;  %v28484_v35 = vld [vmem:[#allocation11_spill] sm:$0xff]  ;;  %v28488_v20 = vld [vmem:[#allocation90_spill] sm:$0xff] }
0x21eb   :  { %22374 = vpow2.f32 %v11230_v56  ;;  %v11220_v4 = vsub.f32 %v11188_v59, %v11210_v54  ;;  %v11548_v59 = vadd.f32 %v25830_v13, %v28482_v9  ;;  %v11550_v11 = vadd.f32 %v25835_v23, %v28484_v35 }
0x21ec   :  { %v26429_v17 = vpop.eup %22364  ;;  %v11236_v27 = vmul.f32 1.442695, %v11221_v44  ;;  %v26495_v31 = vadd.f32 %v26462_v39, %v11549_v45  ;;  %v26507_v13 = vadd.f32 %v26462_v39, %v11551_v26 }
0x21ed   :  { %v26431_v53 = vpop.eup %22366  ;;  %v11234_v3 = vmul.f32 1.442695, %v11220_v4  ;;  %v11241_v47 = vsel %vm2227_vm3, %v26429_v17, 0.0  ;;  %v26500_v10 = vadd.f32 %v26462_v39, %v11548_v59  ;;  %v26510_v34 = vadd.f32 %v26462_v39, %v11550_v11  ;;  %v28489_v11 = vld [vmem:[#allocation91_spill] sm:$0xff] }
0x21ee   :  { %22376 = vpow2.f32 %v11236_v27  ;;  %11242 = vadd.xlane.f32.xlu1 %v11241_v47  ;;  %v11238_v36 = vsel %vm2227_vm3, %v26431_v53, 0.0 }
0x21ef   :  { %22378 = vpow2.f32 %v11234_v3  ;;  %11239 = vadd.xlane.f32.xlu0 %v11238_v36 }
0x21f0   :  { %v26437_v49 = vpop.eup %22368 }
0x21f1   :  { %v26439_v61 = vpop.eup %22370  ;;  %v11247_v42 = vsel %vm2227_vm3, %v26437_v49, 0.0 }
0x21f2   :  { %11248 = vadd.xlane.f32.xlu1 %v11247_v42  ;;  %v11244_v55 = vsel %vm2227_vm3, %v26439_v61, 0.0 }
0x21f3   :  { %11245 = vadd.xlane.f32.xlu0 %v11244_v55 }
0x21f4   :  { %v26445_v0 = vpop.eup %22372 }
0x21f5   :  { %v26447_v2 = vpop.eup %22374  ;;  %v11253_v19 = vsel %vm2227_vm3, %v26445_v0, 0.0 }
0x21f6   :  { %11254 = vadd.xlane.f32.xlu1 %v11253_v19  ;;  %v11250_v32 = vsel %vm2227_vm3, %v26447_v2, 0.0 }
0x21f7   :  { %11251 = vadd.xlane.f32.xlu0 %v11250_v32  ;;  %v28485_v32 = vld [vmem:[#allocation87_spill] sm:$0xff] }
0x21f8   :  { %v26453_v41 = vpop.eup %22376 }
0x21f9   :  { %v26457_v46 = vpop.eup %22378  ;;  %v11259_v1 = vsel %vm2227_vm3, %v26453_v41, 0.0 }
0x21fa   :  { %11260 = vadd.xlane.f32.xlu1 %v11259_v1  ;;  %v11256_v58 = vsel %vm2227_vm3, %v26457_v46, 0.0 }
0x21fb   :  { %11257 = vadd.xlane.f32.xlu0 %v11256_v58 }
0x21fe   :  { %11587 = vadd.xlane.f32.xlu1 %v26471_v30 }
0x21ff   :  { %11585 = vadd.xlane.f32.xlu0 %v26476_v43 }
0x2202   :  { %11591 = vadd.xlane.f32.xlu1 %v26483_v18 }
0x2203   :  { %11589 = vadd.xlane.f32.xlu0 %v26488_v63 }
0x2206   :  { %11595 = vadd.xlane.f32.xlu1 %v26495_v31 }
0x2207   :  { %11593 = vadd.xlane.f32.xlu0 %v26500_v10 }
0x220a   :  { %11599 = vadd.xlane.f32.xlu1 %v26507_v13 }
0x220b   :  { %11597 = vadd.xlane.f32.xlu0 %v26510_v34 }
0x227b   :  { %v11243_v14 = vpop.xlane.xlu1 %11242 }
0x227c   :  { %22380 = vrcp.f32 %v11243_v14  ;;  %v11240_v33 = vpop.xlane.xlu0 %11239 }
0x227d   :  { %22382 = vrcp.f32 %v11240_v33 }
0x227f   :  { %v11249_v24 = vpop.xlane.xlu1 %11248 }
0x2280   :  { %22384 = vrcp.f32 %v11249_v24  ;;  %v11246_v23 = vpop.xlane.xlu0 %11245  ;;  %v28490_v24 = vld [vmem:[#allocation92_spill] sm:$0xff] }
0x2281   :  { %22386 = vrcp.f32 %v11246_v23 }
0x2283   :  { %v11255_v40 = vpop.xlane.xlu1 %11254 }
0x2284   :  { %22388 = vrcp.f32 %v11255_v40  ;;  %v11252_v60 = vpop.xlane.xlu0 %11251 }
0x2285   :  { %22390 = vrcp.f32 %v11252_v60 }
0x2286   :  { %v22381_v29 = vpop.eup %22380 }
0x2287   :  { %v22383_v25 = vpop.eup %22382  ;;  %v11261_v15 = vpop.xlane.xlu1 %11260  ;;  %v11265_v51 = vmul.f32 %v22381_v29, %v26429_v17 }
0x2288   :  { %22392 = vrcp.f32 %v11261_v15  ;;  %v11258_v7 = vpop.xlane.xlu0 %11257  ;;  %v11263_v5 = vmul.f32 %v22383_v25, %v26431_v53 }
0x2289   :  { %22394 = vrcp.f32 %v11258_v7  ;;  %v28491_v7 = vld [vmem:[#allocation93_spill] sm:$0xff] }
0x228a   :  { %v22385_v6 = vpop.eup %22384  ;;  %19411 = vmatprep.mubr.msk.f32.mxu1 %vm2227_vm3, %v11263_v5 }
0x228b   :  { %v22387_v28 = vpop.eup %22386  ;;  %19412 = vmatmul.mubr.msk.f32.vlgmr.msra.gmra.mrb[192].mxu1 %vm2227_vm3, %v11265_v51  ;;  %v11269_v8 = vmul.f32 %v22385_v6, %v26437_v49  ;;  %v11588_v57 = vpop.xlane.xlu1 %11587 }
0x228c   :  { %v11267_v62 = vmul.f32 %v22387_v28, %v26439_v61  ;;  %v11586_v37 = vpop.xlane.xlu0 %11585  ;;  %v11618_v40 = vmul.f32 0.0078125, %v11588_v57  ;;  %v28492_v28 = vld [vmem:[#allocation94_spill] sm:$0xff]  ;;  %v11809_v57 = vld [vmem:[%s28116_s17 + $0x20] sm:$0xff] }
0x228d   :  { %v11617_v29 = vmul.f32 0.0078125, %v11586_v37 }
0x228e   :  { %v22389_v56 = vpop.eup %22388  ;;  %19414 = vmatprep.mubr.msk.f32.mxu1 %vm2227_vm3, %v11267_v62 }
0x228f   :  { %v22391_v38 = vpop.eup %22390  ;;  %19415 = vmatmul.mubr.msk.f32.gmra.mrb[194].mxu1 %vm2227_vm3, %v11269_v8  ;;  %v11273_v54 = vmul.f32 %v22389_v56, %v26445_v0  ;;  %v11592_v59 = vpop.xlane.xlu1 %11591  ;;  %v26574_v8 = vsub.f32 %v26471_v30, %v11618_v40 }
0x2290   :  { %v11271_v44 = vmul.f32 %v22391_v38, %v26447_v2  ;;  %v26538_v2 = vld [vmem:[#allocation4] sm:$0xff]  ;;  %v11590_v35 = vpop.xlane.xlu0 %11589  ;;  %v11620_v56 = vmul.f32 0.0078125, %v11592_v59 }
0x2291   :  { %v11813_v59 = vld [vmem:[%s28116_s17 + $0x40] sm:$0xff] }
0x2292   :  { %v22393_v4 = vpop.eup %22392  ;;  %19417 = vmatprep.mubr.msk.f32.mxu1 %vm2227_vm3, %v11271_v44 }
0x2293   :  { %v22395_v17 = vpop.eup %22394  ;;  %19418 = vmatmul.mubr.msk.f32.gmra.mrb[196].mxu1 %vm2227_vm3, %v11273_v54  ;;  %v11277_v53 = vmul.f32 %v22393_v4, %v26453_v41  ;;  %v11596_v6 = vpop.xlane.xlu1 %11595  ;;  %v26580_v54 = vsub.f32 %v26476_v43, %v11617_v29  ;;  %v11619_v4 = vmul.f32 0.0078125, %v11590_v35  ;;  %v11821_v29 = vld [vmem:[%s28116_s17 + $0x80] sm:$0xff] }
0x2294   :  { %v11275_v27 = vmul.f32 %v22395_v17, %v26457_v46  ;;  %v28486_v46 = vld [vmem:[#allocation88_spill] sm:$0xff]  ;;  %v11594_v38 = vpop.xlane.xlu0 %11593 }
0x2296   :  { %19420 = vmatprep.mubr.msk.f32.mxu1 %vm2227_vm3, %v11275_v27  ;;  %v26588_v27 = vsub.f32 %v26483_v18, %v11620_v56  ;;  %v11833_v56 = vld [vmem:[%s28116_s17 + $0xe0] sm:$0xff] }
0x2297   :  { %19421 = vmatmul.mubr.msk.f32.gmra.mrb[198].mxu1 %vm2227_vm3, %v11277_v53  ;;  %v11622_v53 = vmul.f32 0.0078125, %v11596_v6  ;;  %v11834_v6 = vld [vmem:[%s28116_s17 + $0xe8] sm:$0xff] }
0x235e   :  { %v19413_v3 = vpop.f32.mrb[192].mxu1 }
0x235f   :  { %v11368_v47 = vpop.f32.mrb[193].mxu1 }
0x2360   :  { %19431 = vmatprep.mubr.msk.f32.mxu0 %vm5006_vm5, %v11368_v47  ;;  %v26593_v47 = vsub.f32 %v26488_v63, %v11619_v4  ;;  %v11838_v4 = vld [vmem:[%s28116_s17 + $0x108] sm:$0xff] }
0x2361   :  { %19432 = vmatmul.mubr.msk.f32.vlgmr.msra.gmra.mrb[128].mxu0 %vm5006_vm5, %v19413_v3  ;;  %v11650_v3 = vmul.f32 %v26574_v8, %v26574_v8 }
0x2362   :  { %v19416_v36 = vpop.f32.mrb[194].mxu1  ;;  %v11651_v37 = vmul.f32 %v26593_v47, %v26593_v47 }
0x2363   :  { %v11378_v49 = vpop.f32.mrb[195].mxu1 }
0x2364   :  { %19434 = vmatprep.mubr.msk.f32.mxu0 %vm5006_vm5, %v11378_v49  ;;  %v11600_v49 = vpop.xlane.xlu1 %11599 }
0x2365   :  { %19435 = vmatmul.mubr.msk.f32.gmra.mrb[130].mxu0 %vm5006_vm5, %v19416_v36  ;;  %v11621_v36 = vmul.f32 0.0078125, %v11594_v38 }
0x2366   :  { %v19419_v61 = vpop.f32.mrb[196].mxu1 }
0x2367   :  { %v11388_v42 = vpop.f32.mrb[197].mxu1 }
0x2368   :  { %19437 = vmatprep.mubr.msk.f32.mxu0 %vm5006_vm5, %v11388_v42  ;;  %v11806_v42 = vld [vmem:[%s28116_s17 + $0x8] sm:$0xff] }
0x2369   :  { %19438 = vmatmul.mubr.msk.f32.gmra.mrb[132].mxu0 %vm5006_vm5, %v19419_v61  ;;  %v11598_v61 = vpop.xlane.xlu0 %11597 }
0x236a   :  { %v19422_v55 = vpop.f32.mrb[198].mxu1 }
0x236b   :  { %v11398_v0 = vpop.f32.mrb[199].mxu1 }
0x236c   :  { %19440 = vmatprep.mubr.msk.f32.mxu0 %vm5006_vm5, %v11398_v0  ;;  %v26604_v0 = vsub.f32 %v26495_v31, %v11622_v53  ;;  %v11842_v53 = vld [vmem:[%s28116_s17 + $0x128] sm:$0xff] }
0x236d   :  { %19441 = vmatmul.mubr.msk.f32.gmra.mrb[134].mxu0 %vm5006_vm5, %v19422_v55  ;;  %v11810_v55 = vld [vmem:[%s28116_s17 + $0x28] sm:$0xff] }
0x236e   :  { %11955 = vmatprep.mubr.f32.mxu0 %v26538_v2 }
0x2434   :  { %v19433_v19 = vpop.f32.mrb[128].mxu0 }
0x2435   :  { %v11553_v41 = vadd.f32 %v19433_v19, %v28485_v32  ;;  %v11497_v22 = vpop.f32.mrb[129].mxu0  ;;  %v11624_v19 = vmul.f32 0.0078125, %v11600_v49  ;;  %v11652_v32 = vmul.f32 %v26588_v27, %v26588_v27  ;;  %v11841_v49 = vld [vmem:[%s28116_s17 + $0x120] sm:$0xff] }
0x2436   :  { %v11552_v16 = vadd.f32 %v11497_v22, %v28486_v46  ;;  %v11805_v22 = vld [vmem:[%s28116_s17] sm:$0xff]  ;;  %v26615_v46 = vsub.f32 %v26500_v10, %v11621_v36 }
0x2437   :  { %v26544_v1 = vadd.f32 %v26462_v39, %v11553_v41  ;;  %v21243_v41 = vpack.c.bf16 %v11810_v55, %v11806_v42  ;;  %v11837_v36 = vld [vmem:[%s28116_s17 + $0x100] sm:$0xff]  ;;  %v11850_v42 = vld [vmem:[%s28116_s17 + $0x168] sm:$0xff] }
0x2438   :  { %v26547_v58 = vadd.f32 %v26462_v39, %v11552_v16  ;;  %v19436_v48 = vpop.f32.mrb[130].mxu0  ;;  %v11623_v16 = vmul.f32 0.0078125, %v11598_v61  ;;  %v11846_v61 = vld [vmem:[%s28116_s17 + $0x148] sm:$0xff] }
0x2439   :  { %v11555_v50 = vadd.f32 %v19436_v48, %v28487_v12  ;;  %11603 = vadd.xlane.f32.xlu1 %v26544_v1  ;;  %v11507_v21 = vpop.f32.mrb[131].mxu0  ;;  %v21245_v48 = vpack.c.bf16 %v11809_v57, %v11805_v22  ;;  %21244 = vmatprep.subr.bf16.mxu0 %v21243_v41  ;;  %v11814_v12 = vld [vmem:[%s28116_s17 + $0x48] sm:$0xff]  ;;  %v21263_v55 = vpack.c.bf16 %v11850_v42, %v11846_v61 }
0x243a   :  { %v11554_v45 = vadd.f32 %v11507_v21, %v28488_v20  ;;  %11601 = vadd.xlane.f32.xlu0 %v26547_v58  ;;  %v26626_v21 = vsub.f32 %v26507_v13, %v11624_v19  ;;  %v11654_v20 = vmul.f32 %v26604_v0, %v26604_v0  ;;  %v26637_v35 = vsub.f32 %v26510_v34, %v11623_v16  ;;  %v11845_v19 = vld [vmem:[%s28116_s17 + $0x140] sm:$0xff]  ;;  %v11854_v22 = vld [vmem:[%s28116_s17 + $0x188] sm:$0xff] }
0x243b   :  { %v26554_v9 = vadd.f32 %v26462_v39, %v11555_v50  ;;  %21246 = vmatpush1.bf16.msra.mxu0 %v21245_v48  ;;  %v11818_v50 = vld [vmem:[%s28116_s17 + $0x68] sm:$0xff]  ;;  %v11857_v48 = vld [vmem:[%s28116_s17 + $0x1a0] sm:$0xff] }
0x243c   :  { %v26557_v52 = vadd.f32 %v26462_v39, %v11554_v45  ;;  %v19439_v26 = vpop.f32.mrb[132].mxu0  ;;  %v21247_v45 = vpack.c.bf16 %v11818_v50, %v11814_v12  ;;  %v11858_v57 = vld [vmem:[%s28116_s17 + $0x1a8] sm:$0xff] }
0x243d   :  { %v11557_v14 = vadd.f32 %v19439_v26, %v28489_v11  ;;  %11607 = vadd.xlane.f32.xlu1 %v26554_v9  ;;  %v11517_v33 = vpop.f32.mrb[133].mxu0  ;;  %v11817_v26 = vld [vmem:[%s28116_s17 + $0x60] sm:$0xff]  ;;  %v11653_v11 = vmul.f32 %v26615_v46, %v26615_v46  ;;  %v21267_v16 = vpack.c.bf16 %v11858_v57, %v11854_v22  ;;  %v11862_v50 = vld [vmem:[%s28116_s17 + $0x1c8] sm:$0xff] }
0x243e   :  { %v11556_v23 = vadd.f32 %v11517_v33, %v28490_v24  ;;  %11605 = vadd.xlane.f32.xlu0 %v26557_v52  ;;  %21248 = vmatprep.subr.bf16.mxu0 %v21247_v45  ;;  %v11822_v33 = vld [vmem:[%s28116_s17 + $0x88] sm:$0xff] }
0x243f   :  { %v26564_v60 = vadd.f32 %v26462_v39, %v11557_v14  ;;  %v21249_v14 = vpack.c.bf16 %v11817_v26, %v11813_v59  ;;  %v11826_v24 = vld [vmem:[%s28116_s17 + $0xa8] sm:$0xff]  ;;  %v11861_v59 = vld [vmem:[%s28116_s17 + $0x1c0] sm:$0xff] }
0x2440   :  { %v26567_v25 = vadd.f32 %v26462_v39, %v11556_v23  ;;  %v19442_v15 = vpop.f32.mrb[134].mxu0  ;;  %v11656_v23 = vmul.f32 %v26626_v21, %v26626_v21  ;;  %v21251_v40 = vpack.c.bf16 %v11826_v24, %v11822_v33  ;;  %v11865_v26 = vld [vmem:[%s28116_s17 + $0x1e0] sm:$0xff]  ;;  %v11812_v33 = vld [vmem:[%s28116_s17 + $0x38] sm:$0xff] }
0x2441   :  { %v11559_v5 = vadd.f32 %v19442_v15, %v28491_v7  ;;  %11611 = vadd.xlane.f32.xlu1 %v26564_v60  ;;  %v11527_v51 = vpop.f32.mrb[135].mxu0  ;;  %21250 = vmatpush1.bf16.msra.mxu0 %v21249_v14  ;;  %v11825_v15 = vld [vmem:[%s28116_s17 + $0xa0] sm:$0xff]  ;;  %v11655_v7 = vmul.f32 %v26637_v35, %v26637_v35  ;;  %v11808_v14 = vld [vmem:[%s28116_s17 + $0x18] sm:$0xff] }
0x2442   :  { %v11558_v62 = vadd.f32 %v11527_v51, %v28492_v28  ;;  %11609 = vadd.xlane.f32.xlu0 %v26567_v25  ;;  %21252 = vmatprep.subr.bf16.mxu0 %v21251_v40  ;;  %v11830_v51 = vld [vmem:[%s28116_s17 + $0xc8] sm:$0xff]  ;;  %v21275_v24 = vpack.c.bf16 %v11812_v33, %v11808_v14 }
0x2443   :  { %v26577_v44 = vadd.f32 %v26462_v39, %v11559_v5  ;;  %v21253_v5 = vpack.c.bf16 %v11825_v15, %v11821_v29  ;;  %v21255_v28 = vpack.c.bf16 %v11834_v6, %v11830_v51 }
0x2444   :  { %v26583_v17 = vadd.f32 %v26462_v39, %v11558_v62  ;;  %v11649_v39 = vmul.f32 %v26580_v54, %v26580_v54  ;;  %v11829_v62 = vld [vmem:[%s28116_s17 + $0xc0] sm:$0xff] }
0x2445   :  { %11615 = vadd.xlane.f32.xlu1 %v26577_v44  ;;  %21254 = vmatpush1.bf16.msra.mxu0 %v21253_v5  ;;  %v21257_v38 = vpack.c.bf16 %v11833_v56, %v11829_v62 }
0x2446   :  { %11613 = vadd.xlane.f32.xlu0 %v26583_v17  ;;  %21256 = vmatprep.subr.bf16.mxu0 %v21255_v28 }
0x2449   :  { %11667 = vadd.xlane.f32.xlu1 %v11650_v3  ;;  %21258 = vmatpush1.bf16.msra.mxu0 %v21257_v38  ;;  %v21259_v3 = vpack.c.bf16 %v11842_v53, %v11838_v4 }
0x244a   :  { %11665 = vadd.xlane.f32.xlu0 %v11649_v39  ;;  %v21261_v39 = vpack.c.bf16 %v11841_v49, %v11837_v36 }
0x244b   :  { %21260 = vmatprep.subr.bf16.mxu0 %v21259_v3 }
0x244d   :  { %11671 = vadd.xlane.f32.xlu1 %v11652_v32  ;;  %21262 = vmatpush1.bf16.msra.mxu0 %v21261_v39  ;;  %v11849_v32 = vld [vmem:[%s28116_s17 + $0x160] sm:$0xff] }
0x244e   :  { %11669 = vadd.xlane.f32.xlu0 %v11651_v37  ;;  %v21265_v41 = vpack.c.bf16 %v11849_v32, %v11845_v19  ;;  %21264 = vmatprep.subr.bf16.mxu0 %v21263_v55  ;;  %v11853_v37 = vld [vmem:[%s28116_s17 + $0x180] sm:$0xff] }
0x244f   :  { %v21269_v12 = vpack.c.bf16 %v11857_v48, %v11853_v37 }
0x2451   :  { %11675 = vadd.xlane.f32.xlu1 %v11654_v20  ;;  %21266 = vmatpush1.bf16.msra.mxu0 %v21265_v41  ;;  %v11866_v20 = vld [vmem:[%s28116_s17 + $0x1e8] sm:$0xff] }
0x2452   :  { %11673 = vadd.xlane.f32.xlu0 %v11653_v11  ;;  %21268 = vmatprep.subr.bf16.mxu0 %v21267_v16  ;;  %v21271_v45 = vpack.c.bf16 %v11866_v20, %v11862_v50  ;;  %v21273_v11 = vpack.c.bf16 %v11865_v26, %v11861_v59 }
0x2455   :  { %11679 = vadd.xlane.f32.xlu1 %v11656_v23  ;;  %21270 = vmatpush1.bf16.msra.mxu0 %v21269_v12 }
0x2456   :  { %11677 = vadd.xlane.f32.xlu0 %v11655_v7  ;;  %21272 = vmatprep.subr.bf16.mxu0 %v21271_v45 }
0x2459   :  { %21274 = vmatpush1.bf16.msra.mxu0 %v21273_v11 }
0x245a   :  { %21276 = vmatprep.subr.bf16.mxu0 %v21275_v24 }
0x24c6   :  { %v11604_v23 = vpop.xlane.xlu1 %11603 }
0x24c7   :  { %v11626_v40 = vmul.f32 0.0078125, %v11604_v23  ;;  %v11602_v29 = vpop.xlane.xlu0 %11601 }
0x24c8   :  { %v11625_v15 = vmul.f32 0.0078125, %v11602_v29 }
0x24c9   :  { %v26724_v7 = vsub.f32 %v26544_v1, %v11626_v40 }
0x24ca   :  { %v26727_v5 = vsub.f32 %v26547_v58, %v11625_v15  ;;  %v11608_v51 = vpop.xlane.xlu1 %11607 }
0x24cb   :  { %v11628_v6 = vmul.f32 0.0078125, %v11608_v51  ;;  %v11606_v28 = vpop.xlane.xlu0 %11605  ;;  %v11658_v62 = vmul.f32 %v26724_v7, %v26724_v7 }
0x24cc   :  { %v11627_v56 = vmul.f32 0.0078125, %v11606_v28  ;;  %v11657_v38 = vmul.f32 %v26727_v5, %v26727_v5 }
0x24cd   :  { %v26734_v4 = vsub.f32 %v26554_v9, %v11628_v6  ;;  %11683 = vadd.xlane.f32.xlu1 %v11658_v62 }
0x24ce   :  { %v26737_v53 = vsub.f32 %v26557_v52, %v11627_v56  ;;  %v11612_v3 = vpop.xlane.xlu1 %11611  ;;  %11681 = vadd.xlane.f32.xlu0 %v11657_v38 }
0x24cf   :  { %v11630_v36 = vmul.f32 0.0078125, %v11612_v3  ;;  %v11610_v49 = vpop.xlane.xlu0 %11609  ;;  %v11660_v39 = vmul.f32 %v26734_v4, %v26734_v4 }
0x24d0   :  { %v11629_v61 = vmul.f32 0.0078125, %v11610_v49  ;;  %v11659_v42 = vmul.f32 %v26737_v53, %v26737_v53 }
0x24d1   :  { %v26744_v55 = vsub.f32 %v26564_v60, %v11630_v36  ;;  %11687 = vadd.xlane.f32.xlu1 %v11660_v39 }
0x24d2   :  { %v26747_v19 = vsub.f32 %v26567_v25, %v11629_v61  ;;  %v11616_v32 = vpop.xlane.xlu1 %11615  ;;  %11685 = vadd.xlane.f32.xlu0 %v11659_v42  ;;  %v26766_v42 = vld [vmem:[%s28117_s15] ss:$0 sm:$0xff] }
0x24d3   :  { %v11632_v41 = vmul.f32 0.0078125, %v11616_v32  ;;  %v11614_v22 = vpop.xlane.xlu0 %11613  ;;  %v11662_v57 = vmul.f32 %v26744_v55, %v26744_v55 }
0x24d4   :  { %v11631_v16 = vmul.f32 0.0078125, %v11614_v22  ;;  %v11661_v37 = vmul.f32 %v26747_v19, %v26747_v19 }
0x24d5   :  { %v26754_v48 = vsub.f32 %v26577_v44, %v11632_v41  ;;  %11691 = vadd.xlane.f32.xlu1 %v11662_v57  ;;  %v11807_v57 = vld [vmem:[%s28116_s17 + $0x10] sm:$0xff] }
0x24d6   :  { %v26757_v12 = vsub.f32 %v26583_v17, %v11631_v16  ;;  %v11668_v50 = vpop.xlane.xlu1 %11667  ;;  %11689 = vadd.xlane.f32.xlu0 %v11661_v37  ;;  %v11811_v16 = vld [vmem:[%s28116_s17 + $0x30] sm:$0xff]  ;;  %v26779_v37 = vld [vmem:[%s28118_s16] ss:$0 sm:$0xff] }
0x24d7   :  { %v11698_v20 = vmul.f32 0.0078125, %v11668_v50  ;;  %v11666_v45 = vpop.xlane.xlu0 %11665  ;;  %v11664_v59 = vmul.f32 %v26754_v48, %v26754_v48 }
0x24d8   :  { %v11697_v26 = vmul.f32 0.0078125, %v11666_v45  ;;  %v11663_v11 = vmul.f32 %v26757_v12, %v26757_v12 }
0x24d9   :  { %v11714_v14 = vadd.f32 1e-05, %v11698_v20  ;;  %11695 = vadd.xlane.f32.xlu1 %v11664_v59 }
0x24da   :  { %v11713_v33 = vadd.f32 1e-05, %v11697_v26  ;;  %v11672_v24 = vpop.xlane.xlu1 %11671  ;;  %11693 = vadd.xlane.f32.xlu0 %v11663_v11  ;;  %v21277_v26 = vpack.c.bf16 %v11811_v16, %v11807_v57  ;;  %v11831_v16 = vld [vmem:[%s28116_s17 + $0xd0] sm:$0xff] }
0x24db   :  { %22396 = vrsqrt.f32 %v11714_v14  ;;  %v11700_v23 = vmul.f32 0.0078125, %v11672_v24  ;;  %v11670_v40 = vpop.xlane.xlu0 %11669 }
0x24dc   :  { %22398 = vrsqrt.f32 %v11713_v33  ;;  %v11699_v29 = vmul.f32 0.0078125, %v11670_v40  ;;  %v11819_v40 = vld [vmem:[%s28116_s17 + $0x70] sm:$0xff] }
0x24dd   :  { %v11716_v15 = vadd.f32 1e-05, %v11700_v23  ;;  %v11815_v23 = vld [vmem:[%s28116_s17 + $0x50] sm:$0xff] }
0x24de   :  { %v11715_v51 = vadd.f32 1e-05, %v11699_v29  ;;  %v11676_v6 = vpop.xlane.xlu1 %11675 }
0x24df   :  { %v11674_v28 = vpop.xlane.xlu0 %11673  ;;  %v11702_v56 = vmul.f32 0.0078125, %v11676_v6  ;;  %v21281_v6 = vpack.c.bf16 %v11819_v40, %v11815_v23  ;;  %v11848_v40 = vld [vmem:[%s28116_s17 + $0x158] sm:$0xff] }
0x24e0   :  { %22400 = vrsqrt.f32 %v11715_v51  ;;  %v11701_v62 = vmul.f32 0.0078125, %v11674_v28  ;;  %v11828_v51 = vld [vmem:[%s28116_s17 + $0xb8] sm:$0xff] }
0x24e1   :  { %22402 = vrsqrt.f32 %v11716_v15  ;;  %v11718_v39 = vadd.f32 1e-05, %v11702_v56  ;;  %v11824_v15 = vld [vmem:[%s28116_s17 + $0x98] sm:$0xff] }
0x24e2   :  { %v11717_v38 = vadd.f32 1e-05, %v11701_v62  ;;  %v11680_v41 = vpop.xlane.xlu1 %11679 }
0x24e3   :  { %v11678_v3 = vpop.xlane.xlu0 %11677  ;;  %v11704_v45 = vmul.f32 0.0078125, %v11680_v41 }
0x24e4   :  { %22404 = vrsqrt.f32 %v11717_v38  ;;  %v11703_v61 = vmul.f32 0.0078125, %v11678_v3  ;;  %v21283_v38 = vpack.c.bf16 %v11828_v51, %v11824_v15  ;;  %v11823_v3 = vld [vmem:[%s28116_s17 + $0x90] sm:$0xff] }
0x24e5   :  { %v22397_v36 = vpop.eup %22396  ;;  %22406 = vrsqrt.f32 %v11718_v39  ;;  %v11832_v39 = vld [vmem:[%s28116_s17 + $0xd8] sm:$0xff] }
0x24e6   :  { %v22399_v49 = vpop.eup %22398  ;;  %v11746_v22 = vmul.f32 %v22397_v36, %v26574_v8  ;;  %v11820_v8 = vld [vmem:[%s28116_s17 + $0x78] sm:$0xff]  ;;  %v11719_v59 = vadd.f32 1e-05, %v11703_v61  ;;  %v11827_v36 = vld [vmem:[%s28116_s17 + $0xb0] sm:$0xff] }
0x24e7   :  { %v11745_v32 = vmul.f32 %v22399_v49, %v26580_v54  ;;  %v11816_v54 = vld [vmem:[%s28116_s17 + $0x58] sm:$0xff] }
0x24e8   :  { %v11768_v14 = vmul.f32 %v26766_v42, %v11746_v22  ;;  %v21279_v24 = vpack.c.bf16 %v11820_v8, %v11816_v54  ;;  %22408 = vrsqrt.f32 %v11719_v59  ;;  %v11836_v61 = vld [vmem:[%s28116_s17 + $0xf8] sm:$0xff]  ;;  %v11835_v54 = vld [vmem:[%s28116_s17 + $0xf0] sm:$0xff] }
0x24e9   :  { %v11767_v50 = vmul.f32 %v26766_v42, %v11745_v32  ;;  %v21287_v57 = vpack.c.bf16 %v11836_v61, %v11832_v39 }
0x24ea   :  { %v22401_v20 = vpop.eup %22400  ;;  %v26808_v28 = vadd.f32 %v26779_v37, %v11768_v14 }
0x24eb   :  { %v26789_v11 = vadd.f32 %v26779_v37, %v11767_v50  ;;  %v11747_v33 = vmul.f32 %v22401_v20, %v26593_v47  ;;  %v22403_v29 = vpop.eup %22402  ;;  %v11720_v47 = vadd.f32 1e-05, %v11704_v45  ;;  %v11840_v50 = vld [vmem:[%s28116_s17 + $0x118] sm:$0xff] }
0x24ec   :  { %v11748_v56 = vmul.f32 %v22403_v29, %v26588_v27  ;;  %v21285_v27 = vpack.c.bf16 %v11827_v36, %v11823_v3  ;;  %v11844_v20 = vld [vmem:[%s28116_s17 + $0x138] sm:$0xff] }
0x24ed   :  { %11956 = vmatmul.mubr.f32.vlgmr.msra.gmra.mrb[168].mxu0 %v26789_v11  ;;  %v11769_v62 = vmul.f32 %v26766_v42, %v11747_v33  ;;  %22410 = vrsqrt.f32 %v11720_v47  ;;  %v21291_v14 = vpack.c.bf16 %v11844_v20, %v11840_v50  ;;  %v11839_v33 = vld [vmem:[%s28116_s17 + $0x110] sm:$0xff]  ;;  %v11852_v29 = vld [vmem:[%s28116_s17 + $0x178] sm:$0xff] }
0x24ee   :  { %11961 = vmatprep.mubr.f32.mxu0 %v26538_v2  ;;  %21278 = vmatpush1.bf16.msra.mxu0 %v21277_v26  ;;  %v22405_v49 = vpop.eup %22404  ;;  %v11770_v41 = vmul.f32 %v26766_v42, %v11748_v56  ;;  %v11851_v56 = vld [vmem:[%s28116_s17 + $0x170] sm:$0xff]  ;;  %v11860_v36 = vld [vmem:[%s28116_s17 + $0x1b8] sm:$0xff] }
0x24ef   :  { %21280 = vmatprep.subr.bf16.mxu0 %v21279_v24  ;;  %v26827_v32 = vadd.f32 %v26779_v37, %v11769_v62  ;;  %v11749_v22 = vmul.f32 %v22405_v49, %v26615_v46  ;;  %v22407_v8 = vpop.eup %22406  ;;  %v21289_v46 = vpack.c.bf16 %v11835_v54, %v11831_v16  ;;  %v11843_v24 = vld [vmem:[%s28116_s17 + $0x130] sm:$0xff]  ;;  %v11864_v54 = vld [vmem:[%s28116_s17 + $0x1d8] sm:$0xff] }
0x24f0   :  { %v26846_v45 = vadd.f32 %v26779_v37, %v11770_v41  ;;  %v11750_v26 = vmul.f32 %v22407_v8, %v26604_v0  ;;  %v21293_v0 = vpack.c.bf16 %v11843_v24, %v11839_v33  ;;  %v11847_v62 = vld [vmem:[%s28116_s17 + $0x150] sm:$0xff]  ;;  %v11868_v8 = vld [vmem:[%s28116_s17 + $0x1f8] sm:$0xff]  ;;  %v12294_v33 = vld [vmem:[%s28119_s19 + $0x88] sm:$0xff] }
0x24f1   :  { %11962 = vmatmul.mubr.f32.gmra.mrb[170].mxu0 %v26808_v28  ;;  %v11771_v59 = vmul.f32 %v26766_v42, %v11749_v22  ;;  %v21297_v3 = vpack.c.bf16 %v11851_v56, %v11847_v62  ;;  %v11855_v41 = vld [vmem:[%s28116_s17 + $0x190] sm:$0xff]  ;;  %v21303_v20 = vpack.c.bf16 %v11868_v8, %v11864_v54 }
0x24f2   :  { %11967 = vmatprep.mubr.f32.mxu0 %v26538_v2  ;;  %21282 = vmatpush1.bf16.msra.mxu0 %v21281_v6  ;;  %v22409_v23 = vpop.eup %22408  ;;  %v11772_v51 = vmul.f32 %v26766_v42, %v11750_v26  ;;  %v21295_v6 = vpack.c.bf16 %v11852_v29, %v11848_v40  ;;  %v11859_v22 = vld [vmem:[%s28116_s17 + $0x1b0] sm:$0xff] }
0x24f3   :  { %21284 = vmatprep.subr.bf16.mxu0 %v21283_v38  ;;  %v26865_v15 = vadd.f32 %v26779_v37, %v11771_v59  ;;  %v11751_v47 = vmul.f32 %v22409_v23, %v26637_v35  ;;  %v11856_v35 = vld [vmem:[%s28116_s17 + $0x198] sm:$0xff]  ;;  %v11867_v59 = vld [vmem:[%s28116_s17 + $0x1f0] sm:$0xff] }
0x24f4   :  { %v26884_v49 = vadd.f32 %v26779_v37, %v11772_v51 }
0x24f5   :  { %11968 = vmatmul.mubr.f32.gmra.mrb[172].mxu0 %v26827_v32  ;;  %v11773_v39 = vmul.f32 %v26766_v42, %v11751_v47 }
0x24f6   :  { %11973 = vmatprep.mubr.f32.mxu0 %v26538_v2  ;;  %21286 = vmatpush1.bf16.msra.mxu0 %v21285_v27  ;;  %v21299_v27 = vpack.c.bf16 %v11860_v36, %v11856_v35 }
0x24f7   :  { %21288 = vmatprep.subr.bf16.mxu0 %v21287_v57  ;;  %v22411_v38 = vpop.eup %22410  ;;  %v21301_v57 = vpack.c.bf16 %v11859_v22, %v11855_v41  ;;  %v26897_v16 = vadd.f32 %v26779_v37, %v11773_v39 }
0x24f8   :  { %v11752_v61 = vmul.f32 %v22411_v38, %v26626_v21 }
0x24f9   :  { %11974 = vmatmul.mubr.f32.gmra.mrb[174].mxu0 %v26846_v45 }
0x24fa   :  { %11979 = vmatprep.mubr.f32.mxu0 %v26538_v2  ;;  %21290 = vmatpush1.bf16.msra.mxu0 %v21289_v46  ;;  %v11774_v21 = vmul.f32 %v26766_v42, %v11752_v61  ;;  %v11863_v46 = vld [vmem:[%s28116_s17 + $0x1d0] sm:$0xff] }
0x24fb   :  { %21292 = vmatprep.subr.bf16.mxu0 %v21291_v14  ;;  %v21305_v26 = vpack.c.bf16 %v11867_v59, %v11863_v46  ;;  %v12293_v14 = vld [vmem:[%s28119_s19 + $0x80] sm:$0xff] }
0x24fc   :  { %v26909_v50 = vadd.f32 %v26779_v37, %v11774_v21  ;;  %v21307_v24 = vpack.c.bf16 %v12294_v33, %v12293_v14 }
0x24fd   :  { %11980 = vmatmul.mubr.f32.gmra.mrb[176].mxu0 %v26865_v15 }
0x24fe   :  { %11985 = vmatprep.mubr.f32.mxu0 %v26538_v2  ;;  %21294 = vmatpush1.bf16.msra.mxu0 %v21293_v0 }
0x24ff   :  { %21296 = vmatprep.subr.bf16.mxu0 %v21295_v6 }
0x2501   :  { %11986 = vmatmul.mubr.f32.gmra.mrb[178].mxu0 %v26884_v49 }
0x2502   :  { %11991 = vmatprep.mubr.f32.mxu0 %v26538_v2  ;;  %21298 = vmatpush1.bf16.msra.mxu0 %v21297_v3 }
0x2503   :  { %21300 = vmatprep.subr.bf16.mxu0 %v21299_v27 }
0x2505   :  { %11992 = vmatmul.mubr.f32.gmra.mrb[180].mxu0 %v26897_v16 }
0x2506   :  { %11997 = vmatprep.mubr.f32.mxu0 %v26538_v2  ;;  %21302 = vmatpush1.bf16.msra.mxu0 %v21301_v57 }
0x2507   :  { %21304 = vmatprep.subr.bf16.mxu0 %v21303_v20 }
0x2509   :  { %11998 = vmatmul.mubr.f32.gmra.mrb[182].mxu0 %v26909_v50 }
0x250a   :  { %12003 = vmatprep.mubr.f32.mxu0 %v26538_v2  ;;  %21306 = vmatpush1.bf16.msra.mxu0 %v21305_v26 }
0x250b   :  { %21308 = vmatprep.subr.bf16.mxu0 %v21307_v24 }
0x255a   :  { %v11684_v23 = vpop.xlane.xlu1 %11683 }
0x255b   :  { %v11706_v40 = vmul.f32 0.0078125, %v11684_v23  ;;  %v11682_v29 = vpop.xlane.xlu0 %11681 }
0x255c   :  { %v11705_v0 = vmul.f32 0.0078125, %v11682_v29 }
0x255d   :  { %v11722_v51 = vadd.f32 1e-05, %v11706_v40 }
0x255e   :  { %v11721_v47 = vadd.f32 1e-05, %v11705_v0  ;;  %v11688_v6 = vpop.xlane.xlu1 %11687 }
0x255f   :  { %22412 = vrsqrt.f32 %v11722_v51  ;;  %v11708_v62 = vmul.f32 0.0078125, %v11688_v6  ;;  %v11686_v56 = vpop.xlane.xlu0 %11685 }
0x2560   :  { %22414 = vrsqrt.f32 %v11721_v47  ;;  %v11707_v38 = vmul.f32 0.0078125, %v11686_v56 }
0x2561   :  { %v11724_v3 = vadd.f32 1e-05, %v11708_v62 }
0x2562   :  { %v11723_v35 = vadd.f32 1e-05, %v11707_v38  ;;  %v11692_v36 = vpop.xlane.xlu1 %11691 }
0x2563   :  { %v11690_v39 = vpop.xlane.xlu0 %11689  ;;  %v11710_v27 = vmul.f32 0.0078125, %v11692_v36 }
0x2564   :  { %22416 = vrsqrt.f32 %v11723_v35  ;;  %v11709_v61 = vmul.f32 0.0078125, %v11690_v39 }
0x2565   :  { %22418 = vrsqrt.f32 %v11724_v3  ;;  %v11726_v54 = vadd.f32 1e-05, %v11710_v27 }
0x2566   :  { %v11725_v41 = vadd.f32 1e-05, %v11709_v61  ;;  %v11696_v20 = vpop.xlane.xlu1 %11695 }
0x2567   :  { %v11694_v22 = vpop.xlane.xlu0 %11693  ;;  %v11712_v33 = vmul.f32 0.0078125, %v11696_v20 }
0x2568   :  { %22420 = vrsqrt.f32 %v11725_v41  ;;  %v11711_v8 = vmul.f32 0.0078125, %v11694_v22 }
0x2569   :  { %v22413_v57 = vpop.eup %22412  ;;  %22422 = vrsqrt.f32 %v11726_v54  ;;  %v11728_v51 = vadd.f32 1e-05, %v11712_v33  ;;  %v12278_v54 = vld [vmem:[%s28119_s19 + $0x8] sm:$0xff] }
0x256a   :  { %v22415_v21 = vpop.eup %22414  ;;  %v11754_v59 = vmul.f32 %v22413_v57, %v26724_v7  ;;  %v11727_v24 = vadd.f32 1e-05, %v11711_v8  ;;  %v12295_v8 = vld [vmem:[%s28119_s19 + $0x90] sm:$0xff] }
0x256b   :  { %v11753_v46 = vmul.f32 %v22415_v21, %v26727_v5 }
0x256c   :  { %v11776_v40 = vmul.f32 %v26766_v42, %v11754_v59  ;;  %22424 = vrsqrt.f32 %v11727_v24  ;;  %v12280_v59 = vld [vmem:[%s28119_s19 + $0x18] sm:$0xff] }
0x256d   :  { %v11775_v26 = vmul.f32 %v26766_v42, %v11753_v46  ;;  %22426 = vrsqrt.f32 %v11728_v51  ;;  %v12279_v46 = vld [vmem:[%s28119_s19 + $0x10] sm:$0xff] }
0x256e   :  { %v22417_v14 = vpop.eup %22416  ;;  %v26936_v7 = vadd.f32 %v26779_v37, %v11776_v40  ;;  %v21313_v33 = vpack.c.bf16 %v12280_v59, %v12279_v46  ;;  %v12281_v40 = vld [vmem:[%s28119_s19 + $0x20] sm:$0xff]  ;;  %v12291_v46 = vld [vmem:[%s28119_s19 + $0x70] sm:$0xff]  ;;  %v12292_v59 = vld [vmem:[%s28119_s19 + $0x78] sm:$0xff] }
0x256f   :  { %v26929_v23 = vadd.f32 %v26779_v37, %v11775_v26  ;;  %v11755_v29 = vmul.f32 %v22417_v14, %v26737_v53  ;;  %v22419_v0 = vpop.eup %22418  ;;  %v12297_v26 = vld [vmem:[%s28119_s19 + $0xa0] sm:$0xff]  ;;  %v12298_v14 = vld [vmem:[%s28119_s19 + $0xa8] sm:$0xff] }
0x2570   :  { %v11756_v47 = vmul.f32 %v22419_v0, %v26734_v4  ;;  %v21315_v24 = vpack.c.bf16 %v12298_v14, %v12297_v26  ;;  %v12299_v0 = vld [vmem:[%s28119_s19 + $0xb0] sm:$0xff]  ;;  %v12325_v26 = vld [vmem:[%s28119_s19 + $0x180] sm:$0xff]  ;;  %v21337_v14 = vpack.c.bf16 %v12292_v59, %v12291_v46 }
0x2571   :  { %12004 = vmatmul.mubr.f32.gmra.mrb[184].mxu0 %v26929_v23  ;;  %v11777_v5 = vmul.f32 %v26766_v42, %v11755_v29  ;;  %v12282_v29 = vld [vmem:[%s28119_s19 + $0x28] sm:$0xff] }
0x2572   :  { %12009 = vmatprep.mubr.f32.mxu0 %v26538_v2  ;;  %v22421_v6 = vpop.eup %22420  ;;  %v11778_v62 = vmul.f32 %v26766_v42, %v11756_v47  ;;  %v21317_v51 = vpack.c.bf16 %v12282_v29, %v12281_v40  ;;  %v12283_v47 = vld [vmem:[%s28119_s19 + $0x30] sm:$0xff] }
0x2573   :  { %v26943_v53 = vadd.f32 %v26779_v37, %v11777_v5  ;;  %v11757_v56 = vmul.f32 %v22421_v6, %v26747_v19  ;;  %v22423_v38 = vpop.eup %22422  ;;  %v12284_v6 = vld [vmem:[%s28119_s19 + $0x38] sm:$0xff] }
0x2574   :  { %v26950_v4 = vadd.f32 %v26779_v37, %v11778_v62  ;;  %v11758_v35 = vmul.f32 %v22423_v38, %v26744_v55  ;;  %v12301_v62 = vld [vmem:[%s28119_s19 + $0xc0] sm:$0xff] }
0x2575   :  { %12010 = vmatmul.mubr.f32.gmra.mrb[186].mxu0 %v26936_v7  ;;  %v11779_v3 = vmul.f32 %v26766_v42, %v11757_v56  ;;  %v21321_v56 = vpack.c.bf16 %v12284_v6, %v12283_v47  ;;  %v12309_v6 = vld [vmem:[%s28119_s19 + $0x100] sm:$0xff] }
0x2576   :  { %12015 = vmatprep.mubr.f32.mxu0 %v26538_v2  ;;  %v22425_v36 = vpop.eup %22424  ;;  %v11780_v19 = vmul.f32 %v26766_v42, %v11758_v35  ;;  %v12286_v35 = vld [vmem:[%s28119_s19 + $0x48] sm:$0xff] }
0x2577   :  { %v26957_v39 = vadd.f32 %v26779_v37, %v11779_v3  ;;  %v11759_v61 = vmul.f32 %v22425_v36, %v26757_v12  ;;  %v22427_v27 = vpop.eup %22426  ;;  %v12285_v3 = vld [vmem:[%s28119_s19 + $0x40] sm:$0xff]  ;;  %v12303_v36 = vld [vmem:[%s28119_s19 + $0xd0] sm:$0xff] }
0x2578   :  { %v26964_v41 = vadd.f32 %v26779_v37, %v11780_v19  ;;  %v11760_v22 = vmul.f32 %v22427_v27, %v26754_v48  ;;  %v12277_v48 = vld [vmem:[%s28119_s19] sm:$0xff]  ;;  %v21325_v19 = vpack.c.bf16 %v12286_v35, %v12285_v3  ;;  %v12287_v27 = vld [vmem:[%s28119_s19 + $0x50] sm:$0xff] }
0x2579   :  { %12016 = vmatmul.mubr.f32.gmra.mrb[188].mxu0 %v26943_v53  ;;  %v11781_v55 = vmul.f32 %v26766_v42, %v11759_v61 }
0x257a   :  { %12021 = vmatprep.mubr.f32.mxu0 %v26538_v2  ;;  %v11782_v12 = vmul.f32 %v26766_v42, %v11760_v22  ;;  %v12296_v42 = vld [vmem:[%s28119_s19 + $0x98] sm:$0xff]  ;;  %v12305_v22 = vld [vmem:[%s28119_s19 + $0xe0] sm:$0xff] }
0x257b   :  { %v26971_v57 = vadd.f32 %v26779_v37, %v11781_v55  ;;  %v21311_v20 = vpack.c.bf16 %v12296_v42, %v12295_v8  ;;  %v12288_v55 = vld [vmem:[%s28119_s19 + $0x58] sm:$0xff]  ;;  %v12290_v8 = vld [vmem:[%s28119_s19 + $0x68] sm:$0xff]  ;;  %v12307_v42 = vld [vmem:[%s28119_s19 + $0xf0] sm:$0xff] }
0x257c   :  { %v26977_v21 = vadd.f32 %v26779_v37, %v11782_v12  ;;  %v21309_v37 = vpack.c.bf16 %v12278_v54, %v12277_v48  ;;  %v21329_v12 = vpack.c.bf16 %v12288_v55, %v12287_v27  ;;  %v12289_v54 = vld [vmem:[%s28119_s19 + $0x60] sm:$0xff]  ;;  %v12312_v27 = vld [vmem:[%s28119_s19 + $0x118] sm:$0xff] }
0x257d   :  { %12022 = vmatmul.mubr.f32.gmra.mrb[190].mxu0 %v26950_v4 }
0x257e   :  { %12027 = vmatprep.mubr.f32.mxu0 %v26538_v2 }
0x2581   :  { %12028 = vmatmul.mubr.f32.gmra.mrb[192].mxu0 %v26957_v39 }
0x2582   :  { %12033 = vmatprep.mubr.f32.mxu0 %v26538_v2 }
0x2585   :  { %12034 = vmatmul.mubr.f32.gmra.mrb[194].mxu0 %v26964_v41 }
0x2586   :  { %12039 = vmatprep.mubr.f32.mxu0 %v26538_v2 }
0x2589   :  { %12040 = vmatmul.mubr.f32.gmra.mrb[196].mxu0 %v26971_v57 }
0x258a   :  { %12045 = vmatprep.mubr.f32.mxu0 %v26538_v2 }
0x258d   :  { %12046 = vmatmul.mubr.f32.gmra.mrb[198].mxu0 %v26977_v21 }
0x258e   :  { %12116 = vmatprep.mubr.f32.mxu0 %v26538_v2 }
0x2591   :  { %12117 = vmatmul.mubr.f32.vlgmr.msra.gmra.mrb[200].mxu0 %v26789_v11  ;;  %v12300_v11 = vld [vmem:[%s28119_s19 + $0xb8] sm:$0xff] }
0x2592   :  { %12122 = vmatprep.mubr.f32.mxu0 %v26538_v2  ;;  %21310 = vmatpush3.bf16.msra.mxu0 %v21309_v37  ;;  %v21319_v5 = vpack.c.bf16 %v12300_v11, %v12299_v0  ;;  %v21333_v37 = vpack.c.bf16 %v12290_v8, %v12289_v54  ;;  %v22443_v11 = vld [vmem:[#allocation4] sm:$0xff] }
0x2593   :  { %21312 = vmatprep.subr.bf16.mxu0 %v21311_v20 }
0x2595   :  { %12123 = vmatmul.mubr.f32.gmra.mrb[202].mxu0 %v26808_v28  ;;  %v12302_v28 = vld [vmem:[%s28119_s19 + $0xc8] sm:$0xff] }
0x2596   :  { %12128 = vmatprep.mubr.f32.mxu0 %v26538_v2  ;;  %21314 = vmatpush3.bf16.msra.mxu0 %v21313_v33  ;;  %v21323_v38 = vpack.c.bf16 %v12302_v28, %v12301_v62 }
0x2597   :  { %21316 = vmatprep.subr.bf16.mxu0 %v21315_v24 }
0x2599   :  { %12129 = vmatmul.mubr.f32.gmra.mrb[204].mxu0 %v26827_v32  ;;  %v12304_v32 = vld [vmem:[%s28119_s19 + $0xd8] sm:$0xff] }
0x259a   :  { %12134 = vmatprep.mubr.f32.mxu0 %v26538_v2  ;;  %21318 = vmatpush3.bf16.msra.mxu0 %v21317_v51  ;;  %v21327_v61 = vpack.c.bf16 %v12304_v32, %v12303_v36 }
0x259b   :  { %21320 = vmatprep.subr.bf16.mxu0 %v21319_v5 }
0x259d   :  { %12135 = vmatmul.mubr.f32.gmra.mrb[206].mxu0 %v26846_v45  ;;  %v12306_v45 = vld [vmem:[%s28119_s19 + $0xe8] sm:$0xff] }
0x259e   :  { %12140 = vmatprep.mubr.f32.mxu0 %v26538_v2  ;;  %21322 = vmatpush3.bf16.msra.mxu0 %v21321_v56  ;;  %v21331_v48 = vpack.c.bf16 %v12306_v45, %v12305_v22 }
0x259f   :  { %21324 = vmatprep.subr.bf16.mxu0 %v21323_v38  ;;  %v12327_v38 = vld [vmem:[%s28119_s19 + $0x190] sm:$0xff] }
0x25a1   :  { %12141 = vmatmul.mubr.f32.gmra.mrb[208].mxu0 %v26865_v15  ;;  %v12308_v15 = vld [vmem:[%s28119_s19 + $0xf8] sm:$0xff] }
0x25a2   :  { %12146 = vmatprep.mubr.f32.mxu0 %v26538_v2  ;;  %21326 = vmatpush3.bf16.msra.mxu0 %v21325_v19  ;;  %v21335_v20 = vpack.c.bf16 %v12308_v15, %v12307_v42 }
0x25a3   :  { %21328 = vmatprep.subr.bf16.mxu0 %v21327_v61  ;;  %v12311_v61 = vld [vmem:[%s28119_s19 + $0x110] sm:$0xff] }
0x25a4   :  { %v21345_v54 = vpack.c.bf16 %v12312_v27, %v12311_v61 }
0x25a5   :  { %12147 = vmatmul.mubr.f32.gmra.mrb[210].mxu0 %v26884_v49  ;;  %v12326_v49 = vld [vmem:[%s28119_s19 + $0x188] sm:$0xff] }
0x25a6   :  { %12152 = vmatprep.mubr.f32.mxu0 %v26538_v2  ;;  %21330 = vmatpush3.bf16.msra.mxu0 %v21329_v12  ;;  %v21339_v33 = vpack.c.bf16 %v12326_v49, %v12325_v26  ;;  %v12330_v12 = vld [vmem:[%s28119_s19 + $0x1a8] sm:$0xff]  ;;  %v12331_v49 = vld [vmem:[%s28119_s19 + $0x1b0] sm:$0xff] }
0x25a7   :  { %21332 = vmatprep.subr.bf16.mxu0 %v21331_v48 }
0x25a9   :  { %12153 = vmatmul.mubr.f32.gmra.mrb[212].mxu0 %v26897_v16  ;;  %v11871_v16 = vlaneseq }
0x25aa   :  { %12158 = vmatprep.mubr.f32.mxu0 %v26538_v2  ;;  %21334 = vmatpush3.bf16.msra.mxu0 %v21333_v37  ;;  %v12313_v37 = vld [vmem:[%s28119_s19 + $0x120] sm:$0xff] }
0x25ab   :  { %21336 = vmatprep.subr.bf16.mxu0 %v21335_v20  ;;  %v27099_v24 = vshrl.u32 %v11871_v16, 7  ;;  %v12314_v20 = vld [vmem:[%s28119_s19 + $0x128] sm:$0xff] }
0x25ac   :  { %v21349_v16 = vpack.c.bf16 %v12314_v20, %v12313_v37 }
0x25ad   :  { %12159 = vmatmul.mubr.f32.gmra.mrb[214].mxu0 %v26909_v50 }
0x25ae   :  { %12164 = vmatprep.mubr.f32.mxu0 %v26538_v2  ;;  %21338 = vmatpush3.bf16.msra.mxu0 %v21337_v14  ;;  %v12332_v14 = vld [vmem:[%s28119_s19 + $0x1b8] sm:$0xff] }
0x25af   :  { %21340 = vmatprep.subr.bf16.mxu0 %v21339_v33 }
0x25b1   :  { %12165 = vmatmul.mubr.f32.gmra.mrb[216].mxu0 %v26929_v23  ;;  %v11877_v23 = vsub.s32 1, %v27099_v24 }
0x25b2   :  { %12170 = vmatprep.mubr.f32.mxu0 %v26538_v2 }
0x25b5   :  { %12171 = vmatmul.mubr.f32.gmra.mrb[218].mxu0 %v26936_v7  ;;  %v27107_v7 = vld [vmem:[%s28120_s18] sm:$0xf] }
0x25b6   :  { %12176 = vmatprep.mubr.f32.mxu0 %v26538_v2  ;;  %v27113_v29 = vrot.slane %v27107_v7, %v11877_v23 }
0x25b9   :  { %12177 = vmatmul.mubr.f32.gmra.mrb[220].mxu0 %v26943_v53  ;;  %v11873_v53 = vsub.s32 0, %v27099_v24 }
0x25ba   :  { %12182 = vmatprep.mubr.f32.mxu0 %v26538_v2 }
0x25bb   :  { %v27117_v51 = vrot.slane %v27107_v7, %v11873_v53  ;;  %v12315_v53 = vld [vmem:[%s28119_s19 + $0x130] sm:$0xff] }
0x25bd   :  { %12183 = vmatmul.mubr.f32.gmra.mrb[222].mxu0 %v26950_v4 }
0x25be   :  { %12188 = vmatprep.mubr.f32.mxu0 %v26538_v2 }
0x25c0   :  { %v11957_v50 = vpop.f32.mrb[168].mxu0 }
0x25c1   :  { %v11959_v40 = vpop.f32.mrb[169].mxu0  ;;  %12189 = vmatmul.mubr.f32.gmra.mrb[224].mxu0 %v26957_v39 }
0x25c2   :  { %12194 = vmatprep.mubr.f32.mxu0 %v26538_v2  ;;  %v11960_v5 = vadd.f32 %v11959_v40, %v27113_v29  ;;  %v11958_v2 = vadd.f32 %v11957_v50, %v27117_v51  ;;  %v21351_v40 = vpack.c.bf16 %v12332_v14, %v12331_v49  ;;  %v12339_v14 = vld [vmem:[%s28119_s19 + $0x1f0] sm:$0xff] }
0x25c4   :  { %v11963_v4 = vpop.f32.mrb[170].mxu0  ;;  %v12214_v62 = vmax.f32 %v11960_v5, 0.0  ;;  %v12213_v36 = vmax.f32 %v11958_v2, 0.0 }
0x25c5   :  { %v11965_v0 = vpop.f32.mrb[171].mxu0  ;;  %12195 = vmatmul.mubr.f32.gmra.mrb[226].mxu0 %v26964_v41  ;;  %v12310_v41 = vld [vmem:[%s28119_s19 + $0x108] sm:$0xff]  ;;  %v11964_v32 = vadd.f32 %v11963_v4, %v27117_v51  ;;  %v12316_v4 = vld [vmem:[%s28119_s19 + $0x138] sm:$0xff] }
0x25c6   :  { %12200 = vmatprep.mubr.f32.mxu0 %v22443_v11  ;;  %v11966_v28 = vadd.f32 %v11965_v0, %v27113_v29  ;;  %v21341_v35 = vpack.c.bf16 %v12310_v41, %v12309_v6  ;;  %v21353_v6 = vpack.c.bf16 %v12316_v4, %v12315_v53  ;;  %v12323_v53 = vld [vmem:[%s28119_s19 + $0x170] sm:$0xff]  ;;  %v12324_v4 = vld [vmem:[%s28119_s19 + $0x178] sm:$0xff] }
0x25c7   :  { %v12217_v8 = vmax.f32 %v11964_v32, 0.0  ;;  %v12336_v32 = vld [vmem:[%s28119_s19 + $0x1d8] sm:$0xff] }
0x25c8   :  { %v11969_v47 = vpop.f32.mrb[172].mxu0  ;;  %v12218_v55 = vmax.f32 %v11966_v28, 0.0 }
0x25c9   :  { %v11971_v39 = vpop.f32.mrb[173].mxu0  ;;  %12201 = vmatmul.mubr.f32.gmra.mrb[228].mxu0 %v26971_v57  ;;  %v12328_v57 = vld [vmem:[%s28119_s19 + $0x198] sm:$0xff]  ;;  %v11970_v42 = vadd.f32 %v11969_v47, %v27117_v51  ;;  %v12333_v47 = vld [vmem:[%s28119_s19 + $0x1c0] sm:$0xff] }
0x25ca   :  { %12206 = vmatprep.mubr.f32.mxu0 %v22443_v11  ;;  %v21343_v19 = vpack.c.bf16 %v12328_v57, %v12327_v38  ;;  %v11972_v22 = vadd.f32 %v11971_v39, %v27113_v29  ;;  %v12334_v39 = vld [vmem:[%s28119_s19 + $0x1c8] sm:$0xff] }
0x25cb   :  { %v12221_v50 = vmax.f32 %v11970_v42, 0.0  ;;  %v21355_v28 = vpack.c.bf16 %v12334_v39, %v12333_v47  ;;  %v12318_v38 = vld [vmem:[%s28119_s19 + $0x148] sm:$0xff] }
0x25cc   :  { %v11975_v56 = vpop.f32.mrb[174].mxu0  ;;  %v12222_v46 = vmax.f32 %v11972_v22, 0.0 }
0x25cd   :  { %v11977_v3 = vpop.f32.mrb[175].mxu0  ;;  %12207 = vmatmul.mubr.f32.gmra.mrb[230].mxu0 %v26977_v21  ;;  %v12329_v21 = vld [vmem:[%s28119_s19 + $0x1a0] sm:$0xff]  ;;  %v11976_v23 = vadd.f32 %v11975_v56, %v27117_v51 }
0x25ce   :  { %12405 = vmatprep.mubr.f32.mxu0 %v12214_v62  ;;  %v21347_v15 = vpack.c.bf16 %v12330_v12, %v12329_v21  ;;  %v11978_v59 = vadd.f32 %v11977_v3, %v27113_v29  ;;  %v12317_v56 = vld [vmem:[%s28119_s19 + $0x140] sm:$0xff]  ;;  %v12320_v21 = vld [vmem:[%s28119_s19 + $0x158] sm:$0xff] }
0x25cf   :  { %v12225_v41 = vmax.f32 %v11976_v23, 0.0  ;;  %v21357_v61 = vpack.c.bf16 %v12318_v38, %v12317_v56 }
0x25d0   :  { %v11981_v45 = vpop.f32.mrb[176].mxu0  ;;  %v12226_v0 = vmax.f32 %v11978_v59, 0.0  ;;  %v12322_v59 = vld [vmem:[%s28119_s19 + $0x168] sm:$0xff] }
0x25d1   :  { %v11983_v48 = vpop.f32.mrb[177].mxu0  ;;  %12406 = vmatmul.mubr.f32.vlgmr.msra.gmra.mrb[232].mxu0 %v12213_v36  ;;  %v11982_v62 = vadd.f32 %v11981_v45, %v27117_v51  ;;  %v12335_v36 = vld [vmem:[%s28119_s19 + $0x1d0] sm:$0xff] }
0x25d2   :  { %12410 = vmatprep.mubr.f32.mxu0 %v12218_v55  ;;  %21342 = vmatpush3.bf16.msra.mxu0 %v21341_v35  ;;  %v11984_v11 = vadd.f32 %v11983_v48, %v27113_v29  ;;  %v21359_v22 = vpack.c.bf16 %v12336_v32, %v12335_v36  ;;  %v12319_v45 = vld [vmem:[%s28119_s19 + $0x150] sm:$0xff] }
0x25d3   :  { %21344 = vmatprep.subr.bf16.mxu0 %v21343_v19  ;;  %v12229_v27 = vmax.f32 %v11982_v62, 0.0  ;;  %v21361_v42 = vpack.c.bf16 %v12320_v21, %v12319_v45 }
0x25d4   :  { %v11987_v26 = vpop.f32.mrb[178].mxu0  ;;  %v12230_v57 = vmax.f32 %v11984_v11, 0.0  ;;  %v21369_v11 = vpack.c.bf16 %v12324_v4, %v12323_v53  ;;  %v11881_v53 = vsub.s32 2, %v27099_v24 }
0x25d5   :  { %v11989_v33 = vpop.f32.mrb[179].mxu0  ;;  %12411 = vmatmul.mubr.f32.gmra.mrb[234].mxu0 %v12217_v8  ;;  %v11988_v55 = vadd.f32 %v11987_v26, %v27117_v51  ;;  %v12338_v8 = vld [vmem:[%s28119_s19 + $0x1e8] sm:$0xff] }
0x25d6   :  { %12415 = vmatprep.mubr.f32.mxu0 %v12222_v46  ;;  %21346 = vmatpush3.bf16.msra.mxu0 %v21345_v54  ;;  %v11990_v3 = vadd.f32 %v11989_v33, %v27113_v29  ;;  %v12337_v54 = vld [vmem:[%s28119_s19 + $0x1e0] sm:$0xff]  ;;  %v12340_v33 = vld [vmem:[%s28119_s19 + $0x1f8] sm:$0xff] }
0x25d7   :  { %21348 = vmatprep.subr.bf16.mxu0 %v21347_v15  ;;  %v12233_v15 = vmax.f32 %v11988_v55, 0.0  ;;  %v21363_v20 = vpack.c.bf16 %v12338_v8, %v12337_v54  ;;  %v12321_v46 = vld [vmem:[%s28119_s19 + $0x160] sm:$0xff] }
0x25d8   :  { %v11993_v5 = vpop.f32.mrb[180].mxu0  ;;  %v12234_v12 = vmax.f32 %v11990_v3, 0.0 }
0x25d9   :  { %v11995_v2 = vpop.f32.mrb[181].mxu0  ;;  %12416 = vmatmul.mubr.f32.gmra.mrb[236].mxu0 %v12221_v50  ;;  %v11994_v37 = vadd.f32 %v11993_v5, %v27117_v51 }
0x25da   :  { %12420 = vmatprep.mubr.f32.mxu0 %v12226_v0  ;;  %21350 = vmatpush3.bf16.msra.mxu0 %v21349_v16  ;;  %v11996_v48 = vadd.f32 %v11995_v2, %v27113_v29  ;;  %v21365_v16 = vpack.c.bf16 %v12322_v59, %v12321_v46 }
0x25db   :  { %21352 = vmatprep.subr.bf16.mxu0 %v21351_v40  ;;  %v12237_v50 = vmax.f32 %v11994_v37, 0.0  ;;  %v21367_v40 = vpack.c.bf16 %v12340_v33, %v12339_v14 }
0x25dc   :  { %v11999_v35 = vpop.f32.mrb[182].mxu0  ;;  %v12238_v26 = vmax.f32 %v11996_v48, 0.0 }
0x25dd   :  { %v12001_v19 = vpop.f32.mrb[183].mxu0  ;;  %12421 = vmatmul.mubr.f32.gmra.mrb[238].mxu0 %v12225_v41  ;;  %v12000_v23 = vadd.f32 %v11999_v35, %v27117_v51 }
0x25de   :  { %12425 = vmatprep.mubr.f32.mxu0 %v12230_v57  ;;  %21354 = vmatpush3.bf16.msra.mxu0 %v21353_v6  ;;  %v12002_v49 = vadd.f32 %v12001_v19, %v27113_v29 }
0x25df   :  { %21356 = vmatprep.subr.bf16.mxu0 %v21355_v28  ;;  %v12241_v5 = vmax.f32 %v12000_v23, 0.0 }
0x25e0   :  { %v12242_v0 = vmax.f32 %v12002_v49, 0.0 }
0x25e1   :  { %12426 = vmatmul.mubr.f32.gmra.mrb[240].mxu0 %v12229_v27 }
0x25e2   :  { %12430 = vmatprep.mubr.f32.mxu0 %v12234_v12  ;;  %21358 = vmatpush3.bf16.msra.mxu0 %v21357_v61 }
0x25e3   :  { %21360 = vmatprep.subr.bf16.mxu0 %v21359_v22 }
0x25e5   :  { %12431 = vmatmul.mubr.f32.gmra.mrb[242].mxu0 %v12233_v15 }
0x25e6   :  { %12435 = vmatprep.mubr.f32.mxu0 %v12238_v26  ;;  %21362 = vmatpush3.bf16.msra.mxu0 %v21361_v42 }
0x25e7   :  { %21364 = vmatprep.subr.bf16.mxu0 %v21363_v20 }
0x25e9   :  { %12436 = vmatmul.mubr.f32.gmra.mrb[244].mxu0 %v12237_v50 }
0x25ea   :  { %12440 = vmatprep.mubr.f32.mxu0 %v12242_v0  ;;  %21366 = vmatpush3.bf16.msra.mxu0 %v21365_v16  ;;  %v11885_v0 = vsub.s32 3, %v27099_v24 }
0x25eb   :  { %21368 = vmatprep.subr.bf16.mxu0 %v21367_v40 }
0x25ed   :  { %12441 = vmatmul.mubr.f32.gmra.mrb[246].mxu0 %v12241_v5 }
0x25ee   :  { %21370 = vmatpush3.bf16.msra.mxu0 %v21369_v11 }
0x2644   :  { %v12005_v47 = vpop.f32.mrb[184].mxu0 }
0x2645   :  { %v12006_v39 = vadd.f32 %v12005_v47, %v27117_v51  ;;  %v12007_v2 = vpop.f32.mrb[185].mxu0 }
0x2646   :  { %v12008_v6 = vadd.f32 %v12007_v2, %v27113_v29 }
0x2647   :  { %v12245_v28 = vmax.f32 %v12006_v39, 0.0 }
0x2648   :  { %v12246_v41 = vmax.f32 %v12008_v6, 0.0  ;;  %v12011_v62 = vpop.f32.mrb[186].mxu0  ;;  %v27245_v6 = vrot.slane %v27107_v7, %v11881_v53 }
0x2649   :  { %v12012_v56 = vadd.f32 %v12011_v62, %v27117_v51  ;;  %v12013_v38 = vpop.f32.mrb[187].mxu0  ;;  %v27249_v62 = vrot.slane %v27107_v7, %v11885_v0 }
0x264a   :  { %v12014_v57 = vadd.f32 %v12013_v38, %v27113_v29  ;;  %12445 = vmatprep.mubr.f32.mxu0 %v12246_v41 }
0x264b   :  { %12446 = vmatmul.mubr.f32.gmra.mrb[248].mxu0 %v12245_v28  ;;  %v12249_v36 = vmax.f32 %v12012_v56, 0.0 }
0x264c   :  { %v12250_v3 = vmax.f32 %v12014_v57, 0.0  ;;  %v12017_v35 = vpop.f32.mrb[188].mxu0 }
0x264d   :  { %v12018_v32 = vadd.f32 %v12017_v35, %v27117_v51  ;;  %v12019_v19 = vpop.f32.mrb[189].mxu0 }
0x264e   :  { %v12020_v61 = vadd.f32 %v12019_v19, %v27113_v29  ;;  %12450 = vmatprep.mubr.f32.mxu0 %v12250_v3 }
0x264f   :  { %12451 = vmatmul.mubr.f32.gmra.mrb[250].mxu0 %v12249_v36  ;;  %v12253_v22 = vmax.f32 %v12018_v32, 0.0 }
0x2650   :  { %v12254_v27 = vmax.f32 %v12020_v61, 0.0  ;;  %v12023_v55 = vpop.f32.mrb[190].mxu0 }
0x2651   :  { %v12024_v45 = vadd.f32 %v12023_v55, %v27117_v51  ;;  %v12025_v21 = vpop.f32.mrb[191].mxu0 }
0x2652   :  { %v12026_v12 = vadd.f32 %v12025_v21, %v27113_v29  ;;  %12455 = vmatprep.mubr.f32.mxu0 %v12254_v27 }
0x2653   :  { %12456 = vmatmul.mubr.f32.gmra.mrb[252].mxu0 %v12253_v22  ;;  %v12257_v8 = vmax.f32 %v12024_v45, 0.0 }
0x2654   :  { %v12258_v48 = vmax.f32 %v12026_v12, 0.0  ;;  %v12029_v54 = vpop.f32.mrb[192].mxu0 }
0x2655   :  { %v12030_v42 = vadd.f32 %v12029_v54, %v27117_v51  ;;  %v12031_v15 = vpop.f32.mrb[193].mxu0 }
0x2656   :  { %v12032_v37 = vadd.f32 %v12031_v15, %v27113_v29  ;;  %12460 = vmatprep.mubr.f32.mxu0 %v12258_v48 }
0x2657   :  { %12461 = vmatmul.mubr.f32.gmra.mrb[254].mxu0 %v12257_v8  ;;  %v12261_v59 = vmax.f32 %v12030_v42, 0.0 }
0x2658   :  { %v12262_v20 = vmax.f32 %v12032_v37, 0.0  ;;  %v12035_v46 = vpop.f32.mrb[194].mxu0 }
0x2659   :  { %v12036_v26 = vadd.f32 %v12035_v46, %v27117_v51  ;;  %v12037_v49 = vpop.f32.mrb[195].mxu0 }
0x265a   :  { %v12038_v14 = vadd.f32 %v12037_v49, %v27113_v29  ;;  %12465 = vmatprep.mubr.f32.mxu0 %v12262_v20 }
0x265b   :  { %12466 = vmatmul.mubr.f32.gmra.mrb[0].mxu0 %v12261_v59  ;;  %v12265_v50 = vmax.f32 %v12036_v26, 0.0 }
0x265c   :  { %v12266_v33 = vmax.f32 %v12038_v14, 0.0  ;;  %v12041_v16 = vpop.f32.mrb[196].mxu0 }
0x265d   :  { %v12042_v23 = vadd.f32 %v12041_v16, %v27117_v51  ;;  %v12043_v40 = vpop.f32.mrb[197].mxu0 }
0x265e   :  { %v12044_v4 = vadd.f32 %v12043_v40, %v27113_v29  ;;  %12470 = vmatprep.mubr.f32.mxu0 %v12266_v33 }
0x265f   :  { %12471 = vmatmul.mubr.f32.gmra.mrb[2].mxu0 %v12265_v50  ;;  %v12269_v47 = vmax.f32 %v12042_v23, 0.0 }
0x2660   :  { %v12270_v11 = vmax.f32 %v12044_v4, 0.0  ;;  %v12047_v5 = vpop.f32.mrb[198].mxu0 }
0x2661   :  { %v12048_v39 = vadd.f32 %v12047_v5, %v27117_v51  ;;  %v12049_v2 = vpop.f32.mrb[199].mxu0 }
0x2662   :  { %v12050_v41 = vadd.f32 %v12049_v2, %v27113_v29  ;;  %12475 = vmatprep.mubr.f32.mxu0 %v12270_v11 }
0x2663   :  { %12476 = vmatmul.mubr.f32.gmra.mrb[4].mxu0 %v12269_v47  ;;  %v12273_v24 = vmax.f32 %v12048_v39, 0.0 }
0x2664   :  { %v12274_v28 = vmax.f32 %v12050_v41, 0.0  ;;  %v12118_v56 = vpop.f32.mrb[200].mxu0 }
0x2665   :  { %v12119_v38 = vadd.f32 %v12118_v56, %v27245_v6  ;;  %v12120_v57 = vpop.f32.mrb[201].mxu0 }
0x2666   :  { %v12121_v3 = vadd.f32 %v12120_v57, %v27249_v62  ;;  %12480 = vmatprep.mubr.f32.mxu0 %v12274_v28 }
0x2667   :  { %12481 = vmatmul.mubr.f32.gmra.mrb[6].mxu0 %v12273_v24  ;;  %v12215_v36 = vmax.f32 %v12119_v38, 0.0 }
0x2668   :  { %v12216_v51 = vmax.f32 %v12121_v3, 0.0  ;;  %v12124_v35 = vpop.f32.mrb[202].mxu0 }
0x2669   :  { %v12125_v29 = vadd.f32 %v12124_v35, %v27245_v6  ;;  %v12126_v32 = vpop.f32.mrb[203].mxu0 }
0x266a   :  { %v12127_v7 = vadd.f32 %v12126_v32, %v27249_v62  ;;  %12550 = vmatprep.mubr.f32.mxu0 %v12216_v51 }
0x266b   :  { %12551 = vmatmul.mubr.f32.vlgmr.msra.gmra.mrb[8].mxu0 %v12215_v36  ;;  %v12219_v27 = vmax.f32 %v12125_v29, 0.0 }
0x266c   :  { %v12220_v19 = vmax.f32 %v12127_v7, 0.0  ;;  %v12130_v61 = vpop.f32.mrb[204].mxu0 }
0x266d   :  { %v12131_v55 = vadd.f32 %v12130_v61, %v27245_v6  ;;  %v12132_v22 = vpop.f32.mrb[205].mxu0 }
0x266e   :  { %v12133_v45 = vadd.f32 %v12132_v22, %v27249_v62  ;;  %12555 = vmatprep.mubr.f32.mxu0 %v12220_v19 }
0x266f   :  { %12556 = vmatmul.mubr.f32.gmra.mrb[10].mxu0 %v12219_v27  ;;  %v12223_v48 = vmax.f32 %v12131_v55, 0.0 }
0x2670   :  { %v12224_v21 = vmax.f32 %v12133_v45, 0.0  ;;  %v12136_v12 = vpop.f32.mrb[206].mxu0 }
0x2671   :  { %v12137_v54 = vadd.f32 %v12136_v12, %v27245_v6  ;;  %v12138_v8 = vpop.f32.mrb[207].mxu0 }
0x2672   :  { %v12139_v42 = vadd.f32 %v12138_v8, %v27249_v62  ;;  %12560 = vmatprep.mubr.f32.mxu0 %v12224_v21 }
0x2673   :  { %12561 = vmatmul.mubr.f32.gmra.mrb[12].mxu0 %v12223_v48  ;;  %v12227_v20 = vmax.f32 %v12137_v54, 0.0 }
0x2674   :  { %v12228_v15 = vmax.f32 %v12139_v42, 0.0  ;;  %v12142_v37 = vpop.f32.mrb[208].mxu0 }
0x2675   :  { %v12143_v46 = vadd.f32 %v12142_v37, %v27245_v6  ;;  %v12144_v59 = vpop.f32.mrb[209].mxu0 }
0x2676   :  { %v12145_v26 = vadd.f32 %v12144_v59, %v27249_v62  ;;  %12565 = vmatprep.mubr.f32.mxu0 %v12228_v15 }
0x2677   :  { %12566 = vmatmul.mubr.f32.gmra.mrb[14].mxu0 %v12227_v20  ;;  %v12231_v33 = vmax.f32 %v12143_v46, 0.0 }
0x2678   :  { %v12232_v49 = vmax.f32 %v12145_v26, 0.0  ;;  %v12148_v14 = vpop.f32.mrb[210].mxu0 }
0x2679   :  { %v12149_v16 = vadd.f32 %v12148_v14, %v27245_v6  ;;  %v12150_v50 = vpop.f32.mrb[211].mxu0 }
0x267a   :  { %v12151_v23 = vadd.f32 %v12150_v50, %v27249_v62  ;;  %12570 = vmatprep.mubr.f32.mxu0 %v12232_v49 }
0x267b   :  { %12571 = vmatmul.mubr.f32.gmra.mrb[16].mxu0 %v12231_v33  ;;  %v12235_v4 = vmax.f32 %v12149_v16, 0.0 }
0x267c   :  { %v12236_v40 = vmax.f32 %v12151_v23, 0.0  ;;  %v12154_v53 = vpop.f32.mrb[212].mxu0 }
0x267d   :  { %v12155_v0 = vadd.f32 %v12154_v53, %v27245_v6  ;;  %v12156_v11 = vpop.f32.mrb[213].mxu0 }
0x267e   :  { %v12157_v5 = vadd.f32 %v12156_v11, %v27249_v62  ;;  %12575 = vmatprep.mubr.f32.mxu0 %v12236_v40 }
0x267f   :  { %12576 = vmatmul.mubr.f32.gmra.mrb[18].mxu0 %v12235_v4  ;;  %v12239_v2 = vmax.f32 %v12155_v0, 0.0 }
0x2680   :  { %v12240_v47 = vmax.f32 %v12157_v5, 0.0  ;;  %v12160_v39 = vpop.f32.mrb[214].mxu0 }
0x2681   :  { %v12161_v41 = vadd.f32 %v12160_v39, %v27245_v6  ;;  %v12162_v28 = vpop.f32.mrb[215].mxu0 }
0x2682   :  { %v12163_v56 = vadd.f32 %v12162_v28, %v27249_v62  ;;  %12580 = vmatprep.mubr.f32.mxu0 %v12240_v47 }
0x2683   :  { %12581 = vmatmul.mubr.f32.gmra.mrb[20].mxu0 %v12239_v2  ;;  %v12243_v57 = vmax.f32 %v12161_v41, 0.0 }
0x2684   :  { %v12244_v24 = vmax.f32 %v12163_v56, 0.0  ;;  %v12166_v38 = vpop.f32.mrb[216].mxu0 }
0x2685   :  { %v12167_v3 = vadd.f32 %v12166_v38, %v27245_v6  ;;  %v12168_v51 = vpop.f32.mrb[217].mxu0 }
0x2686   :  { %v12169_v35 = vadd.f32 %v12168_v51, %v27249_v62  ;;  %12585 = vmatprep.mubr.f32.mxu0 %v12244_v24 }
0x2687   :  { %12586 = vmatmul.mubr.f32.gmra.mrb[22].mxu0 %v12243_v57  ;;  %v12247_v32 = vmax.f32 %v12167_v3, 0.0 }
0x2688   :  { %v12248_v36 = vmax.f32 %v12169_v35, 0.0  ;;  %v12172_v29 = vpop.f32.mrb[218].mxu0 }
0x2689   :  { %v12173_v7 = vadd.f32 %v12172_v29, %v27245_v6  ;;  %v12174_v19 = vpop.f32.mrb[219].mxu0  ;;  %v15312_v29 = vld [vmem:[%s28121_s21 + $0x88] sm:$0xff] }
0x268a   :  { %v12175_v61 = vadd.f32 %v12174_v19, %v27249_v62  ;;  %12590 = vmatprep.mubr.f32.mxu0 %v12248_v36  ;;  %v15311_v36 = vld [vmem:[%s28121_s21 + $0x80] sm:$0xff]  ;;  %v15313_v19 = vld [vmem:[%s28121_s21 + $0x90] sm:$0xff] }
0x268b   :  { %12591 = vmatmul.mubr.f32.gmra.mrb[24].mxu0 %v12247_v32  ;;  %v12251_v22 = vmax.f32 %v12173_v7, 0.0 }
0x268c   :  { %v12252_v27 = vmax.f32 %v12175_v61, 0.0  ;;  %v12178_v55 = vpop.f32.mrb[220].mxu0  ;;  %v15314_v61 = vld [vmem:[%s28121_s21 + $0x98] sm:$0xff] }
0x268d   :  { %v12179_v45 = vadd.f32 %v12178_v55, %v27245_v6  ;;  %v12180_v21 = vpop.f32.mrb[221].mxu0  ;;  %v21375_v55 = vpack.c.bf16 %v15314_v61, %v15313_v19  ;;  %v15325_v19 = vld [vmem:[%s28121_s21 + $0xf0] sm:$0xff] }
0x268e   :  { %v12181_v12 = vadd.f32 %v12180_v21, %v27249_v62  ;;  %12595 = vmatprep.mubr.f32.mxu0 %v12252_v27  ;;  %v15315_v21 = vld [vmem:[%s28121_s21 + $0xa0] sm:$0xff] }
0x268f   :  { %12596 = vmatmul.mubr.f32.gmra.mrb[26].mxu0 %v12251_v22  ;;  %v12255_v8 = vmax.f32 %v12179_v45, 0.0 }
0x2690   :  { %v12256_v48 = vmax.f32 %v12181_v12, 0.0  ;;  %v12184_v54 = vpop.f32.mrb[222].mxu0  ;;  %v15316_v12 = vld [vmem:[%s28121_s21 + $0xa8] sm:$0xff] }
0x2691   :  { %v12185_v42 = vadd.f32 %v12184_v54, %v27245_v6  ;;  %v12186_v15 = vpop.f32.mrb[223].mxu0  ;;  %v21379_v54 = vpack.c.bf16 %v15316_v12, %v15315_v21  ;;  %v15431_v21 = vld [vmem:[%s28121_s21 + $0x440] sm:$0xff]  ;;  %v15432_v12 = vld [vmem:[%s28121_s21 + $0x448] sm:$0xff] }
0x2692   :  { %v12187_v37 = vadd.f32 %v12186_v15, %v27249_v62  ;;  %12600 = vmatprep.mubr.f32.mxu0 %v12256_v48  ;;  %v15317_v15 = vld [vmem:[%s28121_s21 + $0xb0] sm:$0xff] }
0x2693   :  { %12601 = vmatmul.mubr.f32.gmra.mrb[28].mxu0 %v12255_v8  ;;  %v12259_v59 = vmax.f32 %v12185_v42, 0.0 }
0x2694   :  { %v12260_v20 = vmax.f32 %v12187_v37, 0.0  ;;  %v12190_v46 = vpop.f32.mrb[224].mxu0  ;;  %v15318_v37 = vld [vmem:[%s28121_s21 + $0xb8] sm:$0xff] }
0x2695   :  { %v12191_v26 = vadd.f32 %v12190_v46, %v27245_v6  ;;  %v12192_v49 = vpop.f32.mrb[225].mxu0  ;;  %v21383_v46 = vpack.c.bf16 %v15318_v37, %v15317_v15  ;;  %v15434_v15 = vld [vmem:[%s28121_s21 + $0x458] sm:$0xff] }
0x2696   :  { %v12193_v14 = vadd.f32 %v12192_v49, %v27249_v62  ;;  %12605 = vmatprep.mubr.f32.mxu0 %v12260_v20  ;;  %v15423_v49 = vld [vmem:[%s28121_s21 + $0x400] sm:$0xff] }
0x2697   :  { %12606 = vmatmul.mubr.f32.gmra.mrb[30].mxu0 %v12259_v59  ;;  %v12263_v50 = vmax.f32 %v12191_v26, 0.0 }
0x2698   :  { %v12264_v33 = vmax.f32 %v12193_v14, 0.0  ;;  %v12196_v16 = vpop.f32.mrb[226].mxu0  ;;  %v15424_v14 = vld [vmem:[%s28121_s21 + $0x408] sm:$0xff] }
0x2699   :  { %v12197_v23 = vadd.f32 %v12196_v16, %v27245_v6  ;;  %v12198_v40 = vpop.f32.mrb[227].mxu0 }
0x269a   :  { %v12199_v53 = vadd.f32 %v12198_v40, %v27249_v62  ;;  %12610 = vmatprep.mubr.f32.mxu0 %v12264_v33  ;;  %v15319_v33 = vld [vmem:[%s28121_s21 + $0xc0] sm:$0xff] }
0x269b   :  { %12611 = vmatmul.mubr.f32.gmra.mrb[32].mxu0 %v12263_v50  ;;  %v12267_v11 = vmax.f32 %v12197_v23, 0.0  ;;  %v27326_v50 = vpack.c.bf16 %v15424_v14, %v15423_v49  ;;  %v15320_v23 = vld [vmem:[%s28121_s21 + $0xc8] sm:$0xff]  ;;  %v15437_v49 = vld [vmem:[%s28121_s21 + $0x470] sm:$0xff]  ;;  %v15438_v14 = vld [vmem:[%s28121_s21 + $0x478] sm:$0xff] }
0x269c   :  { %v12268_v4 = vmax.f32 %v12199_v53, 0.0  ;;  %v12202_v0 = vpop.f32.mrb[228].mxu0  ;;  %v21387_v40 = vpack.c.bf16 %v15320_v23, %v15319_v33  ;;  %v27423_v33 = vpack.c.bf16 %v15438_v14, %v15437_v49  ;;  %v12743_v23 = vld [vmem:[%s28121_s21] sm:$0xff] }
0x269d   :  { %v12203_v5 = vadd.f32 %v12202_v0, %v27245_v6  ;;  %v12204_v47 = vpop.f32.mrb[229].mxu0  ;;  %21628 = vmatprep.subr.bf16.mxu0 %v27326_v50  ;;  %v15425_v0 = vld [vmem:[%s28121_s21 + $0x410] sm:$0xff] }
0x269e   :  { %v12205_v39 = vadd.f32 %v12204_v47, %v27249_v62  ;;  %12615 = vmatprep.mubr.f32.mxu0 %v12268_v4  ;;  %21630 = vmatpush3.bf16.msra.mxu0 %v27326_v50 }
0x269f   :  { %12616 = vmatmul.mubr.f32.gmra.mrb[34].mxu0 %v12267_v11  ;;  %v12271_v28 = vmax.f32 %v12203_v5, 0.0  ;;  %v15426_v11 = vld [vmem:[%s28121_s21 + $0x418] sm:$0xff]  ;;  %v15321_v5 = vld [vmem:[%s28121_s21 + $0xd0] sm:$0xff] }
0x26a0   :  { %v12272_v2 = vmax.f32 %v12205_v39, 0.0  ;;  %v12208_v41 = vpop.f32.mrb[230].mxu0  ;;  %v27344_v39 = vpack.c.bf16 %v15426_v11, %v15425_v0 }
0x26a1   :  { %v12209_v56 = vadd.f32 %v12208_v41, %v27245_v6  ;;  %v12210_v24 = vpop.f32.mrb[231].mxu0  ;;  %v21371_v6 = vpack.c.bf16 %v15312_v29, %v15311_v36 }
0x26a2   :  { %v12211_v38 = vadd.f32 %v12210_v24, %v27249_v62  ;;  %12620 = vmatprep.mubr.f32.mxu0 %v12272_v2  ;;  %v15322_v2 = vld [vmem:[%s28121_s21 + $0xd8] sm:$0xff]  ;;  %21632 = vmatprep.subr.bf16.mxu0 %v27344_v39  ;;  %v15427_v24 = vld [vmem:[%s28121_s21 + $0x420] sm:$0xff] }
0x26a3   :  { %12621 = vmatmul.mubr.f32.gmra.mrb[36].mxu0 %v12271_v28  ;;  %v12275_v51 = vmax.f32 %v12209_v56, 0.0  ;;  %21372 = vmatprep.subr.bf16.mxu1 %v21371_v6  ;;  %v21391_v41 = vpack.c.bf16 %v15322_v2, %v15321_v5 }
0x26a4   :  { %v12276_v57 = vmax.f32 %v12211_v38, 0.0  ;;  %v16769_v3 = vpop.f32.mrb[232].mxu0  ;;  %21374 = vmatpush3.bf16.msra.mxu1 %v21371_v6  ;;  %21634 = vmatpush3.bf16.msra.mxu0 %v27344_v39  ;;  %v15428_v38 = vld [vmem:[%s28121_s21 + $0x428] sm:$0xff] }
0x26a5   :  { %v16770_v35 = vpop.f32.mrb[233].mxu0  ;;  %21376 = vmatprep.subr.bf16.mxu1 %v21375_v55 }
0x26a6   :  { %v27289_v32 = vadd.f32 %v16770_v35, %v16769_v3  ;;  %12625 = vmatprep.mubr.f32.mxu0 %v12276_v57  ;;  %v15323_v57 = vld [vmem:[%s28121_s21 + $0xe0] sm:$0xff]  ;;  %v15324_v35 = vld [vmem:[%s28121_s21 + $0xe8] sm:$0xff] }
0x26a7   :  { %12626 = vmatmul.mubr.f32.gmra.mrb[38].mxu0 %v12275_v51  ;;  %v27362_v51 = vpack.c.bf16 %v15428_v38, %v15427_v24  ;;  %v21395_v36 = vpack.c.bf16 %v15324_v35, %v15323_v57 }
0x26a8   :  { %v16772_v62 = vpop.f32.mrb[234].mxu0  ;;  %21378 = vmatpush3.bf16.msra.mxu1 %v21375_v55 }
0x26a9   :  { %v16773_v7 = vpop.f32.mrb[235].mxu0  ;;  %21380 = vmatprep.subr.bf16.mxu1 %v21379_v54  ;;  %21636 = vmatprep.subr.bf16.mxu0 %v27362_v51 }
0x26aa   :  { %v27297_v27 = vadd.f32 %v16773_v7, %v16772_v62  ;;  %21638 = vmatpush3.bf16.msra.mxu0 %v27362_v51  ;;  %v15429_v62 = vld [vmem:[%s28121_s21 + $0x430] sm:$0xff]  ;;  %v15430_v7 = vld [vmem:[%s28121_s21 + $0x438] sm:$0xff] }
0x26ab   :  { %v27380_v55 = vpack.c.bf16 %v15430_v7, %v15429_v62 }
0x26ac   :  { %v16775_v22 = vpop.f32.mrb[236].mxu0  ;;  %21382 = vmatpush3.bf16.msra.mxu1 %v21379_v54  ;;  %v27393_v54 = vpack.c.bf16 %v15432_v12, %v15431_v21 }
0x26ad   :  { %v16776_v45 = vpop.f32.mrb[237].mxu0  ;;  %21384 = vmatprep.subr.bf16.mxu1 %v21383_v46  ;;  %21640 = vmatprep.subr.bf16.mxu0 %v27380_v55 }
0x26ae   :  { %v27305_v48 = vadd.f32 %v16776_v45, %v16775_v22  ;;  %v15326_v22 = vld [vmem:[%s28121_s21 + $0xf8] sm:$0xff]  ;;  %21642 = vmatpush3.bf16.msra.mxu0 %v27380_v55 }
0x26af   :  { %v21399_v45 = vpack.c.bf16 %v15326_v22, %v15325_v19  ;;  %21644 = vmatprep.subr.bf16.mxu0 %v27393_v54 }
0x26b0   :  { %v16778_v8 = vpop.f32.mrb[238].mxu0  ;;  %21386 = vmatpush3.bf16.msra.mxu1 %v21383_v46  ;;  %v15435_v46 = vld [vmem:[%s28121_s21 + $0x460] sm:$0xff] }
0x26b1   :  { %v16779_v42 = vpop.f32.mrb[239].mxu0  ;;  %21388 = vmatprep.subr.bf16.mxu1 %v21387_v40 }
0x26b2   :  { %v27313_v20 = vadd.f32 %v16779_v42, %v16778_v8  ;;  %v12759_v8 = vld [vmem:[#allocation4 + $0x1] sm:$0xff]  ;;  %21646 = vmatpush3.bf16.msra.mxu0 %v27393_v54  ;;  %v15433_v42 = vld [vmem:[%s28121_s21 + $0x450] sm:$0xff] }
0x26b3   :  { %19475 = vmatprep.mubr.f32.mxu1 %v12759_v8  ;;  %v27403_v37 = vpack.c.bf16 %v15434_v15, %v15433_v42 }
0x26b4   :  { %v16781_v59 = vpop.f32.mrb[240].mxu0  ;;  %21390 = vmatpush3.bf16.msra.mxu1 %v21387_v40  ;;  %v12744_v40 = vld [vmem:[%s28121_s21 + $0x8] sm:$0xff] }
0x26b5   :  { %v16782_v26 = vpop.f32.mrb[241].mxu0  ;;  %21392 = vmatprep.subr.bf16.mxu1 %v21391_v41  ;;  %21648 = vmatprep.subr.bf16.mxu0 %v27403_v37 }
0x26b6   :  { %v27324_v16 = vadd.f32 %v16782_v26, %v16781_v59  ;;  %21650 = vmatpush3.bf16.msra.mxu0 %v27403_v37  ;;  %v15436_v59 = vld [vmem:[%s28121_s21 + $0x468] sm:$0xff] }
0x26b7   :  { %v27413_v26 = vpack.c.bf16 %v15436_v59, %v15435_v46 }
0x26b8   :  { %v16784_v53 = vpop.f32.mrb[242].mxu0  ;;  %21394 = vmatpush3.bf16.msra.mxu1 %v21391_v41 }
0x26b9   :  { %v16785_v4 = vpop.f32.mrb[243].mxu0  ;;  %21396 = vmatprep.subr.bf16.mxu1 %v21395_v36  ;;  %21652 = vmatprep.subr.bf16.mxu0 %v27413_v26 }
0x26ba   :  { %v27342_v47 = vadd.f32 %v16785_v4, %v16784_v53  ;;  %21654 = vmatpush3.bf16.msra.mxu0 %v27413_v26  ;;  %v21403_v53 = vpack.c.bf16 %v12744_v40, %v12743_v23  ;;  %v27453_v23 = vld [vmem:[%s28122_s20] ss:$0 sm:$0xff] }
0x26bb   :  { %21656 = vmatprep.subr.bf16.mxu0 %v27423_v33 }
0x26bc   :  { %v16787_v28 = vpop.f32.mrb[244].mxu0  ;;  %21398 = vmatpush3.bf16.msra.mxu1 %v21395_v36 }
0x26bd   :  { %v16788_v56 = vpop.f32.mrb[245].mxu0  ;;  %21400 = vmatprep.subr.bf16.mxu1 %v21399_v45 }
0x26be   :  { %v27360_v3 = vadd.f32 %v16788_v56, %v16787_v28  ;;  %21658 = vmatpush3.bf16.msra.mxu0 %v27423_v33 }
0x26c0   :  { %v16790_v29 = vpop.f32.mrb[246].mxu0  ;;  %21402 = vmatpush3.bf16.msra.mxu1 %v21399_v45 }
0x26c1   :  { %v16791_v6 = vpop.f32.mrb[247].mxu0  ;;  %21404 = vmatprep.subr.bf16.mxu1 %v21403_v53 }
0x26c2   :  { %v27378_v61 = vadd.f32 %v16791_v6, %v16790_v29 }
0x271e   :  { %v16793_v4 = vpop.f32.mrb[248].mxu0 }
0x271f   :  { %v16794_v0 = vpop.f32.mrb[249].mxu0 }
0x2720   :  { %v27433_v11 = vadd.f32 %v16794_v0, %v16793_v4  ;;  %v12745_v4 = vld [vmem:[%s28121_s21 + $0x10] sm:$0xff]  ;;  %v12746_v0 = vld [vmem:[%s28121_s21 + $0x18] sm:$0xff] }
0x2722   :  { %v16796_v5 = vpop.f32.mrb[250].mxu0 }
0x2723   :  { %v16797_v2 = vpop.f32.mrb[251].mxu0 }
0x2724   :  { %v27435_v41 = vadd.f32 %v16797_v2, %v16796_v5 }
0x2726   :  { %v16799_v28 = vpop.f32.mrb[252].mxu0 }
0x2727   :  { %v16800_v56 = vpop.f32.mrb[253].mxu0 }
0x2728   :  { %v27437_v24 = vadd.f32 %v16800_v56, %v16799_v28 }
0x272a   :  { %v16802_v38 = vpop.f32.mrb[254].mxu0 }
0x272b   :  { %v16803_v57 = vpop.f32.mrb[255].mxu0 }
0x272c   :  { %v27439_v35 = vadd.f32 %v16803_v57, %v16802_v38  ;;  %v21407_v38 = vpack.c.bf16 %v12746_v0, %v12745_v4 }
0x272e   :  { %v16805_v36 = vpop.f32.mrb[0].mxu0 }
0x272f   :  { %v16806_v29 = vpop.f32.mrb[1].mxu0 }
0x2730   :  { %v27441_v6 = vadd.f32 %v16806_v29, %v16805_v36  ;;  %v12747_v36 = vld [vmem:[%s28121_s21 + $0x20] sm:$0xff]  ;;  %v12748_v29 = vld [vmem:[%s28121_s21 + $0x28] sm:$0xff] }
0x2732   :  { %v16808_v62 = vpop.f32.mrb[2].mxu0 }
0x2733   :  { %v16809_v7 = vpop.f32.mrb[3].mxu0 }
0x2734   :  { %v27443_v19 = vadd.f32 %v16809_v7, %v16808_v62 }
0x2736   :  { %v16811_v22 = vpop.f32.mrb[4].mxu0 }
0x2737   :  { %v16812_v45 = vpop.f32.mrb[5].mxu0 }
0x2738   :  { %v27445_v21 = vadd.f32 %v16812_v45, %v16811_v22  ;;  %v21411_v45 = vpack.c.bf16 %v12748_v29, %v12747_v36 }
0x273a   :  { %v16814_v12 = vpop.f32.mrb[6].mxu0 }
0x273b   :  { %v16815_v8 = vpop.f32.mrb[7].mxu0 }
0x273c   :  { %v27447_v42 = vadd.f32 %v16815_v8, %v16814_v12  ;;  %v12749_v8 = vld [vmem:[%s28121_s21 + $0x30] sm:$0xff] }
0x273e   :  { %v16849_v15 = vpop.f32.mrb[8].mxu0 }
0x273f   :  { %v16850_v46 = vpop.f32.mrb[9].mxu0 }
0x2740   :  { %v16851_v59 = vadd.f32 %v16850_v46, %v16849_v15 }
0x2742   :  { %v12553_v49 = vadd.f32 %v16851_v59, %v27289_v32  ;;  %v16852_v14 = vpop.f32.mrb[10].mxu0 }
0x2743   :  { %v16853_v40 = vpop.f32.mrb[11].mxu0 }
0x2744   :  { %v12631_v5 = vadd.f32 %v12553_v49, %v26476_v43  ;;  %v16854_v2 = vadd.f32 %v16853_v40, %v16852_v14  ;;  %v12751_v40 = vld [vmem:[%s28121_s21 + $0x40] sm:$0xff] }
0x2746   :  { %v27463_v32 = vadd.f32 %v27453_v23, %v12631_v5  ;;  %v12558_v28 = vadd.f32 %v16854_v2, %v27297_v27  ;;  %v16855_v56 = vpop.f32.mrb[12].mxu0 }
0x2747   :  { %v16856_v57 = vpop.f32.mrb[13].mxu0 }
0x2748   :  { %12711 = vst [vmem:[#allocation4 + $0x11] sm:$0xff] %v27463_v32  ;;  %v12632_v43 = vadd.f32 %v12558_v28, %v26471_v30  ;;  %v16857_v62 = vadd.f32 %v16856_v57, %v16855_v56  ;;  %19476 = vmatmul.mubr.f32.vlgmr.msra.gmra.mrb[200].mxu1 %v27463_v32  ;;  %v12750_v30 = vld [vmem:[%s28121_s21 + $0x38] sm:$0xff]  ;;  %v12753_v57 = vld [vmem:[%s28121_s21 + $0x50] sm:$0xff] }
0x2749   :  { %21406 = vmatpush3.bf16.msra.mxu1 %v21403_v53  ;;  %v21415_v49 = vpack.c.bf16 %v12750_v30, %v12749_v8 }
0x274a   :  { %v27476_v27 = vadd.f32 %v27453_v23, %v12632_v43  ;;  %v12563_v7 = vadd.f32 %v16857_v62, %v27305_v48  ;;  %v16858_v22 = vpop.f32.mrb[14].mxu0  ;;  %21408 = vmatprep.subr.bf16.mxu1 %v21407_v38 }
0x274b   :  { %v16859_v12 = vpop.f32.mrb[15].mxu0 }
0x274c   :  { %12712 = vst [vmem:[#allocation4 + $0x21] sm:$0xff] %v27476_v27  ;;  %v12633_v53 = vadd.f32 %v12563_v7, %v26488_v63  ;;  %v16860_v15 = vadd.f32 %v16859_v12, %v16858_v22  ;;  %19478 = vmatprep.mubr.f32.mxu1 %v27476_v27  ;;  %v12752_v63 = vld [vmem:[%s28121_s21 + $0x48] sm:$0xff] }
0x274d   :  { %21410 = vmatpush3.bf16.msra.mxu1 %v21407_v38  ;;  %v21419_v28 = vpack.c.bf16 %v12752_v63, %v12751_v40  ;;  %v12756_v12 = vld [vmem:[%s28121_s21 + $0x68] sm:$0xff] }
0x274e   :  { %v27489_v48 = vadd.f32 %v27453_v23, %v12633_v53  ;;  %v12568_v46 = vadd.f32 %v16860_v15, %v27313_v20  ;;  %v16861_v59 = vpop.f32.mrb[16].mxu0  ;;  %21412 = vmatprep.subr.bf16.mxu1 %v21411_v45 }
0x274f   :  { %v16862_v14 = vpop.f32.mrb[17].mxu0 }
0x2750   :  { %12713 = vst [vmem:[#allocation4 + $0x31] sm:$0xff] %v27489_v48  ;;  %v12634_v4 = vadd.f32 %v12568_v46, %v26483_v18  ;;  %v16863_v0 = vadd.f32 %v16862_v14, %v16861_v59  ;;  %19479 = vmatmul.mubr.f32.gmra.mrb[202].mxu1 %v27489_v48  ;;  %v12754_v18 = vld [vmem:[%s28121_s21 + $0x58] sm:$0xff] }
0x2751   :  { %21414 = vmatpush3.bf16.msra.mxu1 %v21411_v45  ;;  %v21423_v7 = vpack.c.bf16 %v12754_v18, %v12753_v57 }
0x2752   :  { %v27502_v20 = vadd.f32 %v27453_v23, %v12634_v4  ;;  %v12573_v5 = vadd.f32 %v16863_v0, %v27324_v16  ;;  %v16864_v2 = vpop.f32.mrb[18].mxu0  ;;  %21416 = vmatprep.subr.bf16.mxu1 %v21415_v49  ;;  %v12767_v0 = vld [vmem:[#allocation4 + $0xa1] sm:$0xff] }
0x2753   :  { %v16865_v56 = vpop.f32.mrb[19].mxu0  ;;  %v27505_v38 = vld [vmem:[#allocation4 + $0x22] sm:$0xff] }
0x2754   :  { %12714 = vst [vmem:[#allocation4 + $0x41] sm:$0xff] %v27502_v20  ;;  %v12635_v36 = vadd.f32 %v12573_v5, %v26500_v10  ;;  %v16866_v29 = vadd.f32 %v16865_v56, %v16864_v2  ;;  %19923 = vmatprep.mubr.f32.mxu0 %v27505_v38  ;;  %19481 = vmatprep.mubr.f32.mxu1 %v27502_v20  ;;  %v12755_v10 = vld [vmem:[%s28121_s21 + $0x60] sm:$0xff] }
0x2755   :  { %21418 = vmatpush3.bf16.msra.mxu1 %v21415_v49  ;;  %v21427_v46 = vpack.c.bf16 %v12756_v12, %v12755_v10  ;;  %v12757_v49 = vld [vmem:[%s28121_s21 + $0x70] sm:$0xff] }
0x2756   :  { %v27518_v16 = vadd.f32 %v27453_v23, %v12635_v36  ;;  %v12578_v43 = vadd.f32 %v16866_v29, %v27342_v47  ;;  %v16867_v62 = vpop.f32.mrb[20].mxu0  ;;  %21420 = vmatprep.subr.bf16.mxu1 %v21419_v28 }
0x2757   :  { %v16868_v22 = vpop.f32.mrb[21].mxu0  ;;  %v27521_v45 = vld [vmem:[#allocation4 + $0x32] sm:$0xff] }
0x2758   :  { %12715 = vst [vmem:[#allocation4 + $0x51] sm:$0xff] %v27518_v16  ;;  %v12636_v8 = vadd.f32 %v12578_v43, %v26495_v31  ;;  %v16869_v30 = vadd.f32 %v16868_v22, %v16867_v62  ;;  %19924 = vmatmul.mubr.f32.vlgmr.msra.gmra.mrb[40].mxu0 %v27521_v45  ;;  %19482 = vmatmul.mubr.f32.gmra.mrb[204].mxu1 %v27518_v16  ;;  %v12758_v31 = vld [vmem:[%s28121_s21 + $0x78] sm:$0xff] }
0x2759   :  { %21422 = vmatpush3.bf16.msra.mxu1 %v21419_v28  ;;  %v21431_v5 = vpack.c.bf16 %v12758_v31, %v12757_v49  ;;  %v15327_v28 = vld [vmem:[%s28121_s21 + $0x100] sm:$0xff] }
0x275a   :  { %v27534_v47 = vadd.f32 %v27453_v23, %v12636_v8  ;;  %v12583_v53 = vadd.f32 %v16869_v30, %v27360_v3  ;;  %v16870_v15 = vpop.f32.mrb[22].mxu0  ;;  %21424 = vmatprep.subr.bf16.mxu1 %v21423_v7 }
0x275b   :  { %v16871_v59 = vpop.f32.mrb[23].mxu0 }
0x275c   :  { %12716 = vst [vmem:[#allocation4 + $0x61] sm:$0xff] %v27534_v47  ;;  %v12637_v14 = vadd.f32 %v12583_v53, %v26510_v34  ;;  %v16872_v40 = vadd.f32 %v16871_v59, %v16870_v15  ;;  %19484 = vmatprep.mubr.f32.mxu1 %v27534_v47  ;;  %v15328_v34 = vld [vmem:[%s28121_s21 + $0x108] sm:$0xff] }
0x275d   :  { %21426 = vmatpush3.bf16.msra.mxu1 %v21423_v7  ;;  %v27563_v29 = vpack.c.bf16 %v15328_v34, %v15327_v28 }
0x275e   :  { %v27547_v3 = vadd.f32 %v27453_v23, %v12637_v14  ;;  %v12588_v63 = vadd.f32 %v16872_v40, %v27378_v61  ;;  %v16873_v4 = vpop.f32.mrb[24].mxu0  ;;  %21428 = vmatprep.subr.bf16.mxu1 %v21427_v46 }
0x275f   :  { %v16874_v2 = vpop.f32.mrb[25].mxu0 }
0x2760   :  { %12717 = vst [vmem:[#allocation4 + $0x71] sm:$0xff] %v27547_v3  ;;  %v12638_v56 = vadd.f32 %v12588_v63, %v26507_v13  ;;  %v16875_v57 = vadd.f32 %v16874_v2, %v16873_v4  ;;  %19485 = vmatmul.mubr.f32.gmra.mrb[206].mxu1 %v27547_v3 }
0x2761   :  { %19487 = vmatprep.mubr.f32.mxu1 %v12767_v0  ;;  %21430 = vmatpush3.bf16.msra.mxu1 %v21427_v46 }
0x2762   :  { %v27560_v61 = vadd.f32 %v27453_v23, %v12638_v56  ;;  %v12593_v18 = vadd.f32 %v16875_v57, %v27433_v11  ;;  %v16876_v36 = vpop.f32.mrb[26].mxu0  ;;  %21432 = vmatprep.subr.bf16.mxu1 %v21431_v5 }
0x2763   :  { %v16877_v43 = vpop.f32.mrb[27].mxu0 }
0x2764   :  { %12718 = vst [vmem:[#allocation4 + $0x81] sm:$0xff] %v27560_v61  ;;  %v12639_v62 = vadd.f32 %v12593_v18, %v26547_v58  ;;  %v16878_v13 = vadd.f32 %v16877_v43, %v16876_v36 }
0x2765   :  { %21434 = vmatpush3.bf16.msra.mxu1 %v21431_v5 }
0x2766   :  { %v27568_v7 = vadd.f32 %v27453_v23, %v12639_v62  ;;  %v12598_v22 = vadd.f32 %v16878_v13, %v27435_v41  ;;  %v16879_v10 = vpop.f32.mrb[28].mxu0  ;;  %21436 = vmatprep.subr.bf16.mxu1 %v27563_v29  ;;  %v15329_v62 = vld [vmem:[%s28121_s21 + $0x110] sm:$0xff]  ;;  %v27623_v13 = vld [vmem:[#allocation4] sm:$0xff] }
0x2767   :  { %v16880_v11 = vpop.f32.mrb[29].mxu0 }
0x2768   :  { %12719 = vst [vmem:[#allocation4 + $0xb1] sm:$0xff] %v27568_v7  ;;  %v12640_v12 = vadd.f32 %v12598_v22, %v26544_v1  ;;  %v16881_v8 = vadd.f32 %v16880_v11, %v16879_v10  ;;  %19488 = vmatmul.mubr.f32.gmra.mrb[208].mxu1 %v27568_v7  ;;  %v27629_v10 = vld [vmem:[#allocation4 + $0x10] sm:$0xff]  ;;  %v15331_v11 = vld [vmem:[%s28121_s21 + $0x120] sm:$0xff] }
0x276a   :  { %v27576_v58 = vadd.f32 %v27453_v23, %v12640_v12  ;;  %v12603_v30 = vadd.f32 %v16881_v8, %v27437_v24  ;;  %v16882_v53 = vpop.f32.mrb[30].mxu0  ;;  %v27639_v12 = vld [vmem:[#allocation4 + $0x20] sm:$0xff]  ;;  %v27643_v8 = vld [vmem:[#allocation4 + $0x30] sm:$0xff] }
0x276b   :  { %v16883_v15 = vpop.f32.mrb[31].mxu0 }
0x276c   :  { %12720 = vst [vmem:[#allocation4 + $0xc1] sm:$0xff] %v27576_v58  ;;  %v12641_v41 = vadd.f32 %v12603_v30, %v26557_v52  ;;  %v16884_v46 = vadd.f32 %v16883_v15, %v16882_v53  ;;  %19490 = vmatprep.mubr.f32.mxu1 %v27576_v58  ;;  %v15333_v30 = vld [vmem:[%s28121_s21 + $0x130] sm:$0xff]  ;;  %v15334_v53 = vld [vmem:[%s28121_s21 + $0x138] sm:$0xff]  ;;  %v27652_v15 = vld [vmem:[#allocation4 + $0x40] sm:$0xff] }
0x276e   :  { %v27583_v59 = vadd.f32 %v27453_v23, %v12641_v41  ;;  %v12608_v1 = vadd.f32 %v16884_v46, %v27439_v35  ;;  %v16885_v49 = vpop.f32.mrb[32].mxu0  ;;  %v27655_v41 = vld [vmem:[#allocation4 + $0x50] sm:$0xff]  ;;  %v15335_v46 = vld [vmem:[%s28121_s21 + $0x140] sm:$0xff] }
0x276f   :  { %v16886_v31 = vpop.f32.mrb[33].mxu0 }
0x2770   :  { %12721 = vst [vmem:[#allocation4 + $0xd1] sm:$0xff] %v27583_v59  ;;  %v12642_v24 = vadd.f32 %v12608_v1, %v26554_v9  ;;  %v16887_v14 = vadd.f32 %v16886_v31, %v16885_v49  ;;  %19491 = vmatmul.mubr.f32.gmra.mrb[210].mxu1 %v27583_v59  ;;  %v15336_v1 = vld [vmem:[%s28121_s21 + $0x148] sm:$0xff]  ;;  %v27664_v49 = vld [vmem:[#allocation4 + $0x60] sm:$0xff] }
0x2771   :  { %v21451_v31 = vpack.c.bf16 %v15336_v1, %v15335_v46  ;;  %v15349_v46 = vld [vmem:[%s28121_s21 + $0x1b0] sm:$0xff]  ;;  %v15350_v1 = vld [vmem:[%s28121_s21 + $0x1b8] sm:$0xff] }
0x2772   :  { %v27590_v40 = vadd.f32 %v27453_v23, %v12642_v24  ;;  %v12613_v52 = vadd.f32 %v16887_v14, %v27441_v6  ;;  %v16888_v63 = vpop.f32.mrb[34].mxu0  ;;  %v27667_v24 = vld [vmem:[#allocation4 + $0x70] sm:$0xff] }
0x2773   :  { %v16889_v4 = vpop.f32.mrb[35].mxu0  ;;  %v15337_v14 = vld [vmem:[%s28121_s21 + $0x150] sm:$0xff] }
0x2774   :  { %12722 = vst [vmem:[#allocation4 + $0xe1] sm:$0xff] %v27590_v40  ;;  %v12643_v35 = vadd.f32 %v12613_v52, %v26567_v25  ;;  %v16890_v0 = vadd.f32 %v16889_v4, %v16888_v63  ;;  %19493 = vmatprep.mubr.f32.mxu1 %v27590_v40  ;;  %v15338_v52 = vld [vmem:[%s28121_s21 + $0x158] sm:$0xff]  ;;  %v27677_v4 = vld [vmem:[#allocation4 + $0xb0] sm:$0xff] }
0x2775   :  { %v21455_v63 = vpack.c.bf16 %v15338_v52, %v15337_v14  ;;  %v21479_v14 = vpack.c.bf16 %v15350_v1, %v15349_v46  ;;  %v27742_v52 = vld [vmem:[#allocation4 + $0x52] sm:$0xff] }
0x2776   :  { %v27597_v5 = vadd.f32 %v27453_v23, %v12643_v35  ;;  %v12618_v9 = vadd.f32 %v16890_v0, %v27443_v19  ;;  %v16891_v2 = vpop.f32.mrb[36].mxu0  ;;  %v15339_v35 = vld [vmem:[%s28121_s21 + $0x160] sm:$0xff]  ;;  %v15340_v0 = vld [vmem:[%s28121_s21 + $0x168] sm:$0xff] }
0x2777   :  { %v16892_v28 = vpop.f32.mrb[37].mxu0 }
0x2778   :  { %12723 = vst [vmem:[#allocation4 + $0xf1] sm:$0xff] %v27597_v5  ;;  %v12644_v6 = vadd.f32 %v12618_v9, %v26564_v60  ;;  %v16893_v34 = vadd.f32 %v16892_v28, %v16891_v2  ;;  %19494 = vmatmul.mubr.f32.gmra.mrb[212].mxu1 %v27597_v5  ;;  %v27686_v9 = vld [vmem:[#allocation4 + $0xc0] sm:$0xff]  ;;  %v21459_v2 = vpack.c.bf16 %v15340_v0, %v15339_v35  ;;  %v27689_v28 = vld [vmem:[#allocation4 + $0xd0] sm:$0xff]  ;;  %v15352_v35 = vld [vmem:[%s28121_s21 + $0x1c8] sm:$0xff] }
0x2779   :  { %v27751_v0 = vld [vmem:[#allocation4 + $0x62] sm:$0xff] }
0x277a   :  { %v27604_v56 = vadd.f32 %v27453_v23, %v12644_v6  ;;  %v12623_v25 = vadd.f32 %v16893_v34, %v27445_v21  ;;  %v16894_v57 = vpop.f32.mrb[38].mxu0  ;;  %v15330_v21 = vld [vmem:[%s28121_s21 + $0x118] sm:$0xff]  ;;  %v15341_v6 = vld [vmem:[%s28121_s21 + $0x170] sm:$0xff] }
0x277b   :  { %v16895_v18 = vpop.f32.mrb[39].mxu0  ;;  %v21439_v22 = vpack.c.bf16 %v15330_v21, %v15329_v62  ;;  %v15342_v34 = vld [vmem:[%s28121_s21 + $0x178] sm:$0xff]  ;;  %v13082_v62 = vld [vmem:[#allocation4 + $0x2] sm:$0xff] }
0x277c   :  { %12724 = vst [vmem:[#allocation4 + $0x101] sm:$0xff] %v27604_v56  ;;  %v12645_v19 = vadd.f32 %v12623_v25, %v26583_v17  ;;  %v16896_v36 = vadd.f32 %v16895_v18, %v16894_v57  ;;  %19496 = vmatprep.mubr.f32.mxu1 %v27604_v56  ;;  %v27698_v25 = vld [vmem:[#allocation4 + $0xe0] sm:$0xff]  ;;  %v21463_v57 = vpack.c.bf16 %v15342_v34, %v15341_v6  ;;  %v27754_v34 = vld [vmem:[#allocation4 + $0x72] sm:$0xff] }
0x277d   :  { %v27784_v46 = vld [vmem:[#allocation4 + $0xe2] sm:$0xff] }
0x277e   :  { %v27611_v43 = vadd.f32 %v27453_v23, %v12645_v19  ;;  %v12628_v60 = vadd.f32 %v16896_v36, %v27447_v42  ;;  %v15343_v19 = vld [vmem:[%s28121_s21 + $0x180] sm:$0xff]  ;;  %v15344_v36 = vld [vmem:[%s28121_s21 + $0x188] sm:$0xff] }
0x277f   :  { %v27701_v18 = vld [vmem:[#allocation4 + $0xf0] sm:$0xff]  ;;  %v21467_v21 = vpack.c.bf16 %v15344_v36, %v15343_v19  ;;  %v15354_v19 = vld [vmem:[%s28121_s21 + $0x1d8] sm:$0xff] }
0x2780   :  { %12725 = vst [vmem:[#allocation4 + $0x111] sm:$0xff] %v27611_v43  ;;  %v12646_v17 = vadd.f32 %v12628_v60, %v26577_v44  ;;  %19497 = vmatmul.mubr.f32.gmra.mrb[214].mxu1 %v27611_v43  ;;  %v15332_v44 = vld [vmem:[%s28121_s21 + $0x128] sm:$0xff] }
0x2781   :  { %19531 = vmatprep.mubr.f32.mxu1 %v27623_v13 }
0x2782   :  { %v27627_v42 = vadd.f32 %v27453_v23, %v12646_v17  ;;  %v21443_v23 = vpack.c.bf16 %v15332_v44, %v15331_v11  ;;  %v15346_v11 = vld [vmem:[%s28121_s21 + $0x198] sm:$0xff] }
0x2783   :  { %v27710_v60 = vld [vmem:[#allocation4 + $0x100] sm:$0xff] }
0x2784   :  { %12726 = vst [vmem:[#allocation4 + $0x121] sm:$0xff] %v27627_v42  ;;  %19532 = vmatmul.mubr.f32.vlgmr.msra.gmra.mrb[200].mxu1 %v27629_v10 }
0x2785   :  { %21438 = vmatpush3.bf16.msra.mxu1 %v27563_v29  ;;  %19534 = vmatprep.mubr.f32.mxu1 %v27639_v12  ;;  %v21447_v29 = vpack.c.bf16 %v15334_v53, %v15333_v30  ;;  %v15347_v30 = vld [vmem:[%s28121_s21 + $0x1a0] sm:$0xff]  ;;  %v15348_v53 = vld [vmem:[%s28121_s21 + $0x1a8] sm:$0xff] }
0x2786   :  { %21440 = vmatprep.subr.bf16.mxu1 %v21439_v22 }
0x2787   :  { %v27713_v17 = vld [vmem:[#allocation4 + $0x110] sm:$0xff] }
0x2788   :  { %19535 = vmatmul.mubr.f32.gmra.mrb[202].mxu1 %v27643_v8 }
0x2789   :  { %21442 = vmatpush3.bf16.msra.mxu1 %v21439_v22  ;;  %19537 = vmatprep.mubr.f32.mxu1 %v27652_v15  ;;  %v15345_v22 = vld [vmem:[%s28121_s21 + $0x190] sm:$0xff] }
0x278a   :  { %21444 = vmatprep.subr.bf16.mxu1 %v21443_v23  ;;  %v21471_v44 = vpack.c.bf16 %v15346_v11, %v15345_v22  ;;  %v15356_v22 = vld [vmem:[%s28121_s21 + $0x1e8] sm:$0xff] }
0x278b   :  { %v27772_v11 = vld [vmem:[#allocation4 + $0xc2] sm:$0xff] }
0x278c   :  { %19538 = vmatmul.mubr.f32.gmra.mrb[204].mxu1 %v27655_v41 }
0x278d   :  { %21446 = vmatpush3.bf16.msra.mxu1 %v21443_v23  ;;  %19540 = vmatprep.mubr.f32.mxu1 %v27664_v49  ;;  %v27722_v23 = vld [vmem:[#allocation4 + $0x12] sm:$0xff] }
0x278e   :  { %21448 = vmatprep.subr.bf16.mxu1 %v21447_v29 }
0x2790   :  { %19541 = vmatmul.mubr.f32.gmra.mrb[206].mxu1 %v27667_v24 }
0x2791   :  { %21450 = vmatpush3.bf16.msra.mxu1 %v21447_v29  ;;  %19543 = vmatprep.mubr.f32.mxu1 %v27623_v13  ;;  %v21475_v29 = vpack.c.bf16 %v15348_v53, %v15347_v30  ;;  %v27775_v30 = vld [vmem:[#allocation4 + $0xd2] sm:$0xff] }
0x2792   :  { %21452 = vmatprep.subr.bf16.mxu1 %v21451_v31  ;;  %v15357_v53 = vld [vmem:[%s28121_s21 + $0x1f0] sm:$0xff] }
0x2794   :  { %19544 = vmatmul.mubr.f32.gmra.mrb[208].mxu1 %v27677_v4 }
0x2795   :  { %21454 = vmatpush3.bf16.msra.mxu1 %v21451_v31  ;;  %19546 = vmatprep.mubr.f32.mxu1 %v27686_v9  ;;  %v27739_v31 = vld [vmem:[#allocation4 + $0x42] sm:$0xff] }
0x2796   :  { %21456 = vmatprep.subr.bf16.mxu1 %v21455_v63 }
0x2798   :  { %19547 = vmatmul.mubr.f32.gmra.mrb[210].mxu1 %v27689_v28 }
0x2799   :  { %21458 = vmatpush3.bf16.msra.mxu1 %v21455_v63  ;;  %19549 = vmatprep.mubr.f32.mxu1 %v27698_v25  ;;  %v15351_v63 = vld [vmem:[%s28121_s21 + $0x1c0] sm:$0xff] }
0x279a   :  { %21460 = vmatprep.subr.bf16.mxu1 %v21459_v2  ;;  %v21483_v6 = vpack.c.bf16 %v15352_v35, %v15351_v63  ;;  %v15359_v63 = vld [vmem:[%s28121_s21 + $0x200] sm:$0xff]  ;;  %v15360_v35 = vld [vmem:[%s28121_s21 + $0x208] sm:$0xff] }
0x279c   :  { %19550 = vmatmul.mubr.f32.gmra.mrb[212].mxu1 %v27701_v18 }
0x279d   :  { %21462 = vmatpush3.bf16.msra.mxu1 %v21459_v2  ;;  %19552 = vmatprep.mubr.f32.mxu1 %v27710_v60  ;;  %v13090_v2 = vld [vmem:[#allocation4 + $0xa2] sm:$0xff] }
0x279e   :  { %21464 = vmatprep.subr.bf16.mxu1 %v21463_v57 }
0x27a0   :  { %19553 = vmatmul.mubr.f32.gmra.mrb[214].mxu1 %v27713_v17 }
0x27a1   :  { %21466 = vmatpush3.bf16.msra.mxu1 %v21463_v57  ;;  %19587 = vmatprep.mubr.f32.mxu1 %v13082_v62  ;;  %v15353_v57 = vld [vmem:[%s28121_s21 + $0x1d0] sm:$0xff] }
0x27a2   :  { %21468 = vmatprep.subr.bf16.mxu1 %v21467_v21  ;;  %v21487_v36 = vpack.c.bf16 %v15354_v19, %v15353_v57  ;;  %v27763_v62 = vld [vmem:[#allocation4 + $0xb2] sm:$0xff] }
0x27a3   :  { %v27799_v57 = vld [vmem:[#allocation4 + $0x112] sm:$0xff] }
0x27a4   :  { %19588 = vmatmul.mubr.f32.vlgmr.msra.gmra.mrb[200].mxu1 %v27722_v23  ;;  %v15361_v19 = vld [vmem:[%s28121_s21 + $0x210] sm:$0xff] }
0x27a5   :  { %21470 = vmatpush3.bf16.msra.mxu1 %v21467_v21  ;;  %19590 = vmatprep.mubr.f32.mxu1 %v27505_v38  ;;  %v15355_v21 = vld [vmem:[%s28121_s21 + $0x1e0] sm:$0xff] }
0x27a6   :  { %21472 = vmatprep.subr.bf16.mxu1 %v21471_v44 }
0x27a8   :  { %19591 = vmatmul.mubr.f32.gmra.mrb[202].mxu1 %v27521_v45 }
0x27a9   :  { %21474 = vmatpush3.bf16.msra.mxu1 %v21471_v44  ;;  %19593 = vmatprep.mubr.f32.mxu1 %v27739_v31  ;;  %v21491_v44 = vpack.c.bf16 %v15356_v22, %v15355_v21  ;;  %v15363_v22 = vld [vmem:[%s28121_s21 + $0x220] sm:$0xff] }
0x27aa   :  { %21476 = vmatprep.subr.bf16.mxu1 %v21475_v29 }
0x27ac   :  { %19594 = vmatmul.mubr.f32.gmra.mrb[204].mxu1 %v27742_v52 }
0x27ad   :  { %21478 = vmatpush3.bf16.msra.mxu1 %v21475_v29  ;;  %19596 = vmatprep.mubr.f32.mxu1 %v27751_v0  ;;  %v15358_v29 = vld [vmem:[%s28121_s21 + $0x1f8] sm:$0xff] }
0x27ae   :  { %21480 = vmatprep.subr.bf16.mxu1 %v21479_v14  ;;  %v21495_v1 = vpack.c.bf16 %v15358_v29, %v15357_v53  ;;  %v15366_v29 = vld [vmem:[%s28121_s21 + $0x238] sm:$0xff] }
0x27b0   :  { %19597 = vmatmul.mubr.f32.gmra.mrb[206].mxu1 %v27754_v34 }
0x27b1   :  { %21482 = vmatpush3.bf16.msra.mxu1 %v21479_v14  ;;  %19599 = vmatprep.mubr.f32.mxu1 %v13090_v2  ;;  %v27787_v14 = vld [vmem:[#allocation4 + $0xf2] sm:$0xff]  ;;  %v27796_v2 = vld [vmem:[#allocation4 + $0x102] sm:$0xff] }
0x27b2   :  { %21484 = vmatprep.subr.bf16.mxu1 %v21483_v6 }
0x27b4   :  { %19600 = vmatmul.mubr.f32.gmra.mrb[208].mxu1 %v27763_v62 }
0x27b5   :  { %21486 = vmatpush3.bf16.msra.mxu1 %v21483_v6  ;;  %19602 = vmatprep.mubr.f32.mxu1 %v27772_v11  ;;  %v21499_v6 = vpack.c.bf16 %v15360_v35, %v15359_v63  ;;  %v15367_v63 = vld [vmem:[%s28121_s21 + $0x240] sm:$0xff]  ;;  %v15368_v35 = vld [vmem:[%s28121_s21 + $0x248] sm:$0xff] }
0x27b6   :  { %21488 = vmatprep.subr.bf16.mxu1 %v21487_v36 }
0x27b8   :  { %19603 = vmatmul.mubr.f32.gmra.mrb[210].mxu1 %v27775_v30 }
0x27b9   :  { %21490 = vmatpush3.bf16.msra.mxu1 %v21487_v36  ;;  %19605 = vmatprep.mubr.f32.mxu1 %v27784_v46  ;;  %v15362_v36 = vld [vmem:[%s28121_s21 + $0x218] sm:$0xff] }
0x27ba   :  { %21492 = vmatprep.subr.bf16.mxu1 %v21491_v44  ;;  %v21503_v21 = vpack.c.bf16 %v15362_v36, %v15361_v19  ;;  %v27833_v19 = vld [vmem:[#allocation4 + $0x80] sm:$0xff]  ;;  %v15369_v36 = vld [vmem:[%s28121_s21 + $0x250] sm:$0xff] }
0x27bc   :  { %19606 = vmatmul.mubr.f32.gmra.mrb[212].mxu1 %v27787_v14 }
0x27bd   :  { %21494 = vmatpush3.bf16.msra.mxu1 %v21491_v44  ;;  %19608 = vmatprep.mubr.f32.mxu1 %v27796_v2  ;;  %v15364_v44 = vld [vmem:[%s28121_s21 + $0x228] sm:$0xff] }
0x27be   :  { %21496 = vmatprep.subr.bf16.mxu1 %v21495_v1  ;;  %v21507_v53 = vpack.c.bf16 %v15364_v44, %v15363_v22  ;;  %v15371_v44 = vld [vmem:[%s28121_s21 + $0x260] sm:$0xff] }
0x27c0   :  { %19609 = vmatmul.mubr.f32.gmra.mrb[214].mxu1 %v27799_v57 }
0x27c1   :  { %21498 = vmatpush3.bf16.msra.mxu1 %v21495_v1  ;;  %19643 = vmatprep.mubr.f32.mxu1 %v27629_v10  ;;  %v15365_v10 = vld [vmem:[%s28121_s21 + $0x230] sm:$0xff] }
0x27c2   :  { %21500 = vmatprep.subr.bf16.mxu1 %v21499_v6  ;;  %v21511_v1 = vpack.c.bf16 %v15366_v29, %v15365_v10  ;;  %v15374_v29 = vld [vmem:[%s28121_s21 + $0x278] sm:$0xff] }
0x27c4   :  { %19644 = vmatmul.mubr.f32.vlgmr.msra.gmra.mrb[200].mxu1 %v27639_v12 }
0x27c5   :  { %21502 = vmatpush3.bf16.msra.mxu1 %v21499_v6  ;;  %19646 = vmatprep.mubr.f32.mxu1 %v27643_v8  ;;  %v21515_v6 = vpack.c.bf16 %v15368_v35, %v15367_v63  ;;  %v15375_v63 = vld [vmem:[%s28121_s21 + $0x280] sm:$0xff]  ;;  %v15376_v35 = vld [vmem:[%s28121_s21 + $0x288] sm:$0xff] }
0x27c6   :  { %21504 = vmatprep.subr.bf16.mxu1 %v21503_v21 }
0x27c8   :  { %19647 = vmatmul.mubr.f32.gmra.mrb[202].mxu1 %v27652_v15 }
0x27c9   :  { %21506 = vmatpush3.bf16.msra.mxu1 %v21503_v21  ;;  %19649 = vmatprep.mubr.f32.mxu1 %v27655_v41  ;;  %v15370_v21 = vld [vmem:[%s28121_s21 + $0x258] sm:$0xff] }
0x27ca   :  { %21508 = vmatprep.subr.bf16.mxu1 %v21507_v53  ;;  %v21519_v22 = vpack.c.bf16 %v15370_v21, %v15369_v36  ;;  %v27867_v36 = vld [vmem:[#allocation4 + $0x120] sm:$0xff]  ;;  %v15377_v21 = vld [vmem:[%s28121_s21 + $0x290] sm:$0xff] }
0x27cc   :  { %19650 = vmatmul.mubr.f32.gmra.mrb[204].mxu1 %v27664_v49 }
0x27cd   :  { %21510 = vmatpush3.bf16.msra.mxu1 %v21507_v53  ;;  %19652 = vmatprep.mubr.f32.mxu1 %v27667_v24  ;;  %v15372_v53 = vld [vmem:[%s28121_s21 + $0x268] sm:$0xff] }
0x27ce   :  { %21512 = vmatprep.subr.bf16.mxu1 %v21511_v1  ;;  %v21523_v10 = vpack.c.bf16 %v15372_v53, %v15371_v44  ;;  %v15379_v53 = vld [vmem:[%s28121_s21 + $0x2a0] sm:$0xff] }
0x27d0   :  { %19653 = vmatmul.mubr.f32.gmra.mrb[206].mxu1 %v27833_v19 }
0x27d1   :  { %21514 = vmatpush3.bf16.msra.mxu1 %v21511_v1  ;;  %19655 = vmatprep.mubr.f32.mxu1 %v27677_v4  ;;  %v15373_v4 = vld [vmem:[%s28121_s21 + $0x270] sm:$0xff] }
0x27d2   :  { %21516 = vmatprep.subr.bf16.mxu1 %v21515_v6  ;;  %v21527_v1 = vpack.c.bf16 %v15374_v29, %v15373_v4  ;;  %v15382_v29 = vld [vmem:[%s28121_s21 + $0x2b8] sm:$0xff] }
0x27d4   :  { %19656 = vmatmul.mubr.f32.gmra.mrb[208].mxu1 %v27686_v9 }
0x27d5   :  { %21518 = vmatpush3.bf16.msra.mxu1 %v21515_v6  ;;  %19658 = vmatprep.mubr.f32.mxu1 %v27689_v28  ;;  %v21531_v6 = vpack.c.bf16 %v15376_v35, %v15375_v63  ;;  %v15386_v63 = vld [vmem:[%s28121_s21 + $0x2d8] sm:$0xff]  ;;  %v15388_v35 = vld [vmem:[%s28121_s21 + $0x2e8] sm:$0xff] }
0x27d6   :  { %21520 = vmatprep.subr.bf16.mxu1 %v21519_v22 }
0x27d8   :  { %19659 = vmatmul.mubr.f32.gmra.mrb[210].mxu1 %v27698_v25 }
0x27d9   :  { %21522 = vmatpush3.bf16.msra.mxu1 %v21519_v22  ;;  %19661 = vmatprep.mubr.f32.mxu1 %v27701_v18  ;;  %v15378_v22 = vld [vmem:[%s28121_s21 + $0x298] sm:$0xff] }
0x27da   :  { %21524 = vmatprep.subr.bf16.mxu1 %v21523_v10  ;;  %v21535_v44 = vpack.c.bf16 %v15378_v22, %v15377_v21  ;;  %v15392_v21 = vld [vmem:[%s28121_s21 + $0x308] sm:$0xff]  ;;  %v15394_v22 = vld [vmem:[%s28121_s21 + $0x318] sm:$0xff] }
0x27dc   :  { %19662 = vmatmul.mubr.f32.gmra.mrb[212].mxu1 %v27710_v60 }
0x27dd   :  { %21526 = vmatpush3.bf16.msra.mxu1 %v21523_v10  ;;  %19664 = vmatprep.mubr.f32.mxu1 %v27713_v17  ;;  %v15380_v10 = vld [vmem:[%s28121_s21 + $0x2a8] sm:$0xff] }
0x27de   :  { %21528 = vmatprep.subr.bf16.mxu1 %v21527_v1  ;;  %v21539_v4 = vpack.c.bf16 %v15380_v10, %v15379_v53  ;;  %v15398_v10 = vld [vmem:[%s28121_s21 + $0x338] sm:$0xff] }
0x27e0   :  { %19665 = vmatmul.mubr.f32.gmra.mrb[214].mxu1 %v27867_v36 }
0x27e1   :  { %21530 = vmatpush3.bf16.msra.mxu1 %v21527_v1  ;;  %19699 = vmatprep.mubr.f32.mxu1 %v27463_v32  ;;  %v15381_v32 = vld [vmem:[%s28121_s21 + $0x2b0] sm:$0xff]  ;;  %v15384_v1 = vld [vmem:[%s28121_s21 + $0x2c8] sm:$0xff] }
0x27e2   :  { %21532 = vmatprep.subr.bf16.mxu1 %v21531_v6 }
0x27e4   :  { %19700 = vmatmul.mubr.f32.vlgmr.msra.gmra.mrb[200].mxu1 %v27476_v27  ;;  %v21543_v27 = vpack.c.bf16 %v15382_v29, %v15381_v32  ;;  %v27965_v29 = vld [vmem:[#allocation4 + $0x82] sm:$0xff] }
0x27e5   :  { %21534 = vmatpush3.bf16.msra.mxu1 %v21531_v6  ;;  %19702 = vmatprep.mubr.f32.mxu1 %v27489_v48  ;;  %v15383_v48 = vld [vmem:[%s28121_s21 + $0x2c0] sm:$0xff]  ;;  %v15390_v6 = vld [vmem:[%s28121_s21 + $0x2f8] sm:$0xff] }
0x27e6   :  { %21536 = vmatprep.subr.bf16.mxu1 %v21535_v44 }
0x27e8   :  { %19703 = vmatmul.mubr.f32.gmra.mrb[202].mxu1 %v27502_v20  ;;  %v21547_v20 = vpack.c.bf16 %v15384_v1, %v15383_v48  ;;  %v15402_v48 = vld [vmem:[%s28121_s21 + $0x358] sm:$0xff] }
0x27e9   :  { %21538 = vmatpush3.bf16.msra.mxu1 %v21535_v44  ;;  %19705 = vmatprep.mubr.f32.mxu1 %v27518_v16  ;;  %v15385_v16 = vld [vmem:[%s28121_s21 + $0x2d0] sm:$0xff]  ;;  %v15396_v44 = vld [vmem:[%s28121_s21 + $0x328] sm:$0xff] }
0x27ea   :  { %21540 = vmatprep.subr.bf16.mxu1 %v21539_v4 }
0x27ec   :  { %19706 = vmatmul.mubr.f32.gmra.mrb[204].mxu1 %v27534_v47  ;;  %v21551_v47 = vpack.c.bf16 %v15386_v63, %v15385_v16  ;;  %v15404_v16 = vld [vmem:[%s28121_s21 + $0x368] sm:$0xff] }
0x27ed   :  { %21542 = vmatpush3.bf16.msra.mxu1 %v21539_v4  ;;  %19708 = vmatprep.mubr.f32.mxu1 %v27547_v3  ;;  %v15387_v3 = vld [vmem:[%s28121_s21 + $0x2e0] sm:$0xff]  ;;  %v15400_v4 = vld [vmem:[%s28121_s21 + $0x348] sm:$0xff] }
0x27ee   :  { %21544 = vmatprep.subr.bf16.mxu1 %v21543_v27 }
0x27f0   :  { %19709 = vmatmul.mubr.f32.gmra.mrb[206].mxu1 %v27560_v61  ;;  %v21555_v61 = vpack.c.bf16 %v15388_v35, %v15387_v3  ;;  %v15407_v35 = vld [vmem:[%s28121_s21 + $0x380] sm:$0xff] }
0x27f1   :  { %21546 = vmatpush3.bf16.msra.mxu1 %v21543_v27  ;;  %19711 = vmatprep.mubr.f32.mxu1 %v27568_v7  ;;  %v15389_v7 = vld [vmem:[%s28121_s21 + $0x2f0] sm:$0xff] }
0x27f2   :  { %21548 = vmatprep.subr.bf16.mxu1 %v21547_v20  ;;  %v15401_v27 = vld [vmem:[%s28121_s21 + $0x350] sm:$0xff] }
0x27f3   :  { %v21583_v1 = vpack.c.bf16 %v15402_v48, %v15401_v27  ;;  %v14063_v27 = vld [vmem:[#allocation4 + $0xe1] sm:$0xff] }
0x27f4   :  { %19712 = vmatmul.mubr.f32.gmra.mrb[208].mxu1 %v27576_v58  ;;  %v21559_v58 = vpack.c.bf16 %v15390_v6, %v15389_v7  ;;  %v27999_v6 = vld [vmem:[#allocation4 + $0x122] sm:$0xff] }
0x27f5   :  { %21550 = vmatpush3.bf16.msra.mxu1 %v21547_v20  ;;  %19714 = vmatprep.mubr.f32.mxu1 %v27583_v59  ;;  %v15391_v59 = vld [vmem:[%s28121_s21 + $0x300] sm:$0xff] }
0x27f6   :  { %21552 = vmatprep.subr.bf16.mxu1 %v21551_v47  ;;  %v15403_v20 = vld [vmem:[%s28121_s21 + $0x360] sm:$0xff] }
0x27f7   :  { %v21587_v63 = vpack.c.bf16 %v15404_v16, %v15403_v20  ;;  %v14065_v48 = vld [vmem:[#allocation4 + $0x101] sm:$0xff] }
0x27f8   :  { %19715 = vmatmul.mubr.f32.gmra.mrb[210].mxu1 %v27590_v40  ;;  %v21563_v40 = vpack.c.bf16 %v15392_v21, %v15391_v59  ;;  %v15410_v59 = vld [vmem:[%s28121_s21 + $0x398] sm:$0xff] }
0x27f9   :  { %21554 = vmatpush3.bf16.msra.mxu1 %v21551_v47  ;;  %19717 = vmatprep.mubr.f32.mxu1 %v27597_v5  ;;  %v15393_v5 = vld [vmem:[%s28121_s21 + $0x310] sm:$0xff]  ;;  %v15406_v47 = vld [vmem:[%s28121_s21 + $0x378] sm:$0xff] }
0x27fa   :  { %21556 = vmatprep.subr.bf16.mxu1 %v21555_v61 }
0x27fc   :  { %19718 = vmatmul.mubr.f32.gmra.mrb[212].mxu1 %v27604_v56  ;;  %v21567_v56 = vpack.c.bf16 %v15394_v22, %v15393_v5  ;;  %v15412_v5 = vld [vmem:[%s28121_s21 + $0x3a8] sm:$0xff] }
0x27fd   :  { %21558 = vmatpush3.bf16.msra.mxu1 %v21555_v61  ;;  %19720 = vmatprep.mubr.f32.mxu1 %v27611_v43  ;;  %v15395_v43 = vld [vmem:[%s28121_s21 + $0x320] sm:$0xff]  ;;  %v15408_v61 = vld [vmem:[%s28121_s21 + $0x388] sm:$0xff] }
0x27fe   :  { %21560 = vmatprep.subr.bf16.mxu1 %v21559_v58  ;;  %v21571_v53 = vpack.c.bf16 %v15396_v44, %v15395_v43  ;;  %v21595_v7 = vpack.c.bf16 %v15408_v61, %v15407_v35  ;;  %v15416_v44 = vld [vmem:[%s28121_s21 + $0x3c8] sm:$0xff] }
0x2800   :  { %19721 = vmatmul.mubr.f32.gmra.mrb[214].mxu1 %v27627_v42 }
0x2801   :  { %21562 = vmatpush3.bf16.msra.mxu1 %v21559_v58  ;;  %19755 = vmatprep.mubr.f32.mxu1 %v27722_v23  ;;  %v15397_v23 = vld [vmem:[%s28121_s21 + $0x330] sm:$0xff] }
0x2802   :  { %21564 = vmatprep.subr.bf16.mxu1 %v21563_v40  ;;  %v15409_v58 = vld [vmem:[%s28121_s21 + $0x390] sm:$0xff] }
0x2803   :  { %v21599_v21 = vpack.c.bf16 %v15410_v59, %v15409_v58 }
0x2804   :  { %19756 = vmatmul.mubr.f32.vlgmr.msra.gmra.mrb[200].mxu1 %v27505_v38  ;;  %v21575_v38 = vpack.c.bf16 %v15398_v10, %v15397_v23  ;;  %v15418_v23 = vld [vmem:[%s28121_s21 + $0x3d8] sm:$0xff]  ;;  %v15420_v10 = vld [vmem:[%s28121_s21 + $0x3e8] sm:$0xff] }
0x2805   :  { %21566 = vmatpush3.bf16.msra.mxu1 %v21563_v40  ;;  %19758 = vmatprep.mubr.f32.mxu1 %v27521_v45  ;;  %v15399_v45 = vld [vmem:[%s28121_s21 + $0x340] sm:$0xff] }
0x2806   :  { %21568 = vmatprep.subr.bf16.mxu1 %v21567_v56  ;;  %v21579_v32 = vpack.c.bf16 %v15400_v4, %v15399_v45  ;;  %v15411_v40 = vld [vmem:[%s28121_s21 + $0x3a0] sm:$0xff]  ;;  %v15422_v45 = vld [vmem:[%s28121_s21 + $0x3f8] sm:$0xff] }
0x2807   :  { %v21603_v22 = vpack.c.bf16 %v15412_v5, %v15411_v40  ;;  %v14054_v4 = vld [vmem:[#allocation4 + $0x31] sm:$0xff] }
0x2808   :  { %19759 = vmatmul.mubr.f32.gmra.mrb[202].mxu1 %v27739_v31 }
0x2809   :  { %21570 = vmatpush3.bf16.msra.mxu1 %v21567_v56  ;;  %19761 = vmatprep.mubr.f32.mxu1 %v27742_v52  ;;  %v15414_v56 = vld [vmem:[%s28121_s21 + $0x3b8] sm:$0xff] }
0x280a   :  { %21572 = vmatprep.subr.bf16.mxu1 %v21571_v53 }
0x280c   :  { %19762 = vmatmul.mubr.f32.gmra.mrb[204].mxu1 %v27751_v0 }
0x280d   :  { %21574 = vmatpush3.bf16.msra.mxu1 %v21571_v53  ;;  %19764 = vmatprep.mubr.f32.mxu1 %v27754_v34 }
0x280e   :  { %21576 = vmatprep.subr.bf16.mxu1 %v21575_v38 }
0x2810   :  { %19765 = vmatmul.mubr.f32.gmra.mrb[206].mxu1 %v27965_v29 }
0x2811   :  { %21578 = vmatpush3.bf16.msra.mxu1 %v21575_v38  ;;  %19767 = vmatprep.mubr.f32.mxu1 %v27763_v62  ;;  %v15405_v62 = vld [vmem:[%s28121_s21 + $0x370] sm:$0xff] }
0x2812   :  { %21580 = vmatprep.subr.bf16.mxu1 %v21579_v32  ;;  %v21591_v3 = vpack.c.bf16 %v15406_v47, %v15405_v62 }
0x2814   :  { %19768 = vmatmul.mubr.f32.gmra.mrb[208].mxu1 %v27772_v11 }
0x2815   :  { %21582 = vmatpush3.bf16.msra.mxu1 %v21579_v32  ;;  %19770 = vmatprep.mubr.f32.mxu1 %v27775_v30  ;;  %v14060_v32 = vld [vmem:[#allocation4 + $0x91] sm:$0xff] }
0x2816   :  { %21584 = vmatprep.subr.bf16.mxu1 %v21583_v1 }
0x2818   :  { %19771 = vmatmul.mubr.f32.gmra.mrb[210].mxu1 %v27784_v46 }
0x2819   :  { %21586 = vmatpush3.bf16.msra.mxu1 %v21583_v1  ;;  %19773 = vmatprep.mubr.f32.mxu1 %v27787_v14  ;;  %v14068_v1 = vld [vmem:[#allocation4 + $0x131] sm:$0xff] }
0x281a   :  { %21588 = vmatprep.subr.bf16.mxu1 %v21587_v63 }
0x281c   :  { %19774 = vmatmul.mubr.f32.gmra.mrb[212].mxu1 %v27796_v2 }
0x281d   :  { %21590 = vmatpush3.bf16.msra.mxu1 %v21587_v63  ;;  %19776 = vmatprep.mubr.f32.mxu1 %v27799_v57 }
0x281e   :  { %21592 = vmatprep.subr.bf16.mxu1 %v21591_v3 }
0x2820   :  { %19777 = vmatmul.mubr.f32.gmra.mrb[214].mxu1 %v27999_v6 }
0x2821   :  { %21594 = vmatpush3.bf16.msra.mxu1 %v21591_v3  ;;  %19811 = vmatprep.mubr.f32.mxu1 %v27639_v12  ;;  %v15413_v12 = vld [vmem:[%s28121_s21 + $0x3b0] sm:$0xff] }
0x2822   :  { %21596 = vmatprep.subr.bf16.mxu1 %v21595_v7 }
0x2824   :  { %19812 = vmatmul.mubr.f32.vlgmr.msra.gmra.mrb[200].mxu1 %v27643_v8  ;;  %v21607_v8 = vpack.c.bf16 %v15414_v56, %v15413_v12 }
0x2825   :  { %21598 = vmatpush3.bf16.msra.mxu1 %v21595_v7  ;;  %19814 = vmatprep.mubr.f32.mxu1 %v27652_v15  ;;  %v15415_v15 = vld [vmem:[%s28121_s21 + $0x3c0] sm:$0xff] }
0x2826   :  { %21600 = vmatprep.subr.bf16.mxu1 %v21599_v21 }
0x2828   :  { %19815 = vmatmul.mubr.f32.gmra.mrb[202].mxu1 %v27655_v41  ;;  %v21611_v41 = vpack.c.bf16 %v15416_v44, %v15415_v15 }
0x2829   :  { %21602 = vmatpush3.bf16.msra.mxu1 %v21599_v21  ;;  %19817 = vmatprep.mubr.f32.mxu1 %v27664_v49  ;;  %v15417_v49 = vld [vmem:[%s28121_s21 + $0x3d0] sm:$0xff] }
0x282a   :  { %21604 = vmatprep.subr.bf16.mxu1 %v21603_v22 }
0x282b   :  { %v28025_v43 = vpop.f32.mrb[40].mxu0 }
0x282c   :  { %v28033_v53 = vpop.f32.mrb[41].mxu0  ;;  %19818 = vmatmul.mubr.f32.gmra.mrb[204].mxu1 %v27667_v24  ;;  %v21615_v24 = vpack.c.bf16 %v15418_v23, %v15417_v49 }
0x282d   :  { %21606 = vmatpush3.bf16.msra.mxu1 %v21603_v22  ;;  %19820 = vmatprep.mubr.f32.mxu1 %v27833_v19  ;;  %v15419_v19 = vld [vmem:[%s28121_s21 + $0x3e0] sm:$0xff] }
0x282e   :  { %21608 = vmatprep.subr.bf16.mxu1 %v21607_v8  ;;  %v21619_v38 = vpack.c.bf16 %v15420_v10, %v15419_v19 }
0x2830   :  { %19821 = vmatmul.mubr.f32.gmra.mrb[206].mxu1 %v27623_v13 }
0x2831   :  { %21610 = vmatpush3.bf16.msra.mxu1 %v21607_v8  ;;  %19823 = vmatprep.mubr.f32.mxu1 %v27686_v9  ;;  %v15421_v9 = vld [vmem:[%s28121_s21 + $0x3f0] sm:$0xff] }
0x2832   :  { %21612 = vmatprep.subr.bf16.mxu1 %v21611_v41 }
0x2834   :  { %19824 = vmatmul.mubr.f32.gmra.mrb[208].mxu1 %v27689_v28  ;;  %v21623_v28 = vpack.c.bf16 %v15422_v45, %v15421_v9 }
0x2835   :  { %21614 = vmatpush3.bf16.msra.mxu1 %v21611_v41  ;;  %19826 = vmatprep.mubr.f32.mxu1 %v27698_v25  ;;  %v14053_v25 = vld [vmem:[#allocation4 + $0x21] sm:$0xff] }
0x2836   :  { %21616 = vmatprep.subr.bf16.mxu1 %v21615_v24 }
0x2838   :  { %19827 = vmatmul.mubr.f32.gmra.mrb[210].mxu1 %v27701_v18  ;;  %v14055_v18 = vld [vmem:[#allocation4 + $0x41] sm:$0xff] }
0x2839   :  { %21618 = vmatpush3.bf16.msra.mxu1 %v21615_v24  ;;  %19829 = vmatprep.mubr.f32.mxu1 %v27710_v60  ;;  %v14056_v60 = vld [vmem:[#allocation4 + $0x51] sm:$0xff] }
0x283a   :  { %21620 = vmatprep.subr.bf16.mxu1 %v21619_v38 }
0x283c   :  { %19830 = vmatmul.mubr.f32.gmra.mrb[212].mxu1 %v27713_v17  ;;  %v14057_v17 = vld [vmem:[#allocation4 + $0x61] sm:$0xff] }
0x283d   :  { %21622 = vmatpush3.bf16.msra.mxu1 %v21619_v38  ;;  %19832 = vmatprep.mubr.f32.mxu1 %v27867_v36  ;;  %v14059_v36 = vld [vmem:[#allocation4 + $0x81] sm:$0xff] }
0x283e   :  { %21624 = vmatprep.subr.bf16.mxu1 %v21623_v28 }
0x2840   :  { %19833 = vmatmul.mubr.f32.gmra.mrb[214].mxu1 %v27623_v13  ;;  %v14058_v13 = vld [vmem:[#allocation4 + $0x71] sm:$0xff] }
0x2841   :  { %21626 = vmatpush3.bf16.msra.mxu1 %v21623_v28  ;;  %19867 = vmatprep.mubr.f32.mxu1 %v14053_v25 }
0x2842   :  { %21659 = vmatprep.subr.bf16.mxu1 %v27326_v50 }
0x2844   :  { %19868 = vmatmul.mubr.f32.vlgmr.msra.gmra.mrb[200].mxu1 %v14054_v4 }
0x2845   :  { %21667 = vmatpush3.bf16.msra.mxu1 %v27326_v50  ;;  %19870 = vmatprep.mubr.f32.mxu1 %v14055_v18  ;;  %v14061_v50 = vld [vmem:[#allocation4 + $0xc1] sm:$0xff] }
0x2846   :  { %21660 = vmatprep.subr.bf16.mxu1 %v27344_v39 }
0x2848   :  { %19871 = vmatmul.mubr.f32.gmra.mrb[202].mxu1 %v14056_v60 }
0x2849   :  { %21668 = vmatpush3.bf16.msra.mxu1 %v27344_v39  ;;  %19873 = vmatprep.mubr.f32.mxu1 %v14057_v17  ;;  %v14062_v39 = vld [vmem:[#allocation4 + $0xd1] sm:$0xff] }
0x284a   :  { %21661 = vmatprep.subr.bf16.mxu1 %v27362_v51 }
0x284c   :  { %19874 = vmatmul.mubr.f32.gmra.mrb[204].mxu1 %v14058_v13 }
0x284d   :  { %21669 = vmatpush3.bf16.msra.mxu1 %v27362_v51  ;;  %19876 = vmatprep.mubr.f32.mxu1 %v14059_v36  ;;  %v14064_v51 = vld [vmem:[#allocation4 + $0xf1] sm:$0xff] }
0x284e   :  { %21662 = vmatprep.subr.bf16.mxu1 %v27380_v55 }
0x2850   :  { %19877 = vmatmul.mubr.f32.gmra.mrb[206].mxu1 %v14060_v32 }
0x2851   :  { %21670 = vmatpush3.bf16.msra.mxu1 %v27380_v55  ;;  %19879 = vmatprep.mubr.f32.mxu1 %v14061_v50  ;;  %v14066_v55 = vld [vmem:[#allocation4 + $0x111] sm:$0xff] }
0x2852   :  { %21663 = vmatprep.subr.bf16.mxu1 %v27393_v54 }
0x2854   :  { %19880 = vmatmul.mubr.f32.gmra.mrb[208].mxu1 %v14062_v39 }
0x2855   :  { %21671 = vmatpush3.bf16.msra.mxu1 %v27393_v54  ;;  %19882 = vmatprep.mubr.f32.mxu1 %v14063_v27  ;;  %v14254_v54 = vld [vmem:[#allocation4 + $0x92] sm:$0xff] }
0x2856   :  { %21664 = vmatprep.subr.bf16.mxu1 %v27403_v37 }
0x2858   :  { %19883 = vmatmul.mubr.f32.gmra.mrb[210].mxu1 %v14064_v51 }
0x2859   :  { %21672 = vmatpush3.bf16.msra.mxu1 %v27403_v37  ;;  %19885 = vmatprep.mubr.f32.mxu1 %v14065_v48  ;;  %v14262_v37 = vld [vmem:[#allocation4 + $0x132] sm:$0xff] }
0x285a   :  { %21665 = vmatprep.subr.bf16.mxu1 %v27413_v26 }
0x285c   :  { %19886 = vmatmul.mubr.f32.gmra.mrb[212].mxu1 %v14066_v55 }
0x285d   :  { %21673 = vmatpush3.bf16.msra.mxu1 %v27413_v26  ;;  %19888 = vmatprep.mubr.f32.mxu1 %v27627_v42  ;;  %v15439_v42 = vld [vmem:[%s28123_s22] ss:$0 sm:$0xff] }
0x285e   :  { %21666 = vmatprep.subr.bf16.mxu1 %v27423_v33 }
0x2860   :  { %19889 = vmatmul.mubr.f32.gmra.mrb[214].mxu1 %v14068_v1 }
0x2861   :  { %21674 = vmatpush3.bf16.msra.mxu1 %v27423_v33  ;;  %19926 = vmatprep.mubr.f32.mxu1 %v27739_v31 }
0x2864   :  { %19927 = vmatmul.mubr.f32.vlgmr.msra.gmra.mrb[202].mxu1 %v27742_v52 }
0x2865   :  { %19929 = vmatprep.mubr.f32.mxu1 %v27751_v0 }
0x2868   :  { %19930 = vmatmul.mubr.f32.gmra.mrb[204].mxu1 %v27754_v34 }
0x2869   :  { %19932 = vmatprep.mubr.f32.mxu1 %v27965_v29 }
0x286c   :  { %19933 = vmatmul.mubr.f32.gmra.mrb[206].mxu1 %v14254_v54 }
0x286d   :  { %19935 = vmatprep.mubr.f32.mxu1 %v27772_v11 }
0x2870   :  { %19936 = vmatmul.mubr.f32.gmra.mrb[208].mxu1 %v27775_v30 }
0x2871   :  { %19938 = vmatprep.mubr.f32.mxu1 %v27784_v46 }
0x2874   :  { %19939 = vmatmul.mubr.f32.gmra.mrb[210].mxu1 %v27787_v14 }
0x2875   :  { %19941 = vmatprep.mubr.f32.mxu1 %v27796_v2 }
0x2878   :  { %19942 = vmatmul.mubr.f32.gmra.mrb[212].mxu1 %v27799_v57 }
0x2879   :  { %19944 = vmatprep.mubr.f32.mxu1 %v27999_v6 }
0x287c   :  { %19945 = vmatmul.mubr.f32.gmra.mrb[214].mxu1 %v14262_v37 }
0x2917   :  { %v19869_v26 = vpop.f32.mrb[200].mxu1 }
0x2918   :  { %v21675_v33 = vadd.f32 %v28025_v43, %v19869_v26  ;;  %v14152_v31 = vpop.f32.mrb[201].mxu1 }
0x2919   :  { %v21676_v52 = vadd.f32 %v28033_v53, %v14152_v31 }
0x291a   :  { %v14449_v34 = vadd.f32 %v21675_v33, %v15439_v42 }
0x291b   :  { %v14448_v0 = vadd.f32 %v21676_v52, %v15439_v42 }
0x291d   :  { %14464 = vxpose.xlu0.b32.start [1/16] (narrow) %v14448_v0, 8 }
0x2921   :  { %14465 = vxpose.xlu0.b32.cont [2/16] (narrow) %v14449_v34, 8 }
0x2937   :  { %v19928_v11 = vpop.f32.mrb[202].mxu1 }
0x2938   :  { %v14356_v30 = vpop.f32.mrb[203].mxu1  ;;  %v14451_v57 = vadd.f32 %v19928_v11, %v15439_v42 }
0x2939   :  { %v14450_v46 = vadd.f32 %v15439_v42, %v14356_v30 }
0x293b   :  { %14466 = vxpose.xlu0.b32.cont [3/16] (narrow) %v14450_v46, 8  ;;  %v19931_v14 = vpop.f32.mrb[204].mxu1 }
0x293c   :  { %v14366_v2 = vpop.f32.mrb[205].mxu1  ;;  %v14453_v47 = vadd.f32 %v19931_v14, %v15439_v42 }
0x293d   :  { %v14452_v16 = vadd.f32 %v15439_v42, %v14366_v2 }
0x293f   :  { %14467 = vxpose.xlu0.b32.cont [4/16] (narrow) %v14451_v57, 8  ;;  %v19934_v29 = vpop.f32.mrb[206].mxu1 }
0x2940   :  { %v14376_v20 = vpop.f32.mrb[207].mxu1  ;;  %v14455_v21 = vadd.f32 %v19934_v29, %v15439_v42 }
0x2941   :  { %v14454_v7 = vadd.f32 %v15439_v42, %v14376_v20 }
0x2943   :  { %14468 = vxpose.xlu0.b32.cont [5/16] (narrow) %v14452_v16, 8  ;;  %v19937_v63 = vpop.f32.mrb[208].mxu1 }
0x2944   :  { %v14386_v62 = vpop.f32.mrb[209].mxu1  ;;  %v14457_v43 = vadd.f32 %v19937_v63, %v15439_v42 }
0x2945   :  { %v14456_v56 = vadd.f32 %v15439_v42, %v14386_v62 }
0x2947   :  { %14469 = vxpose.xlu0.b32.cont [6/16] (narrow) %v14453_v47, 8  ;;  %v19940_v3 = vpop.f32.mrb[210].mxu1 }
0x2948   :  { %v14459_v35 = vadd.f32 %v19940_v3, %v15439_v42  ;;  %v14396_v61 = vpop.f32.mrb[211].mxu1 }
0x2949   :  { %v14458_v15 = vadd.f32 %v15439_v42, %v14396_v61 }
0x294b   :  { %14470 = vxpose.xlu0.b32.cont [7/16] (narrow) %v14454_v7, 8  ;;  %v19943_v6 = vpop.f32.mrb[212].mxu1 }
0x294c   :  { %v14461_v58 = vadd.f32 %v19943_v6, %v15439_v42  ;;  %v14406_v59 = vpop.f32.mrb[213].mxu1 }
0x294d   :  { %v14460_v40 = vadd.f32 %v15439_v42, %v14406_v59 }
0x294f   :  { %14471 = vxpose.xlu0.b32.cont [8/16] (narrow) %v14455_v21, 8  ;;  %v19946_v5 = vpop.f32.mrb[214].mxu1 }
0x2950   :  { %v14463_v22 = vadd.f32 %v19946_v5, %v15439_v42  ;;  %v14416_v12 = vpop.f32.mrb[215].mxu1 }
0x2951   :  { %v14462_v8 = vadd.f32 %v15439_v42, %v14416_v12 }
0x2953   :  { %14472 = vxpose.xlu0.b32.cont [9/16] (narrow) %v14456_v56, 8 }
0x2957   :  { %14473 = vxpose.xlu0.b32.cont [10/16] (narrow) %v14457_v43, 8 }
0x295b   :  { %14474 = vxpose.xlu0.b32.cont [11/16] (narrow) %v14458_v15, 8 }
0x295f   :  { %14475 = vxpose.xlu0.b32.cont [12/16] (narrow) %v14459_v35, 8 }
0x2963   :  { %14476 = vxpose.xlu0.b32.cont [13/16] (narrow) %v14460_v40, 8 }
0x2967   :  { %14477 = vxpose.xlu0.b32.cont [14/16] (narrow) %v14461_v58, 8 }
0x296b   :  { %14478 = vxpose.xlu0.b32.cont [15/16] (narrow) %v14462_v8, 8 }
0x296f   :  { %14479 = vxpose.xlu0.b32.end [16/16] (narrow) %v14463_v22, 8 }
0x29b3   :  { %v14480_v44 = vpop.trf.xlu0 }
0x29b4   :  { %14496 = vst [vmem:[%s28124_s23] sm:$0x7] %v14480_v44 }

</bundles_post_ra>
